<compile_context>
chip_gen: v6e
topology: v6e:2x2x1
jax: 0.10.0
libtpu: 0.0.40
codegen_flags: <defaults>
</compile_context>

<pallas_src>
import jax
import jax.numpy as jnp
from jax.experimental import pallas as pl
from jax.experimental.pallas import tpu as pltpu


# ---------------------------------------------------------------------------
# Kernel 1: conv1(1->16, k3, pad0) + bias + ReLU + 2x2 max-pool, fused (VPU only).
#
#  xrep : (B, 100, 400)  row = phase*25 + r  (phase = rp*2 + cp, input parities),
#                        xrep[b, phase*25+r, s*16+c] = x[b, 2r+rp, 2s+cp]  (c = 16x lane rep)
#  w    : (9, 384)       w[ki*3+kj, q*16+c] = conv1_w[c, 0, ki, kj]        (tiled over q)
#  bias : (1, 384)       bias[0, q*16+c]    = conv1_b[c]
#  out  : (B, 24, 384)   out[b, p, q*16+c]  = maxpool2(relu(conv1(x)+b))[b, p, q, c]
# ---------------------------------------------------------------------------
def _conv1_relu_pool_kernel(x_ref, w_ref, b_ref, o_ref):
    pooled = None
    for d in range(2):            # pool-phase row offset
        for e in range(2):        # pool-phase col offset
            acc = None
            for ki in range(3):
                for kj in range(3):
                    a, bb = d + ki, e + kj
                    row0 = ((a % 2) * 2 + (bb % 2)) * 25 + a // 2
                    col0 = (bb // 2) * 16
                    t = ki * 3 + kj
                    term = (x_ref[0, row0:row0 + 24, col0:col0 + 384]
                            * w_ref[t:t + 1, :])
                    acc = term if acc is None else acc + term
            pooled = acc if pooled is None else jnp.maximum(pooled, acc)
    o_ref[0] = jnp.maximum(pooled + b_ref[...], 0.0)


def conv1_relu_pool(xrep, w_rows, b_row):
    B = xrep.shape[0]
    return pl.pallas_call(
        _conv1_relu_pool_kernel,
        out_shape=jax.ShapeDtypeStruct((B, 24, 384), jnp.float32),
        grid=(B,),
        in_specs=[
            pl.BlockSpec((1, 100, 400), lambda b: (b, 0, 0)),
            pl.BlockSpec((9, 384), lambda b: (0, 0)),
            pl.BlockSpec((1, 384), lambda b: (0, 0)),
        ],
        out_specs=pl.BlockSpec((1, 24, 384), lambda b: (b, 0, 0)),
        compiler_params=pltpu.CompilerParams(dimension_semantics=("parallel",)),
    )(xrep, w_rows, b_row)


# ---------------------------------------------------------------------------
# Kernel 2: conv2(16->32, k5, pad2) + bias + ReLU + 2x2 max-pool, fused (one MXU
# matmul per image with the 4 pool phases folded into N = 4*32 = 128 lanes).
#
#  sp   : (B, 144, 576)  sp[b, p*12+q, (ri*6+rj)*16+ci] = pad2(y1)[b, 2p+ri, 2q+rj, ci]
#  w    : (576, 128)     w[(ri*6+rj)*16+ci, (d*2+e)*32+c] = conv2_w[c, ci, ri-d, rj-e] (0 outside)
#  bias : (1, 32)
#  out  : (B, 144, 32)   out[b, p*12+q, c] = maxpool2(relu(conv2(y1)+b))[b, p, q, c]
# ---------------------------------------------------------------------------
def _conv2_relu_pool_kernel(sp_ref, w_ref, b_ref, o_ref):
    y = jnp.dot(sp_ref[0], w_ref[...], preferred_element_type=jnp.float32)  # (144, 128)
    m = jnp.maximum(jnp.maximum(y[:, 0:32], y[:, 32:64]),
                    jnp.maximum(y[:, 64:96], y[:, 96:128]))
    o_ref[0] = jnp.maximum(m + b_ref[...], 0.0)


def conv2_relu_pool(sp, w_sp, b_row):
    B = sp.shape[0]
    return pl.pallas_call(
        _conv2_relu_pool_kernel,
        out_shape=jax.ShapeDtypeStruct((B, 144, 32), jnp.float32),
        grid=(B,),
        in_specs=[
            pl.BlockSpec((1, 144, 576), lambda b: (b, 0, 0)),
            pl.BlockSpec((576, 128), lambda b: (0, 0)),
            pl.BlockSpec((1, 32), lambda b: (0, 0)),
        ],
        out_specs=pl.BlockSpec((1, 144, 32), lambda b: (b, 0, 0)),
        compiler_params=pltpu.CompilerParams(dimension_semantics=("parallel",)),
    )(sp, w_sp, b_row)


# ---------------------------------------------------------------------------
# Kernel 3: Linear(4608 -> 13) + log_softmax, row-block grid over the batch.
# ---------------------------------------------------------------------------
def _linear_logsoftmax_kernel(x_ref, w_ref, b_ref, o_ref):
    logits = jnp.dot(x_ref[...], w_ref[...],
                     preferred_element_type=jnp.float32) + b_ref[...]
    m = jnp.max(logits, axis=-1, keepdims=True)
    s = logits - m
    o_ref[...] = s - jnp.log(jnp.sum(jnp.exp(s), axis=-1, keepdims=True))


def linear_logsoftmax(x, w, b, tb=128):
    B, K = x.shape
    N = w.shape[1]
    tb = min(tb, B)
    nb = pl.cdiv(B, tb)
    Bp = nb * tb
    if Bp != B:                       # no-op at small batch (tb == B)
        x = jnp.pad(x, ((0, Bp - B), (0, 0)))
    out = pl.pallas_call(
        _linear_logsoftmax_kernel,
        out_shape=jax.ShapeDtypeStruct((Bp, N), jnp.float32),
        grid=(nb,),
        in_specs=[
            pl.BlockSpec((tb, K), lambda i: (i, 0)),
            pl.BlockSpec((K, N), lambda i: (0, 0)),
            pl.BlockSpec((1, N), lambda i: (0, 0)),
        ],
        out_specs=pl.BlockSpec((tb, N), lambda i: (i, 0)),
        compiler_params=pltpu.CompilerParams(dimension_semantics=("parallel",)),
    )(x, w, b)
    return out[:B] if Bp != B else out


# ---------------------------------------------------------------------------
# One-time parameter preparation (outside the jitted forward).
# ---------------------------------------------------------------------------
def prepare_params(p):
    # conv1: (16,1,3,3) OIHW -> (ki*3+kj, c) -> lane-tiled rows (9, 384)
    w1 = jnp.transpose(p["conv1_w"][:, 0], (1, 2, 0)).reshape(9, 16)
    w1_rows = jnp.tile(w1, (1, 24))
    b1_row = jnp.tile(p["conv1_b"].reshape(1, 16), (1, 24))

    # conv2: (32,16,5,5) OIHW -> super-patch weight (576, 128) with the 4 pool
    # phases in the column (N) dimension; zero where the 5x5 tap falls outside.
    w2 = jnp.transpose(p["conv2_w"], (2, 3, 1, 0))                 # (ki,kj,ci,c)
    w2_sp = jnp.zeros((6, 6, 16, 2, 2, 32), jnp.float32)
    for d in range(2):
        for e in range(2):
            w2_sp = w2_sp.at[d:d + 5, e:e + 5, :, d, e, :].set(w2)
    w2_sp = w2_sp.reshape(576, 128)
    b2_row = p["conv2_b"].reshape(1, 32)

    # linear: permute columns from torch NCHW-flatten order to the kernel's NHWC
    # order and pre-transpose to (4608, 13) once, outside jit.
    lin_w_k = jnp.transpose(p["lin_w"].reshape(13, 32, 12, 12),
                            (2, 3, 1, 0)).reshape(4608, 13)
    lin_b_row = p["lin_b"].reshape(1, 13)

    return dict(w1_rows=w1_rows, b1_row=b1_row, w2_sp=w2_sp, b2_row=b2_row,
                lin_w_k=lin_w_k, lin_b_row=lin_b_row)


# ---------------------------------------------------------------------------
# Forward pass (XLA glue = tiny layout shuffles of the small input / patches).
# ---------------------------------------------------------------------------
def cnn_forward(x_nchw, kp):
    B = x_nchw.shape[0]
    x = x_nchw[:, 0].astype(jnp.float32)                               # (B, 50, 50)

    # stage-1 glue: pool-phase decomposition + 16x channel lane replication
    xph = jnp.stack([x[:, 0::2, 0::2], x[:, 0::2, 1::2],
                     x[:, 1::2, 0::2], x[:, 1::2, 1::2]], axis=1)      # (B,4,25,25)
    xrep = jnp.broadcast_to(xph[..., None],
                            (B, 4, 25, 25, 16)).reshape(B, 100, 400)
    y1 = conv1_relu_pool(xrep, kp["w1_rows"], kp["b1_row"])            # (B,24,384)
    y1 = y1.reshape(B, 24, 24, 16)                                     # NHWC (free)

    # stage-2 glue: "super-patch" im2col covering all four pool phases at once
    ypad = jnp.pad(y1, ((0, 0), (2, 2), (2, 2), (0, 0)))               # (B,28,28,16)
    cols = [ypad[:, ri:ri + 24:2, rj:rj + 24:2, :]
            for ri in range(6) for rj in range(6)]                     # 36 x (B,12,12,16)
    sp = jnp.stack(cols, axis=3).reshape(B, 144, 576)
    y2 = conv2_relu_pool(sp, kp["w2_sp"], kp["b2_row"])                # (B,144,32)

    # stage 3: Linear + log_softmax (weights already in NHWC column order)
    flat = y2.reshape(B, 144 * 32)                                     # (B, 4608), free
    return linear_logsoftmax(flat, kp["lin_w_k"], kp["lin_b_row"])


# ---------------------------------------------------------------------------
# Pure-JAX reference (for correctness check only)
# ---------------------------------------------------------------------------
def cnn_reference(x_nchw, params):
    x = jnp.transpose(x_nchw, (0, 2, 3, 1)).astype(jnp.float32)
    dn = ("NHWC", "HWIO", "NHWC")

    def conv(x, w_oihw, b, pad):
        w = jnp.transpose(w_oihw, (2, 3, 1, 0))
        y = jax.lax.conv_general_dilated(x, w, (1, 1),
                                         [(pad, pad), (pad, pad)],
                                         dimension_numbers=dn)
        return jax.nn.relu(y + b)

    def pool(x):
        return jax.lax.reduce_window(x, -jnp.inf, jax.lax.max,
                                     (1, 2, 2, 1), (1, 2, 2, 1), "VALID")

    y = pool(conv(x, params["conv1_w"], params["conv1_b"], 0))
    y = pool(conv(y, params["conv2_w"], params["conv2_b"], 2))
    flat = jnp.transpose(y, (0, 3, 1, 2)).reshape(y.shape[0], -1)
    logits = flat @ params["lin_w"].T + params["lin_b"]
    return jax.nn.log_softmax(logits, axis=1)


# ---------------------------------------------------------------------------
# Main
# ---------------------------------------------------------------------------
if __name__ == "__main__":
    key = jax.random.PRNGKey(0)
    ks = jax.random.split(key, 7)

    # Deterministic synthetic parameters with the shapes from CNN.__init__.
    params = {
        "conv1_w": 0.1 * jax.random.normal(ks[0], (16, 1, 3, 3), jnp.float32),
        "conv1_b": 0.1 * jax.random.normal(ks[1], (16,), jnp.float32),
        "conv2_w": 0.05 * jax.random.normal(ks[2], (32, 16, 5, 5), jnp.float32),
        "conv2_b": 0.1 * jax.random.normal(ks[3], (32,), jnp.float32),
        "lin_w": 0.02 * jax.random.normal(ks[4], (13, 32 * 12 * 12), jnp.float32),
        "lin_b": 0.1 * jax.random.normal(ks[5], (13,), jnp.float32),
    }

    # Input: 50x50 is required so the flattened conv2 output is 32*12*12.
    x = jax.random.normal(ks[6], (2, 1, 50, 50), jnp.float32)

    kp = prepare_params(params)                # one-time, outside jit
    out = jax.block_until_ready(jax.jit(cnn_forward)(x, kp))

    ref = jax.block_until_ready(cnn_reference(x, params))
    assert out.shape == (2, 13)
    assert jnp.allclose(out, ref, rtol=1e-4, atol=1e-4), "mismatch vs reference"

    print("KERNEL_OK")
</pallas_src>

<mosaic_0001>
module attributes {stable_mosaic.version = 11 : i64} {
  func.func @_conv1_relu_pool_kernel(%arg0: i32, %arg1: memref<1x100x400xf32, #tpu.memory_space<vmem>>, %arg2: memref<9x384xf32, #tpu.memory_space<vmem>>, %arg3: memref<1x384xf32, #tpu.memory_space<vmem>>, %arg4: memref<1x24x384xf32, #tpu.memory_space<vmem>>) attributes {dimension_semantics = [#tpu.dimension_semantics<parallel>], iteration_bounds = array<i64: 2>, scalar_prefetch = 0 : i64, scratch_operands = 0 : i64, tpu.core_type = #tpu.core_type<tc>, window_params = [{transform_indices = @transform_0, window_bounds = array<i64: 1, 100, 400>}, {pipeline_mode = #tpu.pipeline_mode<synchronous>, transform_indices = @transform_1, window_bounds = array<i64: 9, 384>}, {pipeline_mode = #tpu.pipeline_mode<synchronous>, transform_indices = @transform_2, window_bounds = array<i64: 1, 384>}, {transform_indices = @transform_3, window_bounds = array<i64: 1, 24, 384>}]} {
    %c0 = arith.constant 0 : index
    %c0_0 = arith.constant 0 : index
    %c0_1 = arith.constant 0 : index
    %0 = vector.load %arg1[%c0, %c0_0, %c0_1] : memref<1x100x400xf32, #tpu.memory_space<vmem>>, vector<1x24x384xf32>
    %1 = vector.shape_cast %0 : vector<1x24x384xf32> to vector<24x384xf32>
    %c0_2 = arith.constant 0 : index
    %c0_3 = arith.constant 0 : index
    %2 = vector.load %arg2[%c0_2, %c0_3] : memref<9x384xf32, #tpu.memory_space<vmem>>, vector<1x384xf32>
    %3 = vector.broadcast %2 : vector<1x384xf32> to vector<24x384xf32>
    %4 = arith.mulf %1, %3 : vector<24x384xf32>
    %c0_4 = arith.constant 0 : index
    %c25 = arith.constant 25 : index
    %c0_5 = arith.constant 0 : index
    %5 = vector.load %arg1[%c0_4, %c25, %c0_5] : memref<1x100x400xf32, #tpu.memory_space<vmem>>, vector<1x24x384xf32>
    %6 = vector.shape_cast %5 : vector<1x24x384xf32> to vector<24x384xf32>
    %c1 = arith.constant 1 : index
    %c0_6 = arith.constant 0 : index
    %7 = vector.load %arg2[%c1, %c0_6] : memref<9x384xf32, #tpu.memory_space<vmem>>, vector<1x384xf32>
    %8 = vector.broadcast %7 : vector<1x384xf32> to vector<24x384xf32>
    %9 = arith.mulf %6, %8 : vector<24x384xf32>
    %10 = arith.addf %4, %9 : vector<24x384xf32>
    %c0_7 = arith.constant 0 : index
    %c0_8 = arith.constant 0 : index
    %c16 = arith.constant 16 : index
    %11 = vector.load %arg1[%c0_7, %c0_8, %c16] : memref<1x100x400xf32, #tpu.memory_space<vmem>>, vector<1x24x384xf32>
    %12 = vector.shape_cast %11 : vector<1x24x384xf32> to vector<24x384xf32>
    %c2 = arith.constant 2 : index
    %c0_9 = arith.constant 0 : index
    %13 = vector.load %arg2[%c2, %c0_9] : memref<9x384xf32, #tpu.memory_space<vmem>>, vector<1x384xf32>
    %14 = vector.broadcast %13 : vector<1x384xf32> to vector<24x384xf32>
    %15 = arith.mulf %12, %14 : vector<24x384xf32>
    %16 = arith.addf %10, %15 : vector<24x384xf32>
    %c0_10 = arith.constant 0 : index
    %c50 = arith.constant 50 : index
    %c0_11 = arith.constant 0 : index
    %17 = vector.load %arg1[%c0_10, %c50, %c0_11] : memref<1x100x400xf32, #tpu.memory_space<vmem>>, vector<1x24x384xf32>
    %18 = vector.shape_cast %17 : vector<1x24x384xf32> to vector<24x384xf32>
    %c3 = arith.constant 3 : index
    %c0_12 = arith.constant 0 : index
    %19 = vector.load %arg2[%c3, %c0_12] : memref<9x384xf32, #tpu.memory_space<vmem>>, vector<1x384xf32>
    %20 = vector.broadcast %19 : vector<1x384xf32> to vector<24x384xf32>
    %21 = arith.mulf %18, %20 : vector<24x384xf32>
    %22 = arith.addf %16, %21 : vector<24x384xf32>
    %c0_13 = arith.constant 0 : index
    %c75 = arith.constant 75 : index
    %c0_14 = arith.constant 0 : index
    %23 = vector.load %arg1[%c0_13, %c75, %c0_14] : memref<1x100x400xf32, #tpu.memory_space<vmem>>, vector<1x24x384xf32>
    %24 = vector.shape_cast %23 : vector<1x24x384xf32> to vector<24x384xf32>
    %c4 = arith.constant 4 : index
    %c0_15 = arith.constant 0 : index
    %25 = vector.load %arg2[%c4, %c0_15] : memref<9x384xf32, #tpu.memory_space<vmem>>, vector<1x384xf32>
    %26 = vector.broadcast %25 : vector<1x384xf32> to vector<24x384xf32>
    %27 = arith.mulf %24, %26 : vector<24x384xf32>
    %28 = arith.addf %22, %27 : vector<24x384xf32>
    %c0_16 = arith.constant 0 : index
    %c50_17 = arith.constant 50 : index
    %c16_18 = arith.constant 16 : index
    %29 = vector.load %arg1[%c0_16, %c50_17, %c16_18] : memref<1x100x400xf32, #tpu.memory_space<vmem>>, vector<1x24x384xf32>
    %30 = vector.shape_cast %29 : vector<1x24x384xf32> to vector<24x384xf32>
    %c5 = arith.constant 5 : index
    %c0_19 = arith.constant 0 : index
    %31 = vector.load %arg2[%c5, %c0_19] : memref<9x384xf32, #tpu.memory_space<vmem>>, vector<1x384xf32>
    %32 = vector.broadcast %31 : vector<1x384xf32> to vector<24x384xf32>
    %33 = arith.mulf %30, %32 : vector<24x384xf32>
    %34 = arith.addf %28, %33 : vector<24x384xf32>
    %c0_20 = arith.constant 0 : index
    %c1_21 = arith.constant 1 : index
    %c0_22 = arith.constant 0 : index
    %35 = vector.load %arg1[%c0_20, %c1_21, %c0_22] : memref<1x100x400xf32, #tpu.memory_space<vmem>>, vector<1x24x384xf32>
    %36 = vector.shape_cast %35 : vector<1x24x384xf32> to vector<24x384xf32>
    %c6 = arith.constant 6 : index
    %c0_23 = arith.constant 0 : index
    %37 = vector.load %arg2[%c6, %c0_23] : memref<9x384xf32, #tpu.memory_space<vmem>>, vector<1x384xf32>
    %38 = vector.broadcast %37 : vector<1x384xf32> to vector<24x384xf32>
    %39 = arith.mulf %36, %38 : vector<24x384xf32>
    %40 = arith.addf %34, %39 : vector<24x384xf32>
    %c0_24 = arith.constant 0 : index
    %c26 = arith.constant 26 : index
    %c0_25 = arith.constant 0 : index
    %41 = vector.load %arg1[%c0_24, %c26, %c0_25] : memref<1x100x400xf32, #tpu.memory_space<vmem>>, vector<1x24x384xf32>
    %42 = vector.shape_cast %41 : vector<1x24x384xf32> to vector<24x384xf32>
    %c7 = arith.constant 7 : index
    %c0_26 = arith.constant 0 : index
    %43 = vector.load %arg2[%c7, %c0_26] : memref<9x384xf32, #tpu.memory_space<vmem>>, vector<1x384xf32>
    %44 = vector.broadcast %43 : vector<1x384xf32> to vector<24x384xf32>
    %45 = arith.mulf %42, %44 : vector<24x384xf32>
    %46 = arith.addf %40, %45 : vector<24x384xf32>
    %c0_27 = arith.constant 0 : index
    %c1_28 = arith.constant 1 : index
    %c16_29 = arith.constant 16 : index
    %47 = vector.load %arg1[%c0_27, %c1_28, %c16_29] : memref<1x100x400xf32, #tpu.memory_space<vmem>>, vector<1x24x384xf32>
    %48 = vector.shape_cast %47 : vector<1x24x384xf32> to vector<24x384xf32>
    %c8 = arith.constant 8 : index
    %c0_30 = arith.constant 0 : index
    %49 = vector.load %arg2[%c8, %c0_30] : memref<9x384xf32, #tpu.memory_space<vmem>>, vector<1x384xf32>
    %50 = vector.broadcast %49 : vector<1x384xf32> to vector<24x384xf32>
    %51 = arith.mulf %48, %50 : vector<24x384xf32>
    %52 = arith.addf %46, %51 : vector<24x384xf32>
    %c0_31 = arith.constant 0 : index
    %c25_32 = arith.constant 25 : index
    %c0_33 = arith.constant 0 : index
    %53 = vector.load %arg1[%c0_31, %c25_32, %c0_33] : memref<1x100x400xf32, #tpu.memory_space<vmem>>, vector<1x24x384xf32>
    %54 = vector.shape_cast %53 : vector<1x24x384xf32> to vector<24x384xf32>
    %c0_34 = arith.constant 0 : index
    %c0_35 = arith.constant 0 : index
    %55 = vector.load %arg2[%c0_34, %c0_35] : memref<9x384xf32, #tpu.memory_space<vmem>>, vector<1x384xf32>
    %56 = vector.broadcast %55 : vector<1x384xf32> to vector<24x384xf32>
    %57 = arith.mulf %54, %56 : vector<24x384xf32>
    %c0_36 = arith.constant 0 : index
    %c0_37 = arith.constant 0 : index
    %c16_38 = arith.constant 16 : index
    %58 = vector.load %arg1[%c0_36, %c0_37, %c16_38] : memref<1x100x400xf32, #tpu.memory_space<vmem>>, vector<1x24x384xf32>
    %59 = vector.shape_cast %58 : vector<1x24x384xf32> to vector<24x384xf32>
    %c1_39 = arith.constant 1 : index
    %c0_40 = arith.constant 0 : index
    %60 = vector.load %arg2[%c1_39, %c0_40] : memref<9x384xf32, #tpu.memory_space<vmem>>, vector<1x384xf32>
    %61 = vector.broadcast %60 : vector<1x384xf32> to vector<24x384xf32>
    %62 = arith.mulf %59, %61 : vector<24x384xf32>
    %63 = arith.addf %57, %62 : vector<24x384xf32>
    %c0_41 = arith.constant 0 : index
    %c25_42 = arith.constant 25 : index
    %c16_43 = arith.constant 16 : index
    %64 = vector.load %arg1[%c0_41, %c25_42, %c16_43] : memref<1x100x400xf32, #tpu.memory_space<vmem>>, vector<1x24x384xf32>
    %65 = vector.shape_cast %64 : vector<1x24x384xf32> to vector<24x384xf32>
    %c2_44 = arith.constant 2 : index
    %c0_45 = arith.constant 0 : index
    %66 = vector.load %arg2[%c2_44, %c0_45] : memref<9x384xf32, #tpu.memory_space<vmem>>, vector<1x384xf32>
    %67 = vector.broadcast %66 : vector<1x384xf32> to vector<24x384xf32>
    %68 = arith.mulf %65, %67 : vector<24x384xf32>
    %69 = arith.addf %63, %68 : vector<24x384xf32>
    %c0_46 = arith.constant 0 : index
    %c75_47 = arith.constant 75 : index
    %c0_48 = arith.constant 0 : index
    %70 = vector.load %arg1[%c0_46, %c75_47, %c0_48] : memref<1x100x400xf32, #tpu.memory_space<vmem>>, vector<1x24x384xf32>
    %71 = vector.shape_cast %70 : vector<1x24x384xf32> to vector<24x384xf32>
    %c3_49 = arith.constant 3 : index
    %c0_50 = arith.constant 0 : index
    %72 = vector.load %arg2[%c3_49, %c0_50] : memref<9x384xf32, #tpu.memory_space<vmem>>, vector<1x384xf32>
    %73 = vector.broadcast %72 : vector<1x384xf32> to vector<24x384xf32>
    %74 = arith.mulf %71, %73 : vector<24x384xf32>
    %75 = arith.addf %69, %74 : vector<24x384xf32>
    %c0_51 = arith.constant 0 : index
    %c50_52 = arith.constant 50 : index
    %c16_53 = arith.constant 16 : index
    %76 = vector.load %arg1[%c0_51, %c50_52, %c16_53] : memref<1x100x400xf32, #tpu.memory_space<vmem>>, vector<1x24x384xf32>
    %77 = vector.shape_cast %76 : vector<1x24x384xf32> to vector<24x384xf32>
    %c4_54 = arith.constant 4 : index
    %c0_55 = arith.constant 0 : index
    %78 = vector.load %arg2[%c4_54, %c0_55] : memref<9x384xf32, #tpu.memory_space<vmem>>, vector<1x384xf32>
    %79 = vector.broadcast %78 : vector<1x384xf32> to vector<24x384xf32>
    %80 = arith.mulf %77, %79 : vector<24x384xf32>
    %81 = arith.addf %75, %80 : vector<24x384xf32>
    %c0_56 = arith.constant 0 : index
    %c75_57 = arith.constant 75 : index
    %c16_58 = arith.constant 16 : index
    %82 = vector.load %arg1[%c0_56, %c75_57, %c16_58] : memref<1x100x400xf32, #tpu.memory_space<vmem>>, vector<1x24x384xf32>
    %83 = vector.shape_cast %82 : vector<1x24x384xf32> to vector<24x384xf32>
    %c5_59 = arith.constant 5 : index
    %c0_60 = arith.constant 0 : index
    %84 = vector.load %arg2[%c5_59, %c0_60] : memref<9x384xf32, #tpu.memory_space<vmem>>, vector<1x384xf32>
    %85 = vector.broadcast %84 : vector<1x384xf32> to vector<24x384xf32>
    %86 = arith.mulf %83, %85 : vector<24x384xf32>
    %87 = arith.addf %81, %86 : vector<24x384xf32>
    %c0_61 = arith.constant 0 : index
    %c26_62 = arith.constant 26 : index
    %c0_63 = arith.constant 0 : index
    %88 = vector.load %arg1[%c0_61, %c26_62, %c0_63] : memref<1x100x400xf32, #tpu.memory_space<vmem>>, vector<1x24x384xf32>
    %89 = vector.shape_cast %88 : vector<1x24x384xf32> to vector<24x384xf32>
    %c6_64 = arith.constant 6 : index
    %c0_65 = arith.constant 0 : index
    %90 = vector.load %arg2[%c6_64, %c0_65] : memref<9x384xf32, #tpu.memory_space<vmem>>, vector<1x384xf32>
    %91 = vector.broadcast %90 : vector<1x384xf32> to vector<24x384xf32>
    %92 = arith.mulf %89, %91 : vector<24x384xf32>
    %93 = arith.addf %87, %92 : vector<24x384xf32>
    %c0_66 = arith.constant 0 : index
    %c1_67 = arith.constant 1 : index
    %c16_68 = arith.constant 16 : index
    %94 = vector.load %arg1[%c0_66, %c1_67, %c16_68] : memref<1x100x400xf32, #tpu.memory_space<vmem>>, vector<1x24x384xf32>
    %95 = vector.shape_cast %94 : vector<1x24x384xf32> to vector<24x384xf32>
    %c7_69 = arith.constant 7 : index
    %c0_70 = arith.constant 0 : index
    %96 = vector.load %arg2[%c7_69, %c0_70] : memref<9x384xf32, #tpu.memory_space<vmem>>, vector<1x384xf32>
    %97 = vector.broadcast %96 : vector<1x384xf32> to vector<24x384xf32>
    %98 = arith.mulf %95, %97 : vector<24x384xf32>
    %99 = arith.addf %93, %98 : vector<24x384xf32>
    %c0_71 = arith.constant 0 : index
    %c26_72 = arith.constant 26 : index
    %c16_73 = arith.constant 16 : index
    %100 = vector.load %arg1[%c0_71, %c26_72, %c16_73] : memref<1x100x400xf32, #tpu.memory_space<vmem>>, vector<1x24x384xf32>
    %101 = vector.shape_cast %100 : vector<1x24x384xf32> to vector<24x384xf32>
    %c8_74 = arith.constant 8 : index
    %c0_75 = arith.constant 0 : index
    %102 = vector.load %arg2[%c8_74, %c0_75] : memref<9x384xf32, #tpu.memory_space<vmem>>, vector<1x384xf32>
    %103 = vector.broadcast %102 : vector<1x384xf32> to vector<24x384xf32>
    %104 = arith.mulf %101, %103 : vector<24x384xf32>
    %105 = arith.addf %99, %104 : vector<24x384xf32>
    %106 = arith.maximumf %52, %105 : vector<24x384xf32>
    %c0_76 = arith.constant 0 : index
    %c50_77 = arith.constant 50 : index
    %c0_78 = arith.constant 0 : index
    %107 = vector.load %arg1[%c0_76, %c50_77, %c0_78] : memref<1x100x400xf32, #tpu.memory_space<vmem>>, vector<1x24x384xf32>
    %108 = vector.shape_cast %107 : vector<1x24x384xf32> to vector<24x384xf32>
    %c0_79 = arith.constant 0 : index
    %c0_80 = arith.constant 0 : index
    %109 = vector.load %arg2[%c0_79, %c0_80] : memref<9x384xf32, #tpu.memory_space<vmem>>, vector<1x384xf32>
    %110 = vector.broadcast %109 : vector<1x384xf32> to vector<24x384xf32>
    %111 = arith.mulf %108, %110 : vector<24x384xf32>
    %c0_81 = arith.constant 0 : index
    %c75_82 = arith.constant 75 : index
    %c0_83 = arith.constant 0 : index
    %112 = vector.load %arg1[%c0_81, %c75_82, %c0_83] : memref<1x100x400xf32, #tpu.memory_space<vmem>>, vector<1x24x384xf32>
    %113 = vector.shape_cast %112 : vector<1x24x384xf32> to vector<24x384xf32>
    %c1_84 = arith.constant 1 : index
    %c0_85 = arith.constant 0 : index
    %114 = vector.load %arg2[%c1_84, %c0_85] : memref<9x384xf32, #tpu.memory_space<vmem>>, vector<1x384xf32>
    %115 = vector.broadcast %114 : vector<1x384xf32> to vector<24x384xf32>
    %116 = arith.mulf %113, %115 : vector<24x384xf32>
    %117 = arith.addf %111, %116 : vector<24x384xf32>
    %c0_86 = arith.constant 0 : index
    %c50_87 = arith.constant 50 : index
    %c16_88 = arith.constant 16 : index
    %118 = vector.load %arg1[%c0_86, %c50_87, %c16_88] : memref<1x100x400xf32, #tpu.memory_space<vmem>>, vector<1x24x384xf32>
    %119 = vector.shape_cast %118 : vector<1x24x384xf32> to vector<24x384xf32>
    %c2_89 = arith.constant 2 : index
    %c0_90 = arith.constant 0 : index
    %120 = vector.load %arg2[%c2_89, %c0_90] : memref<9x384xf32, #tpu.memory_space<vmem>>, vector<1x384xf32>
    %121 = vector.broadcast %120 : vector<1x384xf32> to vector<24x384xf32>
    %122 = arith.mulf %119, %121 : vector<24x384xf32>
    %123 = arith.addf %117, %122 : vector<24x384xf32>
    %c0_91 = arith.constant 0 : index
    %c1_92 = arith.constant 1 : index
    %c0_93 = arith.constant 0 : index
    %124 = vector.load %arg1[%c0_91, %c1_92, %c0_93] : memref<1x100x400xf32, #tpu.memory_space<vmem>>, vector<1x24x384xf32>
    %125 = vector.shape_cast %124 : vector<1x24x384xf32> to vector<24x384xf32>
    %c3_94 = arith.constant 3 : index
    %c0_95 = arith.constant 0 : index
    %126 = vector.load %arg2[%c3_94, %c0_95] : memref<9x384xf32, #tpu.memory_space<vmem>>, vector<1x384xf32>
    %127 = vector.broadcast %126 : vector<1x384xf32> to vector<24x384xf32>
    %128 = arith.mulf %125, %127 : vector<24x384xf32>
    %129 = arith.addf %123, %128 : vector<24x384xf32>
    %c0_96 = arith.constant 0 : index
    %c26_97 = arith.constant 26 : index
    %c0_98 = arith.constant 0 : index
    %130 = vector.load %arg1[%c0_96, %c26_97, %c0_98] : memref<1x100x400xf32, #tpu.memory_space<vmem>>, vector<1x24x384xf32>
    %131 = vector.shape_cast %130 : vector<1x24x384xf32> to vector<24x384xf32>
    %c4_99 = arith.constant 4 : index
    %c0_100 = arith.constant 0 : index
    %132 = vector.load %arg2[%c4_99, %c0_100] : memref<9x384xf32, #tpu.memory_space<vmem>>, vector<1x384xf32>
    %133 = vector.broadcast %132 : vector<1x384xf32> to vector<24x384xf32>
    %134 = arith.mulf %131, %133 : vector<24x384xf32>
    %135 = arith.addf %129, %134 : vector<24x384xf32>
    %c0_101 = arith.constant 0 : index
    %c1_102 = arith.constant 1 : index
    %c16_103 = arith.constant 16 : index
    %136 = vector.load %arg1[%c0_101, %c1_102, %c16_103] : memref<1x100x400xf32, #tpu.memory_space<vmem>>, vector<1x24x384xf32>
    %137 = vector.shape_cast %136 : vector<1x24x384xf32> to vector<24x384xf32>
    %c5_104 = arith.constant 5 : index
    %c0_105 = arith.constant 0 : index
    %138 = vector.load %arg2[%c5_104, %c0_105] : memref<9x384xf32, #tpu.memory_space<vmem>>, vector<1x384xf32>
    %139 = vector.broadcast %138 : vector<1x384xf32> to vector<24x384xf32>
    %140 = arith.mulf %137, %139 : vector<24x384xf32>
    %141 = arith.addf %135, %140 : vector<24x384xf32>
    %c0_106 = arith.constant 0 : index
    %c51 = arith.constant 51 : index
    %c0_107 = arith.constant 0 : index
    %142 = vector.load %arg1[%c0_106, %c51, %c0_107] : memref<1x100x400xf32, #tpu.memory_space<vmem>>, vector<1x24x384xf32>
    %143 = vector.shape_cast %142 : vector<1x24x384xf32> to vector<24x384xf32>
    %c6_108 = arith.constant 6 : index
    %c0_109 = arith.constant 0 : index
    %144 = vector.load %arg2[%c6_108, %c0_109] : memref<9x384xf32, #tpu.memory_space<vmem>>, vector<1x384xf32>
    %145 = vector.broadcast %144 : vector<1x384xf32> to vector<24x384xf32>
    %146 = arith.mulf %143, %145 : vector<24x384xf32>
    %147 = arith.addf %141, %146 : vector<24x384xf32>
    %c0_110 = arith.constant 0 : index
    %c76 = arith.constant 76 : index
    %c0_111 = arith.constant 0 : index
    %148 = vector.load %arg1[%c0_110, %c76, %c0_111] : memref<1x100x400xf32, #tpu.memory_space<vmem>>, vector<1x24x384xf32>
    %149 = vector.shape_cast %148 : vector<1x24x384xf32> to vector<24x384xf32>
    %c7_112 = arith.constant 7 : index
    %c0_113 = arith.constant 0 : index
    %150 = vector.load %arg2[%c7_112, %c0_113] : memref<9x384xf32, #tpu.memory_space<vmem>>, vector<1x384xf32>
    %151 = vector.broadcast %150 : vector<1x384xf32> to vector<24x384xf32>
    %152 = arith.mulf %149, %151 : vector<24x384xf32>
    %153 = arith.addf %147, %152 : vector<24x384xf32>
    %c0_114 = arith.constant 0 : index
    %c51_115 = arith.constant 51 : index
    %c16_116 = arith.constant 16 : index
    %154 = vector.load %arg1[%c0_114, %c51_115, %c16_116] : memref<1x100x400xf32, #tpu.memory_space<vmem>>, vector<1x24x384xf32>
    %155 = vector.shape_cast %154 : vector<1x24x384xf32> to vector<24x384xf32>
    %c8_117 = arith.constant 8 : index
    %c0_118 = arith.constant 0 : index
    %156 = vector.load %arg2[%c8_117, %c0_118] : memref<9x384xf32, #tpu.memory_space<vmem>>, vector<1x384xf32>
    %157 = vector.broadcast %156 : vector<1x384xf32> to vector<24x384xf32>
    %158 = arith.mulf %155, %157 : vector<24x384xf32>
    %159 = arith.addf %153, %158 : vector<24x384xf32>
    %160 = arith.maximumf %106, %159 : vector<24x384xf32>
    %c0_119 = arith.constant 0 : index
    %c75_120 = arith.constant 75 : index
    %c0_121 = arith.constant 0 : index
    %161 = vector.load %arg1[%c0_119, %c75_120, %c0_121] : memref<1x100x400xf32, #tpu.memory_space<vmem>>, vector<1x24x384xf32>
    %162 = vector.shape_cast %161 : vector<1x24x384xf32> to vector<24x384xf32>
    %c0_122 = arith.constant 0 : index
    %c0_123 = arith.constant 0 : index
    %163 = vector.load %arg2[%c0_122, %c0_123] : memref<9x384xf32, #tpu.memory_space<vmem>>, vector<1x384xf32>
    %164 = vector.broadcast %163 : vector<1x384xf32> to vector<24x384xf32>
    %165 = arith.mulf %162, %164 : vector<24x384xf32>
    %c0_124 = arith.constant 0 : index
    %c50_125 = arith.constant 50 : index
    %c16_126 = arith.constant 16 : index
    %166 = vector.load %arg1[%c0_124, %c50_125, %c16_126] : memref<1x100x400xf32, #tpu.memory_space<vmem>>, vector<1x24x384xf32>
    %167 = vector.shape_cast %166 : vector<1x24x384xf32> to vector<24x384xf32>
    %c1_127 = arith.constant 1 : index
    %c0_128 = arith.constant 0 : index
    %168 = vector.load %arg2[%c1_127, %c0_128] : memref<9x384xf32, #tpu.memory_space<vmem>>, vector<1x384xf32>
    %169 = vector.broadcast %168 : vector<1x384xf32> to vector<24x384xf32>
    %170 = arith.mulf %167, %169 : vector<24x384xf32>
    %171 = arith.addf %165, %170 : vector<24x384xf32>
    %c0_129 = arith.constant 0 : index
    %c75_130 = arith.constant 75 : index
    %c16_131 = arith.constant 16 : index
    %172 = vector.load %arg1[%c0_129, %c75_130, %c16_131] : memref<1x100x400xf32, #tpu.memory_space<vmem>>, vector<1x24x384xf32>
    %173 = vector.shape_cast %172 : vector<1x24x384xf32> to vector<24x384xf32>
    %c2_132 = arith.constant 2 : index
    %c0_133 = arith.constant 0 : index
    %174 = vector.load %arg2[%c2_132, %c0_133] : memref<9x384xf32, #tpu.memory_space<vmem>>, vector<1x384xf32>
    %175 = vector.broadcast %174 : vector<1x384xf32> to vector<24x384xf32>
    %176 = arith.mulf %173, %175 : vector<24x384xf32>
    %177 = arith.addf %171, %176 : vector<24x384xf32>
    %c0_134 = arith.constant 0 : index
    %c26_135 = arith.constant 26 : index
    %c0_136 = arith.constant 0 : index
    %178 = vector.load %arg1[%c0_134, %c26_135, %c0_136] : memref<1x100x400xf32, #tpu.memory_space<vmem>>, vector<1x24x384xf32>
    %179 = vector.shape_cast %178 : vector<1x24x384xf32> to vector<24x384xf32>
    %c3_137 = arith.constant 3 : index
    %c0_138 = arith.constant 0 : index
    %180 = vector.load %arg2[%c3_137, %c0_138] : memref<9x384xf32, #tpu.memory_space<vmem>>, vector<1x384xf32>
    %181 = vector.broadcast %180 : vector<1x384xf32> to vector<24x384xf32>
    %182 = arith.mulf %179, %181 : vector<24x384xf32>
    %183 = arith.addf %177, %182 : vector<24x384xf32>
    %c0_139 = arith.constant 0 : index
    %c1_140 = arith.constant 1 : index
    %c16_141 = arith.constant 16 : index
    %184 = vector.load %arg1[%c0_139, %c1_140, %c16_141] : memref<1x100x400xf32, #tpu.memory_space<vmem>>, vector<1x24x384xf32>
    %185 = vector.shape_cast %184 : vector<1x24x384xf32> to vector<24x384xf32>
    %c4_142 = arith.constant 4 : index
    %c0_143 = arith.constant 0 : index
    %186 = vector.load %arg2[%c4_142, %c0_143] : memref<9x384xf32, #tpu.memory_space<vmem>>, vector<1x384xf32>
    %187 = vector.broadcast %186 : vector<1x384xf32> to vector<24x384xf32>
    %188 = arith.mulf %185, %187 : vector<24x384xf32>
    %189 = arith.addf %183, %188 : vector<24x384xf32>
    %c0_144 = arith.constant 0 : index
    %c26_145 = arith.constant 26 : index
    %c16_146 = arith.constant 16 : index
    %190 = vector.load %arg1[%c0_144, %c26_145, %c16_146] : memref<1x100x400xf32, #tpu.memory_space<vmem>>, vector<1x24x384xf32>
    %191 = vector.shape_cast %190 : vector<1x24x384xf32> to vector<24x384xf32>
    %c5_147 = arith.constant 5 : index
    %c0_148 = arith.constant 0 : index
    %192 = vector.load %arg2[%c5_147, %c0_148] : memref<9x384xf32, #tpu.memory_space<vmem>>, vector<1x384xf32>
    %193 = vector.broadcast %192 : vector<1x384xf32> to vector<24x384xf32>
    %194 = arith.mulf %191, %193 : vector<24x384xf32>
    %195 = arith.addf %189, %194 : vector<24x384xf32>
    %c0_149 = arith.constant 0 : index
    %c76_150 = arith.constant 76 : index
    %c0_151 = arith.constant 0 : index
    %196 = vector.load %arg1[%c0_149, %c76_150, %c0_151] : memref<1x100x400xf32, #tpu.memory_space<vmem>>, vector<1x24x384xf32>
    %197 = vector.shape_cast %196 : vector<1x24x384xf32> to vector<24x384xf32>
    %c6_152 = arith.constant 6 : index
    %c0_153 = arith.constant 0 : index
    %198 = vector.load %arg2[%c6_152, %c0_153] : memref<9x384xf32, #tpu.memory_space<vmem>>, vector<1x384xf32>
    %199 = vector.broadcast %198 : vector<1x384xf32> to vector<24x384xf32>
    %200 = arith.mulf %197, %199 : vector<24x384xf32>
    %201 = arith.addf %195, %200 : vector<24x384xf32>
    %c0_154 = arith.constant 0 : index
    %c51_155 = arith.constant 51 : index
    %c16_156 = arith.constant 16 : index
    %202 = vector.load %arg1[%c0_154, %c51_155, %c16_156] : memref<1x100x400xf32, #tpu.memory_space<vmem>>, vector<1x24x384xf32>
    %203 = vector.shape_cast %202 : vector<1x24x384xf32> to vector<24x384xf32>
    %c7_157 = arith.constant 7 : index
    %c0_158 = arith.constant 0 : index
    %204 = vector.load %arg2[%c7_157, %c0_158] : memref<9x384xf32, #tpu.memory_space<vmem>>, vector<1x384xf32>
    %205 = vector.broadcast %204 : vector<1x384xf32> to vector<24x384xf32>
    %206 = arith.mulf %203, %205 : vector<24x384xf32>
    %207 = arith.addf %201, %206 : vector<24x384xf32>
    %c0_159 = arith.constant 0 : index
    %c76_160 = arith.constant 76 : index
    %c16_161 = arith.constant 16 : index
    %208 = vector.load %arg1[%c0_159, %c76_160, %c16_161] : memref<1x100x400xf32, #tpu.memory_space<vmem>>, vector<1x24x384xf32>
    %209 = vector.shape_cast %208 : vector<1x24x384xf32> to vector<24x384xf32>
    %c8_162 = arith.constant 8 : index
    %c0_163 = arith.constant 0 : index
    %210 = vector.load %arg2[%c8_162, %c0_163] : memref<9x384xf32, #tpu.memory_space<vmem>>, vector<1x384xf32>
    %211 = vector.broadcast %210 : vector<1x384xf32> to vector<24x384xf32>
    %212 = arith.mulf %209, %211 : vector<24x384xf32>
    %213 = arith.addf %207, %212 : vector<24x384xf32>
    %214 = arith.maximumf %160, %213 : vector<24x384xf32>
    %c0_164 = arith.constant 0 : index
    %c0_165 = arith.constant 0 : index
    %215 = vector.load %arg3[%c0_164, %c0_165] : memref<1x384xf32, #tpu.memory_space<vmem>>, vector<1x384xf32>
    %216 = vector.broadcast %215 : vector<1x384xf32> to vector<24x384xf32>
    %217 = arith.addf %214, %216 : vector<24x384xf32>
    %cst = arith.constant 0.000000e+00 : f32
    %218 = vector.broadcast %cst : f32 to vector<24x384xf32>
    %219 = arith.maximumf %217, %218 : vector<24x384xf32>
    %c0_166 = arith.constant 0 : index
    %c0_167 = arith.constant 0 : index
    %c0_168 = arith.constant 0 : index
    %220 = vector.load %arg4[%c0_166, %c0_167, %c0_168] : memref<1x24x384xf32, #tpu.memory_space<vmem>>, vector<1x24x384xf32>
    %221 = vector.shape_cast %220 : vector<1x24x384xf32> to vector<24x384xf32>
    %222 = vector.shape_cast %219 : vector<24x384xf32> to vector<1x24x384xf32>
    tpu.vector_store %arg4[%c0_166, %c0_167, %c0_168], %222 {strides = array<i32>} : memref<1x24x384xf32, #tpu.memory_space<vmem>>, vector<1x24x384xf32>,
    return
  }
  func.func @transform_0(%arg0: i32) -> (i32, i32, i32) {
    %c0_i32 = arith.constant 0 : i32
    %c0_i32_0 = arith.constant 0 : i32
    %c0_i32_1 = arith.constant 0 : i32
    return %arg0, %c0_i32, %c0_i32_0 : i32, i32, i32
  }
  func.func @transform_1(%arg0: i32) -> (i32, i32) {
    %c0_i32 = arith.constant 0 : i32
    %c0_i32_0 = arith.constant 0 : i32
    %c0_i32_1 = arith.constant 0 : i32
    return %c0_i32, %c0_i32_0 : i32, i32
  }
  func.func @transform_2(%arg0: i32) -> (i32, i32) {
    %c0_i32 = arith.constant 0 : i32
    %c0_i32_0 = arith.constant 0 : i32
    %c0_i32_1 = arith.constant 0 : i32
    return %c0_i32, %c0_i32_0 : i32, i32
  }
  func.func @transform_3(%arg0: i32) -> (i32, i32, i32) {
    %c0_i32 = arith.constant 0 : i32
    %c0_i32_0 = arith.constant 0 : i32
    %c0_i32_1 = arith.constant 0 : i32
    return %arg0, %c0_i32, %c0_i32_0 : i32, i32, i32
  }
}

module attributes {stable_mosaic.version = 11 : i64} {
  func.func @_conv2_relu_pool_kernel(%arg0: i32, %arg1: memref<1x144x576xf32, #tpu.memory_space<vmem>>, %arg2: memref<576x128xf32, #tpu.memory_space<vmem>>, %arg3: memref<1x32xf32, #tpu.memory_space<vmem>>, %arg4: memref<1x144x32xf32, #tpu.memory_space<vmem>>) attributes {dimension_semantics = [#tpu.dimension_semantics<parallel>], iteration_bounds = array<i64: 2>, scalar_prefetch = 0 : i64, scratch_operands = 0 : i64, tpu.core_type = #tpu.core_type<tc>, window_params = [{transform_indices = @transform_0, window_bounds = array<i64: 1, 144, 576>}, {pipeline_mode = #tpu.pipeline_mode<synchronous>, transform_indices = @transform_1, window_bounds = array<i64: 576, 128>}, {pipeline_mode = #tpu.pipeline_mode<synchronous>, transform_indices = @transform_2, window_bounds = array<i64: 1, 32>}, {transform_indices = @transform_3, window_bounds = array<i64: 1, 144, 32>}]} {
    %c0 = arith.constant 0 : index
    %c0_0 = arith.constant 0 : index
    %c0_1 = arith.constant 0 : index
    %0 = vector.load %arg1[%c0, %c0_0, %c0_1] : memref<1x144x576xf32, #tpu.memory_space<vmem>>, vector<1x144x576xf32>
    %1 = vector.shape_cast %0 : vector<1x144x576xf32> to vector<144x576xf32>
    %c0_2 = arith.constant 0 : index
    %c0_3 = arith.constant 0 : index
    %2 = vector.load %arg2[%c0_2, %c0_3] : memref<576x128xf32, #tpu.memory_space<vmem>>, vector<576x128xf32>
    %cst = arith.constant dense<0.000000e+00> : vector<144x128xf32>
    %3 = tpu.matmul %1, %2, %cst {dimension_numbers = #tpu.dot_dimension_numbers<[1], [0], [0], [1], [0, 0, 1, 1], [], []>} : vector<144x576xf32>, vector<576x128xf32>, vector<144x128xf32> -> vector<144x128xf32>
    %4 = vector.extract_strided_slice %3 {offsets = [0, 0], sizes = [144, 32], strides = [1, 1]} : vector<144x128xf32> to vector<144x32xf32>
    %5 = vector.extract_strided_slice %3 {offsets = [0, 32], sizes = [144, 32], strides = [1, 1]} : vector<144x128xf32> to vector<144x32xf32>
    %6 = arith.maximumf %4, %5 : vector<144x32xf32>
    %7 = vector.extract_strided_slice %3 {offsets = [0, 64], sizes = [144, 32], strides = [1, 1]} : vector<144x128xf32> to vector<144x32xf32>
    %8 = vector.extract_strided_slice %3 {offsets = [0, 96], sizes = [144, 32], strides = [1, 1]} : vector<144x128xf32> to vector<144x32xf32>
    %9 = arith.maximumf %7, %8 : vector<144x32xf32>
    %10 = arith.maximumf %6, %9 : vector<144x32xf32>
    %c0_4 = arith.constant 0 : index
    %c0_5 = arith.constant 0 : index
    %11 = vector.load %arg3[%c0_4, %c0_5] : memref<1x32xf32, #tpu.memory_space<vmem>>, vector<1x32xf32>
    %12 = vector.broadcast %11 : vector<1x32xf32> to vector<144x32xf32>
    %13 = arith.addf %10, %12 : vector<144x32xf32>
    %cst_6 = arith.constant 0.000000e+00 : f32
    %14 = vector.broadcast %cst_6 : f32 to vector<144x32xf32>
    %15 = arith.maximumf %13, %14 : vector<144x32xf32>
    %c0_7 = arith.constant 0 : index
    %c0_8 = arith.constant 0 : index
    %c0_9 = arith.constant 0 : index
    %16 = vector.load %arg4[%c0_7, %c0_8, %c0_9] : memref<1x144x32xf32, #tpu.memory_space<vmem>>, vector<1x144x32xf32>
    %17 = vector.shape_cast %16 : vector<1x144x32xf32> to vector<144x32xf32>
    %18 = vector.shape_cast %15 : vector<144x32xf32> to vector<1x144x32xf32>
    tpu.vector_store %arg4[%c0_7, %c0_8, %c0_9], %18 {strides = array<i32>} : memref<1x144x32xf32, #tpu.memory_space<vmem>>, vector<1x144x32xf32>,
    return
  }
  func.func @transform_0(%arg0: i32) -> (i32, i32, i32) {
    %c0_i32 = arith.constant 0 : i32
    %c0_i32_0 = arith.constant 0 : i32
    %c0_i32_1 = arith.constant 0 : i32
    return %arg0, %c0_i32, %c0_i32_0 : i32, i32, i32
  }
  func.func @transform_1(%arg0: i32) -> (i32, i32) {
    %c0_i32 = arith.constant 0 : i32
    %c0_i32_0 = arith.constant 0 : i32
    %c0_i32_1 = arith.constant 0 : i32
    return %c0_i32, %c0_i32_0 : i32, i32
  }
  func.func @transform_2(%arg0: i32) -> (i32, i32) {
    %c0_i32 = arith.constant 0 : i32
    %c0_i32_0 = arith.constant 0 : i32
    %c0_i32_1 = arith.constant 0 : i32
    return %c0_i32, %c0_i32_0 : i32, i32
  }
  func.func @transform_3(%arg0: i32) -> (i32, i32, i32) {
    %c0_i32 = arith.constant 0 : i32
    %c0_i32_0 = arith.constant 0 : i32
    %c0_i32_1 = arith.constant 0 : i32
    return %arg0, %c0_i32, %c0_i32_0 : i32, i32, i32
  }
}

module attributes {stable_mosaic.version = 11 : i64} {
  func.func @_linear_logsoftmax_kernel(%arg0: i32, %arg1: memref<2x4608xf32, #tpu.memory_space<vmem>>, %arg2: memref<4608x13xf32, #tpu.memory_space<vmem>>, %arg3: memref<1x13xf32, #tpu.memory_space<vmem>>, %arg4: memref<2x13xf32, #tpu.memory_space<vmem>>) attributes {dimension_semantics = [#tpu.dimension_semantics<parallel>], iteration_bounds = array<i64: 1>, scalar_prefetch = 0 : i64, scratch_operands = 0 : i64, tpu.core_type = #tpu.core_type<tc>, window_params = [{transform_indices = @transform_0, window_bounds = array<i64: 2, 4608>}, {pipeline_mode = #tpu.pipeline_mode<synchronous>, transform_indices = @transform_1, window_bounds = array<i64: 4608, 13>}, {pipeline_mode = #tpu.pipeline_mode<synchronous>, transform_indices = @transform_2, window_bounds = array<i64: 1, 13>}, {transform_indices = @transform_3, window_bounds = array<i64: 2, 13>}]} {
    %c0 = arith.constant 0 : index
    %c0_0 = arith.constant 0 : index
    %0 = vector.load %arg1[%c0, %c0_0] : memref<2x4608xf32, #tpu.memory_space<vmem>>, vector<2x4608xf32>
    %c0_1 = arith.constant 0 : index
    %c0_2 = arith.constant 0 : index
    %1 = vector.load %arg2[%c0_1, %c0_2] : memref<4608x13xf32, #tpu.memory_space<vmem>>, vector<4608x13xf32>
    %cst = arith.constant dense<0.000000e+00> : vector<2x13xf32>
    %2 = tpu.matmul %0, %1, %cst {dimension_numbers = #tpu.dot_dimension_numbers<[1], [0], [0], [1], [0, 0, 1, 1], [], []>} : vector<2x4608xf32>, vector<4608x13xf32>, vector<2x13xf32> -> vector<2x13xf32>
    %c0_3 = arith.constant 0 : index
    %c0_4 = arith.constant 0 : index
    %3 = vector.load %arg3[%c0_3, %c0_4] : memref<1x13xf32, #tpu.memory_space<vmem>>, vector<1x13xf32>
    %4 = vector.broadcast %3 : vector<1x13xf32> to vector<2x13xf32>
    %5 = arith.addf %2, %4 : vector<2x13xf32>
    %cst_5 = arith.constant dense<0xFF800000> : vector<2xf32>
    %6 = vector.multi_reduction <maximumf>, %5, %cst_5 [1] : vector<2x13xf32> to vector<2xf32>
    %7 = vector.shape_cast %6 : vector<2xf32> to vector<2x1xf32>
    %8 = vector.broadcast %7 : vector<2x1xf32> to vector<2x13xf32>
    %9 = arith.subf %5, %8 : vector<2x13xf32>
    %10 = math.exp %9 : vector<2x13xf32>
    %cst_6 = arith.constant dense<0.000000e+00> : vector<2xf32>
    %11 = vector.multi_reduction <add>, %10, %cst_6 [1] : vector<2x13xf32> to vector<2xf32>
    %12 = vector.shape_cast %11 : vector<2xf32> to vector<2x1xf32>
    %13 = math.log %12 : vector<2x1xf32>
    %14 = vector.broadcast %13 : vector<2x1xf32> to vector<2x13xf32>
    %15 = arith.subf %9, %14 : vector<2x13xf32>
    %c0_7 = arith.constant 0 : index
    %c0_8 = arith.constant 0 : index
    %16 = vector.load %arg4[%c0_7, %c0_8] : memref<2x13xf32, #tpu.memory_space<vmem>>, vector<2x13xf32>
    tpu.vector_store %arg4[%c0_7, %c0_8], %15 {strides = array<i32>} : memref<2x13xf32, #tpu.memory_space<vmem>>, vector<2x13xf32>,
    return
  }
  func.func @transform_0(%arg0: i32) -> (i32, i32) {
    %c0_i32 = arith.constant 0 : i32
    %c0_i32_0 = arith.constant 0 : i32
    return %arg0, %c0_i32 : i32, i32
  }
  func.func @transform_1(%arg0: i32) -> (i32, i32) {
    %c0_i32 = arith.constant 0 : i32
    %c0_i32_0 = arith.constant 0 : i32
    %c0_i32_1 = arith.constant 0 : i32
    return %c0_i32, %c0_i32_0 : i32, i32
  }
  func.func @transform_2(%arg0: i32) -> (i32, i32) {
    %c0_i32 = arith.constant 0 : i32
    %c0_i32_0 = arith.constant 0 : i32
    %c0_i32_1 = arith.constant 0 : i32
    return %c0_i32, %c0_i32_0 : i32, i32
  }
  func.func @transform_3(%arg0: i32) -> (i32, i32) {
    %c0_i32 = arith.constant 0 : i32
    %c0_i32_0 = arith.constant 0 : i32
    return %arg0, %c0_i32 : i32, i32
  }
}

</mosaic_0001>

<bundles_post_ra>
// kernel: cnn_forward.3
= control target key start
LH: loop header
LB: loop body
LE: loop exit
PB: predicated region body
PF: predicated region fallthrough
CT: control target
= control target key end

     0   :  { %8 = vsyncpa [#allocation3], 0  ;;  %s8946_s0 = inlined_call_operand.vmem [shape: f32[2,100,400], index: 0, kind: input, shape index: {}]   ;;  %s8947_s1 = inlined_call_operand.hbm [shape: f32[9,384], index: 1, kind: input, shape index: {}]   ;;  %s8948_s2 = inlined_call_operand.hbm [shape: f32[1,384], index: 2, kind: input, shape index: {}]   ;;  %s8949_s3 = inlined_call_operand.vmem [shape: f32[2,24,384], index: 3, kind: output, shape index: {}]  }
   0x1   :  { %9 = vsyncpa [#allocation5], 0  ;;  %s4084_s12 = smov 0  }
   0x2 LB: > { %s4090_s13 = sadd.s32 4294967295, %s4056_s12   ;;  %p3795_p0 = scmp.ge.s32.totalorder %s4056_s12, 1  ;;  %s4056_s12 = sphi %s4084_s12, %s15_s12  }
   0x3   : > { %p114_p1 = scmp.lt.s32.totalorder %s4056_s12, 3  ;;  %s4058_s14 = smov [#allocation2]  }
   0x4   : > { %s126_s15 = sshll.u32 %s4058_s14, 4  ;;  %p3823_p3 = scmp.eq.s32.totalorder %s4090_s13, 0  ;;  %s127_s15 = int_to_ptr.vmem [resolvable:$true] %s126_s15 }
   0x5   : > { %p4094_p2 = pnand %p3795_p0, %p114_p1  ;;  %s4059_s17 = smov [#allocation4]  }
   0x6   : > { %s140_s18 = sshll.u32 %s4059_s17, 4  ;;  %s4001_s20 = scalar_lea.vmem %s127_s15, 768  ;;  %s141_s18 = int_to_ptr.vmem [resolvable:$true] %s140_s18 }
   0x7   : > { %p3816_p4 = pneg %p4094_p2  ;;  %p4002_p7 = scmp.ne.s32.totalorder %s127_s15, %s4001_s20 }
   0x8   : > { %p4009_p10 = scmp.lt.s32.totalorder %s127_s15, %s127_s15  ;;  %p4010_p11 = scmp.lt.s32.totalorder %s4001_s20, %s4001_s20 }
   0x9   : > { %p4103_p5 = pnand %p3823_p3, %p3816_p4 }
   0xa   : > { %p4011_p12 = por %p4010_p11, %p4009_p10 }
   0xb   : > { %p3992_p6 = pneg %p4103_p5 }
   0xd   : > { %p4004_p8 = pnand %p4002_p7, %p3992_p6 }
   0xf   : > { %p4005_p9 = pneg %p4004_p8 }
  0x11   : > { %p4012_p13 = pnand %p4011_p12, %p4005_p9 }
  0x13   : > { %4015 = shalt.err (!%p4012_p13)
}
  0x14   : > { %s4060_s21 = smov 384   ;;  %s4061_s22 = smov 24  }
  0x15   : > { %3819 = dma.hbm_to_vmem [thread:$0]  (!%p4103_p5), %s8947_s1, 768, %s127_s15, [#allocation3], %s4060_s21, %s4060_s21, %s4061_s22  }
  0x16   : > { %s4027_s25 = scalar_lea.vmem %s141_s18, 48  ;;  %s4034_s26 = scalar_lea.vmem %s141_s18, 64 }
  0x17   : > { %p4028_p0 = scmp.ne.s32.totalorder %s141_s18, %s4027_s25  ;;  %p4035_p7 = scmp.lt.s32.totalorder %s141_s18, %s141_s18 }
  0x18   : > { %p4036_p8 = scmp.lt.s32.totalorder %s4034_s26, %s4027_s25 }
  0x19   : > { %p4030_p1 = pnand %p4028_p0, %p3992_p6 }
  0x1a   : > { %p4037_p9 = por %p4036_p8, %p4035_p7 }
  0x1b   : > { %p4031_p4 = pneg %p4030_p1 }
  0x1d   : > { %p4038_p10 = pnand %p4037_p9, %p4031_p4 }
  0x1f   : > { %4041 = shalt.err (!%p4038_p10)
}
  0x20   : > { %3822 = dma.hbm_to_vmem [thread:$0]  (!%p4103_p5), %s8948_s2, 48, %s141_s18, [#allocation5]  }
  0x21   : > { %161 = sbr.rel (%p4094_p2) target bundleno = 1111 (0x457), region = 32 }
  0x26   : > { %4047 = dma.done.wait (%p3823_p3), [#allocation3], 768  }
  0x27   : > { %4049 = vsyncadd (%p3823_p3), [#allocation3], 4294966528 }
  0x28   : > { %4051 = dma.done.wait (%p3823_p3), [#allocation5], 48  }
  0x29   : > { %4053 = vsyncadd (%p3823_p3), [#allocation5], 4294967248  ;;  %v210_v0 = vlaneseq  ;;  %v332_v5 = vld [vmem:[#allocation2 + $0x2] ss:$8 sm:$0x7]  ;;  %s4062_s29 = smov 16  }
  0x2a   : > { %v628_v6 = vld [vmem:[#allocation2 + $0x5] ss:$8 sm:$0x7]  ;;  %v942_v13 = vld [vmem:[#allocation2 + $0x18] ss:$8 sm:$0x7] }
  0x2b   : > { %v211_v1 = vshrl.u32 %v210_v0, 7  ;;  %v247_v16 = vld [vmem:[#allocation2 + $0x1] ss:$8 sm:$0x7]  ;;  %p189_p2 = scmp.lt.s32.totalorder %s4090_s13, 1  ;;  %s4063_s7 = smov 112  }
  0x2c   : > { %vm352_vm0 = vcmask 130048   ;;  %vm489_vm1 = vcmask 1045504   ;;  %vm288_vm2 = vcmask 1046528   ;;  %vm1127_vm3 = vcmask 1040384  }
  0x2d   : > { %v4135_v2 = vsub.s32 2, %v211_v1  ;;  %v4137_v3 = vsub.s32 0, %v211_v1  ;;  %v4139_v4 = vsub.s32 1, %v211_v1  ;;  %s10333_s13 = smov (!%p189_p2, %s4090_s13), 1  ;;  %vm583_vm4 = vcmask 1044480  }
  0x2e   : > { %s3806_s30 = smul.u32 416, %s10333_s13  ;;  %vm407_vm5 = vcmask 916480   ;;  %vm3097_vm6 = vcmask 1041408  }
  0x2f   : > { %9282 = vst [vmem:[#allocation8_spill] sm:$0xff] %v4135_v2  ;;  %9283 = vst [vmem:[#allocation9_spill] sm:$0xff] %v4137_v3  ;;  %v345_v7 = vrot.slane %v332_v5, %v4135_v2  ;;  %v337_v8 = vrot.slane %v332_v5, %v4137_v3  ;;  %v341_v9 = vrot.slane %v332_v5, %v4139_v4  ;;  %s3807_s8 = smul.u32 72, %s10333_s13 }
  0x30   : > { %9284 = vst [vmem:[#allocation10_spill] sm:$0xff] %v4139_v4  ;;  %v633_v10 = vrot.slane %v628_v6, %v4137_v3  ;;  %v637_v11 = vrot.slane %v628_v6, %v4139_v4  ;;  %v641_v12 = vrot.slane %v628_v6, %v4135_v2  ;;  %v947_v14 = vrot.slane %v942_v13, %v4137_v3  ;;  %s4182_s6 = scalar_lea.vmem %s8946_s0, %s3806_s30 }
  0x31   : > { %350 = vrot.lane.b32.xlu1 %v345_v7, %s4062_s29  ;;  %346 = vrot.lane.b32.xlu0 %v337_v8, %s4062_s29  ;;  %v951_v15 = vrot.slane %v942_v13, %v4139_v4  ;;  %v955_v17 = vrot.slane %v942_v13, %v4135_v2  ;;  %v4159_v18 = vrot.slane %v247_v16, %v4137_v3  ;;  %v328_v21 = vld [vmem:[%s4182_s6 + $0x18] sm:$0xff]  ;;  %v199_v22 = vld [vmem:[%s4182_s6] sm:$0xff]  ;;  %s8881_s11 = scalar_lea.vmem %s8949_s3, %s3807_s8 }
  0x32   : > { %v4163_v19 = vrot.slane %v247_v16, %v4139_v4  ;;  %v4168_v20 = vrot.slane %v247_v16, %v4135_v2  ;;  %v4193_v27 = vld [vmem:[%s4182_s6 + $0x38] sm:$0xff]  ;;  %v4196_v28 = vld [vmem:[%s4182_s6 + $0x20] sm:$0xff]  ;;  %v4226_v40 = vld [vmem:[%s4182_s6 + $0x10] sm:$0xff] }
  0x33   : > { %9285 = vst [vmem:[#allocation11_spill] sm:$0xff] %v4159_v18  ;;  %v4207_v32 = vld [vmem:[%s4182_s6 + $0x58] sm:$0xff]  ;;  %v4210_v33 = vld [vmem:[%s4182_s6 + $0x40] sm:$0xff]  ;;  %v4240_v45 = vld [vmem:[%s4182_s6 + $0x8] sm:$0xff] }
  0x34   : > { %9286 = vst [vmem:[#allocation12_spill] sm:$0xff] %v4163_v19  ;;  %9287 = vst [vmem:[#allocation13_spill] sm:$0xff] %v4168_v20  ;;  %v234_v39 = vld [vmem:[%s4182_s6 + $0x60] sm:$0xfe]  ;;  %v4243_v46 = vld [vmem:[%s4182_s6 + $0x30] sm:$0xff] }
  0x35   : > { %348 = vrot.lane.b32.xlu0 %v341_v9, %s4062_s29  ;;  %642 = vrot.lane.b32.xlu1 %v633_v10, %s4062_s29  ;;  %v4254_v50 = vld [vmem:[%s4182_s6 + $0x28] sm:$0xff]  ;;  %v4257_v51 = vld [vmem:[%s4182_s6 + $0x50] sm:$0xff] }
  0x36   : > { %v4268_v55 = vld [vmem:[%s4182_s6 + $0x48] sm:$0xff]  ;;  %v4288_v63 = vld [vmem:[%s4182_s6 + $0xc0] sm:$0xfc]  ;;  %v4305_v8 = vld [vmem:[%s4182_s6 + $0xd8] sm:$0xfc] }
  0x37   : > { %v235_v56 = vld [vmem:[%s4182_s6 + $0x68] sm:$0xfe]  ;;  %v4300_v6 = vld [vmem:[%s4182_s6 + $0xe0] sm:$0xff]  ;;  %v4308_v9 = vld [vmem:[%s4182_s6 + $0xf8] sm:$0xff] }
  0x38   : > { %v4323_v13 = vld [vmem:[%s4182_s6 + $0x100] sm:$0xff] }
  0x39   : > { %644 = vrot.lane.b32.xlu0 %v637_v11, %s4062_s29  ;;  %646 = vrot.lane.b32.xlu1 %v641_v12, %s4062_s29 }
  0x3d   : > { %956 = vrot.lane.b32.xlu0 %v947_v14, %s4062_s29  ;;  %958 = vrot.lane.b32.xlu1 %v951_v15, %s4062_s29 }
  0x41   : > { %960 = vrot.lane.b32.xlu0 %v955_v17, %s4062_s29  ;;  %1091 = vrot.lane.b32.xlu1 %v4159_v18, %s4062_s29 }
  0x45   : > { %1093 = vrot.lane.b32.xlu0 %v4163_v19, %s4062_s29  ;;  %1095 = vrot.lane.b32.xlu1 %v4168_v20, %s4062_s29 }
  0xa3   : > { %v4186_v23 = vpop.permute.xlu1 %350  ;;  %v4188_v24 = vpop.permute.xlu0 %346 }
  0xa4   : > { %9288 = vst [vmem:[#allocation14_spill] sm:$0xff] %v4186_v23  ;;  %9289 = vst [vmem:[#allocation15_spill] sm:$0xff] %v4188_v24  ;;  %v362_v25 = vmul.f32 %v4186_v23, %v328_v21  ;;  %v359_v26 = vmul.f32 %v4188_v24, %v199_v22  ;;  %v366_v30 = vmul.f32 %v4186_v23, %v4193_v27 }
  0xa5   : > { %v363_v31 = vmul.f32 %v4188_v24, %v4196_v28  ;;  %v370_v36 = vmul.f32 %v4186_v23, %v4207_v32  ;;  %v367_v37 = vmul.f32 %v4188_v24, %v4210_v33  ;;  %v1220_v42 = vmul.f32 %v4188_v24, %v234_v39  ;;  %v4348_v39 = vld [vmem:[%s4182_s6 + $0x138] sm:$0x3] }
  0xa6   : > { %389 = vrot.lane.b32.xlu0 %v362_v25, %s4063_s7  ;;  %383 = vrot.lane.b32.xlu1 %v359_v26, %s4063_s7 }
  0xa7   : > { %v4200_v29 = vpop.permute.xlu1 %642  ;;  %v349_v34 = vpop.permute.xlu0 %348 }
  0xa8   : > { %9290 = vst [vmem:[#allocation16_spill] sm:$0xff] %v4200_v29  ;;  %v4222_v38 = vsel %vm352_vm0, %v349_v34, %v4186_v23  ;;  %v4237_v44 = vsel %vm352_vm0, %v4188_v24, %v349_v34  ;;  %v654_v7 = vmul.f32 %v4200_v29, %v4288_v63  ;;  %v658_v10 = vmul.f32 %v4200_v29, %v4300_v6  ;;  %v4343_v34 = vld [vmem:[%s4182_s6 + $0x120] sm:$0x3] }
  0xa9   : > { %9292 = vst [vmem:[#allocation18_spill] sm:$0xff] %v4222_v38  ;;  %v361_v43 = vmul.f32 %v4222_v38, %v4226_v40  ;;  %9293 = vst [vmem:[#allocation19_spill] sm:$0xff] %v4237_v44  ;;  %v360_v48 = vmul.f32 %v4237_v44, %v4240_v45  ;;  %v365_v49 = vmul.f32 %v4222_v38, %v4243_v46 }
  0xaa   : > { %397 = vrot.lane.b32.xlu0 %v366_v30, %s4063_s7  ;;  %391 = vrot.lane.b32.xlu1 %v363_v31, %s4063_s7  ;;  %v364_v53 = vmul.f32 %v4237_v44, %v4254_v50  ;;  %v369_v54 = vmul.f32 %v4222_v38, %v4257_v51  ;;  %v368_v58 = vmul.f32 %v4237_v44, %v4268_v55  ;;  %v686_v17 = vrot.slane %v654_v7, 2 }
  0xab   : > { %v4214_v35 = vpop.permute.xlu1 %646  ;;  %v1221_v59 = vmul.f32 %v4237_v44, %v235_v56  ;;  %v4282_v61 = vpop.permute.xlu0 %644  ;;  %v687_v25 = vrot.slane %v658_v10, 2  ;;  %v4367_v10 = vld [vmem:[%s4182_s6] sm:$0xfe] }
  0xac   : > { %9291 = vst [vmem:[#allocation17_spill] sm:$0xff] %v4214_v35  ;;  %v657_v11 = vmul.f32 %v4214_v35, %v4305_v8  ;;  %v661_v12 = vmul.f32 %v4214_v35, %v4308_v9 }
  0xae   : > { %405 = vrot.lane.b32.xlu0 %v370_v36, %s4063_s7  ;;  %399 = vrot.lane.b32.xlu1 %v367_v37, %s4063_s7  ;;  %v695_v26 = vrot.slane %v657_v11, 2  ;;  %v696_v30 = vrot.slane %v661_v12, 2  ;;  %v666_v37 = vmul.f32 %v4200_v29, %v4343_v34 }
  0xaf   : > { %v4230_v41 = vpop.permute.xlu1 %958  ;;  %v4325_v14 = vpop.permute.xlu0 %956 }
  0xb0   : > { %9296 = vst [vmem:[#allocation22_spill] sm:$0xff] %v4325_v14  ;;  %v706_v7 = vrot.slane %v666_v37, 2 }
  0xb2   : > { %1252 = vrot.lane.b32.xlu0 %v1220_v42, %s4063_s7  ;;  %387 = vrot.lane.b32.xlu1 %v361_v43, %s4063_s7  ;;  %v688_v42 = vsel %vm489_vm1, %v686_v17, %v687_v25  ;;  %v697_v43 = vsel %vm489_vm1, %v695_v26, %v696_v30  ;;  %v968_v17 = vmul.f32 %v4325_v14, %v4367_v10 }
  0xb3   : > { %v4247_v47 = vpop.permute.xlu1 %1091 }
  0xb4   : > { %9294 = vst [vmem:[#allocation20_spill] sm:$0xff] %v4247_v47  ;;  %v4280_v60 = vmul.f32 %v4247_v47, %v199_v22  ;;  %v4293_v1 = vmul.f32 %v4247_v47, %v4210_v33  ;;  %v4332_v22 = vld [vmem:[%s4182_s6 + $0x118] sm:$0xff] }
  0xb5   : > { %v665_v31 = vmul.f32 %v4214_v35, %v4332_v22 }
  0xb6   : > { %385 = vrot.lane.b32.xlu0 %v360_v48, %s4063_s7  ;;  %395 = vrot.lane.b32.xlu1 %v365_v49, %s4063_s7  ;;  %v1128_v0 = vrot.slane %v4280_v60, 7  ;;  %v1140_v15 = vrot.slane %v4293_v1, 7  ;;  %v669_v49 = vmul.f32 %v4214_v35, %v4348_v39  ;;  %v4453_v60 = vld [vmem:[%s4182_s6 + $0xd0] sm:$0xfc] }
  0xb7   : > { %v4261_v52 = vpop.permute.xlu1 %1095  ;;  %v704_v48 = vrot.slane %v665_v31, 2 }
  0xb8   : > { %9295 = vst [vmem:[#allocation21_spill] sm:$0xff] %v4261_v52  ;;  %v4274_v57 = vmul.f32 %v4261_v52, %v328_v21  ;;  %v4297_v5 = vmul.f32 %v4261_v52, %v4207_v32  ;;  %v662_v21 = vmul.f32 %v4200_v29, %v4323_v13  ;;  %v712_v12 = vrot.slane %v669_v49, 2 }
  0xb9   : > { %v705_v11 = vsel %vm489_vm1, %v696_v30, %v704_v48  ;;  %v976_v30 = vmul.f32 %v4325_v14, %v4210_v33 }
  0xba   : > { %393 = vrot.lane.b32.xlu0 %v364_v53, %s4063_s7  ;;  %403 = vrot.lane.b32.xlu1 %v369_v54, %s4063_s7  ;;  %v1131_v62 = vrot.slane %v4274_v57, 7  ;;  %v1146_v16 = vrot.slane %v4297_v5, 7  ;;  %v698_v36 = vrot.slane %v662_v21, 2  ;;  %v4354_v53 = vpop.permute.xlu0 %960  ;;  %v4359_v54 = vld [vmem:[%s4182_s6 + $0x18] sm:$0xfe]  ;;  %v972_v21 = vmul.f32 %v4325_v14, %v4196_v28 }
  0xbb   : > { %9297 = vst [vmem:[#allocation23_spill] sm:$0xff] %v4354_v53  ;;  %v971_v56 = vmul.f32 %v4354_v53, %v4359_v54  ;;  %v713_v37 = vsel %vm489_vm1, %v704_v48, %v712_v12  ;;  %v979_v49 = vmul.f32 %v4354_v53, %v4207_v32 }
  0xbc   : > { %v707_v31 = vsel %vm489_vm1, %v698_v36, %v706_v7 }
  0xbd   : > { %v1009_v26 = vrot.slane %v971_v56, 1  ;;  %v1018_v7 = vrot.slane %v979_v49, 1  ;;  %v1107_v49 = vmul.f32 %v4247_v47, %v4196_v28 }
  0xbe   : > { %401 = vrot.lane.b32.xlu0 %v368_v58, %s4063_s7  ;;  %1254 = vrot.lane.b32.xlu1 %v1221_v59, %s4063_s7  ;;  %v975_v58 = vmul.f32 %v4354_v53, %v4193_v27  ;;  %v699_v59 = vsel %vm489_vm1, %v687_v25, %v698_v36  ;;  %v1012_v36 = vrot.slane %v976_v30, 1 }
  0xc0   : > { %v1010_v25 = vrot.slane %v975_v58, 1  ;;  %v4386_v58 = vld [vmem:[%s4182_s6 + $0x60] sm:$0x1] }
  0xc1   : > { %v980_v33 = vmul.f32 %v4325_v14, %v4386_v58 }
  0xc2   : > { %1148 = vrot.lane.b32.xlu0 %v1128_v0, %s4063_s7  ;;  %1154 = vrot.lane.b32.xlu1 %v1131_v62, %s4063_s7  ;;  %v1011_v56 = vsel %vm288_vm2, %v1009_v26, %v1010_v25 }
  0xc6   : > { %1172 = vrot.lane.b32.xlu0 %v1140_v15, %s4063_s7  ;;  %1178 = vrot.lane.b32.xlu1 %v1146_v16, %s4063_s7 }
  0xca   : > { %714 = vrot.lane.b32.xlu0 %v688_v42, %s4063_s7  ;;  %720 = vrot.lane.b32.xlu1 %v697_v43, %s4063_s7  ;;  %v1000_v42 = vrot.slane %v968_v17, 1  ;;  %v1001_v43 = vrot.slane %v972_v21, 1  ;;  %v1020_v17 = vrot.slane %v980_v33, 1  ;;  %v1019_v21 = vsel %vm288_vm2, %v1010_v25, %v1018_v7 }
  0xcb   : > { %v1132_v33 = vrot.slane %v1107_v49, 7  ;;  %v4491_v49 = vld [vmem:[%s4182_s6 + $0x110] sm:$0xff] }
  0xcc   : > { %v1002_v48 = vsel %vm288_vm2, %v1000_v42, %v1001_v43  ;;  %v1013_v12 = vsel %vm288_vm2, %v1001_v43, %v1012_v36  ;;  %v1021_v43 = vsel %vm288_vm2, %v1012_v36, %v1020_v17  ;;  %v4443_v36 = vsel %vm352_vm0, %v4282_v61, %v4214_v35 }
  0xcd   : > { %9301 = vst [vmem:[#allocation27_spill] sm:$0xff] %v4443_v36  ;;  %v1141_v17 = vsel %vm1127_vm3, %v1132_v33, %v1140_v15 }
  0xce   : > { %722 = vrot.lane.b32.xlu0 %v699_v59, %s4063_s7  ;;  %728 = vrot.lane.b32.xlu1 %v705_v11, %s4063_s7  ;;  %v4389_v59 = vld [vmem:[%s4182_s6 + $0x78] sm:$0x1]  ;;  %v1094_v11 = vpop.permute.xlu0 %1093 }
  0xcf   : > { %9298 = vst [vmem:[#allocation24_spill] sm:$0xff] %v4389_v59  ;;  %v983_v32 = vmul.f32 %v4354_v53, %v4389_v59  ;;  %v4406_v30 = vsel %vm352_vm0, %v4247_v47, %v1094_v11 }
  0xd0   : > { %9300 = vst [vmem:[#allocation26_spill] sm:$0xff] %v4406_v30  ;;  %v4416_v25 = vmul.f32 %v4406_v30, %v4240_v45 }
  0xd1   : > { %v1026_v26 = vrot.slane %v983_v32, 1 }
  0xd2   : > { %730 = vrot.lane.b32.xlu0 %v707_v31, %s4063_s7  ;;  %736 = vrot.lane.b32.xlu1 %v713_v37, %s4063_s7  ;;  %v4402_v31 = vsel %vm352_vm0, %v1094_v11, %v4261_v52  ;;  %v8952_v45 = vrot.slane %v4416_v25, 7  ;;  %v4471_v11 = vld [vmem:[%s4182_s6 + $0xc8] sm:$0xfc] }
  0xd3   : > { %9299 = vst [vmem:[#allocation25_spill] sm:$0xff] %v4402_v31  ;;  %v4412_v37 = vmul.f32 %v4402_v31, %v4226_v40  ;;  %v1027_v42 = vsel %vm288_vm2, %v1018_v7, %v1026_v26  ;;  %v4448_v7 = vsel %vm352_vm0, %v4200_v29, %v4282_v61  ;;  %v4460_v57 = vmul.f32 %v4402_v31, %v4257_v51 }
  0xd4   : > { %9302 = vst [vmem:[#allocation28_spill] sm:$0xff] %v4448_v7  ;;  %v656_v61 = vmul.f32 %v4443_v36, %v4453_v60  ;;  %v655_v26 = vmul.f32 %v4448_v7, %v4471_v11 }
  0xd5   : > { %v8953_v40 = vrot.slane %v4412_v37, 7  ;;  %v8951_v1 = vrot.slane %v4460_v57, 7 }
  0xd6   : > { %1034 = vrot.lane.b32.xlu0 %v1011_v56, %s4063_s7  ;;  %1028 = vrot.lane.b32.xlu1 %v1002_v48, %s4063_s7  ;;  %v1110_v56 = vmul.f32 %v4261_v52, %v4193_v27  ;;  %v1133_v27 = vsel %vm1127_vm3, %v1128_v0, %v1132_v33  ;;  %v4456_v0 = vld [vmem:[%s4182_s6 + $0xf0] sm:$0xff] }
  0xd7   : > { %v660_v32 = vmul.f32 %v4443_v36, %v4456_v0 }
  0xd8   : > { %v1138_v48 = vrot.slane %v1110_v56, 7  ;;  %v689_v56 = vrot.slane %v655_v26, 2 }
  0xd9   : > { %v693_v5 = vrot.slane %v660_v32, 2  ;;  %v4515_v32 = vsel %vm352_vm0, %v4325_v14, %v4230_v41 }
  0xda   : > { %1042 = vrot.lane.b32.xlu0 %v1019_v21, %s4063_s7  ;;  %1036 = vrot.lane.b32.xlu1 %v1013_v12, %s4063_s7  ;;  %v1139_v28 = vsel %vm1127_vm3, %v1131_v62, %v1138_v48  ;;  %v4464_v62 = vmul.f32 %v4406_v30, %v4268_v55  ;;  %v4474_v12 = vld [vmem:[%s4182_s6 + $0xe8] sm:$0xff]  ;;  %v1147_v21 = vsel %vm1127_vm3, %v1138_v48, %v1146_v16 }
  0xdb   : > { %v4494_v16 = vld [vmem:[%s4182_s6 + $0x108] sm:$0xff]  ;;  %v664_v48 = vmul.f32 %v4443_v36, %v4491_v49  ;;  %9303 = vst [vmem:[#allocation29_spill] sm:$0xff] %v4515_v32 }
  0xdc   : > { %v8950_v15 = vrot.slane %v4464_v62, 7 }
  0xde   : > { %1050 = vrot.lane.b32.xlu0 %v1027_v42, %s4063_s7  ;;  %1044 = vrot.lane.b32.xlu1 %v1021_v43, %s4063_s7  ;;  %v659_v42 = vmul.f32 %v4448_v7, %v4474_v12  ;;  %v692_v43 = vrot.slane %v656_v61, 2  ;;  %v4510_v61 = vld [vmem:[%s4182_s6 + $0x128] sm:$0x3] }
  0xe0   : > { %v690_v33 = vrot.slane %v659_v42, 2  ;;  %v694_v26 = vsel %vm489_vm1, %v692_v43, %v693_v5 }
  0xe2   : > { %1152 = vrot.lane.b32.xlu0 %v8953_v40, %s4063_s7  ;;  %1150 = vrot.lane.b32.xlu1 %v8952_v45, %s4063_s7  ;;  %v691_v42 = vsel %vm489_vm1, %v689_v56, %v690_v33  ;;  %v4528_v45 = vsel %vm352_vm0, %v4230_v41, %v4354_v53  ;;  %v4531_v40 = vld [vmem:[%s4182_s6 + $0x8] sm:$0xfe]  ;;  %v973_v56 = vmul.f32 %v4515_v32, %v4254_v50 }
  0xe3   : > { %9304 = vst [vmem:[#allocation30_spill] sm:$0xff] %v4528_v45  ;;  %v969_v43 = vmul.f32 %v4515_v32, %v4531_v40  ;;  %v978_v59 = vmul.f32 %v4528_v45, %v4257_v51 }
  0xe5   : > { %v1003_v19 = vrot.slane %v969_v43, 1 }
  0xe6   : > { %1156 = vrot.lane.b32.xlu0 %v1133_v27, %s4063_s7  ;;  %1162 = vrot.lane.b32.xlu1 %v1139_v28, %s4063_s7  ;;  %v663_v27 = vmul.f32 %v4448_v7, %v4494_v16  ;;  %v4507_v28 = vld [vmem:[%s4182_s6 + $0x130] sm:$0x3] }
  0xea   : > { %1164 = vrot.lane.b32.xlu0 %v1141_v17, %s4063_s7  ;;  %1170 = vrot.lane.b32.xlu1 %v1147_v21, %s4063_s7  ;;  %v668_v17 = vmul.f32 %v4443_v36, %v4507_v28  ;;  %v667_v21 = vmul.f32 %v4448_v7, %v4510_v61 }
  0xec   : > { %v710_v52 = vrot.slane %v668_v17, 2  ;;  %v708_v47 = vrot.slane %v667_v21, 2  ;;  %v974_v17 = vmul.f32 %v4528_v45, %v4243_v46 }
  0xee   : > { %1176 = vrot.lane.b32.xlu0 %v8951_v1, %s4063_s7  ;;  %1174 = vrot.lane.b32.xlu1 %v8950_v15, %s4063_s7  ;;  %v702_v15 = vrot.slane %v664_v48, 2  ;;  %v700_v1 = vrot.slane %v663_v27, 2  ;;  %v4538_v48 = vld [vmem:[%s4182_s6 + $0x10] sm:$0xfe]  ;;  %v1007_v20 = vrot.slane %v974_v17, 1 }
  0xef   : > { %v970_v41 = vmul.f32 %v4528_v45, %v4538_v48 }
  0xf0   : > { %v703_v27 = vsel %vm489_vm1, %v693_v5, %v702_v15  ;;  %v711_v21 = vsel %vm489_vm1, %v702_v15, %v710_v52  ;;  %v1004_v5 = vrot.slane %v973_v56, 1 }
  0xf1   : > { %v1006_v18 = vrot.slane %v970_v41, 1 }
  0xf2   : > { %718 = vrot.lane.b32.xlu0 %v694_v26, %s4063_s7  ;;  %716 = vrot.lane.b32.xlu1 %v691_v42, %s4063_s7  ;;  %v701_v26 = vsel %vm489_vm1, %v690_v33, %v700_v1  ;;  %v709_v42 = vsel %vm489_vm1, %v700_v1, %v708_v47  ;;  %v977_v33 = vmul.f32 %v4515_v32, %v4268_v55  ;;  %v4563_v1 = vld [vmem:[%s4182_s6 + $0x70] sm:$0x1]  ;;  %v1016_v55 = vrot.slane %v978_v59, 1 }
  0xf3   : > { %v1005_v52 = vsel %vm288_vm2, %v1003_v19, %v1004_v5  ;;  %v1008_v15 = vsel %vm288_vm2, %v1006_v18, %v1007_v20  ;;  %v982_v51 = vmul.f32 %v4528_v45, %v4563_v1  ;;  %v1109_v19 = vmul.f32 %v4402_v31, %v4243_v46 }
  0xf4   : > { %v1014_v43 = vrot.slane %v977_v33, 1  ;;  %v1017_v41 = vsel %vm288_vm2, %v1007_v20, %v1016_v55  ;;  %v1108_v18 = vmul.f32 %v4406_v30, %v4254_v50  ;;  %v9305_v20 = vrot.slane %v4412_v37, 7 }
  0xf5   : > { %v1024_v17 = vrot.slane %v982_v51, 1  ;;  %v4606_v51 = vld [vmem:[%s4182_s6 + $0x80] sm:$0xff] }
  0xf6   : > { %726 = vrot.lane.b32.xlu0 %v703_v27, %s4063_s7  ;;  %724 = vrot.lane.b32.xlu1 %v701_v26, %s4063_s7  ;;  %v4557_v27 = vld [vmem:[%s4182_s6 + $0x68] sm:$0x1]  ;;  %v1015_v26 = vsel %vm288_vm2, %v1004_v5, %v1014_v43  ;;  %v1134_v46 = vrot.slane %v1108_v18, 7  ;;  %v9306_v5 = vrot.slane %v4416_v25, 7 }
  0xf7   : > { %v981_v47 = vmul.f32 %v4515_v32, %v4557_v27 }
  0xf8   : > { %v1135_v33 = vsel %vm1127_vm3, %v9306_v5, %v1134_v46 }
  0xf9   : > { %v1022_v56 = vrot.slane %v981_v47, 1 }
  0xfa   : > { %734 = vrot.lane.b32.xlu0 %v711_v21, %s4063_s7  ;;  %732 = vrot.lane.b32.xlu1 %v709_v42, %s4063_s7  ;;  %v1025_v21 = vsel %vm288_vm2, %v1016_v55, %v1024_v17  ;;  %v1136_v42 = vrot.slane %v1109_v19, 7  ;;  %v1216_v55 = vld [vmem:[%s4182_s6 + $0x78] sm:$0xfe] }
  0xfb   : > { %v1023_v59 = vsel %vm288_vm2, %v1014_v43, %v1022_v56  ;;  %v4597_v43 = vld [vmem:[%s4182_s6 + $0x70] sm:$0xfe]  ;;  %v4609_v56 = vld [vmem:[%s4182_s6 + $0x88] sm:$0xff] }
  0xfc   : > { %v1137_v50 = vsel %vm1127_vm3, %v9305_v20, %v1136_v42  ;;  %9309 = vst [vmem:[#allocation31_spill] sm:$0xff] %v4597_v43  ;;  %v1222_v25 = vmul.f32 %v4222_v38, %v4597_v43  ;;  %v1225_v19 = vmul.f32 %v4237_v44, %v4609_v56 }
  0xfe   : > { %1030 = vrot.lane.b32.xlu0 %v1005_v52, %s4063_s7  ;;  %1032 = vrot.lane.b32.xlu1 %v1008_v15, %s4063_s7  ;;  %v9307_v52 = vrot.slane %v4460_v57, 7  ;;  %v9308_v15 = vrot.slane %v4464_v62, 7  ;;  %v1223_v57 = vmul.f32 %v1216_v55, %v4186_v23  ;;  %v1224_v62 = vmul.f32 %v4188_v24, %v4606_v51 }
 0x100   : > { %v1145_v47 = vsel %vm1127_vm3, %v1136_v42, %v9307_v52  ;;  %v1143_v37 = vsel %vm1127_vm3, %v1134_v46, %v9308_v15  ;;  %v4634_v42 = vld [vmem:[%s4182_s6 + $0xa0] sm:$0xff]  ;;  %v4637_v46 = vld [vmem:[%s4182_s6 + $0xa8] sm:$0xff]  ;;  %v4650_v52 = vld [vmem:[%s4182_s6 + $0xb0] sm:$0xff] }
 0x101   : > { %v1228_v5 = vmul.f32 %v4188_v24, %v4634_v42  ;;  %v1230_v55 = vmul.f32 %v4222_v38, %v4650_v52 }
 0x102   : > { %1038 = vrot.lane.b32.xlu0 %v1015_v26, %s4063_s7  ;;  %1040 = vrot.lane.b32.xlu1 %v1017_v41, %s4063_s7  ;;  %v4618_v26 = vld [vmem:[%s4182_s6 + $0x90] sm:$0xff]  ;;  %v4621_v41 = vld [vmem:[%s4182_s6 + $0x98] sm:$0xff] }
 0x106   : > { %1046 = vrot.lane.b32.xlu0 %v1023_v59, %s4063_s7  ;;  %1048 = vrot.lane.b32.xlu1 %v1025_v21, %s4063_s7  ;;  %v1226_v59 = vmul.f32 %v4222_v38, %v4618_v26  ;;  %v1227_v21 = vmul.f32 %v4621_v41, %v4186_v23 }
 0x10a   : > { %1160 = vrot.lane.b32.xlu0 %v1137_v50, %s4063_s7  ;;  %1158 = vrot.lane.b32.xlu1 %v1135_v33, %s4063_s7  ;;  %v1229_v33 = vmul.f32 %v4237_v44, %v4637_v46 }
 0x10e   : > { %1168 = vrot.lane.b32.xlu0 %v1145_v47, %s4063_s7  ;;  %1166 = vrot.lane.b32.xlu1 %v1143_v37, %s4063_s7  ;;  %v4653_v47 = vld [vmem:[%s4182_s6 + $0xb8] sm:$0xff] }
 0x112   : > { %1256 = vrot.lane.b32.xlu0 %v1222_v25, %s4063_s7  ;;  %1258 = vrot.lane.b32.xlu1 %v1223_v57, %s4063_s7  ;;  %v1231_v25 = vmul.f32 %v4653_v47, %v4186_v23  ;;  %v4666_v57 = vld [vmem:[%s4182_s6 + $0xc0] sm:$0x1] }
 0x113   : > { %9316 = vst [vmem:[#allocation38_spill] sm:$0xff] %v4666_v57 }
 0x116   : > { %1260 = vrot.lane.b32.xlu0 %v1224_v62, %s4063_s7  ;;  %1262 = vrot.lane.b32.xlu1 %v1225_v19, %s4063_s7  ;;  %v4669_v62 = vld [vmem:[%s4182_s6 + $0xc8] sm:$0x1] }
 0x117   : > { %9317 = vst [vmem:[#allocation39_spill] sm:$0xff] %v4669_v62 }
 0x118   : > { %v4625_v17 = vpop.permute.xlu0 %389  ;;  %v4627_v18 = vpop.permute.xlu1 %383 }
 0x119   : > { %9310 = vst [vmem:[#allocation32_spill] sm:$0xff] %v4625_v17  ;;  %9311 = vst [vmem:[#allocation33_spill] sm:$0xff] %v4627_v18 }
 0x11a   : > { %1264 = vrot.lane.b32.xlu0 %v1226_v59, %s4063_s7  ;;  %1266 = vrot.lane.b32.xlu1 %v1227_v21, %s4063_s7  ;;  %v1232_v21 = vmul.f32 %v4188_v24, %v4666_v57 }
 0x11c   : > { %v4641_v20 = vpop.permute.xlu0 %397  ;;  %v4643_v50 = vpop.permute.xlu1 %391 }
 0x11d   : > { %9312 = vst [vmem:[#allocation34_spill] sm:$0xff] %v4641_v20  ;;  %9313 = vst [vmem:[#allocation35_spill] sm:$0xff] %v4643_v50  ;;  %v542_v50 = vld [vmem:[#allocation2 + $0x4] ss:$8 sm:$0x7] }
 0x11e   : > { %1268 = vrot.lane.b32.xlu0 %v1228_v5, %s4063_s7  ;;  %1270 = vrot.lane.b32.xlu1 %v1229_v33, %s4063_s7  ;;  %v1233_v5 = vmul.f32 %v4237_v44, %v4669_v62  ;;  %v4682_v33 = vld [vmem:[%s4182_s6 + $0xd0] sm:$0x1] }
 0x11f   : > { %9320 = vst [vmem:[#allocation42_spill] sm:$0xff] %v4682_v33 }
 0x120   : > { %v4657_v15 = vpop.permute.xlu0 %405  ;;  %v4659_v37 = vpop.permute.xlu1 %399 }
 0x121   : > { %9314 = vst [vmem:[#allocation36_spill] sm:$0xff] %v4657_v15  ;;  %9315 = vst [vmem:[#allocation37_spill] sm:$0xff] %v4659_v37  ;;  %v1219_v37 = vld [vmem:[%s4182_s6 + $0xd8] sm:$0x1] }
 0x122   : > { %1272 = vrot.lane.b32.xlu0 %v1230_v55, %s4063_s7  ;;  %1274 = vrot.lane.b32.xlu1 %v1231_v25, %s4063_s7  ;;  %v1235_v15 = vmul.f32 %v1219_v37, %v4186_v23 }
 0x124   : > { %v4673_v19 = vpop.permute.xlu0 %1252  ;;  %v4675_v59 = vpop.permute.xlu1 %387 }
 0x125   : > { %9318 = vst [vmem:[#allocation40_spill] sm:$0xff] %v4673_v19  ;;  %9319 = vst [vmem:[#allocation41_spill] sm:$0xff] %v4675_v59  ;;  %v1234_v19 = vmul.f32 %v4222_v38, %v4682_v33 }
 0x126   : > { %1276 = vrot.lane.b32.xlu0 %v1232_v21, %s4063_s7  ;;  %1278 = vrot.lane.b32.xlu1 %v1233_v5, %s4063_s7  ;;  %v4701_v21 = vrot.slane %v542_v50, %v4137_v3  ;;  %v4704_v5 = vrot.slane %v542_v50, %v4139_v4 }
 0x128   : > { %v4687_v55 = vpop.permute.xlu0 %385  ;;  %v4689_v25 = vpop.permute.xlu1 %395  ;;  %9325 = vst [vmem:[#allocation47_spill] sm:$0xff] %v4701_v21  ;;  %9326 = vst [vmem:[#allocation48_spill] sm:$0xff] %v4704_v5 }
 0x129   : > { %9321 = vst [vmem:[#allocation43_spill] sm:$0xff] %v4687_v55  ;;  %9322 = vst [vmem:[#allocation44_spill] sm:$0xff] %v4689_v25 }
 0x12a   : > { %1280 = vrot.lane.b32.xlu0 %v1234_v19, %s4063_s7  ;;  %1282 = vrot.lane.b32.xlu1 %v1235_v15, %s4063_s7  ;;  %v4715_v19 = vrot.slane %v542_v50, %v4135_v2 }
 0x12c   : > { %v4696_v20 = vpop.permute.xlu0 %393  ;;  %v4698_v18 = vpop.permute.xlu1 %403  ;;  %9329 = vst [vmem:[#allocation51_spill] sm:$0xff] %v4715_v19 }
 0x12d   : > { %9323 = vst [vmem:[#allocation45_spill] sm:$0xff] %v4696_v20  ;;  %9324 = vst [vmem:[#allocation46_spill] sm:$0xff] %v4698_v18 }
 0x12e   : > { %1389 = vrot.lane.b32.xlu0 %v4701_v21, %s4062_s29  ;;  %1391 = vrot.lane.b32.xlu1 %v4704_v5, %s4062_s29 }
 0x130   : > { %v4710_v37 = vpop.permute.xlu0 %401  ;;  %v4712_v15 = vpop.permute.xlu1 %1254 }
 0x131   : > { %9327 = vst [vmem:[#allocation49_spill] sm:$0xff] %v4710_v37  ;;  %9328 = vst [vmem:[#allocation50_spill] sm:$0xff] %v4712_v15 }
 0x132   : > { %1393 = vrot.lane.b32.xlu0 %v4715_v19, %s4062_s29 }
 0x134   : > { %v4719_v18 = vpop.permute.xlu0 %1148  ;;  %v4721_v20 = vpop.permute.xlu1 %1154 }
 0x135   : > { %9330 = vst [vmem:[#allocation52_spill] sm:$0xff] %v4719_v18  ;;  %9331 = vst [vmem:[#allocation53_spill] sm:$0xff] %v4721_v20 }
 0x138   : > { %v4723_v25 = vpop.permute.xlu0 %1172  ;;  %v4725_v55 = vpop.permute.xlu1 %1178 }
 0x139   : > { %9332 = vst [vmem:[#allocation54_spill] sm:$0xff] %v4723_v25  ;;  %9333 = vst [vmem:[#allocation55_spill] sm:$0xff] %v4725_v55 }
 0x13c   : > { %v4727_v59 = vpop.permute.xlu0 %714  ;;  %v4729_v17 = vpop.permute.xlu1 %720 }
 0x13d   : > { %9334 = vst [vmem:[#allocation56_spill] sm:$0xff] %v4727_v59  ;;  %9335 = vst [vmem:[#allocation57_spill] sm:$0xff] %v4729_v17 }
 0x140   : > { %v4731_v37 = vpop.permute.xlu0 %722  ;;  %v4733_v15 = vpop.permute.xlu1 %728 }
 0x141   : > { %9336 = vst [vmem:[#allocation58_spill] sm:$0xff] %v4731_v37  ;;  %9337 = vst [vmem:[#allocation59_spill] sm:$0xff] %v4733_v15 }
 0x144   : > { %v4735_v50 = vpop.permute.xlu0 %730  ;;  %v4737_v31 = vpop.permute.xlu1 %736 }
 0x145   : > { %9338 = vst [vmem:[#allocation60_spill] sm:$0xff] %v4735_v50  ;;  %9339 = vst [vmem:[#allocation61_spill] sm:$0xff] %v4737_v31 }
 0x148   : > { %v4739_v30 = vpop.permute.xlu0 %1034  ;;  %v4741_v18 = vpop.permute.xlu1 %1028 }
 0x149   : > { %9340 = vst [vmem:[#allocation62_spill] sm:$0xff] %v4739_v30  ;;  %9341 = vst [vmem:[#allocation63_spill] sm:$0xff] %v4741_v18 }
 0x14c   : > { %v4743_v20 = vpop.permute.xlu0 %1042  ;;  %v4745_v25 = vpop.permute.xlu1 %1036 }
 0x14d   : > { %9342 = vst [vmem:[#allocation64_spill] sm:$0xff] %v4743_v20  ;;  %9343 = vst [vmem:[#allocation65_spill] sm:$0xff] %v4745_v25 }
 0x150   : > { %v4747_v55 = vpop.permute.xlu0 %1050  ;;  %v4749_v59 = vpop.permute.xlu1 %1044 }
 0x151   : > { %9344 = vst [vmem:[#allocation66_spill] sm:$0xff] %v4747_v55  ;;  %9345 = vst [vmem:[#allocation67_spill] sm:$0xff] %v4749_v59 }
 0x154   : > { %v4751_v17 = vpop.permute.xlu0 %1152  ;;  %v4753_v37 = vpop.permute.xlu1 %1150 }
 0x155   : > { %9346 = vst [vmem:[#allocation68_spill] sm:$0xff] %v4751_v17  ;;  %9347 = vst [vmem:[#allocation69_spill] sm:$0xff] %v4753_v37 }
 0x158   : > { %v4755_v15 = vpop.permute.xlu0 %1156  ;;  %v4757_v50 = vpop.permute.xlu1 %1162 }
 0x159   : > { %9348 = vst [vmem:[#allocation70_spill] sm:$0xff] %v4755_v15  ;;  %9349 = vst [vmem:[#allocation71_spill] sm:$0xff] %v4757_v50 }
 0x15c   : > { %v4759_v31 = vpop.permute.xlu0 %1164  ;;  %v4761_v30 = vpop.permute.xlu1 %1170 }
 0x15d   : > { %9350 = vst [vmem:[#allocation72_spill] sm:$0xff] %v4759_v31  ;;  %9351 = vst [vmem:[#allocation73_spill] sm:$0xff] %v4761_v30 }
 0x160   : > { %v4763_v18 = vpop.permute.xlu0 %1176  ;;  %v4765_v20 = vpop.permute.xlu1 %1174 }
 0x161   : > { %9352 = vst [vmem:[#allocation74_spill] sm:$0xff] %v4763_v18  ;;  %9353 = vst [vmem:[#allocation75_spill] sm:$0xff] %v4765_v20 }
 0x164   : > { %v4767_v25 = vpop.permute.xlu0 %718  ;;  %v4769_v55 = vpop.permute.xlu1 %716 }
 0x165   : > { %9354 = vst [vmem:[#allocation76_spill] sm:$0xff] %v4767_v25  ;;  %9355 = vst [vmem:[#allocation77_spill] sm:$0xff] %v4769_v55 }
 0x168   : > { %v4771_v59 = vpop.permute.xlu0 %726  ;;  %v4773_v17 = vpop.permute.xlu1 %724 }
 0x169   : > { %9356 = vst [vmem:[#allocation78_spill] sm:$0xff] %v4771_v59  ;;  %9357 = vst [vmem:[#allocation79_spill] sm:$0xff] %v4773_v17 }
 0x16c   : > { %v4775_v37 = vpop.permute.xlu0 %734  ;;  %v4777_v15 = vpop.permute.xlu1 %732 }
 0x16d   : > { %9358 = vst [vmem:[#allocation80_spill] sm:$0xff] %v4775_v37  ;;  %9359 = vst [vmem:[#allocation81_spill] sm:$0xff] %v4777_v15 }
 0x170   : > { %v4779_v50 = vpop.permute.xlu0 %1030  ;;  %v4781_v31 = vpop.permute.xlu1 %1032 }
 0x171   : > { %9360 = vst [vmem:[#allocation82_spill] sm:$0xff] %v4779_v50  ;;  %9361 = vst [vmem:[#allocation83_spill] sm:$0xff] %v4781_v31 }
 0x174   : > { %v4783_v30 = vpop.permute.xlu0 %1038  ;;  %v4785_v18 = vpop.permute.xlu1 %1040 }
 0x175   : > { %9362 = vst [vmem:[#allocation84_spill] sm:$0xff] %v4783_v30  ;;  %9363 = vst [vmem:[#allocation85_spill] sm:$0xff] %v4785_v18 }
 0x178   : > { %v4787_v20 = vpop.permute.xlu0 %1046  ;;  %v4789_v25 = vpop.permute.xlu1 %1048 }
 0x179   : > { %9364 = vst [vmem:[#allocation86_spill] sm:$0xff] %v4787_v20  ;;  %9365 = vst [vmem:[#allocation87_spill] sm:$0xff] %v4789_v25 }
 0x17c   : > { %v4791_v55 = vpop.permute.xlu0 %1160  ;;  %v4793_v59 = vpop.permute.xlu1 %1158 }
 0x17d   : > { %9366 = vst [vmem:[#allocation88_spill] sm:$0xff] %v4791_v55  ;;  %9367 = vst [vmem:[#allocation89_spill] sm:$0xff] %v4793_v59 }
 0x180   : > { %v4795_v17 = vpop.permute.xlu0 %1168  ;;  %v4797_v37 = vpop.permute.xlu1 %1166 }
 0x181   : > { %9368 = vst [vmem:[#allocation90_spill] sm:$0xff] %v4795_v17  ;;  %9369 = vst [vmem:[#allocation91_spill] sm:$0xff] %v4797_v37 }
 0x184   : > { %v4799_v15 = vpop.permute.xlu0 %1256  ;;  %v4801_v50 = vpop.permute.xlu1 %1258 }
 0x185   : > { %9370 = vst [vmem:[#allocation92_spill] sm:$0xff] %v4799_v15  ;;  %9371 = vst [vmem:[#allocation93_spill] sm:$0xff] %v4801_v50 }
 0x188   : > { %v4803_v31 = vpop.permute.xlu0 %1260  ;;  %v4805_v30 = vpop.permute.xlu1 %1262 }
 0x189   : > { %9372 = vst [vmem:[#allocation94_spill] sm:$0xff] %v4803_v31  ;;  %9373 = vst [vmem:[#allocation95_spill] sm:$0xff] %v4805_v30 }
 0x18c   : > { %v4807_v18 = vpop.permute.xlu0 %1264  ;;  %v4809_v20 = vpop.permute.xlu1 %1266 }
 0x18d   : > { %9374 = vst [vmem:[#allocation96_spill] sm:$0xff] %v4807_v18  ;;  %9375 = vst [vmem:[#allocation97_spill] sm:$0xff] %v4809_v20 }
 0x190   : > { %v4811_v25 = vpop.permute.xlu0 %1268  ;;  %v4813_v55 = vpop.permute.xlu1 %1270 }
 0x191   : > { %9376 = vst [vmem:[#allocation98_spill] sm:$0xff] %v4811_v25  ;;  %9377 = vst [vmem:[#allocation99_spill] sm:$0xff] %v4813_v55 }
 0x194   : > { %v4815_v59 = vpop.permute.xlu0 %1272  ;;  %v4817_v17 = vpop.permute.xlu1 %1274 }
 0x195   : > { %9378 = vst [vmem:[#allocation100_spill] sm:$0xff] %v4815_v59  ;;  %9379 = vst [vmem:[#allocation101_spill] sm:$0xff] %v4817_v17 }
 0x198   : > { %v4819_v37 = vpop.permute.xlu0 %1276  ;;  %v4821_v15 = vpop.permute.xlu1 %1278 }
 0x199   : > { %9380 = vst [vmem:[#allocation102_spill] sm:$0xff] %v4819_v37  ;;  %9381 = vst [vmem:[#allocation103_spill] sm:$0xff] %v4821_v15 }
 0x19c   : > { %v4823_v50 = vpop.permute.xlu0 %1280  ;;  %v4825_v31 = vpop.permute.xlu1 %1282 }
 0x19d   : > { %9382 = vst [vmem:[#allocation104_spill] sm:$0xff] %v4823_v50  ;;  %9383 = vst [vmem:[#allocation105_spill] sm:$0xff] %v4825_v31 }
 0x1a0   : > { %v4827_v30 = vpop.permute.xlu0 %1389  ;;  %v1392_v18 = vpop.permute.xlu1 %1391 }
 0x1a1   : > { %9384 = vst [vmem:[#allocation106_spill] sm:$0xff] %v4827_v30  ;;  %v4831_v25 = vsel %vm352_vm0, %v4827_v30, %v1392_v18  ;;  %v1401_v20 = vmul.f32 %v4827_v30, %v4288_v63  ;;  %v1405_v55 = vmul.f32 %v4827_v30, %v4300_v6  ;;  %v1409_v21 = vmul.f32 %v4827_v30, %v4323_v13 }
 0x1a2   : > { %9385 = vst [vmem:[#allocation107_spill] sm:$0xff] %v4831_v25  ;;  %v1402_v37 = vmul.f32 %v4831_v25, %v4471_v11  ;;  %v1406_v15 = vmul.f32 %v4831_v25, %v4474_v12 }
 0x1a3   : > { %v1433_v31 = vrot.slane %v1401_v20, 1  ;;  %v1434_v50 = vrot.slane %v1405_v55, 1 }
 0x1a4   : > { %v4841_v59 = vpop.permute.xlu0 %1393  ;;  %v1436_v17 = vrot.slane %v1402_v37, 1  ;;  %v1437_v5 = vrot.slane %v1406_v15, 1 }
 0x1a5   : > { %9386 = vst [vmem:[#allocation108_spill] sm:$0xff] %v4841_v59  ;;  %v1435_v63 = vsel %vm288_vm2, %v1433_v31, %v1434_v50  ;;  %v4848_v6 = vsel %vm352_vm0, %v1392_v18, %v4841_v59  ;;  %v1404_v19 = vmul.f32 %v4841_v59, %v4305_v8  ;;  %v1408_v20 = vmul.f32 %v4841_v59, %v4308_v9 }
 0x1a6   : > { %9387 = vst [vmem:[#allocation109_spill] sm:$0xff] %v4848_v6  ;;  %1461 = vrot.lane.b32.xlu1 %v1435_v63, %s4063_s7  ;;  %v1438_v55 = vsel %vm288_vm2, %v1436_v17, %v1437_v5  ;;  %v1403_v37 = vmul.f32 %v4848_v6, %v4453_v60  ;;  %v1407_v13 = vmul.f32 %v4848_v6, %v4456_v0  ;;  %v1445_v63 = vrot.slane %v1409_v21, 1 }
 0x1a7   : > { %v1410_v31 = vmul.f32 %v4831_v25, %v4494_v16  ;;  %1463 = vrot.lane.b32.xlu0 %v1438_v55, %s4063_s7  ;;  %v1442_v18 = vrot.slane %v1404_v19, 1  ;;  %v1443_v8 = vrot.slane %v1408_v20, 1  ;;  %v1411_v57 = vmul.f32 %v4848_v6, %v4491_v49 }
 0x1a8   : > { %v1439_v15 = vrot.slane %v1403_v37, 1  ;;  %v1440_v33 = vrot.slane %v1407_v13, 1  ;;  %v1412_v43 = vmul.f32 %v4841_v59, %v4332_v22  ;;  %v1413_v19 = vmul.f32 %v4827_v30, %v4343_v34 }
 0x1a9   : > { %v1444_v9 = vsel %vm288_vm2, %v1442_v18, %v1443_v8  ;;  %v1447_v62 = vrot.slane %v1410_v31, 1  ;;  %v1414_v20 = vmul.f32 %v4831_v25, %v4510_v61  ;;  %v1446_v21 = vsel %vm288_vm2, %v1434_v50, %v1445_v63 }
 0x1aa   : > { %v1441_v17 = vsel %vm288_vm2, %v1439_v15, %v1440_v33  ;;  %v1449_v37 = vrot.slane %v1411_v57, 1  ;;  %v1451_v13 = vrot.slane %v1412_v43, 1  ;;  %v1453_v22 = vrot.slane %v1413_v19, 1 }
 0x1ab   : > { %1465 = vrot.lane.b32.xlu1 %v1441_v17, %s4063_s7  ;;  %1467 = vrot.lane.b32.xlu0 %v1444_v9, %s4063_s7  ;;  %v1448_v55 = vsel %vm288_vm2, %v1437_v5, %v1447_v62  ;;  %v1455_v31 = vrot.slane %v1414_v20, 1  ;;  %v1415_v15 = vmul.f32 %v4848_v6, %v4507_v28  ;;  %v1416_v57 = vmul.f32 %v4841_v59, %v4348_v39  ;;  %v4896_v9 = vld [vmem:[%s4182_s6 + $0x120] sm:$0xf8]  ;;  %v4905_v17 = vld [vmem:[%s4182_s6 + $0x148] sm:$0xff] }
 0x1ac   : > { %v1450_v18 = vsel %vm288_vm2, %v1440_v33, %v1449_v37  ;;  %v1452_v34 = vsel %vm288_vm2, %v1443_v8, %v1451_v13  ;;  %v1454_v43 = vsel %vm288_vm2, %v1445_v63, %v1453_v22  ;;  %9388 = vst [vmem:[#allocation110_spill] sm:$0xff] %v4896_v9  ;;  %v4902_v63 = vld [vmem:[%s4182_s6 + $0x128] sm:$0xf8]  ;;  %9391 = vst [vmem:[#allocation113_spill] sm:$0xff] %v4905_v17 }
 0x1ad   : > { %v1456_v33 = vsel %vm288_vm2, %v1447_v62, %v1455_v31  ;;  %v1457_v5 = vrot.slane %v1415_v15, 1  ;;  %v1459_v50 = vrot.slane %v1416_v57, 1  ;;  %v4899_v62 = vld [vmem:[%s4182_s6 + $0x140] sm:$0xff]  ;;  %9390 = vst [vmem:[#allocation112_spill] sm:$0xff] %v4902_v63  ;;  %v1533_v19 = vmul.f32 %v4200_v29, %v4896_v9 }
 0x1ae   : > { %9389 = vst [vmem:[#allocation111_spill] sm:$0xff] %v4899_v62  ;;  %v1537_v20 = vmul.f32 %v4200_v29, %v4899_v62 }
 0x1af   : > { %1469 = vrot.lane.b32.xlu1 %v1446_v21, %s4063_s7  ;;  %1471 = vrot.lane.b32.xlu0 %v1448_v55, %s4063_s7  ;;  %v1458_v8 = vsel %vm288_vm2, %v1449_v37, %v1457_v5  ;;  %v1460_v39 = vsel %vm288_vm2, %v1451_v13, %v1459_v50  ;;  %v1534_v21 = vmul.f32 %v4448_v7, %v4902_v63  ;;  %v4918_v37 = vld [vmem:[%s4182_s6 + $0x130] sm:$0xf8] }
 0x1b0   : > { %v1538_v55 = vmul.f32 %v4448_v7, %v4905_v17  ;;  %9392 = vst [vmem:[#allocation114_spill] sm:$0xff] %v4918_v37  ;;  %v4921_v13 = vld [vmem:[%s4182_s6 + $0x150] sm:$0xff]  ;;  %v1535_v15 = vmul.f32 %v4443_v36, %v4918_v37  ;;  %v3867_v37 = vld [vmem:[%s4182_s6 + $0x8] sm:$0xff] }
 0x1b1   : > { %9393 = vst [vmem:[#allocation115_spill] sm:$0xff] %v4921_v13  ;;  %v1539_v57 = vmul.f32 %v4443_v36, %v4921_v13  ;;  %v9442_v63 = vld [vmem:[#allocation24_spill] sm:$0xff]  ;;  %v5469_v13 = vld [vmem:[%s4182_s6 + $0xe8] sm:$0xff] }
 0x1b2   : > { %v1571_v6 = vrot.slane %v1535_v15, 2 }
 0x1b3   : > { %1473 = vrot.lane.b32.xlu1 %v1450_v18, %s4063_s7  ;;  %1475 = vrot.lane.b32.xlu0 %v1452_v34, %s4063_s7  ;;  %v1565_v18 = vrot.slane %v1533_v19, 2  ;;  %v1566_v34 = vrot.slane %v1537_v20, 2  ;;  %v4934_v19 = vld [vmem:[%s4182_s6 + $0x160] sm:$0xff]  ;;  %v4937_v20 = vld [vmem:[%s4182_s6 + $0x168] sm:$0xff]  ;;  %v1572_v25 = vrot.slane %v1539_v57, 2 }
 0x1b4   : > { %9394 = vst [vmem:[#allocation116_spill] sm:$0xff] %v4934_v19  ;;  %9395 = vst [vmem:[#allocation117_spill] sm:$0xff] %v4937_v20  ;;  %v1531_v57 = vld [vmem:[%s4182_s6 + $0x178] sm:$0xff] }
 0x1b5   : > { %v1567_v59 = vsel %vm489_vm1, %v1565_v18, %v1566_v34  ;;  %v1544_v30 = vmul.f32 %v1531_v57, %v4214_v35 }
 0x1b7   : > { %1477 = vrot.lane.b32.xlu1 %v1454_v43, %s4063_s7  ;;  %1479 = vrot.lane.b32.xlu0 %v1456_v33, %s4063_s7  ;;  %v1529_v43 = vld [vmem:[%s4182_s6 + $0x138] sm:$0xf8] }
 0x1b8   : > { %v1530_v33 = vld [vmem:[%s4182_s6 + $0x158] sm:$0xff] }
 0x1bb   : > { %1481 = vrot.lane.b32.xlu1 %v1458_v8, %s4063_s7  ;;  %1483 = vrot.lane.b32.xlu0 %v1460_v39, %s4063_s7  ;;  %v1568_v8 = vrot.slane %v1534_v21, 2  ;;  %v1536_v39 = vmul.f32 %v1529_v43, %v4214_v35  ;;  %v1541_v21 = vmul.f32 %v4200_v29, %v4934_v19  ;;  %v1532_v19 = vld [vmem:[%s4182_s6 + $0x198] sm:$0x7] }
 0x1bd   : > { %v1574_v43 = vrot.slane %v1536_v39, 2  ;;  %v1577_v18 = vrot.slane %v1541_v21, 2  ;;  %v4962_v21 = vld [vmem:[%s4182_s6 + $0x188] sm:$0x7] }
 0x1be   : > { %9398 = vst [vmem:[#allocation120_spill] sm:$0xff] %v4962_v21  ;;  %v1546_v57 = vmul.f32 %v4448_v7, %v4962_v21 }
 0x1bf   : > { %1485 = vrot.lane.b32.xlu1 %v1453_v22, %s4063_s7  ;;  %1487 = vrot.lane.b32.xlu0 %v1455_v31, %s4063_s7  ;;  %v1569_v22 = vrot.slane %v1538_v55, 2  ;;  %v1540_v31 = vmul.f32 %v1530_v33, %v4214_v35  ;;  %v4948_v33 = vld [vmem:[%s4182_s6 + $0x170] sm:$0xff] }
 0x1c0   : > { %9396 = vst [vmem:[#allocation118_spill] sm:$0xff] %v4948_v33  ;;  %v1543_v15 = vmul.f32 %v4443_v36, %v4948_v33  ;;  %v1587_v33 = vrot.slane %v1546_v57, 2 }
 0x1c1   : > { %v1570_v55 = vsel %vm489_vm1, %v1568_v8, %v1569_v22  ;;  %v1573_v8 = vsel %vm489_vm1, %v1571_v6, %v1572_v25  ;;  %v1578_v6 = vsel %vm489_vm1, %v1566_v34, %v1577_v18 }
 0x1c3   : > { %1489 = vrot.lane.b32.xlu1 %v1457_v5, %s4063_s7  ;;  %1491 = vrot.lane.b32.xlu0 %v1459_v50, %s4063_s7  ;;  %v1575_v5 = vrot.slane %v1540_v31, 2  ;;  %v1542_v50 = vmul.f32 %v4448_v7, %v4937_v20 }
 0x1c5   : > { %v1576_v39 = vsel %vm489_vm1, %v1574_v43, %v1575_v5  ;;  %v1579_v31 = vrot.slane %v1542_v50, 2  ;;  %v1583_v50 = vrot.slane %v1544_v30, 2  ;;  %v1548_v30 = vmul.f32 %v1532_v19, %v4214_v35  ;;  %v859_v19 = vld [vmem:[#allocation2 + $0x7] ss:$8 sm:$0x7] }
 0x1c7   : > { %1593 = vrot.lane.b32.xlu1 %v1567_v59, %s4063_s7  ;;  %1595 = vrot.lane.b32.xlu0 %v1570_v55, %s4063_s7  ;;  %v4959_v59 = vld [vmem:[%s4182_s6 + $0x180] sm:$0x7]  ;;  %v1581_v55 = vrot.slane %v1543_v15, 2  ;;  %v1580_v43 = vsel %vm489_vm1, %v1569_v22, %v1579_v31 }
 0x1c8   : > { %9397 = vst [vmem:[#allocation119_spill] sm:$0xff] %v4959_v59  ;;  %v1545_v20 = vmul.f32 %v4200_v29, %v4959_v59  ;;  %v1584_v59 = vsel %vm489_vm1, %v1575_v5, %v1583_v50 }
 0x1ca   : > { %v1585_v15 = vrot.slane %v1545_v20, 2 }
 0x1cb   : > { %1597 = vrot.lane.b32.xlu1 %v1573_v8, %s4063_s7  ;;  %1599 = vrot.lane.b32.xlu0 %v1576_v39, %s4063_s7  ;;  %v4973_v8 = vld [vmem:[%s4182_s6 + $0x190] sm:$0x7]  ;;  %v1582_v39 = vsel %vm489_vm1, %v1572_v25, %v1581_v55  ;;  %v1591_v25 = vrot.slane %v1548_v30, 2 }
 0x1cc   : > { %9399 = vst [vmem:[#allocation121_spill] sm:$0xff] %v4973_v8  ;;  %v1547_v34 = vmul.f32 %v4443_v36, %v4973_v8  ;;  %v1586_v22 = vsel %vm489_vm1, %v1577_v18, %v1585_v15  ;;  %v4996_v18 = vrot.slane %v859_v19, %v4137_v3 }
 0x1cd   : > { %v1592_v5 = vsel %vm489_vm1, %v1583_v50, %v1591_v25 }
 0x1ce   : > { %9400 = vst [vmem:[#allocation122_spill] sm:$0xff] %v4996_v18 }
 0x1cf   : > { %1601 = vrot.lane.b32.xlu1 %v1578_v6, %s4063_s7  ;;  %1603 = vrot.lane.b32.xlu0 %v1580_v43, %s4063_s7  ;;  %v1588_v6 = vsel %vm489_vm1, %v1579_v31, %v1587_v33  ;;  %v1589_v43 = vrot.slane %v1547_v34, 2  ;;  %v4999_v31 = vrot.slane %v859_v19, %v4139_v4 }
 0x1d1   : > { %v1590_v20 = vsel %vm489_vm1, %v1581_v55, %v1589_v43  ;;  %9401 = vst [vmem:[#allocation123_spill] sm:$0xff] %v4999_v31 }
 0x1d3   : > { %1605 = vrot.lane.b32.xlu1 %v1582_v39, %s4063_s7  ;;  %1607 = vrot.lane.b32.xlu0 %v1584_v59, %s4063_s7  ;;  %v5006_v59 = vrot.slane %v859_v19, %v4135_v2 }
 0x1d5   : > { %9402 = vst [vmem:[#allocation124_spill] sm:$0xff] %v5006_v59 }
 0x1d7   : > { %1609 = vrot.lane.b32.xlu1 %v1586_v22, %s4063_s7  ;;  %1611 = vrot.lane.b32.xlu0 %v1588_v6, %s4063_s7 }
 0x1db   : > { %1613 = vrot.lane.b32.xlu1 %v1590_v20, %s4063_s7  ;;  %1615 = vrot.lane.b32.xlu0 %v1592_v5, %s4063_s7 }
 0x1df   : > { %1617 = vrot.lane.b32.xlu1 %v1585_v15, %s4063_s7  ;;  %1619 = vrot.lane.b32.xlu0 %v1587_v33, %s4063_s7 }
 0x1e3   : > { %1621 = vrot.lane.b32.xlu1 %v1589_v43, %s4063_s7  ;;  %1623 = vrot.lane.b32.xlu0 %v1591_v25, %s4063_s7 }
 0x1e7   : > { %1730 = vrot.lane.b32.xlu1 %v4996_v18, %s4062_s29  ;;  %1732 = vrot.lane.b32.xlu0 %v4999_v31, %s4062_s29 }
 0x1eb   : > { %1734 = vrot.lane.b32.xlu1 %v5006_v59, %s4062_s29  ;;  %v5148_v59 = vld [vmem:[%s4182_s6 + $0x68] sm:$0xfc] }
 0x1ec   : > { %9440 = vst [vmem:[#allocation162_spill] sm:$0xff] %v5148_v59 }
 0x218   : > { %v5010_v33 = vpop.permute.xlu1 %1461 }
 0x219   : > { %9403 = vst [vmem:[#allocation125_spill] sm:$0xff] %v5010_v33  ;;  %v5012_v55 = vpop.permute.xlu0 %1463 }
 0x21a   : > { %9404 = vst [vmem:[#allocation126_spill] sm:$0xff] %v5012_v55 }
 0x21d   : > { %v5014_v50 = vpop.permute.xlu0 %1467  ;;  %v5016_v57 = vpop.permute.xlu1 %1465 }
 0x21e   : > { %9405 = vst [vmem:[#allocation127_spill] sm:$0xff] %v5014_v50  ;;  %9406 = vst [vmem:[#allocation128_spill] sm:$0xff] %v5016_v57 }
 0x221   : > { %v5018_v39 = vpop.permute.xlu0 %1471  ;;  %v5020_v15 = vpop.permute.xlu1 %1469 }
 0x222   : > { %9407 = vst [vmem:[#allocation129_spill] sm:$0xff] %v5018_v39  ;;  %9408 = vst [vmem:[#allocation130_spill] sm:$0xff] %v5020_v15 }
 0x225   : > { %v5022_v34 = vpop.permute.xlu0 %1475  ;;  %v5024_v30 = vpop.permute.xlu1 %1473 }
 0x226   : > { %9409 = vst [vmem:[#allocation131_spill] sm:$0xff] %v5022_v34  ;;  %9410 = vst [vmem:[#allocation132_spill] sm:$0xff] %v5024_v30 }
 0x229   : > { %v5026_v22 = vpop.permute.xlu0 %1479  ;;  %v5028_v6 = vpop.permute.xlu1 %1477 }
 0x22a   : > { %9411 = vst [vmem:[#allocation133_spill] sm:$0xff] %v5026_v22  ;;  %9412 = vst [vmem:[#allocation134_spill] sm:$0xff] %v5028_v6 }
 0x22d   : > { %v5030_v43 = vpop.permute.xlu0 %1483  ;;  %v5032_v25 = vpop.permute.xlu1 %1481 }
 0x22e   : > { %9413 = vst [vmem:[#allocation135_spill] sm:$0xff] %v5030_v43  ;;  %9414 = vst [vmem:[#allocation136_spill] sm:$0xff] %v5032_v25  ;;  %v5135_v43 = vld [vmem:[%s4182_s6 + $0x58] sm:$0xff]  ;;  %v5145_v25 = vld [vmem:[%s4182_s6 + $0x60] sm:$0xfc] }
 0x22f   : > { %9439 = vst [vmem:[#allocation161_spill] sm:$0xff] %v5145_v25  ;;  %v1844_v31 = vmul.f32 %v4325_v14, %v5145_v25  ;;  %v5169_v25 = vld [vmem:[%s4182_s6 + $0x70] sm:$0xfc] }
 0x230   : > { %9441 = vst [vmem:[#allocation163_spill] sm:$0xff] %v5169_v25 }
 0x231   : > { %v5034_v20 = vpop.permute.xlu0 %1487  ;;  %v5036_v5 = vpop.permute.xlu1 %1485  ;;  %v1876_v17 = vrot.slane %v1844_v31, 1  ;;  %v1850_v31 = vmul.f32 %v4528_v45, %v4618_v26 }
 0x232   : > { %9415 = vst [vmem:[#allocation137_spill] sm:$0xff] %v5034_v20  ;;  %9416 = vst [vmem:[#allocation138_spill] sm:$0xff] %v5036_v5 }
 0x235   : > { %v5038_v19 = vpop.permute.xlu0 %1491  ;;  %v5040_v39 = vpop.permute.xlu1 %1489 }
 0x236   : > { %9417 = vst [vmem:[#allocation139_spill] sm:$0xff] %v5038_v19  ;;  %9418 = vst [vmem:[#allocation140_spill] sm:$0xff] %v5040_v39 }
 0x239   : > { %v5042_v15 = vpop.permute.xlu0 %1595  ;;  %v5044_v34 = vpop.permute.xlu1 %1593 }
 0x23a   : > { %9419 = vst [vmem:[#allocation141_spill] sm:$0xff] %v5042_v15  ;;  %9420 = vst [vmem:[#allocation142_spill] sm:$0xff] %v5044_v34 }
 0x23d   : > { %v5046_v30 = vpop.permute.xlu0 %1599  ;;  %v5048_v50 = vpop.permute.xlu1 %1597 }
 0x23e   : > { %9421 = vst [vmem:[#allocation143_spill] sm:$0xff] %v5046_v30  ;;  %9422 = vst [vmem:[#allocation144_spill] sm:$0xff] %v5048_v50 }
 0x241   : > { %v5050_v6 = vpop.permute.xlu0 %1603  ;;  %v5052_v57 = vpop.permute.xlu1 %1601 }
 0x242   : > { %9423 = vst [vmem:[#allocation145_spill] sm:$0xff] %v5050_v6  ;;  %9424 = vst [vmem:[#allocation146_spill] sm:$0xff] %v5052_v57 }
 0x245   : > { %v5054_v33 = vpop.permute.xlu0 %1607  ;;  %v5056_v55 = vpop.permute.xlu1 %1605 }
 0x246   : > { %9425 = vst [vmem:[#allocation147_spill] sm:$0xff] %v5054_v33  ;;  %9426 = vst [vmem:[#allocation148_spill] sm:$0xff] %v5056_v55 }
 0x249   : > { %v5058_v5 = vpop.permute.xlu0 %1611  ;;  %v5060_v19 = vpop.permute.xlu1 %1609 }
 0x24a   : > { %9427 = vst [vmem:[#allocation149_spill] sm:$0xff] %v5058_v5  ;;  %9428 = vst [vmem:[#allocation150_spill] sm:$0xff] %v5060_v19  ;;  %v5128_v5 = vld [vmem:[%s4182_s6 + $0x40] sm:$0xff] }
 0x24d   : > { %v5062_v20 = vpop.permute.xlu0 %1615  ;;  %v5064_v15 = vpop.permute.xlu1 %1613 }
 0x24e   : > { %9429 = vst [vmem:[#allocation151_spill] sm:$0xff] %v5062_v20  ;;  %9430 = vst [vmem:[#allocation152_spill] sm:$0xff] %v5064_v15  ;;  %v5104_v20 = vld [vmem:[%s4182_s6 + $0x20] sm:$0xff] }
 0x251   : > { %v5066_v34 = vpop.permute.xlu0 %1619  ;;  %v5068_v30 = vpop.permute.xlu1 %1617 }
 0x252   : > { %9431 = vst [vmem:[#allocation153_spill] sm:$0xff] %v5066_v34  ;;  %9432 = vst [vmem:[#allocation154_spill] sm:$0xff] %v5068_v30 }
 0x255   : > { %v5070_v6 = vpop.permute.xlu0 %1623  ;;  %v5072_v57 = vpop.permute.xlu1 %1621 }
 0x256   : > { %9433 = vst [vmem:[#allocation155_spill] sm:$0xff] %v5070_v6  ;;  %9434 = vst [vmem:[#allocation156_spill] sm:$0xff] %v5072_v57 }
 0x259   : > { %v1733_v33 = vpop.permute.xlu0 %1732  ;;  %v5074_v55 = vpop.permute.xlu1 %1730 }
 0x25a   : > { %9435 = vst [vmem:[#allocation157_spill] sm:$0xff] %v5074_v55  ;;  %v1742_v19 = vmul.f32 %v5074_v55, %v4367_v10  ;;  %v5080_v50 = vsel %vm352_vm0, %v5074_v55, %v1733_v33  ;;  %v1750_v15 = vmul.f32 %v5128_v5, %v5074_v55  ;;  %v1754_v21 = vmul.f32 %v5074_v55, %v4386_v58 }
 0x25b   : > { %9436 = vst [vmem:[#allocation158_spill] sm:$0xff] %v5080_v50  ;;  %v1743_v30 = vmul.f32 %v5080_v50, %v4531_v40  ;;  %v1755_v18 = vmul.f32 %v5080_v50, %v4557_v27 }
 0x25c   : > { %1774 = vrot.lane.b32.xlu0 %v1742_v19, %s4063_s7  ;;  %v5099_v19 = vld [vmem:[%s4182_s6 + $0x28] sm:$0xff] }
 0x25d   : > { %1776 = vrot.lane.b32.xlu1 %v1743_v30, %s4063_s7  ;;  %v5086_v6 = vpop.permute.xlu1 %1734  ;;  %v1747_v30 = vmul.f32 %v5099_v19, %v5080_v50 }
 0x25e   : > { %9437 = vst [vmem:[#allocation159_spill] sm:$0xff] %v5086_v6  ;;  %v1745_v34 = vmul.f32 %v5086_v6, %v4359_v54  ;;  %v5092_v10 = vsel %vm352_vm0, %v1733_v33, %v5086_v6  ;;  %v1746_v54 = vmul.f32 %v5104_v20, %v5074_v55  ;;  %v5111_v33 = vld [vmem:[%s4182_s6 + $0x38] sm:$0xff]  ;;  %v1757_v27 = vmul.f32 %v5086_v6, %v9442_v63 }
 0x25f   : > { %9438 = vst [vmem:[#allocation160_spill] sm:$0xff] %v5092_v10  ;;  %v1744_v57 = vmul.f32 %v5092_v10, %v4538_v48  ;;  %v1756_v58 = vmul.f32 %v5092_v10, %v4563_v1 }
 0x261   : > { %1780 = vrot.lane.b32.xlu1 %v1745_v34, %s4063_s7  ;;  %1778 = vrot.lane.b32.xlu0 %v1744_v57, %s4063_s7  ;;  %v1749_v57 = vmul.f32 %v5111_v33, %v5086_v6  ;;  %v5116_v34 = vld [vmem:[%s4182_s6 + $0x30] sm:$0xff] }
 0x262   : > { %v1748_v39 = vmul.f32 %v5116_v34, %v5092_v10 }
 0x265   : > { %1784 = vrot.lane.b32.xlu1 %v1747_v30, %s4063_s7  ;;  %1782 = vrot.lane.b32.xlu0 %v1746_v54, %s4063_s7  ;;  %v5123_v30 = vld [vmem:[%s4182_s6 + $0x48] sm:$0xff] }
 0x266   : > { %v1751_v54 = vmul.f32 %v5123_v30, %v5080_v50  ;;  %v5414_v9 = vmul.f32 %v5123_v30, %v4448_v7 }
 0x269   : > { %1788 = vrot.lane.b32.xlu1 %v1749_v57, %s4063_s7  ;;  %1786 = vrot.lane.b32.xlu0 %v1748_v39, %s4063_s7  ;;  %v1753_v39 = vmul.f32 %v5135_v43, %v5086_v6  ;;  %v5140_v57 = vld [vmem:[%s4182_s6 + $0x50] sm:$0xff]  ;;  %v1852_v6 = vmul.f32 %v4325_v14, %v4634_v42  ;;  %v5200_v42 = vld [vmem:[%s4182_s6 + $0xc0] sm:$0x3] }
 0x26a   : > { %v1752_v22 = vmul.f32 %v5140_v57, %v5092_v10  ;;  %9443 = vst [vmem:[#allocation24_spill] sm:$0xff] %v5200_v42  ;;  %v5378_v10 = vld [vmem:[%s4182_s6 + $0xf0] sm:$0xff] }
 0x26d   : > { %1792 = vrot.lane.b32.xlu1 %v1751_v54, %s4063_s7  ;;  %1790 = vrot.lane.b32.xlu0 %v1750_v15, %s4063_s7  ;;  %v1845_v15 = vmul.f32 %v4515_v32, %v5148_v59  ;;  %v1849_v54 = vmul.f32 %v4515_v32, %v4609_v56 }
 0x26f   : > { %v1879_v59 = vrot.slane %v1845_v15, 1  ;;  %v1880_v8 = vrot.slane %v1849_v54, 1 }
 0x271   : > { %1796 = vrot.lane.b32.xlu1 %v1753_v39, %s4063_s7  ;;  %1794 = vrot.lane.b32.xlu0 %v1752_v22, %s4063_s7  ;;  %v1848_v39 = vmul.f32 %v4325_v14, %v4606_v51  ;;  %v1842_v22 = vld [vmem:[%s4182_s6 + $0x78] sm:$0xfc]  ;;  %v1881_v15 = vsel %vm288_vm2, %v1879_v59, %v1880_v8  ;;  %v1855_v59 = vmul.f32 %v4653_v47, %v4354_v53 }
 0x272   : > { %v1847_v62 = vmul.f32 %v1842_v22, %v4354_v53  ;;  %v1853_v22 = vmul.f32 %v4515_v32, %v4637_v46 }
 0x273   : > { %v1877_v50 = vrot.slane %v1848_v39, 1  ;;  %v1894_v47 = vrot.slane %v1855_v59, 1 }
 0x274   : > { %v1885_v54 = vrot.slane %v1847_v62, 1  ;;  %v1854_v62 = vmul.f32 %v4528_v45, %v4650_v52  ;;  %v1890_v46 = vrot.slane %v1853_v22, 1 }
 0x275   : > { %1800 = vrot.lane.b32.xlu1 %v1755_v18, %s4063_s7  ;;  %1798 = vrot.lane.b32.xlu0 %v1754_v21, %s4063_s7  ;;  %v1851_v18 = vmul.f32 %v4621_v41, %v4354_v53  ;;  %v1846_v21 = vmul.f32 %v4528_v45, %v5169_v25  ;;  %v1878_v63 = vsel %vm288_vm2, %v1876_v17, %v1877_v50  ;;  %v1883_v41 = vrot.slane %v1850_v31, 1  ;;  %v9462_v25 = vld [vmem:[#allocation38_spill] sm:$0xff] }
 0x276   : > { %v1891_v31 = vsel %vm288_vm2, %v1880_v8, %v1890_v46 }
 0x277   : > { %v1886_v1 = vrot.slane %v1851_v18, 1  ;;  %v1882_v39 = vrot.slane %v1846_v21, 1  ;;  %v5203_v18 = vld [vmem:[%s4182_s6 + $0xc8] sm:$0x3]  ;;  %v1892_v21 = vrot.slane %v1854_v62, 1 }
 0x278   : > { %9444 = vst [vmem:[#allocation164_spill] sm:$0xff] %v5203_v18 }
 0x279   : > { %1804 = vrot.lane.b32.xlu1 %v1757_v27, %s4063_s7  ;;  %1802 = vrot.lane.b32.xlu0 %v1756_v58, %s4063_s7  ;;  %v1887_v17 = vsel %vm288_vm2, %v1885_v54, %v1886_v1  ;;  %v1884_v27 = vsel %vm288_vm2, %v1882_v39, %v1883_v41  ;;  %v1888_v58 = vrot.slane %v1852_v6, 1  ;;  %v1856_v6 = vmul.f32 %v4325_v14, %v5200_v42  ;;  %v1843_v54 = vld [vmem:[%s4182_s6 + $0xd8] sm:$0x3]  ;;  %v5215_v39 = vld [vmem:[%s4182_s6 + $0xd0] sm:$0x3] }
 0x27a   : > { %9445 = vst [vmem:[#allocation165_spill] sm:$0xff] %v5215_v39  ;;  %v1895_v22 = vsel %vm288_vm2, %v1886_v1, %v1894_v47  ;;  %v1859_v59 = vmul.f32 %v1843_v54, %v4354_v53  ;;  %v1893_v8 = vsel %vm288_vm2, %v1883_v41, %v1892_v21  ;;  %v2106_v54 = vmul.f32 %v4453_v60, %v4222_v38 }
 0x27b   : > { %v1896_v62 = vrot.slane %v1856_v6, 1 }
 0x27d   : > { %1906 = vrot.lane.b32.xlu1 %v1881_v15, %s4063_s7  ;;  %1904 = vrot.lane.b32.xlu0 %v1878_v63, %s4063_s7  ;;  %v1889_v15 = vsel %vm288_vm2, %v1877_v50, %v1888_v58  ;;  %v1857_v63 = vmul.f32 %v4515_v32, %v5203_v18  ;;  %v3861_v18 = vld [vmem:[%s4182_s6 + $0x10] sm:$0xff] }
 0x27f   : > { %v1898_v50 = vrot.slane %v1857_v63, 1 }
 0x281   : > { %1910 = vrot.lane.b32.xlu1 %v1887_v17, %s4063_s7  ;;  %1908 = vrot.lane.b32.xlu0 %v1884_v27, %s4063_s7  ;;  %v1858_v17 = vmul.f32 %v4528_v45, %v5215_v39  ;;  %v1899_v27 = vsel %vm288_vm2, %v1890_v46, %v1898_v50  ;;  %v2105_v46 = vmul.f32 %v4471_v11, %v4237_v44 }
 0x282   : > { %v2109_v11 = vmul.f32 %v4474_v12, %v4237_v44  ;;  %v2113_v12 = vmul.f32 %v4494_v16, %v4237_v44  ;;  %v2117_v16 = vmul.f32 %v4510_v61, %v4237_v44  ;;  %v2298_v61 = vmul.f32 %v4531_v40, %v4448_v7 }
 0x283   : > { %v1900_v1 = vrot.slane %v1858_v17, 1 }
 0x284   : > { %v2330_v40 = vrot.slane %v2298_v61, 7  ;;  %v9456_v61 = vld [vmem:[#allocation12_spill] sm:$0xff] }
 0x285   : > { %1914 = vrot.lane.b32.xlu1 %v1891_v31, %s4063_s7  ;;  %1912 = vrot.lane.b32.xlu0 %v1889_v15, %s4063_s7  ;;  %v1897_v31 = vsel %vm288_vm2, %v1888_v58, %v1896_v62  ;;  %v1902_v15 = vrot.slane %v1859_v59, 1  ;;  %v1901_v63 = vsel %vm288_vm2, %v1892_v21, %v1900_v1  ;;  %v5239_v58 = vld [vmem:[%s4182_s6 + $0xc0] sm:$0xfc]  ;;  %v5246_v21 = vld [vmem:[%s4182_s6 + $0xd8] sm:$0xfc] }
 0x286   : > { %9446 = vst [vmem:[#allocation166_spill] sm:$0xff] %v5239_v58  ;;  %9447 = vst [vmem:[#allocation167_spill] sm:$0xff] %v5246_v21  ;;  %v2107_v6 = vmul.f32 %v5246_v21, %v4186_v23  ;;  %v9463_v21 = vld [vmem:[#allocation39_spill] sm:$0xff] }
 0x287   : > { %v1903_v41 = vsel %vm288_vm2, %v1894_v47, %v1902_v15  ;;  %v2104_v47 = vmul.f32 %v5239_v58, %v4188_v24 }
 0x289   : > { %1918 = vrot.lane.b32.xlu1 %v1895_v22, %s4063_s7  ;;  %1916 = vrot.lane.b32.xlu0 %v1893_v8, %s4063_s7  ;;  %v5257_v22 = vld [vmem:[%s4182_s6 + $0xe0] sm:$0xff]  ;;  %v5264_v8 = vld [vmem:[%s4182_s6 + $0xf8] sm:$0xff] }
 0x28a   : > { %v2108_v59 = vmul.f32 %v5257_v22, %v4188_v24  ;;  %v2111_v60 = vmul.f32 %v5264_v8, %v4186_v23 }
 0x28d   : > { %1922 = vrot.lane.b32.xlu1 %v1899_v27, %s4063_s7  ;;  %1920 = vrot.lane.b32.xlu0 %v1897_v31, %s4063_s7  ;;  %v5282_v27 = vld [vmem:[%s4182_s6 + $0x118] sm:$0xff]  ;;  %v2114_v31 = vmul.f32 %v4491_v49, %v4222_v38 }
 0x28e   : > { %9448 = vst [vmem:[#allocation168_spill] sm:$0xff] %v5282_v27 }
 0x291   : > { %1926 = vrot.lane.b32.xlu1 %v1903_v41, %s4063_s7  ;;  %1924 = vrot.lane.b32.xlu0 %v1901_v63, %s4063_s7  ;;  %v5300_v41 = vld [vmem:[%s4182_s6 + $0x138] sm:$0x3]  ;;  %v2118_v63 = vmul.f32 %v4507_v28, %v4222_v38 }
 0x292   : > { %9449 = vst [vmem:[#allocation169_spill] sm:$0xff] %v5300_v41  ;;  %v2119_v49 = vmul.f32 %v5300_v41, %v4186_v23 }
 0x295   : > { %1930 = vrot.lane.b32.xlu1 %v1898_v50, %s4063_s7  ;;  %1928 = vrot.lane.b32.xlu0 %v1896_v62, %s4063_s7  ;;  %v2110_v50 = vmul.f32 %v4456_v0, %v4222_v38  ;;  %v5275_v62 = vld [vmem:[%s4182_s6 + $0x100] sm:$0xff]  ;;  %v2115_v0 = vmul.f32 %v5282_v27, %v4186_v23  ;;  %v5358_v38 = vmul.f32 %v5111_v33, %v4214_v35  ;;  %v9472_v27 = vrot.slane %v5414_v9, 7 }
 0x296   : > { %v2112_v17 = vmul.f32 %v5275_v62, %v4188_v24 }
 0x299   : > { %1934 = vrot.lane.b32.xlu1 %v1902_v15, %s4063_s7  ;;  %1932 = vrot.lane.b32.xlu0 %v1900_v1, %s4063_s7  ;;  %v5293_v15 = vld [vmem:[%s4182_s6 + $0x120] sm:$0x3] }
 0x29a   : > { %v2116_v1 = vmul.f32 %v5293_v15, %v4188_v24  ;;  %v5362_v24 = vmul.f32 %v5116_v34, %v4443_v36 }
 0x29d   : > { %2138 = vrot.lane.b32.xlu1 %v2105_v46, %s4063_s7  ;;  %2136 = vrot.lane.b32.xlu0 %v2104_v47, %s4063_s7  ;;  %v5309_v46 = vld [vmem:[%s4182_s6] sm:$0xfe] }
 0x29e   : > { %9450 = vst [vmem:[#allocation170_spill] sm:$0xff] %v5309_v46  ;;  %v2297_v47 = vmul.f32 %v5309_v46, %v4200_v29  ;;  %v5406_v46 = vmul.f32 %v9456_v61, %v9463_v21 }
 0x2a1   : > { %2142 = vrot.lane.b32.xlu1 %v2107_v6, %s4063_s7  ;;  %2140 = vrot.lane.b32.xlu0 %v2106_v54, %s4063_s7  ;;  %v9451_v6 = vld [vmem:[#allocation31_spill] sm:$0xff]  ;;  %v9452_v54 = vld [vmem:[#allocation13_spill] sm:$0xff] }
 0x2a2   : > { %v5319_v28 = vmul.f32 %v9452_v54, %v4618_v26  ;;  %v5338_v26 = vmul.f32 %v5104_v20, %v4200_v29 }
 0x2a4   : > { %v2333_v39 = vrot.slane %v5338_v26, 7 }
 0x2a5   : > { %2146 = vrot.lane.b32.xlu1 %v2109_v11, %s4063_s7  ;;  %2144 = vrot.lane.b32.xlu0 %v2108_v59, %s4063_s7  ;;  %v266_v11 = vmul.f32 %v9452_v54, %v9451_v6  ;;  %v208_v59 = vld [vmem:[#allocation2] ss:$8 sm:$0x7] }
 0x2a9   : > { %2150 = vrot.lane.b32.xlu1 %v2111_v60, %s4063_s7  ;;  %2148 = vrot.lane.b32.xlu0 %v2110_v50, %s4063_s7  ;;  %v448_v60 = vld [vmem:[#allocation2 + $0x3] ss:$8 sm:$0x7]  ;;  %v2329_v50 = vrot.slane %v2297_v47, 7  ;;  %v5348_v47 = vrot.slane %v208_v59, %v4135_v2 }
 0x2aa   : > { %v5351_v6 = vrot.slane %v448_v60, %v4135_v2  ;;  %v5398_v42 = vrot.slane %v448_v60, %v4137_v3 }
 0x2ab   : > { %9457 = vst [vmem:[#allocation172_spill] sm:$0xff] %v5348_v47 }
 0x2ac   : > { %9458 = vst [vmem:[#allocation173_spill] sm:$0xff] %v5351_v6  ;;  %9461 = vst [vmem:[#allocation175_spill] sm:$0xff] %v5398_v42 }
 0x2ad   : > { %2154 = vrot.lane.b32.xlu1 %v2113_v12, %s4063_s7  ;;  %2152 = vrot.lane.b32.xlu0 %v2112_v17, %s4063_s7  ;;  %v3858_v12 = vld [vmem:[%s4182_s6 + $0x18] sm:$0xfe] }
 0x2ae   : > { %v2300_v17 = vmul.f32 %v3858_v12, %v4214_v35  ;;  %v295_v12 = vrot.slane %v266_v11, 1 }
 0x2b0   : > { %v2332_v55 = vrot.slane %v2300_v17, 7  ;;  %v227_v17 = vmul.f32 %v3861_v18, %v5348_v47 }
 0x2b1   : > { %2158 = vrot.lane.b32.xlu1 %v2115_v0, %s4063_s7  ;;  %2156 = vrot.lane.b32.xlu0 %v2114_v31, %s4063_s7  ;;  %v2299_v0 = vmul.f32 %v4538_v48, %v4443_v36  ;;  %v5326_v31 = vld [vmem:[%s4182_s6 + $0x60] sm:$0xfe] }
 0x2b2   : > { %9453 = vst [vmem:[#allocation31_spill] sm:$0xff] %v5326_v31 }
 0x2b3   : > { %v2331_v23 = vrot.slane %v2299_v0, 7  ;;  %v5371_v0 = vld [vmem:[%s4182_s6 + $0xd0] sm:$0xfc] }
 0x2b4   : > { %9459 = vst [vmem:[#allocation174_spill] sm:$0xff] %v5371_v0  ;;  %v5375_v33 = vmul.f32 %v5371_v0, %v5351_v6 }
 0x2b5   : > { %2162 = vrot.lane.b32.xlu1 %v2117_v16, %s4063_s7  ;;  %2160 = vrot.lane.b32.xlu0 %v2116_v1, %s4063_s7  ;;  %v9454_v16 = vld [vmem:[#allocation11_spill] sm:$0xff] }
 0x2b6   : > { %v5330_v1 = vmul.f32 %v5326_v31, %v9454_v16  ;;  %v5391_v26 = vmul.f32 %v9454_v16, %v4606_v51  ;;  %v5402_v0 = vmul.f32 %v9454_v16, %v9462_v25  ;;  %v5418_v25 = vmul.f32 %v5128_v5, %v4200_v29 }
 0x2b7   : > { %v496_v21 = vrot.slane %v5375_v33, 2  ;;  %v5427_v51 = vrot.slane %v448_v60, %v4139_v4  ;;  %v465_v33 = vmul.f32 %v5239_v58, %v5398_v42  ;;  %v5440_v60 = vmul.f32 %v5257_v22, %v5398_v42 }
 0x2b8   : > { %v289_v44 = vrot.slane %v5330_v1, 1  ;;  %v5382_v1 = vmul.f32 %v5378_v10, %v5351_v6 }
 0x2b9   : > { %2166 = vrot.lane.b32.xlu1 %v2119_v49, %s4063_s7  ;;  %2164 = vrot.lane.b32.xlu0 %v2118_v63, %s4063_s7  ;;  %v5334_v49 = vmul.f32 %v5099_v19, %v4448_v7  ;;  %v5341_v63 = vld [vmem:[%s4182_s6 + $0x68] sm:$0xfe]  ;;  %9466 = vst [vmem:[#allocation176_spill] sm:$0xff] %v5427_v51 }
 0x2ba   : > { %9455 = vst [vmem:[#allocation171_spill] sm:$0xff] %v5341_v63  ;;  %v5345_v48 = vmul.f32 %v5341_v63, %v9456_v61 }
 0x2bb   : > { %v2335_v41 = vrot.slane %v5334_v49, 7  ;;  %v9460_v49 = vrot.slane %v5319_v28, 1 }
 0x2bc   : > { %v292_v11 = vrot.slane %v5345_v48, 1  ;;  %v5395_v48 = vmul.f32 %v9456_v61, %v4609_v56  ;;  %v2334_v56 = vsel %vm1127_vm3, %v2329_v50, %v2333_v39 }
 0x2bd   : > { %2359 = vrot.lane.b32.xlu1 %v2330_v40, %s4063_s7  ;;  %2357 = vrot.lane.b32.xlu0 %v2329_v50, %s4063_s7  ;;  %v297_v18 = vsel %vm288_vm2, %v295_v12, %v9460_v49  ;;  %v2336_v49 = vsel %vm1127_vm3, %v2330_v40, %v2335_v41  ;;  %v5424_v12 = vrot.slane %v208_v59, %v4137_v3  ;;  %v9468_v50 = vrot.slane %v5362_v24, 7 }
 0x2be   : > { %v5420_v2 = vadd.f32 %v297_v18, %v227_v17  ;;  %v5432_v40 = vrot.slane %v208_v59, %v4139_v4  ;;  %v5444_v18 = vmul.f32 %v9452_v54, %v4650_v52  ;;  %v5448_v59 = vmul.f32 %v5135_v43, %v4214_v35  ;;  %v5464_v4 = vld [vmem:[%s4182_s6 + $0xc8] sm:$0xfc] }
 0x2bf   : > { %9465 = vst [vmem:[#allocation39_spill] sm:$0xff] %v5424_v12  ;;  %9469 = vst [vmem:[#allocation177_spill] sm:$0xff] %v5464_v4  ;;  %v466_v3 = vmul.f32 %v5464_v4, %v5427_v51  ;;  %v9471_v58 = vrot.slane %v5395_v48, 1  ;;  %v490_v4 = vrot.slane %v465_v33, 2  ;;  %v5503_v33 = vld [vmem:[%s4182_s6 + $0x60] sm:$0x1] }
 0x2c0   : > { %9464 = vst [vmem:[#allocation38_spill] sm:$0xff] %v5420_v2  ;;  %v2338_v2 = vsel %vm1127_vm3, %v2331_v23, %v9468_v50  ;;  %v9470_v50 = vrot.slane %v5391_v26, 1  ;;  %v226_v63 = vmul.f32 %v3867_v37, %v5432_v40 }
 0x2c1   : > { %2363 = vrot.lane.b32.xlu1 %v2332_v55, %s4063_s7  ;;  %2361 = vrot.lane.b32.xlu0 %v2331_v23, %s4063_s7  ;;  %v294_v52 = vsel %vm288_vm2, %v292_v11, %v9471_v58  ;;  %v5498_v11 = vld [vmem:[%s4182_s6 + $0x68] sm:$0x1]  ;;  %v493_v31 = vrot.slane %v466_v3, 2  ;;  %v230_v3 = vmul.f32 %v5116_v34, %v5348_v47 }
 0x2c2   : > { %v291_v43 = vsel %vm288_vm2, %v289_v44, %v9470_v50  ;;  %v2344_v44 = vsel %vm1127_vm3, %v2335_v41, %v9472_v27  ;;  %v9473_v50 = vrot.slane %v5418_v25, 7  ;;  %9474 = vst [vmem:[#allocation178_spill] sm:$0xff] %v5498_v11  ;;  %v2310_v37 = vmul.f32 %v5498_v11, %v4448_v7  ;;  %v5510_v41 = vld [vmem:[%s4182_s6 + $0x110] sm:$0xff]  ;;  %v3871_v27 = vld [vmem:[%s4182_s6 + $0x78] sm:$0x1] }
 0x2c3   : > { %v2312_v7 = vmul.f32 %v3871_v27, %v4214_v35  ;;  %v9483_v27 = vrot.slane %v5319_v28, 1  ;;  %v2426_v28 = vld [vmem:[%s4182_s6 + $0xc8] sm:$0xf8] }
 0x2c4   : > { %v2342_v58 = vsel %vm1127_vm3, %v2333_v39, %v9473_v50  ;;  %v5514_v39 = vmul.f32 %v5510_v41, %v5351_v6  ;;  %v9475_v50 = vrot.slane %v5382_v1, 2 }
 0x2c5   : > { %2367 = vrot.lane.b32.xlu1 %v2336_v49, %s4063_s7  ;;  %2365 = vrot.lane.b32.xlu0 %v2334_v56, %s4063_s7  ;;  %v5452_v49 = vmul.f32 %v5140_v57, %v4443_v36  ;;  %v9467_v56 = vrot.slane %v5358_v38, 7 }
 0x2c7   : > { %v2340_v17 = vsel %vm1127_vm3, %v2332_v55, %v9467_v56  ;;  %v5473_v55 = vmul.f32 %v5469_v13, %v5427_v51  ;;  %v3866_v56 = vld [vmem:[%s4182_s6] sm:$0xff] }
 0x2c8   : > { %v225_v23 = vmul.f32 %v3866_v56, %v5424_v12  ;;  %v5521_v56 = vsel %vm489_vm1, %v496_v21, %v9475_v50  ;;  %v5541_v50 = vadd.f32 %v294_v52, %v226_v63  ;;  %v9488_v63 = vrot.slane %v5362_v24, 7  ;;  %v2425_v24 = vld [vmem:[%s4182_s6 + $0xc0] sm:$0xf8] }
 0x2c9   : > { %2371 = vrot.lane.b32.xlu1 %v2340_v17, %s4063_s7  ;;  %2369 = vrot.lane.b32.xlu0 %v2338_v2, %s4063_s7  ;;  %v2309_v2 = vmul.f32 %v5503_v33, %v4200_v29  ;;  %9476 = vst [vmem:[#allocation179_spill] sm:$0xff] %v5521_v56  ;;  %v5530_v29 = vld [vmem:[%s4182_s6 + $0x70] sm:$0x1] }
 0x2ca   : > { %v5539_v21 = vadd.f32 %v291_v43, %v225_v23  ;;  %9481 = vst [vmem:[#allocation183_spill] sm:$0xff] %v5541_v50  ;;  %v9487_v43 = vrot.slane %v5452_v49, 7  ;;  %v2351_v23 = vrot.slane %v2310_v37, 7  ;;  %v9491_v50 = vld [vmem:[#allocation42_spill] sm:$0xff] }
 0x2cb   : > { %v5584_v37 = vld [vmem:[%s4182_s6 + $0xa8] sm:$0xff] }
 0x2cc   : > { %9480 = vst [vmem:[#allocation182_spill] sm:$0xff] %v5539_v21  ;;  %v2346_v52 = vsel %vm1127_vm3, %v9488_v63, %v9487_v43  ;;  %v229_v63 = vmul.f32 %v5099_v19, %v5432_v40 }
 0x2cd   : > { %2375 = vrot.lane.b32.xlu1 %v2344_v44, %s4063_s7  ;;  %2373 = vrot.lane.b32.xlu0 %v2342_v58, %s4063_s7  ;;  %v2311_v44 = vmul.f32 %v5530_v29, %v4443_v36  ;;  %v9478_v58 = vrot.slane %v5440_v60, 2  ;;  %v9485_v36 = vrot.slane %v5448_v59, 7 }
 0x2ce   : > { %v5525_v17 = vpop.permute.xlu0 %1774 }
 0x2cf   : > { %9477 = vst [vmem:[#allocation180_spill] sm:$0xff] %v5525_v17  ;;  %v5537_v11 = vsel %vm489_vm1, %v490_v4, %v9478_v58  ;;  %v9482_v17 = vrot.slane %v5444_v18, 1  ;;  %v5548_v56 = vpop.permute.xlu1 %1776  ;;  %v9486_v4 = vrot.slane %v5358_v38, 7  ;;  %v275_v38 = vmul.f32 %v9452_v54, %v9491_v50 }
 0x2d0   : > { %9479 = vst [vmem:[#allocation181_spill] sm:$0xff] %v5537_v11  ;;  %9484 = vst [vmem:[#allocation184_spill] sm:$0xff] %v5548_v56  ;;  %v2349_v11 = vrot.slane %v2309_v2, 7  ;;  %v5577_v2 = vld [vmem:[%s4182_s6 + $0xa0] sm:$0xff]  ;;  %v5588_v50 = vmul.f32 %v5584_v37, %v9456_v61  ;;  %v2353_v43 = vrot.slane %v2311_v44, 7  ;;  %v2578_v56 = vmul.f32 %v2426_v28, %v4515_v32 }
 0x2d1   : > { %v303_v35 = vsel %vm288_vm2, %v9483_v27, %v9482_v17  ;;  %v2348_v58 = vsel %vm1127_vm3, %v9486_v4, %v9485_v36  ;;  %v9489_v17 = vrot.slane %v5473_v55, 2  ;;  %v5571_v36 = vmul.f32 %v5104_v20, %v5424_v12  ;;  %2377 = vrot.lane.b32.xlu0 %v2346_v52, %s4063_s7 }
 0x2d2   : > { %2379 = vrot.lane.b32.xlu1 %v2348_v58, %s4063_s7  ;;  %v2355_v4 = vrot.slane %v2312_v7, 7  ;;  %v5590_v58 = vadd.f32 %v303_v35, %v230_v3  ;;  %v9495_v7 = vrot.slane %v5414_v9, 7  ;;  %v9496_v35 = vrot.slane %v5418_v25, 7 }
 0x2d3   : > { %v5564_v27 = vsel %vm489_vm1, %v493_v31, %v9489_v17  ;;  %v5581_v31 = vmul.f32 %v5577_v2, %v9454_v16  ;;  %v5594_v52 = vpop.permute.xlu0 %1778  ;;  %v5596_v17 = vpop.permute.xlu1 %1780  ;;  %v5601_v16 = vmul.f32 %v5469_v13, %v4515_v32  ;;  %v2577_v54 = vmul.f32 %v2425_v24, %v4325_v14  ;;  %v2427_v24 = vld [vmem:[%s4182_s6 + $0xd0] sm:$0xf8] }
 0x2d4   : > { %9490 = vst [vmem:[#allocation185_spill] sm:$0xff] %v5564_v27  ;;  %9492 = vst [vmem:[#allocation42_spill] sm:$0xff] %v5590_v58  ;;  %v2352_v44 = vsel %vm1127_vm3, %v9495_v7, %v2351_v23  ;;  %v2350_v3 = vsel %vm1127_vm3, %v9496_v35, %v2349_v11  ;;  %v9497_v28 = vrot.slane %v5514_v39, 2  ;;  %v9498_v61 = vrot.slane %v5382_v1, 2  ;;  %v5627_v11 = vld [vmem:[%s4182_s6 + $0x108] sm:$0xff] }
 0x2d5   : > { %9493 = vst [vmem:[#allocation186_spill] sm:$0xff] %v5594_v52  ;;  %9494 = vst [vmem:[#allocation187_spill] sm:$0xff] %v5596_v17  ;;  %v5612_v52 = vmul.f32 %v5257_v22, %v4325_v14  ;;  %v2575_v17 = vld [vmem:[%s4182_s6 + $0xd8] sm:$0xf8]  ;;  %v308_v9 = vrot.slane %v275_v38, 1  ;;  %v5624_v25 = vmul.f32 %v5275_v62, %v5398_v42  ;;  %v5631_v23 = vmul.f32 %v5627_v11, %v5427_v51 }
 0x2d6   : > { %v5620_v27 = vsel %vm489_vm1, %v9498_v61, %v9497_v28  ;;  %2383 = vrot.lane.b32.xlu1 %v2352_v44, %s4063_s7  ;;  %2381 = vrot.lane.b32.xlu0 %v2350_v3, %s4063_s7  ;;  %v298_v1 = vrot.slane %v5581_v31, 1  ;;  %v300_v61 = vrot.slane %v5588_v50, 1  ;;  %v9500_v38 = vrot.slane %v5448_v59, 7  ;;  %v5667_v3 = vld [vmem:[%s4182_s6 + $0x130] sm:$0x3] }
 0x2d7   : > { %9499 = vst [vmem:[#allocation188_spill] sm:$0xff] %v5620_v27  ;;  %v9501_v35 = vrot.slane %v5452_v49, 7  ;;  %v5644_v27 = vpop.permute.xlu0 %1782  ;;  %v5646_v58 = vpop.permute.xlu1 %1784  ;;  %v2612_v44 = vrot.slane %v2578_v56, 1  ;;  %v2580_v31 = vmul.f32 %v2575_v17, %v4354_v53  ;;  %v5652_v50 = vmul.f32 %v5264_v8, %v4354_v53 }
 0x2d8   : > { %v2356_v7 = vsel %vm1127_vm3, %v9500_v38, %v2355_v4  ;;  %9502 = vst [vmem:[#allocation189_spill] sm:$0xff] %v5644_v27  ;;  %9503 = vst [vmem:[#allocation190_spill] sm:$0xff] %v5646_v58  ;;  %v2609_v59 = vrot.slane %v2577_v54, 1  ;;  %v2579_v49 = vmul.f32 %v2427_v24, %v4528_v45  ;;  %v306_v38 = vrot.slane %v5406_v46, 1 }
 0x2d9   : > { %v2354_v28 = vsel %vm1127_vm3, %v9501_v35, %v2353_v43  ;;  %v5658_v43 = vmul.f32 %v5378_v10, %v4528_v45  ;;  %v233_v56 = vmul.f32 %v5140_v57, %v5348_v47  ;;  %v9504_v17 = vrot.slane %v5444_v18, 1 }
 0x2da   : > { %v476_v54 = vmul.f32 %v5667_v3, %v5351_v6  ;;  %2387 = vrot.lane.b32.xlu1 %v2356_v7, %s4063_s7  ;;  %2385 = vrot.lane.b32.xlu0 %v2354_v28, %s4063_s7  ;;  %v9505_v24 = vrot.slane %v5391_v26, 1  ;;  %v9506_v4 = vrot.slane %v5395_v48, 1  ;;  %v9509_v7 = vrot.slane %v5601_v16, 1 }
 0x2db   : > { %v309_v35 = vsel %vm288_vm2, %v9504_v17, %v308_v9  ;;  %v5681_v17 = vpop.permute.xlu0 %1786  ;;  %v5683_v58 = vpop.permute.xlu1 %1788  ;;  %v2618_v21 = vrot.slane %v2580_v31, 1  ;;  %v5691_v48 = vmul.f32 %v5627_v11, %v4515_v32  ;;  %v2615_v9 = vrot.slane %v2579_v49, 1 }
 0x2dc   : > { %v299_v46 = vsel %vm288_vm2, %v9505_v24, %v298_v1  ;;  %v301_v27 = vsel %vm288_vm2, %v9506_v4, %v300_v61  ;;  %9507 = vst [vmem:[#allocation191_spill] sm:$0xff] %v5681_v17  ;;  %9508 = vst [vmem:[#allocation192_spill] sm:$0xff] %v5683_v58  ;;  %v2614_v28 = vsel %vm288_vm2, %v2612_v44, %v9509_v7  ;;  %v9510_v4 = vrot.slane %v5612_v52, 1 }
 0x2dd   : > { %v9108_v18 = vrot.slane %v5658_v43, 1  ;;  %v5699_v58 = vmul.f32 %v5275_v62, %v4325_v14  ;;  %v5702_v44 = vadd.f32 %v299_v46, %v5571_v36  ;;  %v5704_v31 = vadd.f32 %v301_v27, %v229_v63 }
 0x2de   : > { %v2611_v24 = vsel %vm288_vm2, %v2609_v59, %v9510_v4  ;;  %v5706_v7 = vadd.f32 %v309_v35, %v233_v56  ;;  %v509_v26 = vrot.slane %v476_v54, 2  ;;  %2639 = vrot.lane.b32.xlu1 %v2614_v28, %s4063_s7  ;;  %v9511_v59 = vrot.slane %v5624_v25, 2 }
 0x2df   : > { %2637 = vrot.lane.b32.xlu0 %v2611_v24, %s4063_s7  ;;  %v9512_v49 = vrot.slane %v5440_v60, 2  ;;  %v231_v27 = vmul.f32 %v5128_v5, %v5424_v12  ;;  %v232_v36 = vmul.f32 %v5123_v30, %v5432_v40  ;;  %v9514_v63 = vrot.slane %v5402_v0, 1  ;;  %v5729_v54 = vpop.permute.xlu0 %1790  ;;  %v5731_v46 = vpop.permute.xlu1 %1792 }
 0x2e0   : > { %v307_v35 = vsel %vm288_vm2, %v300_v61, %v306_v38  ;;  %v5727_v60 = vmul.f32 %v5293_v15, %v5398_v42  ;;  %9515 = vst [vmem:[#allocation194_spill] sm:$0xff] %v5729_v54  ;;  %9516 = vst [vmem:[#allocation195_spill] sm:$0xff] %v5731_v46  ;;  %v9517_v28 = vrot.slane %v5652_v50, 1  ;;  %v9518_v38 = vld [vmem:[#allocation168_spill] sm:$0xff]  ;;  %v2428_v54 = vld [vmem:[%s4182_s6 + $0x120] sm:$0x7] }
 0x2e1   : > { %v5715_v4 = vsel %vm489_vm1, %v9512_v49, %v9511_v59  ;;  %v305_v56 = vsel %vm288_vm2, %v298_v1, %v9514_v63  ;;  %v2617_v1 = vsel %vm288_vm2, %v2615_v9, %v9108_v18  ;;  %v5743_v59 = vmul.f32 %v9518_v38, %v4354_v53  ;;  %v2429_v63 = vld [vmem:[%s4182_s6 + $0x128] sm:$0x7] }
 0x2e2   : > { %9513 = vst [vmem:[#allocation193_spill] sm:$0xff] %v5715_v4  ;;  %v2620_v24 = vsel %vm288_vm2, %v2618_v21, %v9517_v28  ;;  %v5747_v49 = vmul.f32 %v5510_v41, %v4528_v45  ;;  %v9519_v21 = vrot.slane %v5631_v23, 2  ;;  %v9520_v28 = vrot.slane %v5473_v55, 2  ;;  %v5764_v61 = vld [vmem:[%s4182_s6 + $0x128] sm:$0x3]  ;;  %v9548_v4 = vld [vmem:[#allocation48_spill] sm:$0xff] }
 0x2e3   : > { %v9522_v9 = vrot.slane %v5514_v39, 2  ;;  %v475_v17 = vmul.f32 %v5764_v61, %v5427_v51  ;;  %2643 = vrot.lane.b32.xlu1 %v2620_v24, %s4063_s7  ;;  %2641 = vrot.lane.b32.xlu0 %v2617_v1, %s4063_s7  ;;  %v5770_v46 = vadd.f32 %v305_v56, %v231_v27  ;;  %v5772_v55 = vadd.f32 %v307_v35, %v232_v36  ;;  %v772_v51 = vld [vmem:[#allocation2 + $0x6] ss:$8 sm:$0x7]  ;;  %v5783_v24 = vpop.permute.xlu0 %1794  ;;  %v5785_v27 = vpop.permute.xlu1 %1796 }
 0x2e4   : > { %v5756_v0 = vsel %vm489_vm1, %v9520_v28, %v9519_v21  ;;  %v3878_v21 = vld [vmem:[%s4182_s6 + $0x70] sm:$0xfe]  ;;  %9529 = vst [vmem:[#allocation200_spill] sm:$0xff] %v5783_v24  ;;  %9530 = vst [vmem:[#allocation201_spill] sm:$0xff] %v5785_v27  ;;  %v5788_v36 = vmul.f32 %v2429_v63, %v4515_v32  ;;  %v5791_v56 = vmul.f32 %v2428_v54, %v4325_v14  ;;  %v9531_v35 = vrot.slane %v5691_v48, 1 }
 0x2e5   : > { %9521 = vst [vmem:[#allocation168_spill] sm:$0xff] %v5756_v0  ;;  %v5761_v18 = vsel %vm489_vm1, %v9522_v9, %v509_v26  ;;  %9524 = vst [vmem:[#allocation197_spill] sm:$0xff] %v5770_v46  ;;  %v5776_v39 = vmul.f32 %v3878_v21, %v5348_v47  ;;  %v505_v26 = vrot.slane %v5727_v60, 2  ;;  %v9527_v28 = vld [vmem:[#allocation31_spill] sm:$0xff]  ;;  %v9532_v60 = vrot.slane %v5601_v16, 1  ;;  %v9537_v16 = vld [vmem:[#allocation114_spill] sm:$0xff] }
 0x2e6   : > { %9523 = vst [vmem:[#allocation196_spill] sm:$0xff] %v5761_v18  ;;  %9525 = vst [vmem:[#allocation198_spill] sm:$0xff] %v5772_v55  ;;  %v5781_v9 = vmul.f32 %v9527_v28, %v5424_v12  ;;  %v9533_v21 = vrot.slane %v5699_v58, 1  ;;  %v9534_v28 = vrot.slane %v5612_v52, 1  ;;  %v2576_v32 = vld [vmem:[%s4182_s6 + $0x138] sm:$0x7] }
 0x2e7   : > { %9526 = vst [vmem:[#allocation199_spill] sm:$0xff] %v5776_v39  ;;  %v2624_v1 = vsel %vm288_vm2, %v9532_v60, %v9531_v35  ;;  %v507_v54 = vrot.slane %v475_v17, 2  ;;  %v9535_v14 = vld [vmem:[#allocation171_spill] sm:$0xff]  ;;  %v3880_v17 = vld [vmem:[%s4182_s6 + $0xc0] sm:$0x1]  ;;  %v9543_v63 = vld [vmem:[#allocation8_spill] sm:$0xff] }
 0x2e8   : > { %9528 = vst [vmem:[#allocation31_spill] sm:$0xff] %v5781_v9  ;;  %v2622_v27 = vsel %vm288_vm2, %v9534_v28, %v9533_v21  ;;  %v5808_v39 = vmul.f32 %v9535_v14, %v5432_v40  ;;  %v9538_v9 = vld [vmem:[#allocation51_spill] sm:$0xff]  ;;  %2647 = vrot.lane.b32.xlu1 %v2624_v1, %s4063_s7  ;;  %v5825_v14 = vmul.f32 %v3880_v17, %v5424_v12  ;;  %v3881_v24 = vld [vmem:[%s4182_s6 + $0xc8] sm:$0x1] }
 0x2e9   : > { %v561_v35 = vmul.f32 %v9538_v9, %v9537_v16  ;;  %v9539_v60 = vld [vmem:[#allocation115_spill] sm:$0xff]  ;;  %2645 = vrot.lane.b32.xlu0 %v2622_v27, %s4063_s7  ;;  %v5829_v16 = vmul.f32 %v3881_v24, %v5432_v40  ;;  %v9547_v27 = vld [vmem:[#allocation112_spill] sm:$0xff]  ;;  %v9551_v24 = vrot.slane %v5743_v59, 1 }
 0x2ea   : > { %9536 = vst [vmem:[#allocation171_spill] sm:$0xff] %v5808_v39  ;;  %v5814_v18 = vmul.f32 %v9538_v9, %v9539_v60  ;;  %v2430_v52 = vld [vmem:[%s4182_s6 + $0x130] sm:$0x7]  ;;  %9541 = vst [vmem:[#allocation115_spill] sm:$0xff] %v5825_v14  ;;  %v5832_v60 = vrot.slane %v772_v51, %v9543_v63  ;;  %v9545_v39 = vld [vmem:[#allocation110_spill] sm:$0xff]  ;;  %v560_v42 = vmul.f32 %v9548_v4, %v9547_v27  ;;  %v9552_v63 = vrot.slane %v5652_v50, 1 }
 0x2eb   : > { %v3879_v21 = vld [vmem:[%s4182_s6 + $0xd0] sm:$0x1]  ;;  %9542 = vst [vmem:[#allocation202_spill] sm:$0xff] %v5829_v16  ;;  %v5844_v14 = vmul.f32 %v2576_v32, %v4354_v53  ;;  %v9554_v27 = vrot.slane %v5658_v43, 1  ;;  %v590_v17 = vrot.slane %v561_v35, 3  ;;  %v9556_v50 = vld [vmem:[#allocation113_spill] sm:$0xff] }
 0x2ec   : > { %v5821_v28 = vmul.f32 %v3879_v21, %v5348_v47  ;;  %9544 = vst [vmem:[#allocation203_spill] sm:$0xff] %v5832_v60  ;;  %v9546_v1 = vld [vmem:[#allocation47_spill] sm:$0xff]  ;;  %v5838_v21 = vpop.permute.xlu0 %1798  ;;  %v2628_v16 = vsel %vm288_vm2, %v9552_v63, %v9551_v24  ;;  %v5867_v63 = vmul.f32 %v9548_v4, %v9556_v50  ;;  %v9557_v43 = vrot.slane %v5624_v25, 2 }
 0x2ed   : > { %v559_v0 = vmul.f32 %v9546_v1, %v9545_v39  ;;  %9549 = vst [vmem:[#allocation110_spill] sm:$0xff] %v5838_v21  ;;  %v9553_v39 = vrot.slane %v5747_v49, 1  ;;  %v9555_v53 = vld [vmem:[#allocation111_spill] sm:$0xff]  ;;  %2651 = vrot.lane.b32.xlu1 %v2628_v16, %s4063_s7  ;;  %v9562_v16 = vrot.slane %v5631_v23, 2  ;;  %v794_v25 = vmul.f32 %v5116_v34, %v5832_v60 }
 0x2ee   : > { %9540 = vst [vmem:[#allocation114_spill] sm:$0xff] %v5821_v28  ;;  %v5840_v28 = vpop.permute.xlu1 %1800  ;;  %v5863_v46 = vmul.f32 %v9546_v1, %v9555_v53  ;;  %v5877_v35 = vld [vmem:[%s4182_s6 + $0x10] sm:$0xfe]  ;;  %v9559_v53 = vld [vmem:[#allocation9_spill] sm:$0xff] }
 0x2ef   : > { %9550 = vst [vmem:[#allocation112_spill] sm:$0xff] %v5840_v28  ;;  %v2626_v55 = vsel %vm288_vm2, %v9554_v27, %v9553_v39  ;;  %v5858_v28 = vmul.f32 %v2430_v52, %v4528_v45  ;;  %v5874_v52 = vsel %vm489_vm1, %v9557_v43, %v505_v26  ;;  %9558 = vst [vmem:[#allocation111_spill] sm:$0xff] %v5877_v35  ;;  %v9561_v27 = vld [vmem:[#allocation118_spill] sm:$0xff]  ;;  %v584_v26 = vrot.slane %v559_v0, 3 }
 0x2f0   : > { %2649 = vrot.lane.b32.xlu0 %v2626_v55, %s4063_s7  ;;  %v791_v24 = vmul.f32 %v5877_v35, %v5832_v60  ;;  %v5882_v39 = vrot.slane %v772_v51, %v9559_v53  ;;  %v5886_v50 = vmul.f32 %v9538_v9, %v9561_v27  ;;  %v5891_v55 = vsel %vm489_vm1, %v9562_v16, %v507_v54  ;;  %v9563_v43 = vld [vmem:[#allocation10_spill] sm:$0xff]  ;;  %v5898_v21 = vpop.permute.xlu0 %1802 }
 0x2f1   : > { %v5896_v32 = vrot.slane %v772_v51, %v9563_v43  ;;  %9565 = vst [vmem:[#allocation204_spill] sm:$0xff] %v5898_v21  ;;  %v9567_v27 = vrot.slane %v5788_v36, 1  ;;  %v9568_v35 = vrot.slane %v5691_v48, 1  ;;  %v9569_v54 = vrot.slane %v5791_v56, 1 }
 0x2f2   : > { %9560 = vst [vmem:[#allocation113_spill] sm:$0xff] %v5882_v39  ;;  %v5900_v53 = vpop.permute.xlu1 %1804  ;;  %v9570_v16 = vrot.slane %v5699_v58, 1  ;;  %v9129_v51 = vrot.slane %v5844_v14, 1  ;;  %v9571_v43 = vrot.slane %v5814_v18, 3  ;;  %v585_v21 = vrot.slane %v5863_v46, 3 }
 0x2f3   : > { %9564 = vst [vmem:[#allocation118_spill] sm:$0xff] %v5896_v32  ;;  %9566 = vst [vmem:[#allocation205_spill] sm:$0xff] %v5900_v53  ;;  %v2632_v23 = vsel %vm288_vm2, %v9568_v35, %v9567_v27  ;;  %v587_v48 = vrot.slane %v560_v42, 3  ;;  %v588_v35 = vrot.slane %v5867_v63, 3  ;;  %v819_v58 = vrot.slane %v791_v24, 1  ;;  %v9573_v27 = vld [vmem:[#allocation170_spill] sm:$0xff] }
 0x2f4   : > { %v2630_v34 = vsel %vm288_vm2, %v9570_v16, %v9569_v54  ;;  %v5917_v53 = vsel %vm583_vm4, %v590_v17, %v9571_v43  ;;  %2655 = vrot.lane.b32.xlu1 %v2632_v23, %s4063_s7  ;;  %v789_v54 = vmul.f32 %v9573_v27, %v5882_v39  ;;  %v597_v16 = vrot.slane %v5886_v50, 3  ;;  %v5929_v17 = vld [vmem:[%s4182_s6 + $0x8] sm:$0xfe]  ;;  %v9575_v24 = vld [vmem:[#allocation116_spill] sm:$0xff]  ;;  %v5939_v23 = vpop.permute.xlu0 %1904 }
 0x2f5   : > { %9572 = vst [vmem:[#allocation206_spill] sm:$0xff] %v5917_v53  ;;  %2653 = vrot.lane.b32.xlu0 %v2630_v34, %s4063_s7  ;;  %v797_v0 = vmul.f32 %v5140_v57, %v5832_v60  ;;  %9574 = vst [vmem:[#allocation170_spill] sm:$0xff] %v5929_v17  ;;  %v790_v42 = vmul.f32 %v5929_v17, %v5896_v32  ;;  %v792_v46 = vmul.f32 %v5104_v20, %v5882_v39  ;;  %v9578_v34 = vld [vmem:[#allocation117_spill] sm:$0xff] }
 0x2f6   : > { %v793_v63 = vmul.f32 %v5099_v19, %v5896_v32  ;;  %v565_v43 = vmul.f32 %v9546_v1, %v9575_v24  ;;  %9576 = vst [vmem:[#allocation116_spill] sm:$0xff] %v5939_v23  ;;  %v5941_v50 = vpop.permute.xlu1 %1906  ;;  %v566_v57 = vmul.f32 %v9548_v4, %v9578_v34  ;;  %v5947_v27 = vmul.f32 %v5128_v5, %v5882_v39  ;;  %v9583_v34 = vld [vmem:[#allocation121_spill] sm:$0xff] }
 0x2f7   : > { %9577 = vst [vmem:[#allocation207_spill] sm:$0xff] %v5941_v50  ;;  %v9579_v20 = vrot.slane %v5743_v59, 1  ;;  %v9580_v17 = vrot.slane %v5858_v28, 1  ;;  %v9581_v24 = vrot.slane %v5747_v49, 1  ;;  %v820_v50 = vrot.slane %v794_v25, 1 }
 0x2f8   : > { %v5960_v45 = vsel %vm583_vm4, %v584_v26, %v585_v21  ;;  %v5964_v5 = vmul.f32 %v5123_v30, %v5896_v32  ;;  %v570_v53 = vmul.f32 %v9538_v9, %v9583_v34  ;;  %v5971_v59 = vsel %vm583_vm4, %v587_v48, %v588_v35  ;;  %v9584_v26 = vld [vmem:[#allocation119_spill] sm:$0xff]  ;;  %v9587_v9 = vld [vmem:[#allocation120_spill] sm:$0xff] }
 0x2f9   : > { %v2636_v19 = vsel %vm288_vm2, %v9579_v20, %v9129_v51  ;;  %v2634_v23 = vsel %vm288_vm2, %v9581_v24, %v9580_v17  ;;  %9582 = vst [vmem:[#allocation117_spill] sm:$0xff] %v5960_v45  ;;  %v826_v49 = vrot.slane %v797_v0, 1  ;;  %v800_v25 = vmul.f32 %v5530_v29, %v5832_v60  ;;  %v5977_v45 = vpop.permute.xlu0 %1908 }
 0x2fa   : > { %2659 = vrot.lane.b32.xlu1 %v2636_v19, %s4063_s7  ;;  %2657 = vrot.lane.b32.xlu0 %v2634_v23, %s4063_s7  ;;  %v568_v17 = vmul.f32 %v9546_v1, %v9584_v26  ;;  %v813_v20 = vrot.slane %v789_v54, 1  ;;  %v814_v30 = vrot.slane %v792_v46, 1  ;;  %v816_v24 = vrot.slane %v790_v42, 1  ;;  %9585 = vst [vmem:[#allocation121_spill] sm:$0xff] %v5977_v45  ;;  %v5979_v34 = vpop.permute.xlu1 %1910 }
 0x2fb   : > { %v817_v51 = vrot.slane %v793_v63, 1  ;;  %9586 = vst [vmem:[#allocation119_spill] sm:$0xff] %v5979_v34  ;;  %v593_v19 = vrot.slane %v565_v43, 3  ;;  %v595_v23 = vrot.slane %v566_v57, 3  ;;  %v822_v48 = vrot.slane %v5947_v27, 1 }
 0x2fc   : > { %v569_v0 = vmul.f32 %v9548_v4, %v9587_v9  ;;  %v5985_v29 = vsel %vm288_vm2, %v819_v58, %v820_v50  ;;  %v9589_v26 = vrot.slane %v5814_v18, 3  ;;  %v603_v46 = vrot.slane %v570_v53, 3 }
 0x2fd   : > { %9588 = vst [vmem:[#allocation120_spill] sm:$0xff] %v5985_v29  ;;  %v9590_v63 = vrot.slane %v5788_v36, 1  ;;  %v9591_v43 = vrot.slane %v5791_v56, 1  ;;  %v6000_v9 = vsel %vm288_vm2, %v820_v50, %v826_v49  ;;  %v832_v58 = vrot.slane %v800_v25, 1  ;;  %v6010_v36 = vpop.permute.xlu0 %1912  ;;  %v9597_v56 = vld [vmem:[#allocation26_spill] sm:$0xff]  ;;  %v9599_v50 = vld [vmem:[#allocation20_spill] sm:$0xff] }
 0x2fe   : > { %v5990_v54 = vsel %vm583_vm4, %v9589_v26, %v597_v16  ;;  %9592 = vst [vmem:[#allocation208_spill] sm:$0xff] %v6000_v9  ;;  %v599_v57 = vrot.slane %v568_v17, 3  ;;  %v798_v18 = vmul.f32 %v5503_v33, %v5882_v39  ;;  %v6005_v27 = vsel %vm288_vm2, %v813_v20, %v814_v30  ;;  %9595 = vst [vmem:[#allocation211_spill] sm:$0xff] %v6010_v36  ;;  %v6012_v26 = vpop.permute.xlu1 %1914  ;;  %v9600_v25 = vld [vmem:[#allocation166_spill] sm:$0xff] }
 0x2ff   : > { %2663 = vrot.lane.b32.xlu1 %v9590_v63, %s4063_s7  ;;  %2661 = vrot.lane.b32.xlu0 %v9591_v43, %s4063_s7  ;;  %9593 = vst [vmem:[#allocation209_spill] sm:$0xff] %v6005_v27  ;;  %v6008_v53 = vsel %vm288_vm2, %v816_v24, %v817_v51  ;;  %9596 = vst [vmem:[#allocation212_spill] sm:$0xff] %v6012_v26  ;;  %v9598_v63 = vld [vmem:[#allocation177_spill] sm:$0xff]  ;;  %v6020_v17 = vmul.f32 %v9600_v25, %v9599_v50  ;;  %v601_v42 = vrot.slane %v569_v0, 3  ;;  %v9605_v25 = vld [vmem:[#allocation178_spill] sm:$0xff] }
 0x300   : > { %9594 = vst [vmem:[#allocation210_spill] sm:$0xff] %v6008_v53  ;;  %v6016_v43 = vmul.f32 %v9598_v63, %v9597_v56  ;;  %v6023_v33 = vsel %vm583_vm4, %v585_v21, %v593_v19  ;;  %v6026_v20 = vsel %vm583_vm4, %v588_v35, %v595_v23  ;;  %v6029_v24 = vsel %vm288_vm2, %v814_v30, %v822_v48 }
 0x301   : > { %9601 = vst [vmem:[#allocation26_spill] sm:$0xff] %v6029_v24  ;;  %v9602_v36 = vrot.slane %v5964_v5, 1  ;;  %v6037_v63 = vsel %vm583_vm4, %v597_v16, %v603_v46  ;;  %v6041_v21 = vmul.f32 %v9605_v25, %v5896_v32  ;;  %v9606_v35 = vrot.slane %v5844_v14, 1  ;;  %v9610_v46 = vld [vmem:[#allocation161_spill] sm:$0xff]  ;;  %v6057_v34 = vpop.permute.xlu0 %1916 }
 0x302   : > { %9604 = vst [vmem:[#allocation20_spill] sm:$0xff] %v6037_v63  ;;  %v9607_v30 = vrot.slane %v5858_v28, 1  ;;  %v6050_v0 = vsel %vm288_vm2, %v826_v49, %v832_v58  ;;  %v828_v16 = vrot.slane %v798_v18, 1  ;;  %9612 = vst [vmem:[#allocation161_spill] sm:$0xff] %v6057_v34  ;;  %v6059_v45 = vpop.permute.xlu1 %1918  ;;  %v2801_v14 = vrot.slane %v6016_v43, 7  ;;  %v9616_v58 = vld [vmem:[#allocation25_spill] sm:$0xff] }
 0x303   : > { %v6034_v26 = vsel %vm288_vm2, %v817_v51, %v9602_v36  ;;  %2667 = vrot.lane.b32.xlu1 %v9606_v35, %s4063_s7  ;;  %9608 = vst [vmem:[#allocation166_spill] sm:$0xff] %v6050_v0  ;;  %v6053_v51 = vsel %vm583_vm4, %v593_v19, %v599_v57  ;;  %v9611_v36 = vld [vmem:[#allocation122_spill] sm:$0xff]  ;;  %9613 = vst [vmem:[#allocation213_spill] sm:$0xff] %v6059_v45  ;;  %v2800_v28 = vrot.slane %v6020_v17, 7  ;;  %v9614_v35 = vld [vmem:[#allocation21_spill] sm:$0xff] }
 0x304   : > { %9603 = vst [vmem:[#allocation177_spill] sm:$0xff] %v6034_v26  ;;  %2665 = vrot.lane.b32.xlu0 %v9607_v30, %s4063_s7  ;;  %9609 = vst [vmem:[#allocation178_spill] sm:$0xff] %v6053_v51  ;;  %v876_v25 = vmul.f32 %v9611_v36, %v9610_v46  ;;  %v9615_v30 = vld [vmem:[#allocation167_spill] sm:$0xff]  ;;  %v9617_v19 = vld [vmem:[#allocation174_spill] sm:$0xff]  ;;  %v6072_v18 = vsel %vm583_vm4, %v595_v23, %v601_v42  ;;  %v6081_v43 = vmul.f32 %v5469_v13, %v9597_v56 }
 0x305   : > { %v6065_v49 = vmul.f32 %v9615_v30, %v9614_v35  ;;  %v6069_v57 = vmul.f32 %v9617_v19, %v9616_v58  ;;  %9618 = vst [vmem:[#allocation21_spill] sm:$0xff] %v6072_v18  ;;  %v6075_v46 = vld [vmem:[%s4182_s6 + $0x80] sm:$0xff]  ;;  %v6085_v17 = vmul.f32 %v5257_v22, %v9599_v50  ;;  %v830_v30 = vrot.slane %v6041_v21, 1  ;;  %v9620_v34 = vld [vmem:[#allocation123_spill] sm:$0xff]  ;;  %v9623_v21 = vld [vmem:[#allocation124_spill] sm:$0xff]  ;;  %v6115_v53 = vpop.permute.xlu0 %1920 }
 0x306   : > { %v879_v45 = vmul.f32 %v6075_v46, %v9611_v36  ;;  %v9619_v19 = vld [vmem:[#allocation162_spill] sm:$0xff]  ;;  %v6097_v39 = vmul.f32 %v5577_v2, %v9611_v36  ;;  %v6102_v13 = vsel %vm288_vm2, %v822_v48, %v828_v16  ;;  %v9622_v22 = vld [vmem:[#allocation163_spill] sm:$0xff]  ;;  %v6113_v24 = vmul.f32 %v5584_v37, %v9620_v34  ;;  %9624 = vst [vmem:[#allocation25_spill] sm:$0xff] %v6115_v53  ;;  %v6117_v27 = vpop.permute.xlu1 %1922 }
 0x307   : > { %v877_v1 = vmul.f32 %v9620_v34, %v9619_v19  ;;  %v6091_v23 = vld [vmem:[%s4182_s6 + $0x88] sm:$0xff]  ;;  %2830 = vrot.lane.b32.xlu1 %v2801_v14, %s4063_s7  ;;  %9621 = vst [vmem:[#allocation167_spill] sm:$0xff] %v6102_v13  ;;  %v878_v9 = vmul.f32 %v9623_v21, %v9622_v22  ;;  %v6107_v19 = vld [vmem:[%s4182_s6 + $0x90] sm:$0xff]  ;;  %v900_v29 = vrot.slane %v876_v25, 2  ;;  %9625 = vst [vmem:[#allocation174_spill] sm:$0xff] %v6117_v27  ;;  %v2803_v48 = vrot.slane %v6065_v49, 7 }
 0x308   : > { %v880_v42 = vmul.f32 %v6091_v23, %v9620_v34  ;;  %2828 = vrot.lane.b32.xlu0 %v2800_v28, %s4063_s7  ;;  %v881_v26 = vmul.f32 %v6107_v19, %v9623_v21  ;;  %v2802_v16 = vrot.slane %v6069_v57, 7  ;;  %v6123_v22 = vmul.f32 %v5264_v8, %v9614_v35  ;;  %v6133_v49 = vld [vmem:[%s4182_s6 + $0xb0] sm:$0xff] }
 0x309   : > { %v901_v13 = vrot.slane %v879_v45, 2  ;;  %v2806_v0 = vrot.slane %v6081_v43, 7  ;;  %v2804_v4 = vrot.slane %v6085_v17, 7  ;;  %v6129_v25 = vmul.f32 %v5378_v10, %v9616_v58  ;;  %v9626_v17 = vld [vmem:[#allocation24_spill] sm:$0xff]  ;;  %v6146_v18 = vpop.permute.xlu0 %1924 }
 0x30a   : > { %v903_v53 = vrot.slane %v877_v1, 2  ;;  %v904_v60 = vrot.slane %v880_v42, 2  ;;  %v909_v27 = vrot.slane %v6097_v39, 2  ;;  %v884_v57 = vmul.f32 %v6133_v49, %v9623_v21  ;;  %v9627_v1 = vld [vmem:[#allocation164_spill] sm:$0xff]  ;;  %v9628_v39 = vld [vmem:[#allocation165_spill] sm:$0xff]  ;;  %9629 = vst [vmem:[#allocation162_spill] sm:$0xff] %v6146_v18  ;;  %v6148_v51 = vpop.permute.xlu1 %1926 }
 0x30b   : > { %2834 = vrot.lane.b32.xlu1 %v2803_v48, %s4063_s7  ;;  %v906_v45 = vrot.slane %v878_v9, 2  ;;  %v907_v8 = vrot.slane %v881_v26, 2  ;;  %v911_v43 = vrot.slane %v6113_v24, 2  ;;  %v885_v10 = vmul.f32 %v9611_v36, %v9626_v17  ;;  %9630 = vst [vmem:[#allocation163_spill] sm:$0xff] %v6148_v51  ;;  %v9729_v18 = vld [vmem:[#allocation52_spill] sm:$0xff] }
 0x30c   : > { %2832 = vrot.lane.b32.xlu0 %v2802_v16, %s4063_s7  ;;  %v886_v42 = vmul.f32 %v9620_v34, %v9627_v1  ;;  %v887_v32 = vmul.f32 %v9623_v21, %v9628_v39  ;;  %v6153_v9 = vmul.f32 %v5627_v11, %v9597_v56  ;;  %v2807_v26 = vsel %vm1127_vm3, %v2801_v14, %v2806_v0  ;;  %v6578_v21 = vld [vmem:[%s4182_s6 + $0xc8] sm:$0x3] }
 0x30d   : > { %v2805_v24 = vsel %vm1127_vm3, %v2800_v28, %v2804_v4  ;;  %v2808_v17 = vrot.slane %v6129_v25, 7  ;;  %v6160_v1 = vmul.f32 %v5275_v62, %v9599_v50  ;;  %v9631_v39 = vrot.slane %v5964_v5, 1  ;;  %v6184_v25 = vpop.permute.xlu0 %1928 }
 0x30e   : > { %v6168_v63 = vsel %vm489_vm1, %v900_v29, %v901_v13  ;;  %v6171_v11 = vsel %vm489_vm1, %v901_v13, %v909_v27  ;;  %v913_v14 = vrot.slane %v884_v57, 2  ;;  %v6176_v28 = vsel %vm489_vm1, %v903_v53, %v904_v60  ;;  %9637 = vst [vmem:[#allocation216_spill] sm:$0xff] %v6184_v25  ;;  %v6186_v57 = vpop.permute.xlu1 %1930 }
 0x30f   : > { %v6165_v36 = vsel %vm288_vm2, %v9631_v39, %v830_v30  ;;  %9632 = vst [vmem:[#allocation24_spill] sm:$0xff] %v6168_v63  ;;  %9633 = vst [vmem:[#allocation164_spill] sm:$0xff] %v6171_v11  ;;  %2838 = vrot.lane.b32.xlu1 %v2807_v26, %s4063_s7  ;;  %v6179_v62 = vsel %vm489_vm1, %v906_v45, %v907_v8  ;;  %v6182_v5 = vsel %vm489_vm1, %v904_v60, %v911_v43  ;;  %v6206_v39 = vld [vmem:[%s4182_s6 + $0x130] sm:$0xf8]  ;;  %v9662_v11 = vld [vmem:[#allocation169_spill] sm:$0xff] }
 0x310   : > { %2836 = vrot.lane.b32.xlu0 %v2805_v24, %s4063_s7  ;;  %9634 = vst [vmem:[#allocation165_spill] sm:$0xff] %v6176_v28  ;;  %9635 = vst [vmem:[#allocation214_spill] sm:$0xff] %v6179_v62  ;;  %v915_v29 = vrot.slane %v885_v10, 2  ;;  %v917_v30 = vrot.slane %v886_v42, 2  ;;  %v919_v13 = vrot.slane %v887_v32, 2  ;;  %v6191_v53 = vmul.f32 %v9518_v38, %v9614_v35  ;;  %v6211_v26 = vld [vmem:[%s4182_s6 + $0x150] sm:$0xff] }
 0x311   : > { %9636 = vst [vmem:[#allocation215_spill] sm:$0xff] %v6182_v5  ;;  %9638 = vst [vmem:[#allocation217_spill] sm:$0xff] %v6186_v57  ;;  %v9639_v45 = vrot.slane %v6123_v22, 7  ;;  %v2809_v60 = vsel %vm1127_vm3, %v2802_v16, %v2808_v17  ;;  %v6200_v32 = vmul.f32 %v5510_v41, %v9616_v58  ;;  %v6203_v42 = vsel %vm489_vm1, %v907_v8, %v913_v14 }
 0x312   : > { %9640 = vst [vmem:[#allocation218_spill] sm:$0xff] %v6203_v42  ;;  %v1322_v38 = vmul.f32 %v6206_v39, %v5351_v6  ;;  %v6220_v41 = vsel %vm489_vm1, %v909_v27, %v915_v29  ;;  %v6224_v16 = vmul.f32 %v6107_v19, %v5348_v47  ;;  %v6228_v8 = vmul.f32 %v6075_v46, %v5424_v12  ;;  %v6240_v27 = vpop.permute.xlu0 %1932  ;;  %v6242_v29 = vpop.permute.xlu1 %1934 }
 0x313   : > { %v2811_v24 = vsel %vm1127_vm3, %v2803_v48, %v9639_v45  ;;  %v6215_v48 = vmul.f32 %v6211_v26, %v5351_v6  ;;  %9641 = vst [vmem:[#allocation219_spill] sm:$0xff] %v6220_v41  ;;  %v6232_v45 = vmul.f32 %v6091_v23, %v5432_v40  ;;  %9647 = vst [vmem:[#allocation225_spill] sm:$0xff] %v6240_v27  ;;  %v9649_v10 = vrot.slane %v6153_v9, 7 }
 0x314   : > { %2842 = vrot.lane.b32.xlu1 %v2811_v24, %s4063_s7  ;;  %2840 = vrot.lane.b32.xlu0 %v2809_v60, %s4063_s7  ;;  %9642 = vst [vmem:[#allocation220_spill] sm:$0xff] %v6224_v16  ;;  %9643 = vst [vmem:[#allocation221_spill] sm:$0xff] %v6228_v8  ;;  %v6235_v24 = vsel %vm489_vm1, %v911_v43, %v917_v30  ;;  %v6238_v60 = vsel %vm489_vm1, %v913_v14, %v919_v13  ;;  %v9650_v16 = vrot.slane %v6160_v1, 7  ;;  %v9657_v8 = vld [vmem:[#allocation44_spill] sm:$0xff] }
 0x315   : > { %9644 = vst [vmem:[#allocation222_spill] sm:$0xff] %v6232_v45  ;;  %9645 = vst [vmem:[#allocation223_spill] sm:$0xff] %v6235_v24  ;;  %v2815_v25 = vsel %vm1127_vm3, %v2806_v0, %v9649_v10  ;;  %v2781_v14 = vmul.f32 %v5764_v61, %v9597_v56  ;;  %v2780_v30 = vmul.f32 %v5293_v15, %v9599_v50  ;;  %v1350_v41 = vrot.slane %v1322_v38, 2  ;;  %v6262_v10 = vld [vmem:[%s4182_s6 + $0x170] sm:$0xff]  ;;  %v9652_v56 = vld [vmem:[#allocation41_spill] sm:$0xff] }
 0x316   : > { %9646 = vst [vmem:[#allocation224_spill] sm:$0xff] %v6238_v60  ;;  %9648 = vst [vmem:[#allocation226_spill] sm:$0xff] %v6242_v29  ;;  %v2813_v45 = vsel %vm1127_vm3, %v2804_v4, %v9650_v16  ;;  %v6258_v13 = vmul.f32 %v6133_v49, %v5348_v47  ;;  %v1351_v0 = vrot.slane %v6215_v48, 2  ;;  %v6266_v4 = vmul.f32 %v6262_v10, %v5351_v6  ;;  %v9651_v61 = vld [vmem:[#allocation32_spill] sm:$0xff]  ;;  %v9653_v50 = vld [vmem:[#allocation43_spill] sm:$0xff]  ;;  %v6290_v42 = vpop.permute.xlu0 %2136 }
 0x317   : > { %v410_v15 = vsel %vm407_vm5, %v9652_v56, %v9651_v61  ;;  %v9654_v16 = vld [vmem:[#allocation33_spill] sm:$0xff]  ;;  %v6278_v48 = vmul.f32 %v5577_v2, %v5424_v12  ;;  %v6282_v43 = vmul.f32 %v5584_v37, %v5432_v40  ;;  %9658 = vst [vmem:[#allocation41_spill] sm:$0xff] %v6290_v42  ;;  %v9660_v5 = vrot.slane %v6191_v53, 7  ;;  %v9664_v42 = vld [vmem:[#allocation38_spill] sm:$0xff] }
 0x318   : > { %2846 = vrot.lane.b32.xlu1 %v2815_v25, %s4063_s7  ;;  %2844 = vrot.lane.b32.xlu0 %v2813_v45, %s4063_s7  ;;  %v408_v38 = vsel %vm407_vm5, %v9654_v16, %v9653_v50  ;;  %v409_v25 = vsel %vm407_vm5, %v9653_v50, %v9652_v56  ;;  %v9656_v45 = vld [vmem:[#allocation34_spill] sm:$0xff]  ;;  %v6292_v16 = vpop.permute.xlu1 %2138  ;;  %v2783_v62 = vmul.f32 %v9662_v11, %v9614_v35  ;;  %v9663_v28 = vrot.slane %v6200_v32, 7  ;;  %v3909_v29 = vld [vmem:[%s4182_s6 + $0xc0] sm:$0x3] }
 0x319   : > { %9655 = vst [vmem:[#allocation32_spill] sm:$0xff] %v6278_v48  ;;  %v413_v61 = vsel %vm407_vm5, %v9657_v8, %v9656_v45  ;;  %9659 = vst [vmem:[#allocation43_spill] sm:$0xff] %v6292_v16  ;;  %v9661_v48 = vrot.slane %v6123_v22, 7  ;;  %v2822_v50 = vrot.slane %v2781_v14, 7  ;;  %v2820_v63 = vrot.slane %v2780_v30, 7  ;;  %v9670_v14 = vld [vmem:[#allocation46_spill] sm:$0xff] }
 0x31a   : > { %v2817_v56 = vsel %vm1127_vm3, %v2808_v17, %v9663_v28  ;;  %v2782_v45 = vmul.f32 %v5667_v3, %v9616_v58  ;;  %v428_v16 = vadd.f32 %v410_v15, %v9664_v42  ;;  %v6308_v60 = vsel %vm489_vm1, %v1350_v41, %v1351_v0  ;;  %v9666_v17 = vld [vmem:[#allocation182_spill] sm:$0xff]  ;;  %v9667_v3 = vld [vmem:[#allocation45_spill] sm:$0xff]  ;;  %v9668_v58 = vld [vmem:[#allocation35_spill] sm:$0xff] }
 0x31b   : > { %v2819_v12 = vsel %vm1127_vm3, %v9661_v48, %v9660_v5  ;;  %9665 = vst [vmem:[#allocation33_spill] sm:$0xff] %v6308_v60  ;;  %v1357_v22 = vrot.slane %v6266_v4, 2  ;;  %v6312_v5 = vld [vmem:[%s4182_s6 + $0x190] sm:$0x7]  ;;  %v426_v11 = vadd.f32 %v408_v38, %v9666_v17  ;;  %v411_v28 = vsel %vm407_vm5, %v9668_v58, %v9667_v3  ;;  %v9669_v41 = vld [vmem:[#allocation36_spill] sm:$0xff]  ;;  %v9672_v48 = vld [vmem:[#allocation42_spill] sm:$0xff]  ;;  %v6338_v58 = vpop.permute.xlu0 %2140 }
 0x31c   : > { %v6316_v35 = vmul.f32 %v6312_v5, %v5351_v6  ;;  %2850 = vrot.lane.b32.xlu1 %v2819_v12, %s4063_s7  ;;  %2848 = vrot.lane.b32.xlu0 %v2817_v56, %s4063_s7  ;;  %v412_v42 = vsel %vm407_vm5, %v9667_v3, %v9657_v8  ;;  %v416_v30 = vsel %vm407_vm5, %v9670_v14, %v9669_v41  ;;  %v9671_v4 = vld [vmem:[#allocation183_spill] sm:$0xff]  ;;  %v9673_v60 = vld [vmem:[#allocation49_spill] sm:$0xff]  ;;  %v6340_v8 = vpop.permute.xlu1 %2142  ;;  %v9677_v3 = vrot.slane %v6153_v9, 7 }
 0x31d   : > { %v427_v15 = vadd.f32 %v409_v25, %v9671_v4  ;;  %v431_v12 = vadd.f32 %v413_v61, %v9672_v48  ;;  %v9674_v56 = vld [vmem:[#allocation37_spill] sm:$0xff]  ;;  %v415_v17 = vsel %vm407_vm5, %v9673_v60, %v9670_v14  ;;  %9675 = vst [vmem:[#allocation34_spill] sm:$0xff] %v6338_v58  ;;  %9676 = vst [vmem:[#allocation44_spill] sm:$0xff] %v6340_v8  ;;  %v9678_v61 = vrot.slane %v6160_v1, 7  ;;  %v9680_v8 = vld [vmem:[#allocation198_spill] sm:$0xff] }
 0x31e   : > { %v414_v38 = vsel %vm407_vm5, %v9674_v56, %v9673_v60  ;;  %v2823_v25 = vsel %vm1127_vm3, %v9677_v3, %v2822_v50  ;;  %v2826_v4 = vrot.slane %v2783_v62, 7  ;;  %v2824_v48 = vrot.slane %v2782_v45, 7  ;;  %v9679_v14 = vld [vmem:[#allocation197_spill] sm:$0xff]  ;;  %v9681_v1 = vld [vmem:[#allocation175_spill] sm:$0xff] }
 0x31f   : > { %v2821_v41 = vsel %vm1127_vm3, %v9678_v61, %v2820_v63  ;;  %v429_v56 = vadd.f32 %v411_v28, %v5702_v44  ;;  %v430_v24 = vadd.f32 %v412_v42, %v5704_v31  ;;  %v434_v60 = vadd.f32 %v416_v30, %v5706_v7  ;;  %v3892_v3 = vld [vmem:[%s4182_s6 + $0x120] sm:$0xf8]  ;;  %v9683_v31 = vld [vmem:[#allocation179_spill] sm:$0xff]  ;;  %v6370_v30 = vpop.permute.xlu0 %2144 }
 0x320   : > { %2854 = vrot.lane.b32.xlu1 %v2823_v25, %s4063_s7  ;;  %2852 = vrot.lane.b32.xlu0 %v2821_v41, %s4063_s7  ;;  %v432_v9 = vadd.f32 %v414_v38, %v9679_v14  ;;  %v433_v50 = vadd.f32 %v415_v17, %v9680_v8  ;;  %v1320_v58 = vmul.f32 %v3892_v3, %v9681_v1  ;;  %v6358_v63 = vld [vmem:[%s4182_s6 + $0x140] sm:$0xff]  ;;  %v6372_v38 = vpop.permute.xlu1 %2146  ;;  %v9689_v25 = vld [vmem:[#allocation188_spill] sm:$0xff]  ;;  %v9690_v41 = vrot.slane %v6191_v53, 7 }
 0x321   : > { %v6362_v44 = vmul.f32 %v6358_v63, %v9681_v1  ;;  %v522_v62 = vadd.f32 %v9683_v31, %v428_v16  ;;  %v9684_v7 = vld [vmem:[#allocation181_spill] sm:$0xff]  ;;  %v6367_v28 = vsel %vm489_vm1, %v1351_v0, %v1357_v22  ;;  %9686 = vst [vmem:[#allocation182_spill] sm:$0xff] %v6370_v30  ;;  %9687 = vst [vmem:[#allocation45_spill] sm:$0xff] %v6372_v38  ;;  %v9694_v30 = vld [vmem:[#allocation196_spill] sm:$0xff] }
 0x322   : > { %v520_v45 = vadd.f32 %v9684_v7, %v426_v11  ;;  %9685 = vst [vmem:[#allocation38_spill] sm:$0xff] %v6367_v28  ;;  %v9688_v17 = vld [vmem:[#allocation185_spill] sm:$0xff]  ;;  %v525_v61 = vadd.f32 %v9689_v25, %v431_v12  ;;  %v2827_v16 = vsel %vm1127_vm3, %v9690_v41, %v2826_v4  ;;  %v9691_v11 = vrot.slane %v6200_v32, 7  ;;  %v9693_v7 = vld [vmem:[#allocation168_spill] sm:$0xff]  ;;  %v9695_v32 = vld [vmem:[#allocation206_spill] sm:$0xff] }
 0x323   : > { %9682 = vst [vmem:[#allocation169_spill] sm:$0xff] %v6362_v44  ;;  %v521_v8 = vadd.f32 %v9688_v17, %v427_v15  ;;  %v9692_v14 = vld [vmem:[#allocation193_spill] sm:$0xff]  ;;  %v524_v42 = vadd.f32 %v9693_v7, %v430_v24  ;;  %v528_v28 = vadd.f32 %v9694_v30, %v434_v60  ;;  %v526_v15 = vadd.f32 %v5874_v52, %v432_v9  ;;  %v6403_v30 = vld [vmem:[%s4182_s6 + $0x128] sm:$0xf8]  ;;  %v9703_v25 = vld [vmem:[#allocation40_spill] sm:$0xff] }
 0x324   : > { %v2825_v0 = vsel %vm1127_vm3, %v9691_v11, %v2824_v48  ;;  %v523_v31 = vadd.f32 %v9692_v14, %v429_v56  ;;  %2858 = vrot.lane.b32.xlu1 %v2827_v16, %s4063_s7  ;;  %v527_v53 = vadd.f32 %v5891_v55, %v433_v50  ;;  %v1344_v12 = vrot.slane %v1320_v58, 2  ;;  %v6398_v56 = vpop.permute.xlu0 %2148  ;;  %v6400_v60 = vpop.permute.xlu1 %2150  ;;  %v9700_v52 = vld [vmem:[#allocation19_spill] sm:$0xff]  ;;  %v9702_v50 = vld [vmem:[#allocation50_spill] sm:$0xff]  ;;  %v9705_v41 = vld [vmem:[#allocation117_spill] sm:$0xff] }
 0x325   : > { %2856 = vrot.lane.b32.xlu0 %v2825_v0, %s4063_s7  ;;  %v9148_v4 = vrot.slane %v6362_v44, 2  ;;  %v6391_v17 = vadd.f32 %v9695_v32, %v522_v62  ;;  %v9697_v48 = vrot.slane %v6316_v35, 2  ;;  %9698 = vst [vmem:[#allocation36_spill] sm:$0xff] %v6398_v56  ;;  %9699 = vst [vmem:[#allocation46_spill] sm:$0xff] %v6400_v60  ;;  %v2897_v55 = vmul.f32 %v6403_v30, %v9700_v52  ;;  %v9701_v58 = vld [vmem:[#allocation15_spill] sm:$0xff]  ;;  %v9710_v14 = vld [vmem:[#allocation20_spill] sm:$0xff] }
 0x326   : > { %v2896_v9 = vmul.f32 %v3892_v3, %v9701_v58  ;;  %v6411_v62 = vsel %vm407_vm5, %v9703_v25, %v9702_v50  ;;  %v6417_v16 = vadd.f32 %v9705_v41, %v520_v45  ;;  %v6420_v11 = vadd.f32 %v5990_v54, %v525_v61  ;;  %v9713_v54 = vld [vmem:[#allocation21_spill] sm:$0xff]  ;;  %v6484_v60 = vld [vmem:[%s4182_s6 + $0x168] sm:$0xff]  ;;  %v3902_v38 = vld [vmem:[%s4182_s6 + $0x70] sm:$0xfc] }
 0x327   : > { %9696 = vst [vmem:[#allocation35_spill] sm:$0xff] %v6391_v17  ;;  %v6396_v24 = vsel %vm489_vm1, %v1357_v22, %v9697_v48  ;;  %v6414_v22 = vadd.f32 %v5971_v59, %v521_v8  ;;  %v6423_v0 = vadd.f32 %v6023_v33, %v523_v31  ;;  %v6426_v3 = vadd.f32 %v6026_v20, %v524_v42  ;;  %v9711_v59 = vld [vmem:[#allocation178_spill] sm:$0xff]  ;;  %v3895_v31 = vld [vmem:[%s4182_s6 + $0x138] sm:$0xf8]  ;;  %v6522_v17 = vld [vmem:[%s4182_s6 + $0x180] sm:$0x7] }
 0x328   : > { %9706 = vst [vmem:[#allocation42_spill] sm:$0xff] %v6417_v16  ;;  %9707 = vst [vmem:[#allocation49_spill] sm:$0xff] %v6420_v11  ;;  %v6429_v7 = vadd.f32 %v9710_v14, %v528_v28  ;;  %2930 = vrot.lane.b32.xlu1 %v2897_v55, %s4063_s7  ;;  %v6434_v45 = vadd.f32 %v9711_v59, %v526_v15  ;;  %v6437_v8 = vadd.f32 %v9713_v54, %v527_v53  ;;  %v9714_v20 = vld [vmem:[#allocation18_spill] sm:$0xff]  ;;  %v6446_v42 = vpop.permute.xlu0 %2152  ;;  %v6448_v61 = vpop.permute.xlu1 %2154  ;;  %v6462_v55 = vld [vmem:[%s4182_s6 + $0x158] sm:$0xff] }
 0x329   : > { %9704 = vst [vmem:[#allocation183_spill] sm:$0xff] %v6414_v22  ;;  %9708 = vst [vmem:[#allocation37_spill] sm:$0xff] %v6423_v0  ;;  %2928 = vrot.lane.b32.xlu0 %v2896_v9, %s4063_s7  ;;  %v6442_v33 = vsel %vm489_vm1, %v1344_v12, %v9148_v4  ;;  %v2898_v28 = vmul.f32 %v6206_v39, %v9714_v20  ;;  %v9717_v15 = vld [vmem:[#allocation14_spill] sm:$0xff]  ;;  %v2900_v53 = vmul.f32 %v6358_v63, %v9701_v58  ;;  %v9719_v59 = vld [vmem:[#allocation16_spill] sm:$0xff] }
 0x32a   : > { %9709 = vst [vmem:[#allocation197_spill] sm:$0xff] %v6426_v3  ;;  %9712 = vst [vmem:[#allocation198_spill] sm:$0xff] %v6434_v45  ;;  %v2899_v32 = vmul.f32 %v3895_v31, %v9717_v15  ;;  %v6455_v48 = vld [vmem:[%s4182_s6 + $0x148] sm:$0xff]  ;;  %v2902_v39 = vmul.f32 %v6211_v26, %v9714_v20  ;;  %v2903_v9 = vmul.f32 %v6462_v55, %v9717_v15  ;;  %v6467_v25 = vld [vmem:[%s4182_s6 + $0x160] sm:$0xff] }
 0x32b   : > { %9715 = vst [vmem:[#allocation179_spill] sm:$0xff] %v6446_v42  ;;  %9716 = vst [vmem:[#allocation181_spill] sm:$0xff] %v6448_v61  ;;  %v2901_v12 = vmul.f32 %v6455_v48, %v9700_v52  ;;  %v6471_v41 = vmul.f32 %v6467_v25, %v9701_v58  ;;  %v3899_v14 = vld [vmem:[%s4182_s6 + $0x60] sm:$0xfc]  ;;  %v3900_v31 = vld [vmem:[%s4182_s6 + $0x68] sm:$0xfc]  ;;  %v6488_v56 = vmul.f32 %v6484_v60, %v9700_v52 }
 0x32c   : > { %9718 = vst [vmem:[#allocation185_spill] sm:$0xff] %v6467_v25  ;;  %v6475_v54 = vmul.f32 %v3899_v14, %v9719_v59  ;;  %v9720_v4 = vld [vmem:[#allocation28_spill] sm:$0xff]  ;;  %2934 = vrot.lane.b32.xlu1 %v2899_v32, %s4063_s7  ;;  %v6492_v14 = vmul.f32 %v6262_v10, %v9714_v20  ;;  %v6507_v45 = vmul.f32 %v6075_v46, %v9719_v59  ;;  %v6519_v0 = vpop.permute.xlu1 %2158  ;;  %9725 = vst [vmem:[#allocation196_spill] sm:$0xff] %v6522_v17  ;;  %v6529_v46 = vld [vmem:[%s4182_s6 + $0x188] sm:$0x7] }
 0x32d   : > { %v6479_v42 = vmul.f32 %v3900_v31, %v9720_v4  ;;  %2932 = vrot.lane.b32.xlu0 %v2898_v28, %s4063_s7  ;;  %v9722_v31 = vld [vmem:[#allocation27_spill] sm:$0xff]  ;;  %v6499_v28 = vld [vmem:[%s4182_s6 + $0x178] sm:$0xff]  ;;  %v6511_v11 = vmul.f32 %v6091_v23, %v9720_v4  ;;  %v6526_v22 = vmul.f32 %v6522_v17, %v9701_v58  ;;  %v6533_v23 = vmul.f32 %v6529_v46, %v9700_v52 }
 0x32e   : > { %v6496_v50 = vmul.f32 %v3902_v38, %v9722_v31  ;;  %9724 = vst [vmem:[#allocation168_spill] sm:$0xff] %v6499_v28  ;;  %v6503_v32 = vmul.f32 %v6499_v28, %v9717_v15  ;;  %v6515_v3 = vmul.f32 %v6107_v19, %v9722_v31  ;;  %v6517_v38 = vpop.permute.xlu0 %2156  ;;  %v3906_v16 = vld [vmem:[%s4182_s6 + $0x78] sm:$0xfc]  ;;  %v3202_v17 = vmul.f32 %v5577_v2, %v9719_v59 }
 0x32f   : > { %9721 = vst [vmem:[#allocation188_spill] sm:$0xff] %v6479_v42  ;;  %v9726_v19 = vld [vmem:[#allocation17_spill] sm:$0xff]  ;;  %v6547_v51 = vmul.f32 %v5584_v37, %v9720_v4  ;;  %v6557_v58 = vmul.f32 %v6133_v49, %v9722_v31  ;;  %v3230_v25 = vrot.slane %v6507_v45, 7  ;;  %v6574_v27 = vmul.f32 %v6312_v5, %v9714_v20 }
 0x330   : > { %9723 = vst [vmem:[#allocation193_spill] sm:$0xff] %v6496_v50  ;;  %v6537_v44 = vmul.f32 %v3906_v16, %v9726_v19  ;;  %v3907_v28 = vld [vmem:[%s4182_s6 + $0x98] sm:$0xff]  ;;  %2938 = vrot.lane.b32.xlu1 %v2901_v12, %s4063_s7  ;;  %v3206_v12 = vmul.f32 %v3909_v29, %v9719_v59  ;;  %v6570_v57 = vpop.permute.xlu1 %2162  ;;  %v3238_v29 = vrot.slane %v3202_v17, 7  ;;  %v6584_v59 = vld [vmem:[%s4182_s6 + $0xd0] sm:$0x3] }
 0x331   : > { %v3201_v1 = vmul.f32 %v3907_v28, %v9726_v19  ;;  %v9728_v52 = vld [vmem:[#allocation69_spill] sm:$0xff]  ;;  %2936 = vrot.lane.b32.xlu0 %v2900_v53, %s4063_s7  ;;  %v3234_v53 = vrot.slane %v6515_v3, 7  ;;  %9731 = vst [vmem:[#allocation15_spill] sm:$0xff] %v6570_v57  ;;  %v9732_v3 = vld [vmem:[#allocation31_spill] sm:$0xff]  ;;  %v3912_v57 = vld [vmem:[%s4182_s6 + $0xd8] sm:$0x3] }
 0x332   : > { %9727 = vst [vmem:[#allocation206_spill] sm:$0xff] %v6537_v44  ;;  %v1180_v16 = vsel %vm407_vm5, %v9729_v18, %v9728_v52  ;;  %v3908_v2 = vld [vmem:[%s4182_s6 + $0xb8] sm:$0xff]  ;;  %v3232_v18 = vrot.slane %v6511_v11, 7  ;;  %v6568_v28 = vpop.permute.xlu0 %2160  ;;  %v3207_v11 = vmul.f32 %v6578_v21, %v9720_v4  ;;  %v3209_v20 = vmul.f32 %v3912_v57, %v9726_v19 }
 0x333   : > { %v6561_v37 = vmul.f32 %v3908_v2, %v9726_v19  ;;  %9730 = vst [vmem:[#allocation19_spill] sm:$0xff] %v6568_v28  ;;  %v3236_v45 = vrot.slane %v3201_v1, 7  ;;  %v1204_v34 = vadd.f32 %v1180_v16, %v9732_v3  ;;  %v3208_v28 = vmul.f32 %v6584_v59, %v9722_v31  ;;  %v3913_v1 = vld [vmem:[%s4182_s6 + $0x198] sm:$0x7]  ;;  %v9739_v3 = vld [vmem:[#allocation53_spill] sm:$0xff] }
 0x334   : > { %2942 = vrot.lane.b32.xlu1 %v2903_v9, %s4063_s7  ;;  %v6594_v2 = vmul.f32 %v3913_v1, %v9717_v15  ;;  %v3240_v4 = vrot.slane %v6547_v51, 7  ;;  %v3242_v17 = vrot.slane %v6557_v58, 7  ;;  %v9733_v31 = vrot.slane %v6475_v54, 7  ;;  %v9740_v58 = vld [vmem:[#allocation68_spill] sm:$0xff] }
 0x335   : > { %2940 = vrot.lane.b32.xlu0 %v2902_v39, %s4063_s7  ;;  %v3244_v16 = vrot.slane %v6561_v37, 7  ;;  %v9735_v39 = vrot.slane %v6479_v42, 7  ;;  %v9737_v15 = vrot.slane %v6496_v50, 7  ;;  %v3246_v51 = vrot.slane %v3206_v12, 7 }
 0x336   : > { %v6602_v57 = vsel %vm1127_vm3, %v9733_v31, %v3230_v25  ;;  %v1182_v37 = vsel %vm407_vm5, %v9740_v58, %v9739_v3  ;;  %v1181_v1 = vsel %vm407_vm5, %v9728_v52, %v9740_v58  ;;  %v6620_v31 = vpop.permute.xlu0 %2164  ;;  %v1308_v12 = vadd.f32 %v6411_v62, %v1204_v34  ;;  %v9747_v62 = vld [vmem:[#allocation199_spill] sm:$0xff] }
 0x337   : > { %9734 = vst [vmem:[#allocation40_spill] sm:$0xff] %v6602_v57  ;;  %v6607_v9 = vsel %vm1127_vm3, %v9735_v39, %v3232_v18  ;;  %v6612_v19 = vsel %vm1127_vm3, %v9737_v15, %v3234_v53  ;;  %v6622_v57 = vpop.permute.xlu1 %2166  ;;  %v2500_v39 = vld [vmem:[%s4182_s6 + $0x120] sm:$0xf0]  ;;  %v3248_v15 = vrot.slane %v3207_v11, 7  ;;  %v6633_v3 = vsel %vm1127_vm3, %v3230_v25, %v3238_v29 }
 0x338   : > { %9736 = vst [vmem:[#allocation117_spill] sm:$0xff] %v6607_v9  ;;  %9738 = vst [vmem:[#allocation20_spill] sm:$0xff] %v6612_v19  ;;  %v9741_v9 = vrot.slane %v6537_v44, 7  ;;  %v2501_v19 = vld [vmem:[%s4182_s6 + $0x128] sm:$0xf0]  ;;  %v3250_v42 = vrot.slane %v3208_v28, 7  ;;  %2946 = vrot.lane.b32.xlu1 %v6488_v56, %s4063_s7  ;;  %v6640_v58 = vsel %vm1127_vm3, %v3232_v18, %v3240_v4  ;;  %v6643_v11 = vsel %vm1127_vm3, %v3234_v53, %v3242_v17 }
 0x339   : > { %9743 = vst [vmem:[#allocation21_spill] sm:$0xff] %v6633_v3  ;;  %v3252_v52 = vrot.slane %v3209_v20, 7  ;;  %2944 = vrot.lane.b32.xlu0 %v6471_v41, %s4063_s7  ;;  %9744 = vst [vmem:[#allocation18_spill] sm:$0xff] %v6640_v58  ;;  %v6646_v34 = vsel %vm1127_vm3, %v3236_v45, %v3244_v16  ;;  %v6649_v25 = vadd.f32 %v1182_v37, %v9747_v62  ;;  %v9749_v28 = vld [vmem:[#allocation171_spill] sm:$0xff]  ;;  %v9752_v56 = vld [vmem:[#allocation22_spill] sm:$0xff] }
 0x33a   : > { %v6628_v50 = vsel %vm1127_vm3, %v9741_v9, %v3236_v45  ;;  %9745 = vst [vmem:[#allocation14_spill] sm:$0xff] %v6643_v11  ;;  %9746 = vst [vmem:[#allocation16_spill] sm:$0xff] %v6646_v34  ;;  %v6652_v20 = vadd.f32 %v1181_v1, %v9749_v28  ;;  %v6655_v41 = vsel %vm1127_vm3, %v3238_v29, %v3246_v51  ;;  %v9753_v18 = vld [vmem:[#allocation73_spill] sm:$0xff]  ;;  %v9754_v58 = vld [vmem:[#allocation90_spill] sm:$0xff]  ;;  %v6663_v11 = vpop.permute.xlu0 %2357 }
 0x33b   : > { %9742 = vst [vmem:[#allocation178_spill] sm:$0xff] %v6628_v50  ;;  %9748 = vst [vmem:[#allocation28_spill] sm:$0xff] %v6649_v25  ;;  %v6658_v9 = vmul.f32 %v2500_v39, %v9752_v56  ;;  %v1188_v53 = vsel %vm407_vm5, %v9754_v58, %v9753_v18  ;;  %v6665_v45 = vpop.permute.xlu1 %2359  ;;  %v2502_v34 = vld [vmem:[%s4182_s6 + $0x130] sm:$0xf0]  ;;  %v6669_v37 = vsel %vm1127_vm3, %v3240_v4, %v3248_v15  ;;  %v9758_v29 = vld [vmem:[#allocation29_spill] sm:$0xff] }
 0x33c   : > { %9750 = vst [vmem:[#allocation27_spill] sm:$0xff] %v6652_v20  ;;  %9751 = vst [vmem:[#allocation17_spill] sm:$0xff] %v6655_v41  ;;  %v6673_v1 = vmul.f32 %v6358_v63, %v9752_v56  ;;  %v6676_v51 = vmul.f32 %v2501_v19, %v9758_v29  ;;  %v6679_v39 = vadd.f32 %v6442_v33, %v1308_v12  ;;  %v9761_v62 = vld [vmem:[#allocation176_spill] sm:$0xff]  ;;  %v3491_v15 = vld [vmem:[%s4182_s6 + $0x138] sm:$0xf0]  ;;  %2950 = vrot.lane.b32.xlu1 %v6503_v32, %s4063_s7 }
 0x33d   : > { %9755 = vst [vmem:[#allocation69_spill] sm:$0xff] %v6663_v11  ;;  %9756 = vst [vmem:[#allocation52_spill] sm:$0xff] %v6665_v45  ;;  %v6683_v28 = vmul.f32 %v6529_v46, %v9761_v62  ;;  %v6686_v18 = vsel %vm1127_vm3, %v3242_v17, %v3250_v42  ;;  %v6689_v4 = vsel %vm1127_vm3, %v3244_v16, %v3252_v52  ;;  %v9764_v11 = vld [vmem:[#allocation80_spill] sm:$0xff]  ;;  %v9765_v63 = vld [vmem:[#allocation81_spill] sm:$0xff]  ;;  %2948 = vrot.lane.b32.xlu0 %v6492_v14, %s4063_s7 }
 0x33e   : > { %9757 = vst [vmem:[#allocation31_spill] sm:$0xff] %v6669_v37  ;;  %9759 = vst [vmem:[#allocation53_spill] sm:$0xff] %v6676_v51  ;;  %v745_v45 = vsel %vm407_vm5, %v9765_v63, %v9764_v11  ;;  %v9766_v19 = vld [vmem:[#allocation101_spill] sm:$0xff]  ;;  %v9767_v20 = vld [vmem:[#allocation100_spill] sm:$0xff]  ;;  %v6704_v42 = vmul.f32 %v6455_v48, %v9758_v29  ;;  %v1212_v17 = vadd.f32 %v1188_v53, %v6258_v13 }
 0x33f   : > { %9760 = vst [vmem:[#allocation68_spill] sm:$0xff] %v6679_v39  ;;  %9762 = vst [vmem:[#allocation199_spill] sm:$0xff] %v6686_v18  ;;  %v1292_v33 = vsel %vm407_vm5, %v9767_v20, %v9766_v19  ;;  %v6709_v16 = vmul.f32 %v6484_v60, %v9761_v62  ;;  %v9770_v12 = vld [vmem:[#allocation30_spill] sm:$0xff]  ;;  %v9773_v14 = vld [vmem:[#allocation55_spill] sm:$0xff]  ;;  %v763_v41 = vadd.f32 %v745_v45, %v6437_v8 }
 0x340   : > { %9763 = vst [vmem:[#allocation171_spill] sm:$0xff] %v6689_v4  ;;  %9768 = vst [vmem:[#allocation73_spill] sm:$0xff] %v6704_v42  ;;  %v6712_v52 = vmul.f32 %v2502_v34, %v9770_v12  ;;  %v6716_v19 = vmul.f32 %v6211_v26, %v9770_v12  ;;  %v9774_v39 = vld [vmem:[#allocation74_spill] sm:$0xff]  ;;  %v9775_v25 = vld [vmem:[#allocation75_spill] sm:$0xff]  ;;  %v6727_v4 = vpop.permute.xlu0 %2361  ;;  %v6729_v34 = vpop.permute.xlu1 %2363  ;;  %v1316_v12 = vadd.f32 %v1292_v33, %v1212_v17  ;;  %2954 = vrot.lane.b32.xlu1 %v6533_v23, %s4063_s7 }
 0x341   : > { %9769 = vst [vmem:[#allocation90_spill] sm:$0xff] %v6709_v16  ;;  %v1191_v32 = vsel %vm407_vm5, %v9774_v39, %v9773_v14  ;;  %v1190_v63 = vsel %vm407_vm5, %v9775_v25, %v9774_v39  ;;  %v9776_v13 = vld [vmem:[#allocation91_spill] sm:$0xff]  ;;  %9777 = vst [vmem:[#allocation100_spill] sm:$0xff] %v6727_v4  ;;  %v9781_v37 = vld [vmem:[#allocation61_spill] sm:$0xff]  ;;  %v6744_v4 = vmul.f32 %v6403_v30, %v9761_v62  ;;  %2952 = vrot.lane.b32.xlu0 %v6526_v22, %s4063_s7 }
 0x342   : > { %9771 = vst [vmem:[#allocation80_spill] sm:$0xff] %v6712_v52  ;;  %9772 = vst [vmem:[#allocation101_spill] sm:$0xff] %v6716_v19  ;;  %v1187_v53 = vsel %vm407_vm5, %v9776_v13, %v9754_v58  ;;  %v9779_v18 = vld [vmem:[#allocation23_spill] sm:$0xff]  ;;  %v746_v14 = vsel %vm407_vm5, %v9764_v11, %v9781_v37  ;;  %v6757_v45 = vmul.f32 %v6455_v48, %v9761_v62  ;;  %v3914_v30 = vld [vmem:[%s4182_s6] sm:$0xfe] }
 0x343   : > { %9778 = vst [vmem:[#allocation55_spill] sm:$0xff] %v6729_v34  ;;  %v6732_v26 = vmul.f32 %v3491_v15, %v9779_v18  ;;  %v9782_v25 = vld [vmem:[#allocation99_spill] sm:$0xff]  ;;  %9783 = vst [vmem:[#allocation61_spill] sm:$0xff] %v6744_v4  ;;  %v6752_v8 = vmul.f32 %v6462_v55, %v9779_v18  ;;  %v1211_v11 = vadd.f32 %v1187_v53, %v6282_v43  ;;  %v9786_v37 = vld [vmem:[#allocation106_spill] sm:$0xff] }
 0x344   : > { %v1291_v58 = vsel %vm407_vm5, %v9782_v25, %v9767_v20  ;;  %9785 = vst [vmem:[#allocation228_spill] sm:$0xff] %v6757_v45  ;;  %v6762_v15 = vmul.f32 %v3914_v30, %v9786_v37  ;;  %v9787_v22 = vld [vmem:[#allocation114_spill] sm:$0xff]  ;;  %v6767_v55 = vadd.f32 %v746_v14, %v6429_v7  ;;  %v6769_v43 = vpop.permute.xlu0 %2365  ;;  %v6771_v48 = vpop.permute.xlu1 %2367  ;;  %v9792_v53 = vld [vmem:[#allocation107_spill] sm:$0xff]  ;;  %v6778_v30 = vadd.f32 %v6165_v36, %v763_v41  ;;  %v3919_v25 = vld [vmem:[%s4182_s6 + $0x18] sm:$0xfe] }
 0x345   : > { %9780 = vst [vmem:[#allocation74_spill] sm:$0xff] %v6732_v26  ;;  %9784 = vst [vmem:[#allocation227_spill] sm:$0xff] %v6752_v8  ;;  %v1215_v33 = vadd.f32 %v1191_v32, %v9787_v22  ;;  %v9788_v23 = vld [vmem:[#allocation202_spill] sm:$0xff]  ;;  %v1315_v32 = vadd.f32 %v1291_v58, %v1211_v11  ;;  %v9795_v7 = vrot.slane %v6683_v28, 2  ;;  %v9796_v14 = vrot.slane %v6709_v16, 2  ;;  %2956 = vrot.lane.b32.xlu0 %v6574_v27, %s4063_s7  ;;  %v9804_v13 = vld [vmem:[#allocation108_spill] sm:$0xff] }
 0x346   : > { %v1214_v17 = vadd.f32 %v1190_v63, %v9788_v23  ;;  %9789 = vst [vmem:[#allocation106_spill] sm:$0xff] %v6767_v55  ;;  %9790 = vst [vmem:[#allocation114_spill] sm:$0xff] %v6769_v43  ;;  %v9793_v20 = vld [vmem:[#allocation170_spill] sm:$0xff]  ;;  %v6781_v63 = vadd.f32 %v6396_v24, %v1316_v12  ;;  %v9797_v23 = vld [vmem:[#allocation104_spill] sm:$0xff]  ;;  %2958 = vrot.lane.b32.xlu1 %v6594_v2, %s4063_s7  ;;  %v3098_v41 = vrot.slane %v6762_v15, 6 }
 0x347   : > { %9791 = vst [vmem:[#allocation202_spill] sm:$0xff] %v6771_v48  ;;  %v6775_v39 = vmul.f32 %v9793_v20, %v9792_v53  ;;  %9794 = vst [vmem:[#allocation107_spill] sm:$0xff] %v6778_v30  ;;  %v1362_v22 = vsel %vm489_vm1, %v9796_v14, %v9795_v7  ;;  %v9798_v43 = vld [vmem:[#allocation103_spill] sm:$0xff]  ;;  %v9799_v20 = vld [vmem:[#allocation105_spill] sm:$0xff] }
 0x348   : > { %v1294_v48 = vsel %vm407_vm5, %v9798_v43, %v9797_v23  ;;  %v1295_v34 = vsel %vm407_vm5, %v9797_v23, %v9799_v20  ;;  %v3915_v36 = vld [vmem:[%s4182_s6 + $0x20] sm:$0xff]  ;;  %v6802_v12 = vld [vmem:[%s4182_s6 + $0x28] sm:$0xff]  ;;  %v6817_v14 = vpop.permute.xlu0 %2369  ;;  %v6819_v15 = vpop.permute.xlu1 %2371  ;;  %v3920_v16 = vld [vmem:[%s4182_s6 + $0x38] sm:$0xff]  ;;  %v1384_v26 = vadd.f32 %v1362_v22, %v1315_v32 }
 0x349   : > { %v3069_v24 = vmul.f32 %v3915_v36, %v9786_v37  ;;  %v3070_v58 = vmul.f32 %v6802_v12, %v9792_v53  ;;  %v3917_v11 = vld [vmem:[%s4182_s6 + $0x40] sm:$0xff]  ;;  %v6811_v27 = vld [vmem:[%s4182_s6 + $0x48] sm:$0xff]  ;;  %9800 = vst [vmem:[#allocation170_spill] sm:$0xff] %v6817_v14  ;;  %9801 = vst [vmem:[#allocation104_spill] sm:$0xff] %v6819_v15  ;;  %v3099_v23 = vrot.slane %v6775_v39, 6  ;;  %v3072_v18 = vmul.f32 %v3920_v16, %v9804_v13 }
 0x34a   : > { %v6808_v7 = vmul.f32 %v3917_v11, %v9786_v37  ;;  %v6815_v2 = vmul.f32 %v6811_v27, %v9792_v53  ;;  %v9802_v20 = vld [vmem:[#allocation109_spill] sm:$0xff]  ;;  %v9803_v36 = vld [vmem:[#allocation111_spill] sm:$0xff]  ;;  %v3068_v11 = vmul.f32 %v3919_v25, %v9804_v13  ;;  %v1318_v45 = vadd.f32 %v1294_v48, %v1214_v17  ;;  %3126 = vrot.lane.b32.xlu0 %v3098_v41, %s4063_s7  ;;  %v6855_v56 = vld [vmem:[%s4182_s6 + $0x68] sm:$0x1] }
 0x34b   : > { %v3067_v43 = vmul.f32 %v9803_v36, %v9802_v20  ;;  %v1319_v4 = vadd.f32 %v1295_v34, %v1215_v33  ;;  %v6829_v8 = vld [vmem:[%s4182_s6 + $0x30] sm:$0xff]  ;;  %v3922_v14 = vld [vmem:[%s4182_s6 + $0x60] sm:$0x1]  ;;  %3128 = vrot.lane.b32.xlu1 %v3099_v23, %s4063_s7  ;;  %v3102_v25 = vrot.slane %v3069_v24, 6  ;;  %v3924_v34 = vld [vmem:[%s4182_s6 + $0x58] sm:$0xff]  ;;  %v3104_v17 = vrot.slane %v3070_v58, 6 }
 0x34c   : > { %v3071_v15 = vmul.f32 %v6829_v8, %v9802_v20  ;;  %v3077_v39 = vmul.f32 %v3922_v14, %v9786_v37  ;;  %v6838_v36 = vld [vmem:[%s4182_s6 + $0x50] sm:$0xff]  ;;  %v6846_v33 = vmul.f32 %v3924_v34, %v9804_v13  ;;  %v3110_v37 = vrot.slane %v6808_v7, 6  ;;  %v6850_v32 = vpop.permute.xlu0 %2373  ;;  %v6852_v22 = vpop.permute.xlu1 %2375  ;;  %v9814_v30 = vld [vmem:[#allocation133_spill] sm:$0xff] }
 0x34d   : > { %v6842_v16 = vmul.f32 %v6838_v36, %v9802_v20  ;;  %v3112_v48 = vrot.slane %v6815_v2, 6  ;;  %9805 = vst [vmem:[#allocation105_spill] sm:$0xff] %v6850_v32  ;;  %9806 = vst [vmem:[#allocation109_spill] sm:$0xff] %v6852_v22  ;;  %v3100_v24 = vrot.slane %v3067_v43, 6  ;;  %v3101_v14 = vrot.slane %v3068_v11, 6  ;;  %v9816_v51 = vld [vmem:[#allocation135_spill] sm:$0xff] }
 0x34e   : > { %v3108_v29 = vrot.slane %v3072_v18, 6  ;;  %v3078_v34 = vmul.f32 %v6855_v56, %v9792_v53  ;;  %v9807_v58 = vrot.slane %v6316_v35, 2  ;;  %v9808_v7 = vrot.slane %v6683_v28, 2  ;;  %v6870_v11 = vld [vmem:[%s4182_s6 + $0x70] sm:$0x1]  ;;  %v9809_v53 = vld [vmem:[#allocation118_spill] sm:$0xff] }
 0x34f   : > { %v3106_v32 = vrot.slane %v3071_v15, 6  ;;  %v3118_v3 = vrot.slane %v3077_v39, 6  ;;  %3130 = vrot.lane.b32.xlu0 %v3100_v24, %s4063_s7  ;;  %3132 = vrot.lane.b32.xlu1 %v3101_v14, %s4063_s7  ;;  %v3114_v18 = vrot.slane %v6842_v16, 6  ;;  %v3116_v43 = vrot.slane %v6846_v33, 6 }
 0x350   : > { %v6861_v19 = vadd.f32 %v9807_v58, %v1319_v4  ;;  %v1387_v2 = vadd.f32 %v9808_v7, %v1318_v45  ;;  %v3079_v35 = vmul.f32 %v6870_v11, %v9802_v20  ;;  %v3927_v4 = vld [vmem:[%s4182_s6 + $0x78] sm:$0x1]  ;;  %v6878_v45 = vmul.f32 %v6578_v21, %v9809_v53  ;;  %v6884_v58 = vld [vmem:[%s4182_s6 + $0xa8] sm:$0xff]  ;;  %v6890_v20 = vpop.permute.xlu0 %2377  ;;  %v6892_v7 = vpop.permute.xlu1 %2379 }
 0x351   : > { %v3080_v28 = vmul.f32 %v3927_v4, %v9804_v13  ;;  %v3103_v15 = vsel %vm3097_vm6, %v3098_v41, %v3102_v25  ;;  %v3105_v39 = vsel %vm3097_vm6, %v3099_v23, %v3104_v17  ;;  %v3111_v16 = vsel %vm3097_vm6, %v3102_v25, %v3110_v37  ;;  %9811 = vst [vmem:[#allocation108_spill] sm:$0xff] %v6890_v20  ;;  %v9813_v41 = vld [vmem:[#allocation136_spill] sm:$0xff]  ;;  %v9815_v25 = vld [vmem:[#allocation203_spill] sm:$0xff] }
 0x352   : > { %v6888_v33 = vmul.f32 %v6884_v58, %v9809_v53  ;;  %9812 = vst [vmem:[#allocation229_spill] sm:$0xff] %v6892_v7  ;;  %v3109_v13 = vsel %vm3097_vm6, %v3101_v14, %v3108_v29  ;;  %v3113_v4 = vsel %vm3097_vm6, %v3104_v17, %v3112_v48  ;;  %v3120_v50 = vrot.slane %v3078_v34, 6  ;;  %v9818_v7 = vld [vmem:[#allocation149_spill] sm:$0xff] }
 0x353   : > { %v1500_v23 = vsel %vm407_vm5, %v9814_v30, %v9813_v41  ;;  %v6901_v55 = vmul.f32 %v6584_v59, %v9815_v25  ;;  %v3107_v52 = vsel %vm3097_vm6, %v3100_v24, %v3106_v32  ;;  %v6905_v42 = vsel %vm3097_vm6, %v3110_v37, %v3118_v3  ;;  %3134 = vrot.lane.b32.xlu0 %v3103_v15, %s4063_s7  ;;  %v9817_v24 = vld [vmem:[#allocation152_spill] sm:$0xff] }
 0x354   : > { %9810 = vst [vmem:[#allocation111_spill] sm:$0xff] %v6888_v33  ;;  %3136 = vrot.lane.b32.xlu1 %v3105_v39, %s4063_s7  ;;  %v6910_v17 = vsel %vm3097_vm6, %v3106_v32, %v3114_v18  ;;  %v6913_v14 = vsel %vm3097_vm6, %v3108_v29, %v3116_v43  ;;  %v3122_v34 = vrot.slane %v3079_v35, 6  ;;  %v3124_v30 = vrot.slane %v3080_v28, 6  ;;  %v9820_v39 = vld [vmem:[#allocation140_spill] sm:$0xff]  ;;  %v9821_v29 = vld [vmem:[#allocation137_spill] sm:$0xff]  ;;  %v6930_v22 = vpop.permute.xlu0 %2381 }
 0x355   : > { %v1501_v44 = vsel %vm407_vm5, %v9813_v41, %v9816_v51  ;;  %v1632_v3 = vsel %vm407_vm5, %v9818_v7, %v9817_v24  ;;  %v6923_v37 = vmul.f32 %v6133_v49, %v9815_v25  ;;  %v1524_v15 = vadd.f32 %v1500_v23, %v1384_v26  ;;  %9822 = vst [vmem:[#allocation135_spill] sm:$0xff] %v6930_v22  ;;  %v6932_v51 = vpop.permute.xlu1 %2383  ;;  %v9824_v7 = vld [vmem:[#allocation151_spill] sm:$0xff]  ;;  %v9825_v26 = vld [vmem:[#allocation12_spill] sm:$0xff] }
 0x356   : > { %v1503_v35 = vsel %vm407_vm5, %v9821_v29, %v9820_v39  ;;  %9823 = vst [vmem:[#allocation152_spill] sm:$0xff] %v6932_v51  ;;  %v6935_v41 = vsel %vm3097_vm6, %v3112_v48, %v3120_v50  ;;  %v1633_v20 = vsel %vm407_vm5, %v9817_v24, %v9824_v7  ;;  %v6943_v23 = vmul.f32 %v6529_v46, %v9825_v26  ;;  %v9826_v29 = vld [vmem:[#allocation13_spill] sm:$0xff]  ;;  %v9827_v51 = vld [vmem:[#allocation139_spill] sm:$0xff] }
 0x357   : > { %9819 = vst [vmem:[#allocation136_spill] sm:$0xff] %v6923_v37  ;;  %v6947_v28 = vmul.f32 %v6312_v5, %v9826_v29  ;;  %v1525_v22 = vadd.f32 %v1501_v44, %v6781_v63  ;;  %v1504_v50 = vsel %vm407_vm5, %v9820_v39, %v9827_v51  ;;  %v1656_v48 = vadd.f32 %v1632_v3, %v1524_v15 }
 0x358   : > { %3138 = vrot.lane.b32.xlu0 %v3107_v52, %s4063_s7  ;;  %3140 = vrot.lane.b32.xlu1 %v3109_v13, %s4063_s7  ;;  %v9184_v46 = vrot.slane %v6923_v37, 1  ;;  %v9828_v24 = vrot.slane %v6878_v45, 1  ;;  %v9829_v5 = vrot.slane %v6888_v33, 1  ;;  %v6964_v44 = vmul.f32 %v6484_v60, %v9825_v26  ;;  %v6970_v3 = vpop.permute.xlu0 %2385 }
 0x359   : > { %v6968_v63 = vmul.f32 %v6262_v10, %v9826_v29  ;;  %v1527_v52 = vadd.f32 %v1503_v35, %v1387_v2  ;;  %v1657_v13 = vadd.f32 %v1633_v20, %v1525_v22  ;;  %v6972_v15 = vpop.permute.xlu1 %2387  ;;  %v6975_v39 = vsel %vm3097_vm6, %v3114_v18, %v3122_v34  ;;  %v9833_v35 = vld [vmem:[#allocation156_spill] sm:$0xff]  ;;  %v9834_v18 = vld [vmem:[#allocation153_spill] sm:$0xff] }
 0x35a   : > { %v1703_v32 = vsel %vm288_vm2, %v9829_v5, %v9828_v24  ;;  %9830 = vst [vmem:[#allocation140_spill] sm:$0xff] %v6964_v44  ;;  %v6978_v51 = vsel %vm3097_vm6, %v3116_v43, %v3124_v30  ;;  %v1528_v24 = vadd.f32 %v1504_v50, %v6861_v19  ;;  %v9832_v5 = vrot.slane %v6901_v55, 1  ;;  %v9836_v50 = vld [vmem:[#allocation155_spill] sm:$0xff]  ;;  %v3931_v43 = vld [vmem:[%s4182_s6 + $0x128] sm:$0x3] }
 0x35b   : > { %9831 = vst [vmem:[#allocation151_spill] sm:$0xff] %v6968_v63  ;;  %v2076_v22 = vrot.slane %v6943_v23, 1  ;;  %v2078_v20 = vrot.slane %v6947_v28, 1  ;;  %v1635_v34 = vsel %vm407_vm5, %v9834_v18, %v9833_v35  ;;  %v6991_v30 = vadd.f32 %v1703_v32, %v1656_v48 }
 0x35c   : > { %v1705_v2 = vsel %vm288_vm2, %v9184_v46, %v9832_v5  ;;  %v6995_v19 = vmul.f32 %v6802_v12, %v9761_v62  ;;  %3142 = vrot.lane.b32.xlu0 %v3111_v16, %s4063_s7  ;;  %3144 = vrot.lane.b32.xlu1 %v3113_v4, %s4063_s7  ;;  %v1636_v28 = vsel %vm407_vm5, %v9833_v35, %v9836_v50  ;;  %v9189_v23 = vrot.slane %v6964_v44, 1  ;;  %v7010_v16 = vld [vmem:[%s4182_s6 + $0x108] sm:$0xff]  ;;  %v7015_v5 = vld [vmem:[%s4182_s6 + $0x110] sm:$0xff]  ;;  %v7021_v46 = vpop.permute.xlu0 %2637  ;;  %v9971_v44 = vld [vmem:[#allocation209_spill] sm:$0xff] }
 0x35d   : > { %v9188_v32 = vrot.slane %v6968_v63, 1  ;;  %v2211_v48 = vmul.f32 %v6811_v27, %v9761_v62  ;;  %v7007_v12 = vadd.f32 %v1705_v2, %v1657_v13  ;;  %v2030_v4 = vmul.f32 %v7010_v16, %v5432_v40  ;;  %9837 = vst [vmem:[#allocation156_spill] sm:$0xff] %v7021_v46  ;;  %v7023_v7 = vpop.permute.xlu1 %2639 }
 0x35e   : > { %9835 = vst [vmem:[#allocation139_spill] sm:$0xff] %v6995_v19  ;;  %v2031_v35 = vmul.f32 %v7015_v5, %v5348_v47  ;;  %v2212_v50 = vmul.f32 %v6838_v36, %v5351_v6  ;;  %9838 = vst [vmem:[#allocation155_spill] sm:$0xff] %v7023_v7  ;;  %v1659_v27 = vadd.f32 %v1635_v34, %v1527_v52  ;;  %v3932_v7 = vld [vmem:[%s4182_s6 + $0x130] sm:$0x3] }
 0x35f   : > { %v2077_v13 = vsel %vm288_vm2, %v9189_v23, %v2076_v22  ;;  %v2079_v2 = vsel %vm288_vm2, %v9188_v32, %v2078_v20  ;;  %v2033_v29 = vmul.f32 %v3931_v43, %v5432_v40  ;;  %v1660_v26 = vadd.f32 %v1636_v28, %v1528_v24  ;;  %v7049_v28 = vld [vmem:[%s4182_s6 + $0x128] sm:$0x7]  ;;  %v7056_v23 = vld [vmem:[%s4182_s6 + $0x130] sm:$0x7] }
 0x360   : > { %v2214_v46 = vmul.f32 %v6855_v56, %v9761_v62  ;;  %v2034_v52 = vmul.f32 %v3932_v7, %v5348_v47  ;;  %3146 = vrot.lane.b32.xlu0 %v6910_v17, %s4063_s7  ;;  %3148 = vrot.lane.b32.xlu1 %v6913_v14, %s4063_s7  ;;  %v7044_v34 = vmul.f32 %v6829_v8, %v5351_v6  ;;  %v2239_v43 = vrot.slane %v2211_v48, 7  ;;  %v7062_v8 = vpop.permute.xlu0 %2641  ;;  %v9984_v62 = vld [vmem:[#allocation177_spill] sm:$0xff] }
 0x361   : > { %v2215_v24 = vmul.f32 %v6870_v11, %v5351_v6  ;;  %v7053_v56 = vmul.f32 %v7049_v28, %v9809_v53  ;;  %v2099_v7 = vadd.f32 %v2077_v13, %v2030_v4  ;;  %v2100_v32 = vadd.f32 %v2079_v2, %v2031_v35  ;;  %9840 = vst [vmem:[#allocation231_spill] sm:$0xff] %v7062_v8  ;;  %v7064_v48 = vpop.permute.xlu1 %2643  ;;  %v9843_v2 = vld [vmem:[#allocation15_spill] sm:$0xff] }
 0x362   : > { %9839 = vst [vmem:[#allocation230_spill] sm:$0xff] %v7044_v34  ;;  %v2241_v17 = vrot.slane %v2212_v50, 7  ;;  %v7060_v14 = vmul.f32 %v7056_v23, %v9815_v25  ;;  %9841 = vst [vmem:[#allocation232_spill] sm:$0xff] %v7064_v48  ;;  %v2175_v11 = vsel %vm407_vm5, %v6448_v61, %v6517_v38  ;;  %v2176_v4 = vsel %vm407_vm5, %v6517_v38, %v6519_v0 }
 0x363   : > { %v2102_v35 = vadd.f32 %v2076_v22, %v2033_v29  ;;  %v7074_v50 = vmul.f32 %v7010_v16, %v9809_v53  ;;  %v2245_v13 = vrot.slane %v2214_v46, 7  ;;  %v2178_v36 = vsel %vm407_vm5, %v9843_v2, %v6620_v31 }
 0x364   : > { %v2103_v8 = vadd.f32 %v2078_v20, %v2034_v52  ;;  %v7081_v48 = vmul.f32 %v7015_v5, %v9815_v25  ;;  %3150 = vrot.lane.b32.xlu0 %v6905_v42, %s4063_s7  ;;  %3152 = vrot.lane.b32.xlu1 %v6935_v41, %s4063_s7  ;;  %v9195_v0 = vrot.slane %v7044_v34, 7  ;;  %v2247_v38 = vrot.slane %v2215_v24, 7  ;;  %v7095_v42 = vpop.permute.xlu0 %2645  ;;  %v9964_v34 = vld [vmem:[#allocation157_spill] sm:$0xff] }
 0x365   : > { %9842 = vst [vmem:[#allocation233_spill] sm:$0xff] %v7074_v50  ;;  %v2179_v29 = vsel %vm407_vm5, %v6620_v31, %v6622_v57  ;;  %v9197_v46 = vrot.slane %v7053_v56, 1  ;;  %v9845_v22 = vrot.slane %v6878_v45, 1  ;;  %v2199_v52 = vadd.f32 %v2175_v11, %v2099_v7  ;;  %9846 = vst [vmem:[#allocation235_spill] sm:$0xff] %v7095_v42  ;;  %v7097_v63 = vpop.permute.xlu1 %2647  ;;  %v9849_v11 = vld [vmem:[#allocation123_spill] sm:$0xff] }
 0x366   : > { %9844 = vst [vmem:[#allocation234_spill] sm:$0xff] %v7081_v48  ;;  %v2200_v2 = vadd.f32 %v2176_v4, %v2100_v32  ;;  %v9196_v61 = vrot.slane %v7060_v14, 1  ;;  %9847 = vst [vmem:[#allocation236_spill] sm:$0xff] %v7097_v63  ;;  %v9848_v41 = vrot.slane %v6995_v19, 7  ;;  %v2242_v57 = vsel %vm1127_vm3, %v9195_v0, %v2241_v17  ;;  %v9865_v0 = vld [vmem:[#allocation109_spill] sm:$0xff] }
 0x367   : > { %v1728_v20 = vadd.f32 %v9845_v22, %v1659_v27  ;;  %v2202_v31 = vadd.f32 %v2178_v36, %v2102_v35  ;;  %v9194_v45 = vrot.slane %v7074_v50, 1  ;;  %v2246_v27 = vsel %vm1127_vm3, %v2239_v43, %v2245_v13  ;;  %v9869_v63 = vld [vmem:[#allocation205_spill] sm:$0xff] }
 0x368   : > { %v2240_v24 = vsel %vm1127_vm3, %v9848_v41, %v2239_v43  ;;  %v2203_v32 = vadd.f32 %v2179_v29, %v2103_v8  ;;  %v9193_v7 = vrot.slane %v7081_v48, 1  ;;  %3154 = vrot.lane.b32.xlu0 %v6975_v39, %s4063_s7  ;;  %3156 = vrot.lane.b32.xlu1 %v6978_v51, %s4063_s7  ;;  %v7114_v4 = vmul.f32 %v6484_v60, %v9849_v11  ;;  %v9852_v43 = vld [vmem:[#allocation48_spill] sm:$0xff]  ;;  %v9853_v29 = vld [vmem:[#allocation51_spill] sm:$0xff]  ;;  %v9872_v50 = vld [vmem:[#allocation225_spill] sm:$0xff] }
 0x369   : > { %v9851_v36 = vrot.slane %v6901_v55, 1  ;;  %v2248_v22 = vsel %vm1127_vm3, %v2241_v17, %v2247_v38  ;;  %v2280_v8 = vmul.f32 %v6884_v58, %v9852_v43  ;;  %v2473_v39 = vsel %vm288_vm2, %v9194_v45, %v9197_v46  ;;  %v7135_v58 = vpop.permute.xlu1 %2651  ;;  %v9863_v46 = vld [vmem:[#allocation201_spill] sm:$0xff] }
 0x36a   : > { %9850 = vst [vmem:[#allocation237_spill] sm:$0xff] %v7114_v4  ;;  %v2268_v51 = vadd.f32 %v2240_v24, %v2199_v52  ;;  %v2269_v13 = vadd.f32 %v2242_v57, %v2200_v2  ;;  %v2281_v41 = vmul.f32 %v6133_v49, %v9853_v29  ;;  %v2475_v55 = vsel %vm288_vm2, %v9193_v7, %v9196_v61  ;;  %v9856_v52 = vld [vmem:[#allocation124_spill] sm:$0xff]  ;;  %v7146_v24 = vld [vmem:[%s4182_s6 + $0x188] sm:$0xf]  ;;  %v7163_v61 = vld [vmem:[%s4182_s6 + $0x190] sm:$0xf] }
 0x36b   : > { %v1729_v35 = vadd.f32 %v9851_v36, %v1660_v26  ;;  %v7133_v26 = vpop.permute.xlu0 %2649  ;;  %9855 = vst [vmem:[#allocation239_spill] sm:$0xff] %v7135_v58  ;;  %v2271_v17 = vadd.f32 %v2246_v27, %v2202_v31  ;;  %v2283_v38 = vmul.f32 %v6578_v21, %v9852_v43  ;;  %v2284_v2 = vmul.f32 %v6584_v59, %v9853_v29  ;;  %v9858_v57 = vld [vmem:[#allocation200_spill] sm:$0xff]  ;;  %v9859_v36 = vld [vmem:[#allocation195_spill] sm:$0xff] }
 0x36c   : > { %9854 = vst [vmem:[#allocation238_spill] sm:$0xff] %v7133_v26  ;;  %v7143_v49 = vmul.f32 %v6262_v10, %v9856_v52  ;;  %v1813_v7 = vsel %vm407_vm5, %v9859_v36, %v9858_v57  ;;  %v2272_v45 = vadd.f32 %v2248_v22, %v2203_v32  ;;  %v9860_v31 = vrot.slane %v6475_v54, 7  ;;  %v9861_v21 = vld [vmem:[#allocation188_spill] sm:$0xff]  ;;  %v9866_v54 = vld [vmem:[#allocation229_spill] sm:$0xff] }
 0x36d   : > { %v9862_v59 = vrot.slane %v9861_v21, 7  ;;  %v7160_v27 = vmul.f32 %v7146_v24, %v9849_v11  ;;  %v1814_v32 = vsel %vm407_vm5, %v9858_v57, %v9863_v46  ;;  %v9864_v22 = vld [vmem:[#allocation108_spill] sm:$0xff]  ;;  %v7176_v21 = vmul.f32 %v7163_v61, %v9856_v52 }
 0x36e   : > { %9857 = vst [vmem:[#allocation240_spill] sm:$0xff] %v7143_v49  ;;  %3254 = vrot.lane.b32.xlu0 %v9860_v31, %s4063_s7  ;;  %v2396_v58 = vsel %vm407_vm5, %v9865_v0, %v9864_v22  ;;  %v2397_v31 = vsel %vm407_vm5, %v9864_v22, %v9866_v54  ;;  %v9868_v26 = vld [vmem:[#allocation112_spill] sm:$0xff]  ;;  %v2292_v57 = vadd.f32 %v2280_v8, %v2268_v51  ;;  %v7186_v0 = vpop.permute.xlu1 %2655  ;;  %v9873_v22 = vld [vmem:[#allocation217_spill] sm:$0xff] }
 0x36f   : > { %3256 = vrot.lane.b32.xlu1 %v9862_v59, %s4063_s7  ;;  %v9867_v59 = vld [vmem:[#allocation204_spill] sm:$0xff]  ;;  %v2293_v36 = vadd.f32 %v2281_v41, %v2269_v13  ;;  %v7184_v48 = vpop.permute.xlu0 %2653  ;;  %9871 = vst [vmem:[#allocation188_spill] sm:$0xff] %v7186_v0  ;;  %v1946_v54 = vsel %vm407_vm5, %v9873_v22, %v9872_v50  ;;  %v2295_v52 = vadd.f32 %v2283_v38, %v2271_v17  ;;  %v9875_v13 = vld [vmem:[#allocation193_spill] sm:$0xff]  ;;  %v2547_v17 = vrot.slane %v7160_v27, 2 }
 0x370   : > { %v1816_v42 = vsel %vm407_vm5, %v9868_v26, %v9867_v59  ;;  %v1817_v46 = vsel %vm407_vm5, %v9867_v59, %v9869_v63  ;;  %9870 = vst [vmem:[#allocation200_spill] sm:$0xff] %v7184_v48  ;;  %v9874_v11 = vld [vmem:[#allocation152_spill] sm:$0xff]  ;;  %v2400_v26 = vsel %vm407_vm5, %v6970_v3, %v6972_v15  ;;  %v2420_v63 = vadd.f32 %v2396_v58, %v2292_v57  ;;  %v9877_v59 = vld [vmem:[#allocation206_spill] sm:$0xff] }
 0x371   : > { %v2399_v29 = vsel %vm407_vm5, %v9874_v11, %v6970_v3  ;;  %v2421_v8 = vadd.f32 %v2397_v31, %v2293_v36  ;;  %v2296_v51 = vadd.f32 %v2284_v2, %v2272_v45  ;;  %v9876_v41 = vrot.slane %v9875_v13, 7  ;;  %v9879_v11 = vld [vmem:[#allocation226_spill] sm:$0xff]  ;;  %v9882_v2 = vld [vmem:[#allocation163_spill] sm:$0xff]  ;;  %v9883_v13 = vld [vmem:[#allocation40_spill] sm:$0xff] }
 0x372   : > { %v9878_v48 = vrot.slane %v9877_v59, 7  ;;  %v1840_v38 = vadd.f32 %v1816_v42, %v1728_v20  ;;  %v1841_v22 = vadd.f32 %v1817_v46, %v1729_v35  ;;  %v1947_v43 = vsel %vm407_vm5, %v9872_v50, %v9879_v11  ;;  %v9880_v15 = vld [vmem:[#allocation162_spill] sm:$0xff]  ;;  %v2660_v27 = vpop.permute.xlu1 %2659  ;;  %v9894_v59 = vld [vmem:[#allocation80_spill] sm:$0xff] }
 0x373   : > { %3258 = vrot.lane.b32.xlu0 %v9876_v41, %s4063_s7  ;;  %v2549_v3 = vrot.slane %v7176_v21, 2  ;;  %v9881_v45 = vld [vmem:[#allocation174_spill] sm:$0xff]  ;;  %v1944_v36 = vsel %vm407_vm5, %v9880_v15, %v9882_v2  ;;  %v2423_v31 = vadd.f32 %v2399_v29, %v2295_v52  ;;  %v2658_v57 = vpop.permute.xlu0 %2657  ;;  %v1837_v20 = vadd.f32 %v1813_v7, %v6991_v30  ;;  %v9884_v41 = vld [vmem:[#allocation117_spill] sm:$0xff] }
 0x374   : > { %3260 = vrot.lane.b32.xlu1 %v9878_v48, %s4063_s7  ;;  %v1943_v58 = vsel %vm407_vm5, %v9881_v45, %v9880_v15  ;;  %v2424_v48 = vadd.f32 %v2400_v26, %v2296_v51  ;;  %v1838_v42 = vadd.f32 %v1814_v32, %v7007_v12  ;;  %v1970_v35 = vadd.f32 %v1946_v54, %v1840_v38  ;;  %v9885_v29 = vld [vmem:[#allocation53_spill] sm:$0xff]  ;;  %v9895_v15 = vld [vmem:[#allocation106_spill] sm:$0xff]  ;;  %v9919_v38 = vld [vmem:[#allocation228_spill] sm:$0xff] }
 0x375   : > { %v9206_v50 = vrot.slane %v7143_v49, 2  ;;  %v1971_v11 = vadd.f32 %v1947_v43, %v1841_v22  ;;  %v2495_v21 = vadd.f32 %v2473_v39, %v2420_v63  ;;  %v2496_v46 = vadd.f32 %v2475_v55, %v2421_v8  ;;  %v9893_v63 = vld [vmem:[#allocation73_spill] sm:$0xff]  ;;  %v9954_v49 = vld [vmem:[#allocation78_spill] sm:$0xff] }
 0x376   : > { %v7222_v52 = vadd.f32 %v1943_v58, %v1837_v20  ;;  %v7224_v51 = vadd.f32 %v1944_v36, %v1838_v42  ;;  %v9888_v30 = vrot.slane %v7114_v4, 2  ;;  %v9889_v43 = vrot.slane %v7053_v56, 1  ;;  %v7238_v54 = vpop.permute.xlu1 %2663  ;;  %v9896_v58 = vld [vmem:[#allocation166_spill] sm:$0xff] }
 0x377   : > { %3262 = vrot.lane.b32.xlu0 %v9883_v13, %s4063_s7  ;;  %v2550_v7 = vsel %vm489_vm1, %v9206_v50, %v2549_v3  ;;  %v9890_v55 = vrot.slane %v7060_v14, 1  ;;  %v7236_v22 = vpop.permute.xlu0 %2661  ;;  %9892 = vst [vmem:[#allocation204_spill] sm:$0xff] %v7238_v54  ;;  %v9211_v8 = vrot.slane %v9893_v63, 1  ;;  %v851_v2 = vadd.f32 %v9896_v58, %v9895_v15  ;;  %v9898_v14 = vld [vmem:[#allocation223_spill] sm:$0xff]  ;;  %v9902_v15 = vld [vmem:[#allocation86_spill] sm:$0xff] }
 0x378   : > { %3264 = vrot.lane.b32.xlu1 %v9884_v41, %s4063_s7  ;;  %9886 = vst [vmem:[#allocation201_spill] sm:$0xff] %v7222_v52  ;;  %9887 = vst [vmem:[#allocation108_spill] sm:$0xff] %v7224_v51  ;;  %v2548_v12 = vsel %vm489_vm1, %v9888_v30, %v2547_v17  ;;  %v2498_v39 = vadd.f32 %v9889_v43, %v2423_v31  ;;  %v2001_v36 = vrot.slane %v1970_v35, 1  ;;  %v9897_v31 = vld [vmem:[#allocation107_spill] sm:$0xff]  ;;  %v2003_v42 = vrot.slane %v1971_v11, 1  ;;  %v9899_v30 = vld [vmem:[#allocation20_spill] sm:$0xff] }
 0x379   : > { %v2499_v32 = vadd.f32 %v9890_v55, %v2424_v48  ;;  %9891 = vst [vmem:[#allocation229_spill] sm:$0xff] %v7236_v22  ;;  %v2676_v20 = vsel %vm407_vm5, %v7186_v0, %v2658_v57  ;;  %v2677_v56 = vsel %vm407_vm5, %v2658_v57, %v2660_v27  ;;  %v937_v48 = vadd.f32 %v9898_v14, %v9897_v31  ;;  %v9900_v43 = vld [vmem:[#allocation178_spill] sm:$0xff]  ;;  %v9901_v55 = vld [vmem:[#allocation87_spill] sm:$0xff] }
 0x37a   : > { %v2570_v13 = vadd.f32 %v2548_v12, %v2495_v21  ;;  %v2571_v41 = vadd.f32 %v2550_v7, %v2496_v46  ;;  %v1059_v35 = vsel %vm407_vm5, %v9902_v15, %v9901_v55  ;;  %v9903_v58 = vld [vmem:[#allocation66_spill] sm:$0xff]  ;;  %v9207_v27 = vrot.slane %v7222_v52, 1  ;;  %v2668_v14 = vpop.permute.xlu1 %2667  ;;  %v9950_v52 = vld [vmem:[#allocation169_spill] sm:$0xff] }
 0x37b   : > { %3266 = vrot.lane.b32.xlu0 %v9899_v30, %s4063_s7  ;;  %v1060_v57 = vsel %vm407_vm5, %v9901_v55, %v9903_v58  ;;  %v9208_v11 = vrot.slane %v7224_v51, 1  ;;  %v2666_v12 = vpop.permute.xlu0 %2665  ;;  %v2573_v7 = vadd.f32 %v2547_v17, %v2498_v39  ;;  %v2574_v31 = vadd.f32 %v2549_v3, %v2499_v32  ;;  %v9906_v30 = vld [vmem:[#allocation224_spill] sm:$0xff]  ;;  %v9907_v17 = vld [vmem:[#allocation21_spill] sm:$0xff]  ;;  %v9908_v3 = vld [vmem:[#allocation18_spill] sm:$0xff] }
 0x37c   : > { %3268 = vrot.lane.b32.xlu1 %v9900_v43, %s4063_s7  ;;  %v7261_v21 = vadd.f32 %v2676_v20, %v2570_v13  ;;  %v7263_v46 = vadd.f32 %v2677_v56, %v2571_v41  ;;  %v938_v43 = vadd.f32 %v9906_v30, %v851_v2  ;;  %v2002_v50 = vsel %vm288_vm2, %v9207_v27, %v2001_v36  ;;  %v9909_v39 = vld [vmem:[#allocation101_spill] sm:$0xff]  ;;  %v9910_v41 = vld [vmem:[#allocation22_spill] sm:$0xff] }
 0x37d   : > { %v2679_v55 = vsel %vm407_vm5, %v7238_v54, %v2666_v12  ;;  %v2680_v58 = vsel %vm407_vm5, %v2666_v12, %v2668_v14  ;;  %v2004_v20 = vsel %vm288_vm2, %v9208_v11, %v2003_v42  ;;  %v1077_v2 = vadd.f32 %v1059_v35, %v937_v48  ;;  %v9911_v30 = vld [vmem:[#allocation185_spill] sm:$0xff]  ;;  %v9915_v11 = vld [vmem:[#allocation16_spill] sm:$0xff] }
 0x37e   : > { %9904 = vst [vmem:[#allocation205_spill] sm:$0xff] %v7261_v21  ;;  %9905 = vst [vmem:[#allocation225_spill] sm:$0xff] %v7263_v46  ;;  %v2703_v56 = vadd.f32 %v2679_v55, %v2573_v7  ;;  %v2704_v13 = vadd.f32 %v2680_v58, %v2574_v31  ;;  %v1078_v36 = vadd.f32 %v1060_v57, %v938_v43  ;;  %v9912_v12 = vld [vmem:[#allocation29_spill] sm:$0xff]  ;;  %v9209_v42 = vrot.slane %v7261_v21, 2 }
 0x37f   : > { %3270 = vrot.lane.b32.xlu0 %v9907_v17, %s4063_s7  ;;  %v7282_v27 = vmul.f32 %v9911_v30, %v9910_v41  ;;  %v7286_v14 = vmul.f32 %v6484_v60, %v9912_v12  ;;  %v9210_v7 = vrot.slane %v7263_v46, 2  ;;  %v2829_v58 = vpop.permute.xlu0 %2828  ;;  %v2831_v17 = vpop.permute.xlu1 %2830  ;;  %v2021_v35 = vmax.f32 %v1077_v2, %v2002_v50  ;;  %v9928_v2 = vld [vmem:[#allocation31_spill] sm:$0xff]  ;;  %v9940_v46 = vld [vmem:[#allocation57_spill] sm:$0xff] }
 0x380   : > { %3272 = vrot.lane.b32.xlu1 %v9908_v3, %s4063_s7  ;;  %v2734_v31 = vrot.slane %v2703_v56, 2  ;;  %v2736_v55 = vrot.slane %v2704_v13, 2  ;;  %v9913_v3 = vld [vmem:[#allocation175_spill] sm:$0xff]  ;;  %v2022_v57 = vmax.f32 %v1078_v36, %v2004_v20  ;;  %v7295_v43 = vsel %vm407_vm5, %v2829_v58, %v2831_v17  ;;  %v9914_v13 = vld [vmem:[#allocation14_spill] sm:$0xff]  ;;  %v9918_v36 = vld [vmem:[#allocation61_spill] sm:$0xff] }
 0x381   : > { %v7292_v48 = vmul.f32 %v9911_v30, %v9913_v3  ;;  %v9916_v30 = vld [vmem:[#allocation74_spill] sm:$0xff]  ;;  %v9917_v20 = vld [vmem:[#allocation227_spill] sm:$0xff]  ;;  %v1347_v58 = vrot.slane %v9918_v36, 2  ;;  %v7383_v21 = vld [vmem:[%s4182_s6 + $0x180] sm:$0xf]  ;;  %v9942_v54 = vrot.slane %v7282_v27, 1 }
 0x382   : > { %v2735_v60 = vsel %vm489_vm1, %v9209_v42, %v2734_v31  ;;  %v2737_v56 = vsel %vm489_vm1, %v9210_v7, %v2736_v55  ;;  %v3534_v50 = vrot.slane %v9916_v30, 1  ;;  %v9922_v7 = vrot.slane %v6673_v1, 1  ;;  %v9924_v36 = vld [vmem:[#allocation30_spill] sm:$0xff]  ;;  %v9934_v30 = vld [vmem:[#allocation77_spill] sm:$0xff]  ;;  %9941 = vst [vmem:[#allocation226_spill] sm:$0xff] %v7383_v21 }
 0x383   : > { %3274 = vrot.lane.b32.xlu0 %v9914_v13, %s4063_s7  ;;  %v7311_v26 = vmax.f32 %v2021_v35, %v2735_v60  ;;  %v7313_v31 = vmax.f32 %v2022_v57, %v2737_v56  ;;  %v2833_v42 = vpop.permute.xlu0 %2832  ;;  %v2835_v55 = vpop.permute.xlu1 %2834  ;;  %v9923_v13 = vrot.slane %v6658_v9, 1  ;;  %v7326_v32 = vmul.f32 %v6262_v10, %v9924_v36  ;;  %v9925_v35 = vld [vmem:[#allocation75_spill] sm:$0xff]  ;;  %v9926_v57 = vld [vmem:[#allocation54_spill] sm:$0xff]  ;;  %v9933_v56 = vld [vmem:[#allocation168_spill] sm:$0xff] }
 0x384   : > { %3276 = vrot.lane.b32.xlu1 %v9915_v11, %s4063_s7  ;;  %v1189_v60 = vsel %vm407_vm5, %v9926_v57, %v9925_v35  ;;  %v7333_v9 = vsel %vm407_vm5, %v2831_v17, %v2833_v42  ;;  %v9929_v10 = vrot.slane %v9885_v29, 1  ;;  %v9930_v57 = vrot.slane %v9909_v39, 1 }
 0x385   : > { %9920 = vst [vmem:[#allocation193_spill] sm:$0xff] %v7311_v26  ;;  %9921 = vst [vmem:[#allocation206_spill] sm:$0xff] %v7313_v31  ;;  %v7320_v11 = vsel %vm288_vm2, %v9923_v13, %v9922_v7  ;;  %v7336_v7 = vsel %vm407_vm5, %v2833_v42, %v2835_v55  ;;  %v9927_v13 = vld [vmem:[#allocation17_spill] sm:$0xff]  ;;  %v9931_v17 = vrot.slane %v9894_v59, 1  ;;  %v9932_v55 = vld [vmem:[#allocation23_spill] sm:$0xff]  ;;  %v9938_v59 = vrot.slane %v9917_v20, 1 }
 0x386   : > { %v7347_v35 = vsel %vm288_vm2, %v9929_v10, %v9211_v8  ;;  %v9936_v26 = vld [vmem:[#allocation76_spill] sm:$0xff]  ;;  %v9937_v10 = vrot.slane %v9919_v38, 2  ;;  %v9949_v51 = vrot.slane %v7292_v48, 2  ;;  %v9951_v0 = vrot.slane %v9950_v52, 2  ;;  %v9955_v52 = vld [vmem:[#allocation199_spill] sm:$0xff] }
 0x387   : > { %3278 = vrot.lane.b32.xlu0 %v9927_v13, %s4063_s7  ;;  %v7354_v42 = vsel %vm288_vm2, %v9931_v17, %v9930_v57  ;;  %v7358_v13 = vmul.f32 %v9933_v56, %v9932_v55  ;;  %v739_v29 = vsel %vm407_vm5, %v9934_v30, %v9936_v26  ;;  %v7374_v57 = vsel %vm288_vm2, %v3534_v50, %v9938_v59  ;;  %v9939_v56 = vld [vmem:[#allocation115_spill] sm:$0xff]  ;;  %v2839_v22 = vpop.permute.xlu1 %2838 }
 0x388   : > { %3280 = vrot.lane.b32.xlu1 %v9928_v2, %s4063_s7  ;;  %v9935_v2 = vld [vmem:[#allocation56_spill] sm:$0xff]  ;;  %v7369_v8 = vsel %vm489_vm1, %v1347_v58, %v9937_v10  ;;  %v7377_v17 = vadd.f32 %v1189_v60, %v9939_v56  ;;  %v9943_v58 = vrot.slane %v6673_v1, 1  ;;  %v9944_v50 = vrot.slane %v7286_v14, 1  ;;  %v9947_v56 = vld [vmem:[#allocation79_spill] sm:$0xff] }
 0x389   : > { %v738_v31 = vsel %vm407_vm5, %v9935_v2, %v9934_v30  ;;  %v740_v2 = vsel %vm407_vm5, %v9936_v26, %v9940_v46  ;;  %v2837_v30 = vpop.permute.xlu0 %2836  ;;  %v9945_v60 = vrot.slane %v9893_v63, 1  ;;  %v9948_v26 = vld [vmem:[#allocation58_spill] sm:$0xff]  ;;  %v7407_v1 = vsel %vm489_vm1, %v9951_v0, %v9949_v51  ;;  %v9956_v0 = vld [vmem:[#allocation171_spill] sm:$0xff] }
 0x38a   : > { %v7390_v10 = vsel %vm288_vm2, %v9943_v58, %v9942_v54  ;;  %v741_v46 = vsel %vm407_vm5, %v9948_v26, %v9947_v56  ;;  %v7410_v54 = vsel %vm407_vm5, %v2837_v30, %v2839_v22  ;;  %v9952_v58 = vld [vmem:[#allocation42_spill] sm:$0xff]  ;;  %v742_v26 = vsel %vm407_vm5, %v9947_v56, %v9954_v49  ;;  %v9957_v30 = vld [vmem:[#allocation35_spill] sm:$0xff] }
 0x38b   : > { %v7397_v59 = vsel %vm288_vm2, %v9945_v60, %v9944_v50  ;;  %v756_v50 = vadd.f32 %v738_v31, %v9952_v58  ;;  %v9953_v60 = vld [vmem:[#allocation183_spill] sm:$0xff]  ;;  %3282 = vrot.lane.b32.xlu0 %v9955_v52, %s4063_s7  ;;  %v758_v4 = vadd.f32 %v740_v2, %v9957_v30  ;;  %v7433_v56 = vmul.f32 %v7146_v24, %v9912_v12  ;;  %v9961_v58 = vld [vmem:[#allocation37_spill] sm:$0xff]  ;;  %v9962_v52 = vld [vmem:[#allocation196_spill] sm:$0xff]  ;;  %v2843_v2 = vpop.permute.xlu1 %2842 }
 0x38c   : > { %9946 = vst [vmem:[#allocation162_spill] sm:$0xff] %v7397_v59  ;;  %v757_v45 = vadd.f32 %v739_v29, %v9953_v60  ;;  %3284 = vrot.lane.b32.xlu1 %v9956_v0, %s4063_s7  ;;  %v9958_v63 = vld [vmem:[#allocation59_spill] sm:$0xff]  ;;  %v7429_v29 = vmul.f32 %v7383_v21, %v9910_v41  ;;  %v759_v60 = vadd.f32 %v741_v46, %v9961_v58  ;;  %v7441_v30 = vld [vmem:[%s4182_s6 + $0xc0] sm:$0xf8]  ;;  %v9969_v19 = vrot.slane %v9909_v39, 1 }
 0x38d   : > { %v743_v31 = vsel %vm407_vm5, %v9954_v49, %v9958_v63  ;;  %9960 = vst [vmem:[#allocation40_spill] sm:$0xff] %v7433_v56  ;;  %v7438_v0 = vmul.f32 %v9962_v52, %v9913_v3  ;;  %v2841_v51 = vpop.permute.xlu0 %2840  ;;  %9963 = vst [vmem:[#allocation117_spill] sm:$0xff] %v7441_v30  ;;  %v3391_v49 = vmul.f32 %v7441_v30, %v9964_v34  ;;  %v7446_v63 = vld [vmem:[%s4182_s6 + $0xc8] sm:$0xf8]  ;;  %v9967_v24 = vld [vmem:[#allocation197_spill] sm:$0xff]  ;;  %v9968_v52 = vrot.slane %v7326_v32, 1 }
 0x38e   : > { %9959 = vst [vmem:[#allocation163_spill] sm:$0xff] %v7429_v29  ;;  %9965 = vst [vmem:[#allocation53_spill] sm:$0xff] %v7446_v63  ;;  %v9966_v41 = vld [vmem:[#allocation158_spill] sm:$0xff]  ;;  %v760_v12 = vadd.f32 %v742_v26, %v9967_v24  ;;  %v7452_v46 = vsel %vm407_vm5, %v2839_v22, %v2841_v51  ;;  %v7455_v58 = vsel %vm407_vm5, %v2841_v51, %v2843_v2  ;;  %v9973_v26 = vld [vmem:[#allocation81_spill] sm:$0xff]  ;;  %v9991_v59 = vrot.slane %v9919_v38, 2 }
 0x38f   : > { %v3392_v21 = vmul.f32 %v7446_v63, %v9966_v41  ;;  %v7462_v30 = vsel %vm288_vm2, %v9969_v19, %v9968_v52  ;;  %v843_v18 = vadd.f32 %v9971_v44, %v756_v50  ;;  %v9972_v63 = vld [vmem:[#allocation210_spill] sm:$0xff]  ;;  %v9974_v24 = vld [vmem:[#allocation60_spill] sm:$0xff]  ;;  %3423 = vrot.lane.b32.xlu0 %v3391_v49, %s4063_s7  ;;  %v9976_v39 = vld [vmem:[#allocation49_spill] sm:$0xff]  ;;  %v9977_v19 = vrot.slane %v7358_v13, 1 }
 0x390   : > { %9970 = vst [vmem:[#allocation73_spill] sm:$0xff] %v7462_v30  ;;  %v844_v37 = vadd.f32 %v9972_v63, %v757_v45  ;;  %v744_v22 = vsel %vm407_vm5, %v9974_v24, %v9973_v26  ;;  %v9975_v51 = vld [vmem:[#allocation120_spill] sm:$0xff]  ;;  %v761_v33 = vadd.f32 %v743_v31, %v9976_v39  ;;  %v9978_v52 = vrot.slane %v9917_v20, 1  ;;  %v9980_v50 = vld [vmem:[#allocation26_spill] sm:$0xff]  ;;  %v2847_v24 = vpop.permute.xlu1 %2846  ;;  %v9983_v39 = vld [vmem:[#allocation159_spill] sm:$0xff] }
 0x391   : > { %3425 = vrot.lane.b32.xlu1 %v3392_v21, %s4063_s7  ;;  %v845_v2 = vadd.f32 %v9975_v51, %v758_v4  ;;  %v846_v63 = vadd.f32 %v9980_v50, %v759_v60  ;;  %v2845_v49 = vpop.permute.xlu0 %2844  ;;  %v7484_v21 = vld [vmem:[%s4182_s6 + $0xd0] sm:$0xf8]  ;;  %v3938_v51 = vld [vmem:[%s4182_s6 + $0xd8] sm:$0xf8]  ;;  %v7498_v60 = vmul.f32 %v7163_v61, %v9924_v36  ;;  %v9989_v3 = vld [vmem:[#allocation90_spill] sm:$0xff] }
 0x392   : > { %v7478_v44 = vsel %vm288_vm2, %v9978_v52, %v9977_v19  ;;  %9981 = vst [vmem:[#allocation106_spill] sm:$0xff] %v7484_v21  ;;  %v9982_v4 = vld [vmem:[#allocation160_spill] sm:$0xff]  ;;  %v3394_v6 = vmul.f32 %v3938_v51, %v9983_v39  ;;  %v847_v19 = vadd.f32 %v9984_v62, %v760_v12  ;;  %v9985_v52 = vld [vmem:[#allocation198_spill] sm:$0xff]  ;;  %v7494_v45 = vsel %vm407_vm5, %v2845_v49, %v2847_v24  ;;  %v9988_v30 = vld [vmem:[#allocation165_spill] sm:$0xff] }
 0x393   : > { %9979 = vst [vmem:[#allocation80_spill] sm:$0xff] %v7478_v44  ;;  %v3393_v31 = vmul.f32 %v7484_v21, %v9982_v4  ;;  %v3492_v20 = vld [vmem:[%s4182_s6 + $0x198] sm:$0xf]  ;;  %v762_v44 = vadd.f32 %v744_v22, %v9985_v52  ;;  %9986 = vst [vmem:[#allocation166_spill] sm:$0xff] %v7498_v60  ;;  %v931_v21 = vadd.f32 %v9988_v30, %v844_v37  ;;  %v9990_v51 = vrot.slane %v9989_v3, 2  ;;  %v9993_v22 = vld [vmem:[#allocation214_spill] sm:$0xff] }
 0x394   : > { %v9987_v50 = vld [vmem:[#allocation24_spill] sm:$0xff]  ;;  %v9994_v49 = vrot.slane %v7429_v29, 1  ;;  %v9995_v37 = vrot.slane %v7282_v27, 1  ;;  %v7522_v38 = vmul.f32 %v3492_v20, %v9932_v55  ;;  %v2851_v52 = vpop.permute.xlu1 %2850 }
 0x395   : > { %v930_v26 = vadd.f32 %v9987_v50, %v843_v18  ;;  %v7507_v62 = vsel %vm489_vm1, %v9991_v59, %v9990_v51  ;;  %3427 = vrot.lane.b32.xlu0 %v3393_v31, %s4063_s7  ;;  %3429 = vrot.lane.b32.xlu1 %v3394_v6, %s4063_s7  ;;  %v9992_v61 = vld [vmem:[#allocation208_spill] sm:$0xff]  ;;  %v932_v18 = vadd.f32 %v9993_v22, %v845_v2  ;;  %v9998_v6 = vrot.slane %v7438_v0, 2  ;;  %v2849_v2 = vpop.permute.xlu0 %2848  ;;  %v7533_v50 = vld [vmem:[%s4182_s6 + $0xe0] sm:$0xff]  ;;  %v7538_v51 = vld [vmem:[%s4182_s6 + $0xe8] sm:$0xff] }
 0x396   : > { %v848_v36 = vadd.f32 %v9992_v61, %v761_v33  ;;  %v7519_v3 = vsel %vm288_vm2, %v9995_v37, %v9994_v49  ;;  %9996 = vst [vmem:[#allocation107_spill] sm:$0xff] %v7522_v38  ;;  %v9997_v59 = vld [vmem:[#allocation164_spill] sm:$0xff]  ;;  %v9999_v31 = vrot.slane %v7292_v48, 2  ;;  %10000 = vst [vmem:[#allocation223_spill] sm:$0xff] %v7533_v50  ;;  %v3395_v27 = vmul.f32 %v7533_v50, %v9964_v34  ;;  %v10003_v61 = vld [vmem:[#allocation215_spill] sm:$0xff] }
 0x397   : > { %v933_v30 = vadd.f32 %v9997_v59, %v846_v63  ;;  %10001 = vst [vmem:[#allocation20_spill] sm:$0xff] %v7538_v51  ;;  %v3396_v55 = vmul.f32 %v7538_v51, %v9966_v41  ;;  %v10002_v63 = vld [vmem:[#allocation167_spill] sm:$0xff]  ;;  %v934_v22 = vadd.f32 %v10003_v61, %v847_v19  ;;  %v7545_v48 = vsel %vm407_vm5, %v2847_v24, %v2849_v2  ;;  %v10004_v37 = vld [vmem:[#allocation82_spill] sm:$0xff]  ;;  %v10008_v19 = vld [vmem:[#allocation84_spill] sm:$0xff] }
 0x398   : > { %v7530_v33 = vsel %vm489_vm1, %v9999_v31, %v9998_v6  ;;  %v849_v20 = vadd.f32 %v10002_v63, %v762_v44  ;;  %v7548_v49 = vsel %vm407_vm5, %v2849_v2, %v2851_v52  ;;  %v10005_v59 = vld [vmem:[#allocation63_spill] sm:$0xff]  ;;  %v10007_v51 = vld [vmem:[#allocation62_spill] sm:$0xff]  ;;  %v10009_v2 = vld [vmem:[#allocation65_spill] sm:$0xff]  ;;  %v2855_v29 = vpop.permute.xlu1 %2854 }
 0x399   : > { %v1052_v6 = vsel %vm407_vm5, %v10005_v59, %v10004_v37  ;;  %v10006_v31 = vld [vmem:[#allocation83_spill] sm:$0xff]  ;;  %3431 = vrot.lane.b32.xlu0 %v3395_v27, %s4063_s7  ;;  %3433 = vrot.lane.b32.xlu1 %v3396_v55, %s4063_s7  ;;  %v1055_v52 = vsel %vm407_vm5, %v10009_v2, %v10008_v19  ;;  %v10010_v63 = vld [vmem:[#allocation218_spill] sm:$0xff]  ;;  %v10011_v59 = vrot.slane %v7433_v56, 1  ;;  %v10014_v27 = vld [vmem:[#allocation85_spill] sm:$0xff]  ;;  %v2853_v2 = vpop.permute.xlu0 %2852 }
 0x39a   : > { %v1053_v12 = vsel %vm407_vm5, %v10004_v37, %v10006_v31  ;;  %v1054_v44 = vsel %vm407_vm5, %v10006_v31, %v10007_v51  ;;  %v935_v61 = vadd.f32 %v10010_v63, %v848_v36  ;;  %v10012_v37 = vrot.slane %v7286_v14, 1  ;;  %v10015_v31 = vld [vmem:[#allocation64_spill] sm:$0xff]  ;;  %v10021_v56 = vld [vmem:[#allocation219_spill] sm:$0xff] }
 0x39b   : > { %v1056_v55 = vsel %vm407_vm5, %v10008_v19, %v10014_v27  ;;  %v1057_v24 = vsel %vm407_vm5, %v10014_v27, %v10015_v31  ;;  %v7581_v36 = vld [vmem:[%s4182_s6 + $0xf0] sm:$0xff]  ;;  %v3942_v63 = vld [vmem:[%s4182_s6 + $0xf8] sm:$0xff]  ;;  %v7589_v51 = vadd.f32 %v1053_v12, %v931_v21  ;;  %v7591_v19 = vadd.f32 %v1054_v44, %v932_v18 }
 0x39c   : > { %v7571_v50 = vsel %vm288_vm2, %v10012_v37, %v10011_v59  ;;  %10016 = vst [vmem:[#allocation87_spill] sm:$0xff] %v7581_v36  ;;  %v3397_v14 = vmul.f32 %v7581_v36, %v9982_v4  ;;  %v3398_v59 = vmul.f32 %v3942_v63, %v9983_v39  ;;  %v7587_v37 = vadd.f32 %v1052_v6, %v930_v26  ;;  %v10028_v44 = vld [vmem:[#allocation88_spill] sm:$0xff] }
 0x39d   : > { %10013 = vst [vmem:[#allocation178_spill] sm:$0xff] %v7571_v50  ;;  %10018 = vst [vmem:[#allocation66_spill] sm:$0xff] %v7589_v51  ;;  %v7594_v27 = vsel %vm407_vm5, %v2853_v2, %v2855_v29  ;;  %v7596_v31 = vadd.f32 %v1055_v52, %v933_v30  ;;  %v7599_v50 = vadd.f32 %v10021_v56, %v849_v20  ;;  %v10023_v26 = vrot.slane %v7498_v60, 1  ;;  %v10027_v30 = vld [vmem:[#allocation71_spill] sm:$0xff] }
 0x39e   : > { %10017 = vst [vmem:[#allocation86_spill] sm:$0xff] %v7587_v37  ;;  %10019 = vst [vmem:[#allocation224_spill] sm:$0xff] %v7591_v19  ;;  %3435 = vrot.lane.b32.xlu0 %v3397_v14, %s4063_s7  ;;  %3437 = vrot.lane.b32.xlu1 %v3398_v59, %s4063_s7  ;;  %v10024_v21 = vrot.slane %v7326_v32, 1  ;;  %v7610_v18 = vadd.f32 %v1056_v55, %v934_v22  ;;  %v7612_v6 = vadd.f32 %v1057_v24, %v935_v61  ;;  %v10031_v14 = vld [vmem:[#allocation93_spill] sm:$0xff]  ;;  %v10032_v32 = vld [vmem:[#allocation92_spill] sm:$0xff]  ;;  %v2857_v61 = vpop.permute.xlu0 %2856  ;;  %v2859_v55 = vpop.permute.xlu1 %2858 }
 0x39f   : > { %10020 = vst [vmem:[#allocation21_spill] sm:$0xff] %v7596_v31  ;;  %10022 = vst [vmem:[#allocation18_spill] sm:$0xff] %v7599_v50  ;;  %v1185_v56 = vsel %vm407_vm5, %v10028_v44, %v10027_v30  ;;  %v10029_v20 = vrot.slane %v7522_v38, 1  ;;  %v10030_v52 = vrot.slane %v7358_v13, 1  ;;  %v1286_v63 = vsel %vm407_vm5, %v10032_v32, %v10031_v14  ;;  %v7628_v59 = vld [vmem:[%s4182_s6 + $0x120] sm:$0xf8] }
 0x3a0   : > { %v7608_v12 = vsel %vm288_vm2, %v10024_v21, %v10023_v26  ;;  %10025 = vst [vmem:[#allocation101_spill] sm:$0xff] %v7610_v18  ;;  %10026 = vst [vmem:[#allocation22_spill] sm:$0xff] %v7612_v6  ;;  %v10034_v22 = vld [vmem:[#allocation39_spill] sm:$0xff]  ;;  %v7633_v26 = vld [vmem:[%s4182_s6 + $0x100] sm:$0xff]  ;;  %v3400_v21 = vmul.f32 %v7010_v16, %v9966_v41  ;;  %v7648_v18 = vsel %vm407_vm5, %v2855_v29, %v2857_v61 }
 0x3a1   : > { %v7622_v2 = vsel %vm288_vm2, %v10030_v52, %v10029_v20  ;;  %10033 = vst [vmem:[#allocation185_spill] sm:$0xff] %v7628_v59  ;;  %v2756_v24 = vmul.f32 %v7628_v59, %v10034_v22  ;;  %10035 = vst [vmem:[#allocation29_spill] sm:$0xff] %v7633_v26  ;;  %v3399_v13 = vmul.f32 %v7633_v26, %v9964_v34  ;;  %v10036_v30 = vld [vmem:[#allocation67_spill] sm:$0xff]  ;;  %v10038_v52 = vld [vmem:[#allocation89_spill] sm:$0xff] }
 0x3a2   : > { %v7642_v20 = vsel %vm407_vm5, %v10036_v30, %v9902_v15  ;;  %v10039_v14 = vld [vmem:[#allocation70_spill] sm:$0xff]  ;;  %v7651_v31 = vsel %vm407_vm5, %v2857_v61, %v2859_v55  ;;  %v10040_v19 = vld [vmem:[#allocation220_spill] sm:$0xff]  ;;  %v1184_v16 = vsel %vm407_vm5, %v10038_v52, %v10028_v44  ;;  %v10041_v37 = vld [vmem:[#allocation91_spill] sm:$0xff]  ;;  %3441 = vrot.lane.b32.xlu1 %v3400_v21, %s4063_s7 }
 0x3a3   : > { %10037 = vst [vmem:[#allocation14_spill] sm:$0xff] %v7642_v20  ;;  %v1183_v6 = vsel %vm407_vm5, %v10039_v14, %v10038_v52  ;;  %v1209_v51 = vadd.f32 %v1185_v56, %v10040_v19  ;;  %v10042_v15 = vld [vmem:[#allocation72_spill] sm:$0xff]  ;;  %3439 = vrot.lane.b32.xlu0 %v3399_v13, %s4063_s7  ;;  %v10043_v29 = vld [vmem:[#allocation50_spill] sm:$0xff]  ;;  %v10045_v20 = vld [vmem:[#allocation95_spill] sm:$0xff]  ;;  %v2884_v52 = vadd.f32 %v7295_v43, %v2756_v24 }
 0x3a4   : > { %v1186_v30 = vsel %vm407_vm5, %v10042_v15, %v10041_v37  ;;  %v1285_v14 = vsel %vm407_vm5, %v10043_v29, %v10032_v32  ;;  %v10044_v61 = vld [vmem:[#allocation28_spill] sm:$0xff]  ;;  %v10046_v19 = vld [vmem:[#allocation94_spill] sm:$0xff]  ;;  %v2931_v15 = vpop.permute.xlu1 %2930  ;;  %v3401_v29 = vmul.f32 %v7015_v5, %v9982_v4  ;;  %v10054_v5 = vld [vmem:[#allocation27_spill] sm:$0xff] }
 0x3a5   : > { %v1310_v55 = vadd.f32 %v1286_v63, %v10044_v61  ;;  %v1287_v56 = vsel %vm407_vm5, %v10046_v19, %v10045_v20  ;;  %v3945_v50 = vld [vmem:[%s4182_s6 + $0x118] sm:$0xff]  ;;  %v7673_v37 = vld [vmem:[%s4182_s6 + $0x128] sm:$0xf8]  ;;  %v7678_v21 = vld [vmem:[%s4182_s6 + $0x130] sm:$0xf8]  ;;  %v2929_v63 = vpop.permute.xlu0 %2928 }
 0x3a6   : > { %v3402_v44 = vmul.f32 %v3945_v50, %v9983_v39  ;;  %10047 = vst [vmem:[#allocation16_spill] sm:$0xff] %v7673_v37  ;;  %v2757_v13 = vmul.f32 %v7673_v37, %v5432_v40  ;;  %10048 = vst [vmem:[#allocation74_spill] sm:$0xff] %v7678_v21  ;;  %v2758_v32 = vmul.f32 %v7678_v21, %v5348_v47  ;;  %v10049_v61 = vld [vmem:[#allocation221_spill] sm:$0xff]  ;;  %v10050_v19 = vld [vmem:[#allocation222_spill] sm:$0xff] }
 0x3a7   : > { %v1207_v50 = vadd.f32 %v1183_v6, %v10049_v61  ;;  %v1208_v43 = vadd.f32 %v1184_v16, %v10050_v19  ;;  %v10051_v24 = vld [vmem:[#allocation32_spill] sm:$0xff]  ;;  %v2960_v36 = vsel %vm407_vm5, %v2929_v63, %v2931_v15  ;;  %v10053_v21 = vld [vmem:[#allocation97_spill] sm:$0xff]  ;;  %3443 = vrot.lane.b32.xlu0 %v3401_v29, %s4063_s7  ;;  %v1309_v6 = vadd.f32 %v1285_v14, %v10054_v5 }
 0x3a8   : > { %v1210_v26 = vadd.f32 %v1186_v30, %v10051_v24  ;;  %v10052_v37 = vld [vmem:[#allocation96_spill] sm:$0xff]  ;;  %v7694_v60 = vadd.f32 %v2960_v36, %v2884_v52  ;;  %3445 = vrot.lane.b32.xlu1 %v3402_v44, %s4063_s7  ;;  %v10055_v16 = vld [vmem:[#allocation33_spill] sm:$0xff]  ;;  %v2885_v19 = vadd.f32 %v7333_v9, %v2757_v13  ;;  %v2886_v36 = vadd.f32 %v7336_v7, %v2758_v32  ;;  %v10057_v7 = vld [vmem:[#allocation99_spill] sm:$0xff] }
 0x3a9   : > { %v1288_v59 = vsel %vm407_vm5, %v10045_v20, %v10052_v37  ;;  %v1289_v38 = vsel %vm407_vm5, %v10052_v37, %v10053_v21  ;;  %v7700_v30 = vadd.f32 %v10055_v16, %v1310_v55  ;;  %v1311_v63 = vadd.f32 %v1287_v56, %v1207_v50  ;;  %v7703_v61 = vld [vmem:[%s4182_s6 + $0x120] sm:$0x7]  ;;  %v2933_v14 = vpop.permute.xlu0 %2932  ;;  %v2935_v55 = vpop.permute.xlu1 %2934  ;;  %v10058_v13 = vld [vmem:[#allocation98_spill] sm:$0xff]  ;;  %v3952_v5 = vld [vmem:[%s4182_s6 + $0x138] sm:$0x7] }
 0x3aa   : > { %10056 = vst [vmem:[#allocation227_spill] sm:$0xff] %v7703_v61  ;;  %v3403_v20 = vmul.f32 %v7703_v61, %v9964_v34  ;;  %v7710_v52 = vld [vmem:[%s4182_s6 + $0x140] sm:$0xff]  ;;  %v3404_v56 = vmul.f32 %v7049_v28, %v9966_v41  ;;  %v1312_v37 = vadd.f32 %v1288_v59, %v1208_v43  ;;  %v1313_v21 = vadd.f32 %v1289_v38, %v1209_v51  ;;  %v10059_v28 = vld [vmem:[#allocation103_spill] sm:$0xff] }
 0x3ab   : > { %v2759_v44 = vmul.f32 %v7710_v52, %v10034_v22  ;;  %v2961_v34 = vsel %vm407_vm5, %v2931_v15, %v2933_v14  ;;  %v2962_v9 = vsel %vm407_vm5, %v2933_v14, %v2935_v55  ;;  %v1290_v32 = vsel %vm407_vm5, %v10058_v13, %v10057_v7  ;;  %v10060_v41 = vld [vmem:[#allocation102_spill] sm:$0xff]  ;;  %v10062_v59 = vld [vmem:[#allocation113_spill] sm:$0xff]  ;;  %v7749_v14 = vld [vmem:[%s4182_s6 + $0x150] sm:$0xff] }
 0x3ac   : > { %v7721_v29 = vadd.f32 %v2961_v34, %v2885_v19  ;;  %v7723_v50 = vadd.f32 %v2962_v9, %v2886_v36  ;;  %3447 = vrot.lane.b32.xlu0 %v3403_v20, %s4063_s7  ;;  %3449 = vrot.lane.b32.xlu1 %v3404_v56, %s4063_s7  ;;  %v1293_v38 = vsel %vm407_vm5, %v10060_v41, %v10059_v28  ;;  %v7731_v51 = vld [vmem:[%s4182_s6 + $0x60] sm:$0xfc]  ;;  %v7744_v19 = vld [vmem:[%s4182_s6 + $0x148] sm:$0xff] }
 0x3ad   : > { %10061 = vst [vmem:[#allocation61_spill] sm:$0xff] %v7731_v51  ;;  %v1661_v15 = vmul.f32 %v7731_v51, %v10062_v59  ;;  %v7736_v43 = vld [vmem:[%s4182_s6 + $0x80] sm:$0xff]  ;;  %v3406_v16 = vmul.f32 %v3952_v5, %v9983_v39  ;;  %v2887_v20 = vadd.f32 %v7410_v54, %v2759_v44  ;;  %v2760_v36 = vmul.f32 %v7744_v19, %v5432_v40  ;;  %v2937_v56 = vpop.permute.xlu0 %2936  ;;  %v2939_v34 = vpop.permute.xlu1 %2938 }
 0x3ae   : > { %10063 = vst [vmem:[#allocation228_spill] sm:$0xff] %v7736_v43  ;;  %v1664_v24 = vmul.f32 %v7736_v43, %v10062_v59  ;;  %v2761_v55 = vmul.f32 %v7749_v14, %v5348_v47  ;;  %v3405_v9 = vmul.f32 %v7056_v23, %v9982_v4  ;;  %v1378_v7 = vadd.f32 %v7369_v8, %v1309_v6  ;;  %v7757_v39 = vld [vmem:[%s4182_s6 + $0xa0] sm:$0xff] }
 0x3af   : > { %v1667_v54 = vmul.f32 %v7757_v39, %v10062_v59  ;;  %v7762_v44 = vld [vmem:[%s4182_s6 + $0xc0] sm:$0x3]  ;;  %v2963_v28 = vsel %vm407_vm5, %v2937_v56, %v2939_v34  ;;  %v10064_v41 = vld [vmem:[#allocation38_spill] sm:$0xff]  ;;  %v7773_v23 = vadd.f32 %v7407_v1, %v1311_v63  ;;  %v1314_v4 = vadd.f32 %v1290_v32, %v1210_v26 }
 0x3b0   : > { %v7766_v13 = vmul.f32 %v7762_v44, %v10062_v59  ;;  %v7770_v5 = vadd.f32 %v10064_v41, %v1313_v21  ;;  %v7775_v8 = vadd.f32 %v2963_v28, %v2887_v20  ;;  %3451 = vrot.lane.b32.xlu0 %v3405_v9, %s4063_s7  ;;  %3453 = vrot.lane.b32.xlu1 %v3406_v16, %s4063_s7  ;;  %v1685_v59 = vrot.slane %v1661_v15, 1  ;;  %v7786_v1 = vld [vmem:[%s4182_s6 + $0x160] sm:$0xff] }
 0x3b1   : > { %v1317_v6 = vadd.f32 %v1293_v38, %v7377_v17  ;;  %v7781_v61 = vadd.f32 %v7507_v62, %v1312_v37  ;;  %v1686_v56 = vrot.slane %v1664_v24, 1  ;;  %v2888_v21 = vadd.f32 %v7452_v46, %v2760_v36  ;;  %10065 = vst [vmem:[#allocation30_spill] sm:$0xff] %v7786_v1  ;;  %v2941_v20 = vpop.permute.xlu0 %2940  ;;  %v2943_v9 = vpop.permute.xlu1 %2942  ;;  %v10066_v32 = vld [vmem:[#allocation126_spill] sm:$0xff]  ;;  %v10067_v46 = vld [vmem:[#allocation125_spill] sm:$0xff]  ;;  %v10068_v24 = vld [vmem:[#allocation128_spill] sm:$0xff] }
 0x3b2   : > { %v2889_v41 = vadd.f32 %v7455_v58, %v2761_v55  ;;  %v2762_v63 = vmul.f32 %v7786_v1, %v10034_v22  ;;  %v1694_v26 = vrot.slane %v1667_v54, 1  ;;  %v9250_v17 = vrot.slane %v7766_v13, 1  ;;  %v10069_v36 = vld [vmem:[#allocation127_spill] sm:$0xff] }
 0x3b3   : > { %v2964_v62 = vsel %vm407_vm5, %v2939_v34, %v2941_v20  ;;  %v2965_v37 = vsel %vm407_vm5, %v2941_v20, %v2943_v9  ;;  %v1493_v58 = vsel %vm407_vm5, %v10067_v46, %v10066_v32  ;;  %v1494_v16 = vsel %vm407_vm5, %v10066_v32, %v10068_v24  ;;  %v7825_v20 = vld [vmem:[%s4182_s6 + $0x170] sm:$0xff] }
 0x3b4   : > { %v7796_v38 = vadd.f32 %v2964_v62, %v2888_v21  ;;  %v7798_v15 = vadd.f32 %v2965_v37, %v2889_v41  ;;  %3553 = vrot.lane.b32.xlu0 %v7320_v11, %s4063_s7  ;;  %3555 = vrot.lane.b32.xlu1 %v7347_v35, %s4063_s7  ;;  %v1495_v55 = vsel %vm407_vm5, %v10068_v24, %v10069_v36  ;;  %v10070_v54 = vrot.slane %v7438_v0, 2  ;;  %v7820_v35 = vld [vmem:[%s4182_s6 + $0x168] sm:$0xff] }
 0x3b5   : > { %v1383_v34 = vadd.f32 %v7530_v33, %v1314_v4  ;;  %v7816_v21 = vsel %vm288_vm2, %v1685_v59, %v1686_v56  ;;  %v2890_v11 = vadd.f32 %v7494_v45, %v2762_v63  ;;  %10071 = vst [vmem:[#allocation75_spill] sm:$0xff] %v7820_v35  ;;  %v2763_v41 = vmul.f32 %v7820_v35, %v5432_v40  ;;  %v2945_v33 = vpop.permute.xlu0 %2944  ;;  %v2947_v0 = vpop.permute.xlu1 %2946  ;;  %v10073_v4 = vld [vmem:[#allocation68_spill] sm:$0xff]  ;;  %v10079_v36 = vld [vmem:[#allocation134_spill] sm:$0xff]  ;;  %v10083_v35 = vld [vmem:[#allocation175_spill] sm:$0xff] }
 0x3b6   : > { %v7813_v28 = vadd.f32 %v10070_v54, %v1317_v6  ;;  %10072 = vst [vmem:[#allocation54_spill] sm:$0xff] %v7825_v20  ;;  %v2764_v9 = vmul.f32 %v7825_v20, %v5348_v47  ;;  %v1517_v6 = vadd.f32 %v1493_v58, %v10073_v4  ;;  %v7831_v59 = vsel %vm288_vm2, %v1686_v56, %v1694_v26  ;;  %v10074_v56 = vld [vmem:[#allocation129_spill] sm:$0xff]  ;;  %v10076_v58 = vld [vmem:[#allocation132_spill] sm:$0xff]  ;;  %v10082_v20 = vld [vmem:[#allocation162_spill] sm:$0xff] }
 0x3b7   : > { %v7836_v45 = vsel %vm288_vm2, %v1694_v26, %v9250_v17  ;;  %v2966_v63 = vsel %vm407_vm5, %v2945_v33, %v2947_v0  ;;  %v7839_v62 = vadd.f32 %v1494_v16, %v1378_v7  ;;  %v7842_v37 = vadd.f32 %v1495_v55, %v7700_v30  ;;  %v10075_v26 = vld [vmem:[#allocation130_spill] sm:$0xff]  ;;  %v10077_v30 = vld [vmem:[#allocation131_spill] sm:$0xff]  ;;  %v10078_v16 = vld [vmem:[#allocation133_spill] sm:$0xff] }
 0x3b8   : > { %v7844_v32 = vadd.f32 %v2966_v63, %v2890_v11  ;;  %3557 = vrot.lane.b32.xlu0 %v7354_v42, %s4063_s7  ;;  %3559 = vrot.lane.b32.xlu1 %v7374_v57, %s4063_s7  ;;  %v1496_v46 = vsel %vm407_vm5, %v10075_v26, %v10074_v56  ;;  %v1497_v7 = vsel %vm407_vm5, %v10074_v56, %v10076_v58  ;;  %v7863_v55 = vld [vmem:[%s4182_s6 + $0x68] sm:$0xfc]  ;;  %v7870_v33 = vld [vmem:[%s4182_s6 + $0x180] sm:$0x7] }
 0x3b9   : > { %v1498_v24 = vsel %vm407_vm5, %v10076_v58, %v10077_v30  ;;  %v1499_v42 = vsel %vm407_vm5, %v10079_v36, %v10078_v16  ;;  %v1662_v57 = vmul.f32 %v7863_v55, %v9809_v53  ;;  %v2891_v54 = vadd.f32 %v7545_v48, %v2763_v41  ;;  %10080 = vst [vmem:[#allocation17_spill] sm:$0xff] %v7870_v33  ;;  %v2949_v63 = vpop.permute.xlu0 %2948  ;;  %v2951_v56 = vpop.permute.xlu1 %2950  ;;  %v7875_v26 = vld [vmem:[%s4182_s6 + $0x88] sm:$0xff]  ;;  %v7882_v30 = vld [vmem:[%s4182_s6 + $0x70] sm:$0xfc] }
 0x3ba   : > { %v2892_v11 = vadd.f32 %v7548_v49, %v2764_v9  ;;  %v2765_v4 = vmul.f32 %v7870_v33, %v10034_v22  ;;  %v7879_v58 = vmul.f32 %v7875_v26, %v9809_v53  ;;  %v1663_v48 = vmul.f32 %v7882_v30, %v9815_v25  ;;  %v7889_v9 = vld [vmem:[%s4182_s6 + $0x90] sm:$0xff]  ;;  %v10086_v33 = vld [vmem:[#allocation137_spill] sm:$0xff] }
 0x3bb   : > { %v2967_v49 = vsel %vm407_vm5, %v2947_v0, %v2949_v63  ;;  %v2968_v41 = vsel %vm407_vm5, %v2949_v63, %v2951_v56  ;;  %v7893_v16 = vmul.f32 %v7889_v9, %v9815_v25  ;;  %v7904_v0 = vadd.f32 %v1496_v46, %v7773_v23  ;;  %v3966_v46 = vld [vmem:[%s4182_s6 + $0x190] sm:$0x7] }
 0x3bc   : > { %v7895_v36 = vadd.f32 %v2967_v49, %v2891_v54  ;;  %v7897_v17 = vadd.f32 %v2968_v41, %v2892_v11  ;;  %3561 = vrot.lane.b32.xlu0 %v7390_v10, %s4063_s7  ;;  %3563 = vrot.lane.b32.xlu1 %v10082_v20, %s4063_s7  ;;  %v7907_v63 = vadd.f32 %v1497_v7, %v7781_v61  ;;  %v10084_v11 = vld [vmem:[#allocation141_spill] sm:$0xff]  ;;  %v10085_v49 = vld [vmem:[#allocation142_spill] sm:$0xff] }
 0x3bd   : > { %v7910_v56 = vadd.f32 %v1498_v24, %v7770_v5  ;;  %v7914_v54 = vmul.f32 %v7731_v51, %v10083_v35  ;;  %v1625_v10 = vsel %vm407_vm5, %v10085_v49, %v10084_v11  ;;  %v2893_v41 = vadd.f32 %v7594_v27, %v2765_v4  ;;  %v3965_v20 = vld [vmem:[%s4182_s6 + $0x188] sm:$0x7]  ;;  %v2953_v7 = vpop.permute.xlu0 %2952  ;;  %v2955_v25 = vpop.permute.xlu1 %2954 }
 0x3be   : > { %10081 = vst [vmem:[#allocation31_spill] sm:$0xff] %v7897_v17  ;;  %v2766_v23 = vmul.f32 %v3965_v20, %v5432_v40  ;;  %v2767_v61 = vmul.f32 %v3966_v46, %v5348_v47  ;;  %v7924_v5 = vadd.f32 %v1499_v42, %v1383_v34  ;;  %v1688_v24 = vrot.slane %v1662_v57, 1  ;;  %v10087_v17 = vld [vmem:[#allocation138_spill] sm:$0xff]  ;;  %v10088_v46 = vld [vmem:[#allocation73_spill] sm:$0xff]  ;;  %v10089_v34 = vld [vmem:[#allocation80_spill] sm:$0xff] }
 0x3bf   : > { %v1689_v51 = vrot.slane %v7879_v58, 1  ;;  %v2969_v53 = vsel %vm407_vm5, %v2953_v7, %v2955_v25  ;;  %v1502_v49 = vsel %vm407_vm5, %v10087_v17, %v10086_v33  ;;  %v1691_v27 = vrot.slane %v1663_v48, 1  ;;  %v10090_v57 = vld [vmem:[#allocation144_spill] sm:$0xff] }
 0x3c0   : > { %v1692_v4 = vrot.slane %v7893_v16, 1  ;;  %v7932_v20 = vadd.f32 %v2969_v53, %v2893_v41  ;;  %3565 = vrot.lane.b32.xlu0 %v10088_v46, %s4063_s7  ;;  %3567 = vrot.lane.b32.xlu1 %v10089_v34, %s4063_s7  ;;  %v1649_v42 = vadd.f32 %v1625_v10, %v1517_v6  ;;  %v1626_v58 = vsel %vm407_vm5, %v10084_v11, %v10090_v57  ;;  %v10091_v47 = vld [vmem:[#allocation176_spill] sm:$0xff]  ;;  %v10092_v41 = vld [vmem:[#allocation173_spill] sm:$0xff] }
 0x3c1   : > { %v3020_v7 = vrot.slane %v7914_v54, 7  ;;  %v7944_v17 = vmul.f32 %v7863_v55, %v10091_v47  ;;  %v2894_v53 = vadd.f32 %v7648_v18, %v2766_v23  ;;  %v2895_v33 = vadd.f32 %v7651_v31, %v2767_v61  ;;  %v2957_v48 = vpop.permute.xlu0 %2956  ;;  %v2959_v16 = vpop.permute.xlu1 %2958  ;;  %v10093_v23 = vld [vmem:[#allocation143_spill] sm:$0xff] }
 0x3c2   : > { %v7950_v46 = vmul.f32 %v7882_v30, %v10092_v41  ;;  %v7954_v6 = vmul.f32 %v7736_v43, %v10083_v35  ;;  %v1526_v54 = vadd.f32 %v1502_v49, %v7813_v28  ;;  %v1690_v11 = vsel %vm288_vm2, %v1688_v24, %v1689_v51  ;;  %v10094_v43 = vld [vmem:[#allocation178_spill] sm:$0xff] }
 0x3c3   : > { %v2970_v10 = vsel %vm407_vm5, %v2955_v25, %v2957_v48  ;;  %v2971_v18 = vsel %vm407_vm5, %v2957_v48, %v2959_v16  ;;  %v1627_v31 = vsel %vm407_vm5, %v10090_v57, %v10093_v23  ;;  %v7972_v28 = vadd.f32 %v7816_v21, %v1649_v42  ;;  %v10096_v42 = vld [vmem:[#allocation111_spill] sm:$0xff]  ;;  %v10099_v16 = vld [vmem:[#allocation146_spill] sm:$0xff] }
 0x3c4   : > { %v7963_v61 = vadd.f32 %v2970_v10, %v2894_v53  ;;  %v7965_v34 = vadd.f32 %v2971_v18, %v2895_v33  ;;  %3569 = vrot.lane.b32.xlu0 %v7519_v3, %s4063_s7  ;;  %3571 = vrot.lane.b32.xlu1 %v10094_v43, %s4063_s7  ;;  %v1650_v25 = vadd.f32 %v1626_v58, %v7839_v62  ;;  %v3021_v49 = vrot.slane %v7944_v17, 7  ;;  %v10098_v17 = vld [vmem:[#allocation145_spill] sm:$0xff]  ;;  %v10100_v10 = vld [vmem:[#allocation136_spill] sm:$0xff] }
 0x3c5   : > { %10095 = vst [vmem:[#allocation23_spill] sm:$0xff] %v7972_v28  ;;  %v1693_v24 = vsel %vm288_vm2, %v1691_v27, %v1692_v4  ;;  %v3127_v57 = vpop.permute.xlu0 %3126  ;;  %v3053_v53 = vadd.f32 %v3020_v7, %v7694_v60  ;;  %v3129_v33 = vpop.permute.xlu1 %3128  ;;  %v3022_v48 = vrot.slane %v7950_v46, 7  ;;  %v7982_v43 = vmul.f32 %v7875_v26, %v10091_v47 }
 0x3c6   : > { %v1651_v21 = vadd.f32 %v1627_v31, %v7842_v37  ;;  %v10097_v62 = vrot.slane %v10096_v42, 1  ;;  %v3158_v58 = vsel %vm407_vm5, %v3127_v57, %v3129_v33  ;;  %v7991_v60 = vmul.f32 %v7889_v9, %v10092_v41  ;;  %v10103_v31 = vld [vmem:[#allocation147_spill] sm:$0xff]  ;;  %v10104_v42 = vld [vmem:[#allocation149_spill] sm:$0xff] }
 0x3c7   : > { %v1628_v46 = vsel %vm407_vm5, %v10099_v16, %v10098_v17  ;;  %v10101_v18 = vrot.slane %v10100_v10, 1  ;;  %v7999_v3 = vadd.f32 %v3158_v58, %v3053_v53  ;;  %v10106_v53 = vld [vmem:[#allocation153_spill] sm:$0xff]  ;;  %v10107_v58 = vld [vmem:[#allocation154_spill] sm:$0xff]  ;;  %v3054_v10 = vadd.f32 %v3021_v49, %v7721_v29 }
 0x3c8   : > { %v1697_v27 = vsel %vm288_vm2, %v1689_v51, %v10097_v62  ;;  %3573 = vrot.lane.b32.xlu0 %v7608_v12, %s4063_s7  ;;  %3575 = vrot.lane.b32.xlu1 %v7622_v2, %s4063_s7  ;;  %v10102_v51 = vld [vmem:[#allocation148_spill] sm:$0xff]  ;;  %v10105_v62 = vld [vmem:[#allocation150_spill] sm:$0xff]  ;;  %v1634_v16 = vsel %vm407_vm5, %v10107_v58, %v10106_v53  ;;  %v3055_v2 = vadd.f32 %v3022_v48, %v7723_v50 }
 0x3c9   : > { %v1699_v23 = vsel %vm288_vm2, %v1692_v4, %v10101_v18  ;;  %v1629_v37 = vsel %vm407_vm5, %v10098_v17, %v10102_v51  ;;  %v1630_v57 = vsel %vm407_vm5, %v10102_v51, %v10103_v31  ;;  %v1631_v4 = vsel %vm407_vm5, %v10105_v62, %v10104_v42  ;;  %v3131_v12 = vpop.permute.xlu0 %3130  ;;  %v3133_v18 = vpop.permute.xlu1 %3132 }
 0x3ca   : > { %v10108_v17 = vrot.slane %v7954_v6, 7  ;;  %v3025_v51 = vrot.slane %v7982_v43, 7  ;;  %v3159_v31 = vsel %vm407_vm5, %v3129_v33, %v3131_v12  ;;  %v3160_v42 = vsel %vm407_vm5, %v3131_v12, %v3133_v18  ;;  %v10111_v33 = vld [vmem:[#allocation40_spill] sm:$0xff] }
 0x3cb   : > { %v3027_v62 = vrot.slane %v7991_v60, 7  ;;  %v8028_v53 = vmul.f32 %v7757_v39, %v10083_v35  ;;  %v1652_v29 = vadd.f32 %v1628_v46, %v7904_v0  ;;  %v8031_v50 = vadd.f32 %v3159_v31, %v3054_v10 }
 0x3cc   : > { %v3024_v28 = vsel %vm1127_vm3, %v3020_v7, %v10108_v17  ;;  %v8033_v58 = vadd.f32 %v3160_v42, %v3055_v2  ;;  %v10109_v7 = vld [vmem:[#allocation163_spill] sm:$0xff]  ;;  %v10112_v12 = vrot.slane %v10111_v33, 1  ;;  %v1653_v60 = vadd.f32 %v1629_v37, %v7907_v63 }
 0x3cd   : > { %v10110_v43 = vrot.slane %v10109_v7, 1  ;;  %v1654_v18 = vadd.f32 %v1630_v57, %v7910_v56  ;;  %v1655_v17 = vadd.f32 %v1631_v4, %v7924_v5  ;;  %v1658_v0 = vadd.f32 %v1634_v16, %v1526_v54  ;;  %v3135_v10 = vpop.permute.xlu0 %3134  ;;  %v3137_v31 = vpop.permute.xlu1 %3136  ;;  %v3967_v7 = vld [vmem:[%s4182_s6 + $0xa8] sm:$0xff]  ;;  %v3968_v5 = vld [vmem:[%s4182_s6 + $0xb0] sm:$0xff] }
 0x3ce   : > { %3579 = vrot.lane.b32.xlu1 %v10112_v12, %s4063_s7  ;;  %v8044_v46 = vadd.f32 %v1690_v11, %v1650_v25  ;;  %v3056_v2 = vadd.f32 %v3024_v28, %v7775_v8  ;;  %v3026_v42 = vsel %vm1127_vm3, %v3021_v49, %v3025_v51  ;;  %v3161_v33 = vsel %vm407_vm5, %v3135_v10, %v3137_v31  ;;  %v10114_v25 = vld [vmem:[#allocation166_spill] sm:$0xff]  ;;  %v10116_v37 = vld [vmem:[#allocation107_spill] sm:$0xff] }
 0x3cf   : > { %3577 = vrot.lane.b32.xlu0 %v10110_v43, %s4063_s7  ;;  %v8050_v43 = vmul.f32 %v3967_v7, %v10091_v47  ;;  %v3028_v63 = vsel %vm1127_vm3, %v3022_v48, %v3027_v62  ;;  %v3029_v56 = vrot.slane %v8028_v53, 7  ;;  %v8057_v54 = vmul.f32 %v3968_v5, %v10092_v41  ;;  %v10125_v5 = vld [vmem:[#allocation16_spill] sm:$0xff] }
 0x3d0   : > { %v8060_v11 = vadd.f32 %v7831_v59, %v1652_v29  ;;  %v8062_v8 = vadd.f32 %v1693_v24, %v1651_v21  ;;  %v8064_v28 = vadd.f32 %v3161_v33, %v3056_v2  ;;  %v10115_v49 = vrot.slane %v10114_v25, 1 }
 0x3d1   : > { %v10117_v48 = vrot.slane %v10116_v37, 1  ;;  %v8073_v57 = vadd.f32 %v7836_v45, %v1655_v17  ;;  %v10118_v4 = vrot.slane %v7766_v13, 1  ;;  %v8079_v24 = vadd.f32 %v1697_v27, %v1653_v60  ;;  %v3139_v16 = vpop.permute.xlu0 %3138  ;;  %v3141_v12 = vpop.permute.xlu1 %3140  ;;  %v10126_v37 = vld [vmem:[#allocation13_spill] sm:$0xff] }
 0x3d2   : > { %10113 = vst [vmem:[#allocation168_spill] sm:$0xff] %v8064_v28  ;;  %v8081_v21 = vadd.f32 %v1699_v23, %v1654_v18  ;;  %v3057_v53 = vadd.f32 %v3026_v42, %v7796_v38  ;;  %v3058_v29 = vadd.f32 %v3028_v63, %v7798_v15  ;;  %v9261_v10 = vrot.slane %v8050_v43, 7  ;;  %v3969_v18 = vld [vmem:[%s4182_s6 + $0xc0] sm:$0xfc]  ;;  %v10120_v15 = vld [vmem:[#allocation11_spill] sm:$0xff]  ;;  %v10124_v63 = vld [vmem:[#allocation12_spill] sm:$0xff] }
 0x3d3   : > { %3581 = vrot.lane.b32.xlu0 %v10115_v49, %s4063_s7  ;;  %3583 = vrot.lane.b32.xlu1 %v10117_v48, %s4063_s7  ;;  %v8077_v59 = vadd.f32 %v10118_v4, %v1658_v0  ;;  %v3005_v45 = vmul.f32 %v7762_v44, %v10083_v35  ;;  %v3162_v13 = vsel %vm407_vm5, %v3137_v31, %v3139_v16  ;;  %v10119_v27 = vrot.slane %v7954_v6, 7  ;;  %v10121_v0 = vld [vmem:[#allocation185_spill] sm:$0xff]  ;;  %v10127_v48 = vld [vmem:[#allocation74_spill] sm:$0xff] }
 0x3d4   : > { %v3163_v17 = vsel %vm407_vm5, %v3139_v16, %v3141_v12  ;;  %v9260_v60 = vrot.slane %v8057_v54, 7  ;;  %v8096_v38 = vmul.f32 %v3969_v18, %v10034_v22  ;;  %v2035_v2 = vmul.f32 %v10121_v0, %v10120_v15  ;;  %v3970_v31 = vld [vmem:[%s4182_s6] sm:$0xfe]  ;;  %v3971_v18 = vld [vmem:[%s4182_s6 + $0xc8] sm:$0x3] }
 0x3d5   : > { %v3030_v23 = vsel %vm1127_vm3, %v10119_v27, %v3029_v56  ;;  %v8100_v42 = vadd.f32 %v3162_v13, %v3057_v53  ;;  %v8102_v7 = vadd.f32 %v3163_v17, %v3058_v29  ;;  %v8106_v6 = vmul.f32 %v7710_v52, %v10120_v15  ;;  %v3143_v16 = vpop.permute.xlu0 %3142  ;;  %v3145_v29 = vpop.permute.xlu1 %3144 }
 0x3d6   : > { %v8110_v33 = vmul.f32 %v3970_v31, %v10083_v35  ;;  %v2036_v25 = vmul.f32 %v10125_v5, %v10124_v63  ;;  %v8116_v49 = vmul.f32 %v7744_v19, %v10124_v63  ;;  %v2037_v4 = vmul.f32 %v10127_v48, %v10126_v37  ;;  %v3972_v31 = vld [vmem:[%s4182_s6 + $0xd0] sm:$0x3] }
 0x3d7   : > { %10122 = vst [vmem:[#allocation77_spill] sm:$0xff] %v8100_v42  ;;  %10123 = vst [vmem:[#allocation56_spill] sm:$0xff] %v8102_v7  ;;  %v3059_v53 = vadd.f32 %v3030_v23, %v7844_v32  ;;  %v3032_v12 = vsel %vm1127_vm3, %v3025_v51, %v9261_v10  ;;  %v3035_v13 = vrot.slane %v3005_v45, 7  ;;  %v3164_v17 = vsel %vm407_vm5, %v3143_v16, %v3145_v29  ;;  %v3973_v32 = vld [vmem:[%s4182_s6 + $0x8] sm:$0xfe] }
 0x3d8   : > { %v3034_v27 = vsel %vm1127_vm3, %v3027_v62, %v9260_v60  ;;  %v3006_v0 = vmul.f32 %v3971_v18, %v10091_v47  ;;  %v3007_v63 = vmul.f32 %v3972_v31, %v10092_v41  ;;  %v2059_v5 = vrot.slane %v2035_v2, 1 }
 0x3d9   : > { %v8134_v23 = vmul.f32 %v3973_v32, %v10091_v47  ;;  %v8138_v51 = vmul.f32 %v7749_v14, %v10126_v37  ;;  %v8140_v45 = vadd.f32 %v3164_v17, %v3059_v53  ;;  %v2060_v62 = vrot.slane %v8106_v6, 1  ;;  %v3147_v47 = vpop.permute.xlu0 %3146  ;;  %v10129_v32 = vld [vmem:[#allocation31_spill] sm:$0xff]  ;;  %v3149_v60 = vpop.permute.xlu1 %3148 }
 0x3da   : > { %v2062_v48 = vrot.slane %v2036_v25, 1  ;;  %v2063_v16 = vrot.slane %v8116_v49, 1  ;;  %v8146_v18 = vmul.f32 %v7786_v1, %v10120_v15  ;;  %v2065_v2 = vrot.slane %v2037_v4, 1 }
 0x3db   : > { %10128 = vst [vmem:[#allocation76_spill] sm:$0xff] %v8140_v45  ;;  %v3060_v31 = vadd.f32 %v3032_v12, %v7895_v36  ;;  %v3061_v37 = vadd.f32 %v3034_v27, %v10129_v32  ;;  %v3036_v53 = vsel %vm1127_vm3, %v3029_v56, %v3035_v13  ;;  %v3165_v17 = vsel %vm407_vm5, %v3145_v29, %v3147_v47  ;;  %v3974_v45 = vld [vmem:[%s4182_s6 + $0x20] sm:$0xff]  ;;  %v3975_v13 = vld [vmem:[%s4182_s6 + $0xc8] sm:$0xfc] }
 0x3dc   : > { %v3166_v6 = vsel %vm407_vm5, %v3147_v47, %v3149_v60  ;;  %v3037_v25 = vrot.slane %v3006_v0, 7  ;;  %v3039_v49 = vrot.slane %v3007_v63, 7  ;;  %v2066_v10 = vrot.slane %v8138_v51, 1  ;;  %v3976_v51 = vld [vmem:[%s4182_s6 + $0xd0] sm:$0xfc] }
 0x3dd   : > { %v8156_v4 = vmul.f32 %v3974_v45, %v10083_v35  ;;  %v8158_v36 = vadd.f32 %v3165_v17, %v3060_v31  ;;  %v8160_v12 = vadd.f32 %v3166_v6, %v3061_v37  ;;  %v2024_v29 = vmul.f32 %v3975_v13, %v5432_v40  ;;  %v10132_v45 = vld [vmem:[#allocation172_spill] sm:$0xff]  ;;  %v3151_v31 = vpop.permute.xlu0 %3150  ;;  %v3153_v37 = vpop.permute.xlu1 %3152  ;;  %v10135_v56 = vld [vmem:[#allocation223_spill] sm:$0xff] }
 0x3de   : > { %v2068_v27 = vrot.slane %v8146_v18, 1  ;;  %v2061_v0 = vsel %vm288_vm2, %v2059_v5, %v2060_v62  ;;  %v2064_v63 = vsel %vm288_vm2, %v2062_v48, %v2063_v16  ;;  %v2025_v47 = vmul.f32 %v3976_v51, %v10132_v45  ;;  %v3977_v17 = vld [vmem:[%s4182_s6 + $0x10] sm:$0xfe] }
 0x3df   : > { %10130 = vst [vmem:[#allocation115_spill] sm:$0xff] %v8158_v36  ;;  %10131 = vst [vmem:[#allocation57_spill] sm:$0xff] %v8160_v12  ;;  %v3062_v32 = vadd.f32 %v3036_v53, %v7932_v20  ;;  %v8174_v6 = vmul.f32 %v3977_v17, %v10092_v41  ;;  %v3167_v13 = vsel %vm407_vm5, %v3151_v31, %v3153_v37  ;;  %v10133_v60 = vrot.slane %v8050_v43, 7  ;;  %v10158_v36 = vld [vmem:[#allocation230_spill] sm:$0xff] }
 0x3e0   : > { %v10134_v5 = vrot.slane %v8057_v54, 7  ;;  %v2067_v51 = vsel %vm288_vm2, %v2065_v2, %v2066_v10  ;;  %v2026_v20 = vmul.f32 %v10135_v56, %v10034_v22  ;;  %v2231_v53 = vrot.slane %v8156_v4, 7  ;;  %v10138_v54 = vld [vmem:[#allocation17_spill] sm:$0xff]  ;;  %v10139_v2 = vld [vmem:[#allocation140_spill] sm:$0xff] }
 0x3e1   : > { %v3038_v18 = vsel %vm1127_vm3, %v10133_v60, %v3037_v25  ;;  %v8187_v12 = vadd.f32 %v3167_v13, %v3062_v32  ;;  %v8190_v41 = vadd.f32 %v2061_v0, %v8096_v38  ;;  %v2069_v43 = vsel %vm288_vm2, %v2060_v62, %v2068_v27  ;;  %v10137_v25 = vld [vmem:[#allocation20_spill] sm:$0xff]  ;;  %v3155_v4 = vpop.permute.xlu0 %3154  ;;  %v3157_v62 = vpop.permute.xlu1 %3156 }
 0x3e2   : > { %v3040_v48 = vsel %vm1127_vm3, %v10134_v5, %v3039_v49  ;;  %v2027_v60 = vmul.f32 %v10137_v25, %v5432_v40  ;;  %v2044_v49 = vmul.f32 %v10138_v54, %v10120_v15  ;;  %v8197_v31 = vadd.f32 %v2064_v63, %v2024_v29  ;;  %v10155_v40 = vld [vmem:[#allocation203_spill] sm:$0xff] }
 0x3e3   : > { %10136 = vst [vmem:[#allocation79_spill] sm:$0xff] %v8187_v12  ;;  %v10140_v17 = vrot.slane %v10139_v2, 1  ;;  %v3063_v32 = vadd.f32 %v3038_v18, %v7963_v61  ;;  %v3064_v38 = vadd.f32 %v3040_v48, %v7965_v34  ;;  %v8204_v0 = vadd.f32 %v2067_v51, %v2025_v47  ;;  %v10144_v47 = vld [vmem:[#allocation87_spill] sm:$0xff] }
 0x3e4   : > { %v3168_v15 = vsel %vm407_vm5, %v3153_v37, %v3155_v4  ;;  %v3169_v29 = vsel %vm407_vm5, %v3155_v4, %v3157_v62  ;;  %v8209_v63 = vadd.f32 %v2069_v43, %v2026_v20  ;;  %v2028_v48 = vmul.f32 %v10144_v47, %v10132_v45  ;;  %v3978_v37 = vld [vmem:[%s4182_s6 + $0x40] sm:$0xff]  ;;  %v10145_v20 = vld [vmem:[#allocation139_spill] sm:$0xff] }
 0x3e5   : > { %v2071_v5 = vsel %vm288_vm2, %v2063_v16, %v10140_v17  ;;  %v10141_v16 = vrot.slane %v8110_v33, 7  ;;  %v8216_v61 = vadd.f32 %v3168_v15, %v3063_v32  ;;  %v8218_v34 = vadd.f32 %v3169_v29, %v3064_v38  ;;  %v3979_v4 = vld [vmem:[%s4182_s6 + $0x60] sm:$0x1]  ;;  %v3257_v62 = vpop.permute.xlu1 %3256 }
 0x3e6   : > { %v8220_v18 = vadd.f32 %v2071_v5, %v2027_v60  ;;  %v2074_v51 = vrot.slane %v2044_v49, 1  ;;  %v2210_v54 = vmul.f32 %v3978_v37, %v10083_v35  ;;  %v10146_v43 = vrot.slane %v10145_v20, 7  ;;  %v10148_v38 = vld [vmem:[#allocation113_spill] sm:$0xff]  ;;  %v3255_v49 = vpop.permute.xlu0 %3254 }
 0x3e7   : > { %v8214_v13 = vsel %vm1127_vm3, %v10141_v16, %v2231_v53  ;;  %10142 = vst [vmem:[#allocation58_spill] sm:$0xff] %v8216_v61  ;;  %10143 = vst [vmem:[#allocation169_spill] sm:$0xff] %v8218_v34  ;;  %v10147_v2 = vrot.slane %v8134_v23, 7  ;;  %v2213_v32 = vmul.f32 %v3979_v4, %v10083_v35  ;;  %v10149_v60 = vld [vmem:[#allocation117_spill] sm:$0xff]  ;;  %v2434_v45 = vmul.f32 %v10135_v56, %v10148_v38  ;;  %v10151_v16 = vld [vmem:[#allocation118_spill] sm:$0xff] }
 0x3e8   : > { %v2431_v5 = vmul.f32 %v10149_v60, %v10148_v38  ;;  %v10150_v15 = vld [vmem:[#allocation29_spill] sm:$0xff]  ;;  %v3286_v35 = vsel %vm407_vm5, %v3255_v49, %v3257_v62  ;;  %v10156_v34 = vld [vmem:[#allocation106_spill] sm:$0xff]  ;;  %v2436_v61 = vmul.f32 %v10144_v47, %v10155_v40  ;;  %v10160_v7 = vrot.slane %v8174_v6, 7 }
 0x3e9   : > { %v8231_v17 = vsel %vm1127_vm3, %v10147_v2, %v10146_v43  ;;  %v2029_v29 = vmul.f32 %v10150_v15, %v10034_v22  ;;  %v10152_v37 = vld [vmem:[#allocation53_spill] sm:$0xff]  ;;  %v2435_v43 = vmul.f32 %v10137_v25, %v10151_v16  ;;  %v10153_v2 = vld [vmem:[#allocation151_spill] sm:$0xff]  ;;  %v2433_v56 = vmul.f32 %v10156_v34, %v10155_v40 }
 0x3ea   : > { %v2432_v20 = vmul.f32 %v10152_v37, %v10151_v16  ;;  %v10154_v4 = vrot.slane %v10153_v2, 1  ;;  %v8254_v12 = vadd.f32 %v3286_v35, %v7999_v3  ;;  %v10159_v37 = vrot.slane %v10158_v36, 7  ;;  %v3259_v47 = vpop.permute.xlu0 %3258  ;;  %v3261_v36 = vpop.permute.xlu1 %3260  ;;  %v10191_v16 = vld [vmem:[#allocation187_spill] sm:$0xff] }
 0x3eb   : > { %v2075_v49 = vsel %vm288_vm2, %v2068_v27, %v2074_v51  ;;  %v2237_v2 = vrot.slane %v2210_v54, 7  ;;  %v2243_v34 = vrot.slane %v2213_v32, 7  ;;  %v2455_v42 = vrot.slane %v2431_v5, 1 }
 0x3ec   : > { %v2073_v60 = vsel %vm288_vm2, %v2066_v10, %v10154_v4  ;;  %10157 = vst [vmem:[#allocation42_spill] sm:$0xff] %v8254_v12  ;;  %v8261_v25 = vsel %vm1127_vm3, %v10160_v7, %v10159_v37  ;;  %v3980_v10 = vld [vmem:[%s4182_s6 + $0x120] sm:$0x3]  ;;  %v2456_v28 = vrot.slane %v2434_v45, 1  ;;  %v2437_v3 = vmul.f32 %v10150_v15, %v10148_v38  ;;  %v10163_v15 = vld [vmem:[#allocation227_spill] sm:$0xff] }
 0x3ed   : > { %v2032_v4 = vmul.f32 %v3980_v10, %v10034_v22  ;;  %v2458_v35 = vrot.slane %v2432_v20, 1  ;;  %v2459_v12 = vrot.slane %v2435_v43, 1  ;;  %v3287_v7 = vsel %vm407_vm5, %v3257_v62, %v3259_v47  ;;  %v10166_v43 = vld [vmem:[#allocation122_spill] sm:$0xff] }
 0x3ee   : > { %v3288_v37 = vsel %vm407_vm5, %v3259_v47, %v3261_v36  ;;  %v2461_v27 = vrot.slane %v2433_v56, 1  ;;  %v2462_v54 = vrot.slane %v2436_v61, 1  ;;  %v8271_v40 = vadd.f32 %v3287_v7, %v8031_v50  ;;  %v8290_v50 = vld [vmem:[%s4182_s6 + $0x120] sm:$0xf0]  ;;  %v10170_v56 = vld [vmem:[#allocation61_spill] sm:$0xff]  ;;  %v10172_v47 = vld [vmem:[#allocation51_spill] sm:$0xff] }
 0x3ef   : > { %v8274_v22 = vadd.f32 %v3288_v37, %v8033_v58  ;;  %v8276_v32 = vadd.f32 %v2073_v60, %v2028_v48  ;;  %v8278_v5 = vadd.f32 %v2075_v49, %v2029_v29  ;;  %v8281_v45 = vsel %vm1127_vm3, %v2231_v53, %v2237_v2  ;;  %10165 = vst [vmem:[#allocation171_spill] sm:$0xff] %v8290_v50  ;;  %v8298_v29 = vpop.permute.xlu0 %3262  ;;  %v8300_v53 = vpop.permute.xlu1 %3264  ;;  %v10175_v37 = vld [vmem:[#allocation123_spill] sm:$0xff] }
 0x3f0   : > { %10161 = vst [vmem:[#allocation183_spill] sm:$0xff] %v8271_v40  ;;  %v8285_v62 = vmul.f32 %v10163_v15, %v10148_v38  ;;  %v8287_v20 = vadd.f32 %v2074_v51, %v2032_v4  ;;  %v2464_v61 = vrot.slane %v2437_v3, 1  ;;  %v2506_v58 = vmul.f32 %v8290_v50, %v10166_v43  ;;  %10167 = vst [vmem:[#allocation35_spill] sm:$0xff] %v8298_v29  ;;  %v10169_v51 = vld [vmem:[#allocation47_spill] sm:$0xff]  ;;  %v10171_v4 = vld [vmem:[#allocation48_spill] sm:$0xff] }
 0x3f1   : > { %10162 = vst [vmem:[#allocation78_spill] sm:$0xff] %v8274_v22  ;;  %v8296_v48 = vmul.f32 %v7710_v52, %v10166_v43  ;;  %10168 = vst [vmem:[#allocation59_spill] sm:$0xff] %v8300_v53  ;;  %v8303_v60 = vsel %vm1127_vm3, %v2237_v2, %v2243_v34  ;;  %v8307_v49 = vmul.f32 %v10170_v56, %v10169_v51  ;;  %v10173_v34 = vld [vmem:[#allocation228_spill] sm:$0xff]  ;;  %v10176_v56 = vld [vmem:[#allocation233_spill] sm:$0xff] }
 0x3f2   : > { %10164 = vst [vmem:[#allocation199_spill] sm:$0xff] %v8285_v62  ;;  %v8310_v10 = vsel %vm288_vm2, %v2455_v42, %v2456_v28  ;;  %v8314_v3 = vmul.f32 %v7863_v55, %v10171_v4  ;;  %v8317_v52 = vsel %vm288_vm2, %v2458_v35, %v2459_v12  ;;  %v8321_v36 = vmul.f32 %v7882_v30, %v10172_v47  ;;  %v8336_v35 = vld [vmem:[%s4182_s6 + $0x128] sm:$0xf0]  ;;  %v10180_v29 = vld [vmem:[#allocation184_spill] sm:$0xff] }
 0x3f3   : > { %v8324_v2 = vsel %vm288_vm2, %v2461_v27, %v2462_v54  ;;  %v8328_v7 = vmul.f32 %v10173_v34, %v10169_v51  ;;  %v8332_v42 = vmul.f32 %v7875_v26, %v10171_v4  ;;  %10174 = vst [vmem:[#allocation37_spill] sm:$0xff] %v8336_v35  ;;  %v2507_v15 = vmul.f32 %v8336_v35, %v10175_v37  ;;  %v8351_v55 = vpop.permute.xlu0 %3266  ;;  %v8353_v40 = vpop.permute.xlu1 %3268  ;;  %v10181_v53 = vld [vmem:[#allocation180_spill] sm:$0xff] }
 0x3f4   : > { %v2510_v30 = vmul.f32 %v7744_v19, %v10175_v37  ;;  %v8343_v27 = vsel %vm288_vm2, %v2456_v28, %v2464_v61  ;;  %v10177_v34 = vrot.slane %v10176_v56, 1  ;;  %v2530_v26 = vrot.slane %v2506_v58, 2  ;;  %10178 = vst [vmem:[#allocation196_spill] sm:$0xff] %v8351_v55  ;;  %10179 = vst [vmem:[#allocation157_spill] sm:$0xff] %v8353_v40  ;;  %v8359_v19 = vld [vmem:[%s4182_s6 + $0x130] sm:$0xf0] }
 0x3f5   : > { %v2531_v4 = vrot.slane %v8296_v48, 2  ;;  %v1806_v35 = vsel %vm407_vm5, %v10181_v53, %v10180_v29  ;;  %10182 = vst [vmem:[#allocation158_spill] sm:$0xff] %v8359_v19  ;;  %v10183_v28 = vld [vmem:[#allocation124_spill] sm:$0xff]  ;;  %v2512_v58 = vmul.f32 %v7786_v1, %v10166_v43  ;;  %v10184_v48 = vld [vmem:[#allocation186_spill] sm:$0xff]  ;;  %v10190_v1 = vld [vmem:[#allocation23_spill] sm:$0xff] }
 0x3f6   : > { %v8348_v22 = vsel %vm288_vm2, %v2459_v12, %v10177_v34  ;;  %v2508_v37 = vmul.f32 %v8359_v19, %v10183_v28  ;;  %v2511_v12 = vmul.f32 %v7749_v14, %v10183_v28  ;;  %v1807_v56 = vsel %vm407_vm5, %v10180_v29, %v10184_v48  ;;  %v10185_v53 = vld [vmem:[#allocation234_spill] sm:$0xff] }
 0x3f7   : > { %v8372_v34 = vmul.f32 %v7889_v9, %v10172_v47  ;;  %v10186_v40 = vrot.slane %v10185_v53, 1  ;;  %v8381_v19 = vmul.f32 %v7757_v39, %v10169_v51  ;;  %v10187_v14 = vrot.slane %v8285_v62, 1  ;;  %v10193_v39 = vld [vmem:[#allocation189_spill] sm:$0xff] }
 0x3f8   : > { %v8390_v29 = vmul.f32 %v7762_v44, %v10169_v51  ;;  %v2533_v9 = vrot.slane %v2507_v15, 2  ;;  %v2534_v47 = vrot.slane %v2510_v30, 2  ;;  %v1830_v53 = vadd.f32 %v1806_v35, %v10190_v1  ;;  %v10197_v15 = vld [vmem:[#allocation43_spill] sm:$0xff]  ;;  %v10198_v30 = vld [vmem:[#allocation41_spill] sm:$0xff] }
 0x3f9   : > { %v8377_v55 = vsel %vm288_vm2, %v2462_v54, %v10186_v40  ;;  %v8386_v28 = vsel %vm288_vm2, %v2464_v61, %v10187_v14  ;;  %v1808_v40 = vsel %vm407_vm5, %v10184_v48, %v10191_v16  ;;  %v10192_v54 = vld [vmem:[#allocation190_spill] sm:$0xff]  ;;  %v8400_v38 = vsel %vm489_vm1, %v2530_v26, %v2531_v4  ;;  %v8402_v61 = vpop.permute.xlu0 %3270  ;;  %v8404_v14 = vpop.permute.xlu1 %3272  ;;  %v10200_v26 = vld [vmem:[#allocation44_spill] sm:$0xff] }
 0x3fa   : > { %10188 = vst [vmem:[#allocation197_spill] sm:$0xff] %v8386_v28  ;;  %10189 = vst [vmem:[#allocation209_spill] sm:$0xff] %v8390_v29  ;;  %v1809_v50 = vsel %vm407_vm5, %v10193_v39, %v10192_v54  ;;  %v8407_v44 = vadd.f32 %v1807_v56, %v8044_v46  ;;  %v2536_v51 = vrot.slane %v2508_v37, 2  ;;  %v2537_v1 = vrot.slane %v2511_v12, 2  ;;  %v10199_v48 = vld [vmem:[#allocation34_spill] sm:$0xff]  ;;  %v10202_v12 = vld [vmem:[#allocation191_spill] sm:$0xff] }
 0x3fb   : > { %10194 = vst [vmem:[#allocation210_spill] sm:$0xff] %v8400_v38  ;;  %10195 = vst [vmem:[#allocation81_spill] sm:$0xff] %v8402_v61  ;;  %v2539_v35 = vrot.slane %v2512_v58, 2  ;;  %v2168_v16 = vsel %vm407_vm5, %v10198_v30, %v10197_v15  ;;  %v2169_v39 = vsel %vm407_vm5, %v10197_v15, %v10199_v48  ;;  %v2170_v61 = vsel %vm407_vm5, %v10199_v48, %v10200_v26  ;;  %v10204_v15 = vld [vmem:[#allocation192_spill] sm:$0xff]  ;;  %v10205_v48 = vld [vmem:[#allocation45_spill] sm:$0xff] }
 0x3fc   : > { %10196 = vst [vmem:[#allocation60_spill] sm:$0xff] %v8404_v14  ;;  %v10201_v14 = vld [vmem:[#allocation226_spill] sm:$0xff]  ;;  %v8423_v46 = vadd.f32 %v1808_v40, %v8062_v8  ;;  %v8426_v37 = vadd.f32 %v1809_v50, %v8060_v11  ;;  %v1810_v58 = vsel %vm407_vm5, %v10192_v54, %v10202_v12  ;;  %v8432_v56 = vsel %vm489_vm1, %v2533_v9, %v2534_v47  ;;  %v10207_v8 = vld [vmem:[#allocation36_spill] sm:$0xff]  ;;  %v10211_v26 = vld [vmem:[#allocation195_spill] sm:$0xff] }
 0x3fd   : > { %v8420_v62 = vmul.f32 %v10201_v14, %v10166_v43  ;;  %10203 = vst [vmem:[#allocation120_spill] sm:$0xff] %v8432_v56  ;;  %v1811_v30 = vsel %vm407_vm5, %v10202_v12, %v10204_v15  ;;  %v10206_v43 = vld [vmem:[#allocation182_spill] sm:$0xff]  ;;  %v2172_v11 = vsel %vm407_vm5, %v10205_v48, %v10207_v8  ;;  %v8446_v54 = vpop.permute.xlu0 %3274  ;;  %v8448_v9 = vpop.permute.xlu1 %3276  ;;  %v2192_v15 = vadd.f32 %v2168_v16, %v8190_v41  ;;  %v10213_v56 = vld [vmem:[#allocation112_spill] sm:$0xff] }
 0x3fe   : > { %v2171_v14 = vsel %vm407_vm5, %v10206_v43, %v10205_v48  ;;  %v10208_v50 = vld [vmem:[#allocation46_spill] sm:$0xff]  ;;  %10209 = vst [vmem:[#allocation49_spill] sm:$0xff] %v8446_v54  ;;  %10210 = vst [vmem:[#allocation26_spill] sm:$0xff] %v8448_v9  ;;  %v2193_v43 = vadd.f32 %v2169_v39, %v8197_v31  ;;  %v2194_v28 = vadd.f32 %v2170_v61, %v8204_v0  ;;  %v10215_v54 = vld [vmem:[#allocation207_spill] sm:$0xff] }
 0x3ff   : > { %v2173_v40 = vsel %vm407_vm5, %v10207_v8, %v10208_v50  ;;  %v10212_v29 = vld [vmem:[#allocation194_spill] sm:$0xff]  ;;  %v8460_v8 = vsel %vm489_vm1, %v2536_v51, %v2537_v1  ;;  %v8463_v50 = vsel %vm489_vm1, %v2531_v4, %v2539_v35  ;;  %v2545_v9 = vrot.slane %v8420_v62, 2  ;;  %v10217_v39 = vld [vmem:[#allocation237_spill] sm:$0xff]  ;;  %v10286_v62 = vld [vmem:[#allocation203_spill] sm:$0xff] }
 0x400   : > { %v1812_v12 = vsel %vm407_vm5, %v10212_v29, %v10211_v26  ;;  %v10214_v48 = vld [vmem:[#allocation110_spill] sm:$0xff]  ;;  %v10216_v29 = vld [vmem:[#allocation116_spill] sm:$0xff]  ;;  %v2195_v31 = vadd.f32 %v2171_v14, %v8209_v63  ;;  %v2196_v0 = vadd.f32 %v2172_v11, %v8220_v18  ;;  %v2197_v61 = vadd.f32 %v2173_v40, %v8276_v32  ;;  %v10223_v14 = vld [vmem:[#allocation179_spill] sm:$0xff] }
 0x401   : > { %v1815_v38 = vsel %vm407_vm5, %v10214_v48, %v10213_v56  ;;  %v1936_v41 = vsel %vm407_vm5, %v10216_v29, %v10215_v54  ;;  %v8473_v16 = vadd.f32 %v1810_v58, %v8079_v24  ;;  %v8476_v51 = vadd.f32 %v1811_v30, %v8081_v21  ;;  %v8486_v48 = vpop.permute.xlu0 %3278  ;;  %v8488_v63 = vpop.permute.xlu1 %3280 }
 0x402   : > { %v8479_v4 = vadd.f32 %v1812_v12, %v8073_v57  ;;  %v10218_v56 = vrot.slane %v10217_v39, 2  ;;  %v10219_v18 = vrot.slane %v8110_v33, 7  ;;  %v10220_v24 = vrot.slane %v8134_v23, 7  ;;  %v10222_v57 = vld [vmem:[#allocation181_spill] sm:$0xff]  ;;  %v10224_v12 = vld [vmem:[#allocation240_spill] sm:$0xff] }
 0x403   : > { %v10221_v21 = vrot.slane %v8174_v6, 7  ;;  %v2174_v11 = vsel %vm407_vm5, %v10223_v14, %v10222_v57  ;;  %v8500_v40 = vadd.f32 %v1936_v41, %v1830_v53  ;;  %v10225_v29 = vrot.slane %v10224_v12, 2  ;;  %v10226_v23 = vld [vmem:[#allocation121_spill] sm:$0xff]  ;;  %v10227_v53 = vld [vmem:[#allocation119_spill] sm:$0xff]  ;;  %v10234_v57 = vld [vmem:[#allocation202_spill] sm:$0xff] }
 0x404   : > { %v8484_v26 = vsel %vm489_vm1, %v2534_v47, %v10218_v56  ;;  %v2261_v32 = vadd.f32 %v10219_v18, %v2192_v15  ;;  %v2262_v58 = vadd.f32 %v10220_v24, %v2193_v43  ;;  %v1839_v47 = vadd.f32 %v1815_v38, %v8077_v59  ;;  %v10228_v15 = vld [vmem:[#allocation212_spill] sm:$0xff]  ;;  %v10229_v43 = vld [vmem:[#allocation211_spill] sm:$0xff]  ;;  %v10231_v18 = vld [vmem:[#allocation69_spill] sm:$0xff] }
 0x405   : > { %v2263_v30 = vadd.f32 %v10221_v21, %v2194_v28  ;;  %v8505_v39 = vsel %vm489_vm1, %v2537_v1, %v10225_v29  ;;  %v8510_v33 = vsel %vm489_vm1, %v2539_v35, %v2545_v9  ;;  %v1937_v6 = vsel %vm407_vm5, %v10215_v54, %v10226_v23  ;;  %v10230_v56 = vld [vmem:[#allocation52_spill] sm:$0xff]  ;;  %v8528_v24 = vpop.permute.xlu0 %3282  ;;  %v10233_v21 = vld [vmem:[#allocation55_spill] sm:$0xff]  ;;  %v10235_v14 = vld [vmem:[#allocation114_spill] sm:$0xff] }
 0x406   : > { %v2264_v28 = vadd.f32 %v8214_v13, %v2195_v31  ;;  %v2265_v59 = vadd.f32 %v8231_v17, %v2196_v0  ;;  %v2266_v38 = vadd.f32 %v8261_v25, %v2197_v61  ;;  %v1938_v1 = vsel %vm407_vm5, %v10226_v23, %v10227_v53  ;;  %v8530_v13 = vpop.permute.xlu1 %3284  ;;  %v10232_v31 = vld [vmem:[#allocation100_spill] sm:$0xff]  ;;  %v10236_v12 = vld [vmem:[#allocation170_spill] sm:$0xff] }
 0x407   : > { %v1939_v41 = vsel %vm407_vm5, %v10229_v43, %v10228_v15  ;;  %v2198_v35 = vadd.f32 %v2174_v11, %v8278_v5  ;;  %v2389_v54 = vsel %vm407_vm5, %v10231_v18, %v10230_v56  ;;  %v2285_v17 = vadd.f32 %v8307_v49, %v2261_v32  ;;  %v10237_v32 = vld [vmem:[#allocation104_spill] sm:$0xff]  ;;  %v10238_v43 = vld [vmem:[#allocation15_spill] sm:$0xff] }
 0x408   : > { %v2286_v25 = vadd.f32 %v8314_v3, %v2262_v58  ;;  %v2390_v0 = vsel %vm407_vm5, %v10230_v56, %v10232_v31  ;;  %v2287_v61 = vadd.f32 %v8321_v36, %v2263_v30  ;;  %v2391_v5 = vsel %vm407_vm5, %v10232_v31, %v10233_v21  ;;  %v10239_v56 = vld [vmem:[#allocation19_spill] sm:$0xff] }
 0x409   : > { %v2392_v11 = vsel %vm407_vm5, %v10235_v14, %v10234_v57  ;;  %v2393_v49 = vsel %vm407_vm5, %v10234_v57, %v10236_v12  ;;  %v2394_v3 = vsel %vm407_vm5, %v10236_v12, %v10237_v32  ;;  %v2413_v58 = vadd.f32 %v2389_v54, %v2285_v17  ;;  %v8558_v21 = vpop.permute.xlu0 %3423  ;;  %v10247_v14 = vld [vmem:[#allocation216_spill] sm:$0xff] }
 0x40a   : > { %v2288_v29 = vadd.f32 %v8328_v7, %v2264_v28  ;;  %v2289_v36 = vadd.f32 %v8332_v42, %v2265_v59  ;;  %v2290_v30 = vadd.f32 %v8372_v34, %v2266_v38  ;;  %v1984_v23 = vrot.slane %v8500_v40, 1  ;;  %v8560_v57 = vpop.permute.xlu1 %3425  ;;  %v10240_v59 = vld [vmem:[#allocation161_spill] sm:$0xff] }
 0x40b   : > { %v2267_v53 = vadd.f32 %v8281_v45, %v2198_v35  ;;  %v2177_v18 = vsel %vm407_vm5, %v10239_v56, %v10238_v43  ;;  %v2414_v31 = vadd.f32 %v2390_v0, %v2286_v25  ;;  %v2415_v54 = vadd.f32 %v2391_v5, %v2287_v61  ;;  %v10241_v35 = vld [vmem:[#allocation213_spill] sm:$0xff]  ;;  %v10248_v56 = vld [vmem:[#allocation210_spill] sm:$0xff] }
 0x40c   : > { %v2416_v17 = vadd.f32 %v2392_v11, %v2288_v29  ;;  %v2417_v7 = vadd.f32 %v2393_v49, %v2289_v36  ;;  %v2418_v28 = vadd.f32 %v2394_v3, %v2290_v30  ;;  %v8563_v42 = vadd.f32 %v1937_v6, %v8407_v44  ;;  %v10242_v44 = vld [vmem:[#allocation109_spill] sm:$0xff] }
 0x40d   : > { %v8566_v34 = vadd.f32 %v1938_v1, %v8423_v46  ;;  %v8569_v45 = vadd.f32 %v1939_v41, %v8426_v37  ;;  %v1940_v38 = vsel %vm407_vm5, %v10228_v15, %v10240_v59  ;;  %v1941_v25 = vsel %vm407_vm5, %v10240_v59, %v10241_v35  ;;  %v10243_v6 = vld [vmem:[#allocation105_spill] sm:$0xff]  ;;  %v10244_v1 = vld [vmem:[#allocation174_spill] sm:$0xff]  ;;  %v8590_v49 = vpop.permute.xlu0 %3427  ;;  %v10255_v35 = vld [vmem:[#allocation155_spill] sm:$0xff] }
 0x40e   : > { %v2201_v0 = vadd.f32 %v2177_v18, %v8287_v20  ;;  %v2488_v61 = vadd.f32 %v8310_v10, %v2413_v58  ;;  %v2395_v46 = vsel %vm407_vm5, %v10243_v6, %v10242_v44  ;;  %v10245_v5 = vld [vmem:[#allocation25_spill] sm:$0xff]  ;;  %v2489_v11 = vadd.f32 %v8317_v52, %v2414_v31  ;;  %v8592_v20 = vpop.permute.xlu1 %3429  ;;  %v10249_v18 = vld [vmem:[#allocation120_spill] sm:$0xff] }
 0x40f   : > { %v1942_v37 = vsel %vm407_vm5, %v10245_v5, %v10244_v1  ;;  %v10246_v41 = vld [vmem:[#allocation217_spill] sm:$0xff]  ;;  %v2291_v12 = vadd.f32 %v8381_v19, %v2267_v53  ;;  %v2490_v10 = vadd.f32 %v8324_v2, %v2415_v54  ;;  %v2491_v32 = vadd.f32 %v8343_v27, %v2416_v17  ;;  %v10250_v31 = vld [vmem:[#allocation236_spill] sm:$0xff]  ;;  %v10252_v54 = vld [vmem:[#allocation238_spill] sm:$0xff] }
 0x410   : > { %v1945_v15 = vsel %vm407_vm5, %v10247_v14, %v10246_v41  ;;  %v2492_v3 = vadd.f32 %v8348_v22, %v2417_v7  ;;  %v2493_v58 = vadd.f32 %v8377_v55, %v2418_v28  ;;  %v1985_v29 = vrot.slane %v8569_v45, 1  ;;  %v10251_v22 = vld [vmem:[#allocation235_spill] sm:$0xff]  ;;  %v10254_v59 = vld [vmem:[#allocation197_spill] sm:$0xff]  ;;  %v10258_v6 = vld [vmem:[#allocation232_spill] sm:$0xff] }
 0x411   : > { %v1964_v36 = vadd.f32 %v1940_v38, %v8473_v16  ;;  %v1965_v52 = vadd.f32 %v1941_v25, %v8476_v51  ;;  %v2419_v30 = vadd.f32 %v2395_v46, %v2291_v12  ;;  %v1966_v19 = vadd.f32 %v1942_v37, %v8479_v4  ;;  %v10253_v17 = vld [vmem:[#allocation239_spill] sm:$0xff]  ;;  %v8614_v4 = vpop.permute.xlu0 %3431  ;;  %v10256_v25 = vld [vmem:[#allocation156_spill] sm:$0xff] }
 0x412   : > { %v1969_v53 = vadd.f32 %v1945_v15, %v1839_v47  ;;  %v2270_v43 = vadd.f32 %v8303_v60, %v2201_v0  ;;  %v2563_v2 = vadd.f32 %v10248_v56, %v2488_v61  ;;  %v2564_v27 = vadd.f32 %v10249_v18, %v2489_v11  ;;  %v8616_v47 = vpop.permute.xlu1 %3433  ;;  %v10257_v61 = vld [vmem:[#allocation231_spill] sm:$0xff]  ;;  %v10259_v46 = vld [vmem:[#allocation152_spill] sm:$0xff]  ;;  %v10261_v15 = vld [vmem:[#allocation209_spill] sm:$0xff] }
 0x413   : > { %v2672_v55 = vsel %vm407_vm5, %v10251_v22, %v10250_v31  ;;  %v2673_v16 = vsel %vm407_vm5, %v10250_v31, %v10252_v54  ;;  %v2674_v51 = vsel %vm407_vm5, %v10252_v54, %v10253_v17  ;;  %v2565_v60 = vadd.f32 %v8460_v8, %v2490_v10  ;;  %v10262_v22 = vld [vmem:[#allocation188_spill] sm:$0xff] }
 0x414   : > { %v2566_v7 = vadd.f32 %v8463_v50, %v2491_v32  ;;  %v2567_v28 = vadd.f32 %v8484_v26, %v2492_v3  ;;  %v2568_v45 = vadd.f32 %v8505_v39, %v2493_v58  ;;  %v2494_v38 = vadd.f32 %v10254_v59, %v2419_v30  ;;  %v10260_v50 = vld [vmem:[#allocation135_spill] sm:$0xff] }
 0x415   : > { %v2669_v0 = vsel %vm407_vm5, %v10256_v25, %v10255_v35  ;;  %v2670_v44 = vsel %vm407_vm5, %v10255_v35, %v10257_v61  ;;  %v2671_v8 = vsel %vm407_vm5, %v10257_v61, %v10258_v6  ;;  %v2398_v26 = vsel %vm407_vm5, %v10260_v50, %v10259_v46  ;;  %v8642_v12 = vpop.permute.xlu0 %3435  ;;  %v10272_v61 = vld [vmem:[#allocation14_spill] sm:$0xff] }
 0x416   : > { %v8635_v1 = vadd.f32 %v2672_v55, %v2566_v7  ;;  %v8637_v39 = vadd.f32 %v2673_v16, %v2567_v28  ;;  %v8639_v5 = vadd.f32 %v2674_v51, %v2568_v45  ;;  %v1988_v37 = vrot.slane %v1964_v36, 1  ;;  %v8644_v10 = vpop.permute.xlu1 %3437  ;;  %v10263_v55 = vld [vmem:[#allocation200_spill] sm:$0xff]  ;;  %v10274_v50 = vld [vmem:[#allocation86_spill] sm:$0xff] }
 0x417   : > { %v1991_v41 = vrot.slane %v1965_v52, 1  ;;  %v1993_v14 = vrot.slane %v1966_v19, 1  ;;  %v2294_v11 = vadd.f32 %v10261_v15, %v2270_v43  ;;  %v1987_v32 = vrot.slane %v8563_v42, 1  ;;  %v10266_v28 = vld [vmem:[#allocation108_spill] sm:$0xff] }
 0x418   : > { %v2693_v3 = vadd.f32 %v2669_v0, %v2563_v2  ;;  %v2694_v58 = vadd.f32 %v2670_v44, %v2564_v27  ;;  %v2695_v30 = vadd.f32 %v2671_v8, %v2565_v60  ;;  %v1990_v56 = vrot.slane %v8566_v34, 1  ;;  %v10271_v0 = vld [vmem:[#allocation18_spill] sm:$0xff] }
 0x419   : > { %v1999_v18 = vrot.slane %v1969_v53, 1  ;;  %v2422_v31 = vadd.f32 %v2398_v26, %v2294_v11  ;;  %v2675_v36 = vsel %vm407_vm5, %v10263_v55, %v10262_v22  ;;  %v2718_v52 = vrot.slane %v8635_v1, 2  ;;  %v8663_v27 = vpop.permute.xlu0 %3439  ;;  %v10275_v1 = vld [vmem:[#allocation66_spill] sm:$0xff] }
 0x41a   : > { %v2721_v19 = vrot.slane %v8637_v39, 2  ;;  %v2724_v43 = vrot.slane %v8639_v5, 2  ;;  %v2569_v54 = vadd.f32 %v8510_v33, %v2494_v38  ;;  %v1986_v42 = vsel %vm288_vm2, %v1984_v23, %v1985_v29  ;;  %v8665_v16 = vpop.permute.xlu1 %3441  ;;  %v10264_v33 = vld [vmem:[#allocation201_spill] sm:$0xff]  ;;  %v10269_v38 = vld [vmem:[#allocation199_spill] sm:$0xff]  ;;  %v10276_v5 = vld [vmem:[#allocation224_spill] sm:$0xff] }
 0x41b   : > { %v1989_v34 = vsel %vm288_vm2, %v1987_v32, %v1988_v37  ;;  %v1992_v53 = vsel %vm288_vm2, %v1990_v56, %v1991_v41  ;;  %v8661_v2 = vsel %vm288_vm2, %v1985_v29, %v1993_v14  ;;  %v2717_v17 = vrot.slane %v2693_v3, 2  ;;  %v10278_v32 = vld [vmem:[#allocation101_spill] sm:$0xff] }
 0x41c   : > { %v2720_v51 = vrot.slane %v2694_v58, 2  ;;  %v2723_v60 = vrot.slane %v2695_v30, 2  ;;  %v8667_v7 = vadd.f32 %v2675_v36, %v2569_v54  ;;  %v10265_v40 = vrot.slane %v10264_v33, 1  ;;  %v10279_v58 = vld [vmem:[#allocation22_spill] sm:$0xff]  ;;  %v10280_v54 = vld [vmem:[#allocation204_spill] sm:$0xff] }
 0x41d   : > { %v10267_v45 = vrot.slane %v10266_v28, 1  ;;  %v8680_v29 = vsel %vm288_vm2, %v1993_v14, %v1999_v18  ;;  %v10270_v35 = vrot.slane %v10269_v38, 1  ;;  %v8686_v44 = vadd.f32 %v10272_v61, %v10271_v0  ;;  %v8696_v15 = vpop.permute.xlu0 %3443  ;;  %v10284_v33 = vld [vmem:[#allocation118_spill] sm:$0xff]  ;;  %v3986_v38 = vld [vmem:[%s4182_s6 + $0x150] sm:$0xff] }
 0x41e   : > { %v8672_v23 = vsel %vm288_vm2, %v1988_v37, %v10265_v40  ;;  %10268 = vst [vmem:[#allocation160_spill] sm:$0xff] %v8680_v29  ;;  %v2719_v6 = vsel %vm489_vm1, %v2717_v17, %v2718_v52  ;;  %v2722_v8 = vsel %vm489_vm1, %v2720_v51, %v2721_v19  ;;  %v2725_v46 = vsel %vm489_vm1, %v2723_v60, %v2724_v43  ;;  %v8698_v11 = vpop.permute.xlu1 %3445  ;;  %v3984_v51 = vld [vmem:[%s4182_s6 + $0x140] sm:$0xff]  ;;  %v3985_v28 = vld [vmem:[%s4182_s6 + $0x148] sm:$0xff]  ;;  %v10311_v29 = vld [vmem:[#allocation8_spill] sm:$0xff] }
 0x41f   : > { %v8677_v59 = vsel %vm288_vm2, %v1991_v41, %v10267_v45  ;;  %v2497_v25 = vadd.f32 %v10270_v35, %v2422_v31  ;;  %10273 = vst [vmem:[#allocation159_spill] sm:$0xff] %v8686_v44  ;;  %v2014_v26 = vmax.f32 %v10274_v50, %v1986_v42  ;;  %v2015_v39 = vmax.f32 %v10275_v1, %v1989_v34  ;;  %v10277_v41 = vld [vmem:[#allocation21_spill] sm:$0xff] }
 0x420   : > { %v2016_v37 = vmax.f32 %v10276_v5, %v1992_v53  ;;  %v2017_v14 = vmax.f32 %v10277_v41, %v8661_v2  ;;  %v2018_v3 = vmax.f32 %v10278_v32, %v8672_v23  ;;  %v2019_v30 = vmax.f32 %v10279_v58, %v8677_v59  ;;  %v10281_v42 = vld [vmem:[#allocation229_spill] sm:$0xff]  ;;  %v10283_v2 = vld [vmem:[#allocation171_spill] sm:$0xff] }
 0x421   : > { %v9274_v18 = vrot.slane %v8667_v7, 2  ;;  %v8707_v31 = vmax.f32 %v2014_v26, %v2719_v6  ;;  %v8709_v22 = vmax.f32 %v2015_v39, %v2722_v8  ;;  %v2572_v36 = vadd.f32 %v2545_v9, %v2497_v25  ;;  %v10282_v53 = vld [vmem:[#allocation113_spill] sm:$0xff]  ;;  %v10287_v9 = vld [vmem:[#allocation158_spill] sm:$0xff]  ;;  %v8732_v61 = vpop.permute.xlu0 %3447 }
 0x422   : > { %v8711_v55 = vmax.f32 %v2016_v37, %v2725_v46  ;;  %v2678_v34 = vsel %vm407_vm5, %v10281_v42, %v10280_v54  ;;  %v3322_v17 = vmul.f32 %v10283_v2, %v10282_v53  ;;  %v3325_v60 = vmul.f32 %v3984_v51, %v10282_v53  ;;  %v10285_v40 = vld [vmem:[#allocation37_spill] sm:$0xff]  ;;  %v10288_v25 = vld [vmem:[#allocation30_spill] sm:$0xff]  ;;  %v8734_v6 = vpop.permute.xlu1 %3449  ;;  %v10289_v46 = vld [vmem:[#allocation75_spill] sm:$0xff] }
 0x423   : > { %v3323_v23 = vmul.f32 %v10285_v40, %v10284_v33  ;;  %v3326_v45 = vmul.f32 %v3985_v28, %v10284_v33  ;;  %v3324_v59 = vmul.f32 %v10287_v9, %v10286_v62  ;;  %v3327_v35 = vmul.f32 %v3986_v38, %v10286_v62  ;;  %v10290_v26 = vld [vmem:[#allocation54_spill] sm:$0xff]  ;;  %v3987_v39 = vld [vmem:[%s4182_s6 + $0x180] sm:$0xf]  ;;  %v3989_v51 = vld [vmem:[%s4182_s6 + $0x190] sm:$0xf] }
 0x424   : > { %v3328_v0 = vmul.f32 %v10288_v25, %v10282_v53  ;;  %v2727_v8 = vsel %vm489_vm1, %v2718_v52, %v9274_v18  ;;  %v3329_v50 = vmul.f32 %v10289_v46, %v10284_v33  ;;  %v3330_v1 = vmul.f32 %v10290_v26, %v10286_v62  ;;  %v10291_v37 = vld [vmem:[#allocation205_spill] sm:$0xff]  ;;  %v3988_v2 = vld [vmem:[%s4182_s6 + $0x188] sm:$0xf] }
 0x425   : > { %v8745_v5 = vmul.f32 %v3987_v39, %v10282_v53  ;;  %v10292_v41 = vrot.slane %v10291_v37, 2  ;;  %v10293_v58 = vld [vmem:[#allocation225_spill] sm:$0xff]  ;;  %v8755_v52 = vmul.f32 %v3988_v2, %v10284_v33  ;;  %v8759_v40 = vmul.f32 %v3989_v51, %v10286_v62  ;;  %v8763_v39 = vpop.permute.xlu0 %3451 }
 0x426   : > { %v10294_v54 = vrot.slane %v10293_v58, 2  ;;  %v8761_v28 = vadd.f32 %v2678_v34, %v2572_v36  ;;  %v3346_v53 = vrot.slane %v3322_v17, 1  ;;  %v3347_v9 = vrot.slane %v3325_v60, 1  ;;  %v10295_v58 = vld [vmem:[#allocation59_spill] sm:$0xff]  ;;  %v10297_v17 = vld [vmem:[#allocation196_spill] sm:$0xff] }
 0x427   : > { %v2729_v32 = vsel %vm489_vm1, %v2721_v19, %v10292_v41  ;;  %v3349_v38 = vrot.slane %v3323_v23, 1  ;;  %v3350_v25 = vrot.slane %v3326_v45, 1  ;;  %v3352_v46 = vrot.slane %v3324_v59, 1  ;;  %v10296_v36 = vld [vmem:[#allocation35_spill] sm:$0xff] }
 0x428   : > { %v2731_v42 = vsel %vm489_vm1, %v2724_v43, %v10294_v54  ;;  %v3353_v19 = vrot.slane %v3327_v35, 1  ;;  %v3355_v26 = vrot.slane %v3328_v0, 1  ;;  %v8765_v43 = vpop.permute.xlu1 %3453  ;;  %v8767_v37 = vmax.f32 %v2017_v14, %v2727_v8  ;;  %v10300_v0 = vld [vmem:[#allocation157_spill] sm:$0xff]  ;;  %v10310_v35 = vld [vmem:[#allocation78_spill] sm:$0xff] }
 0x429   : > { %v3357_v33 = vrot.slane %v3329_v50, 1  ;;  %v3359_v41 = vrot.slane %v3330_v1, 1  ;;  %v9277_v62 = vrot.slane %v8745_v5, 1  ;;  %v3289_v34 = vsel %vm407_vm5, %v10296_v36, %v10295_v58  ;;  %v3554_v51 = vpop.permute.xlu0 %3553 }
 0x42a   : > { %v3290_v60 = vsel %vm407_vm5, %v10295_v58, %v10297_v17  ;;  %v9275_v23 = vrot.slane %v8755_v52, 1  ;;  %v9276_v45 = vrot.slane %v8759_v40, 1  ;;  %v8778_v59 = vmax.f32 %v2018_v3, %v2729_v32  ;;  %v3672_v3 = vld [vmem:[#allocation4] sm:$0x7]  ;;  %v10301_v32 = vld [vmem:[#allocation168_spill] sm:$0xff] }
 0x42b   : > { %v8780_v14 = vmax.f32 %v2019_v30, %v2731_v42  ;;  %v3291_v8 = vsel %vm407_vm5, %v10297_v17, %v10300_v0  ;;  %v3348_v50 = vsel %vm288_vm2, %v3346_v53, %v3347_v9  ;;  %v3351_v1 = vsel %vm288_vm2, %v3349_v38, %v3350_v25  ;;  %v10302_v42 = vld [vmem:[#allocation77_spill] sm:$0xff]  ;;  %v10303_v17 = vld [vmem:[#allocation56_spill] sm:$0xff] }
 0x42c   : > { %10298 = vst [vmem:[#allocation177_spill] sm:$0xff] %v8778_v59  ;;  %v3354_v54 = vsel %vm288_vm2, %v3352_v46, %v3353_v19  ;;  %v3356_v2 = vsel %vm288_vm2, %v3347_v9, %v3355_v26  ;;  %v3556_v58 = vpop.permute.xlu1 %3555  ;;  %v3313_v30 = vadd.f32 %v3289_v34, %v10301_v32  ;;  %v3314_v36 = vadd.f32 %v3290_v60, %v10302_v42  ;;  %v10304_v46 = vld [vmem:[#allocation60_spill] sm:$0xff]  ;;  %v10305_v34 = vld [vmem:[#allocation81_spill] sm:$0xff]  ;;  %v10308_v42 = vld [vmem:[#allocation42_spill] sm:$0xff] }
 0x42d   : > { %10299 = vst [vmem:[#allocation198_spill] sm:$0xff] %v8780_v14  ;;  %v3358_v56 = vsel %vm288_vm2, %v3350_v25, %v3357_v33  ;;  %v3360_v18 = vsel %vm288_vm2, %v3353_v19, %v3359_v41  ;;  %v3315_v0 = vadd.f32 %v3291_v8, %v10303_v17  ;;  %v3362_v53 = vsel %vm288_vm2, %v3355_v26, %v9277_v62  ;;  %v10306_v60 = vld [vmem:[#allocation9_spill] sm:$0xff]  ;;  %v10307_v26 = vld [vmem:[#allocation10_spill] sm:$0xff]  ;;  %v10309_v17 = vld [vmem:[#allocation183_spill] sm:$0xff] }
 0x42e   : > { %v3364_v9 = vsel %vm288_vm2, %v3357_v33, %v9275_v23  ;;  %v3366_v38 = vsel %vm288_vm2, %v3359_v41, %v9276_v45  ;;  %v3292_v25 = vsel %vm407_vm5, %v10305_v34, %v10304_v46  ;;  %v3455_v19 = vsel %vm407_vm5, %v8558_v21, %v8560_v57  ;;  %v3558_v45 = vpop.permute.xlu0 %3557  ;;  %v10312_v14 = vld [vmem:[#allocation76_spill] sm:$0xff] }
 0x42f   : > { %v8811_v8 = vrot.slane %v3672_v3, %v10306_v60  ;;  %v8814_v32 = vrot.slane %v3672_v3, %v10307_v26  ;;  %v3379_v33 = vadd.f32 %v3348_v50, %v10308_v42  ;;  %v3380_v23 = vadd.f32 %v3351_v1, %v10309_v17  ;;  %v10313_v50 = vld [vmem:[#allocation49_spill] sm:$0xff]  ;;  %v10314_v42 = vld [vmem:[#allocation26_spill] sm:$0xff] }
 0x430   : > { %v3381_v41 = vadd.f32 %v3354_v54, %v10310_v35  ;;  %v3560_v62 = vpop.permute.xlu1 %3559  ;;  %v8820_v34 = vrot.slane %v3672_v3, %v10311_v29  ;;  %v3382_v44 = vadd.f32 %v3356_v2, %v3313_v30  ;;  %v3458_v21 = vsel %vm407_vm5, %v8614_v4, %v8616_v47 }
 0x431   : > { %v3383_v60 = vadd.f32 %v3358_v56, %v3314_v36  ;;  %v3585_v26 = vsel %vm407_vm5, %v3554_v51, %v3556_v58  ;;  %v3316_v59 = vadd.f32 %v3292_v25, %v10312_v14  ;;  %v3293_v1 = vsel %vm407_vm5, %v10304_v46, %v10313_v50  ;;  %v10315_v36 = vld [vmem:[#allocation115_spill] sm:$0xff] }
 0x432   : > { %v3479_v35 = vadd.f32 %v3455_v19, %v3379_v33  ;;  %v3384_v54 = vadd.f32 %v3360_v18, %v3315_v0  ;;  %v3294_v29 = vsel %vm407_vm5, %v10313_v50, %v10314_v42  ;;  %v3295_v2 = vsel %vm407_vm5, %v8486_v48, %v8488_v63  ;;  %v3562_v30 = vpop.permute.xlu0 %3561  ;;  %v10317_v33 = vld [vmem:[#allocation79_spill] sm:$0xff] }
 0x433   : > { %v3456_v4 = vsel %vm407_vm5, %v8560_v57, %v8590_v49  ;;  %v3457_v56 = vsel %vm407_vm5, %v8590_v49, %v8592_v20  ;;  %v3482_v14 = vadd.f32 %v3458_v21, %v3382_v44  ;;  %v3459_v18 = vsel %vm407_vm5, %v8616_v47, %v8642_v12  ;;  %v10316_v20 = vld [vmem:[#allocation57_spill] sm:$0xff] }
 0x434   : > { %v3460_v51 = vsel %vm407_vm5, %v8642_v12, %v8644_v10  ;;  %v3609_v3 = vadd.f32 %v3585_v26, %v3479_v35  ;;  %v3564_v48 = vpop.permute.xlu1 %3563  ;;  %v3317_v0 = vadd.f32 %v3293_v1, %v10315_v36  ;;  %v3586_v57 = vsel %vm407_vm5, %v3556_v58, %v3558_v45 }
 0x435   : > { %v3587_v46 = vsel %vm407_vm5, %v3558_v45, %v3560_v62  ;;  %v3588_v49 = vsel %vm407_vm5, %v3562_v30, %v3564_v48  ;;  %v3318_v44 = vadd.f32 %v3294_v29, %v10316_v20  ;;  %v3480_v25 = vadd.f32 %v3456_v4, %v3380_v23 }
 0x436   : > { %v3481_v19 = vadd.f32 %v3457_v56, %v3381_v41  ;;  %v3612_v47 = vadd.f32 %v3588_v49, %v3482_v14  ;;  %v3319_v17 = vadd.f32 %v3295_v2, %v10317_v33  ;;  %v3483_v12 = vadd.f32 %v3459_v18, %v3383_v60  ;;  %v3566_v45 = vpop.permute.xlu0 %3565 }
 0x437   : > { %v3484_v10 = vadd.f32 %v3460_v51, %v3384_v54  ;;  %v3461_v21 = vsel %vm407_vm5, %v8663_v27, %v8665_v16  ;;  %v3633_v26 = vrot.slane %v3609_v3, 3  ;;  %v3610_v58 = vadd.f32 %v3586_v57, %v3480_v25 }
 0x438   : > { %v3611_v50 = vadd.f32 %v3587_v46, %v3481_v19  ;;  %v3634_v62 = vrot.slane %v3612_v47, 3  ;;  %v3568_v1 = vpop.permute.xlu1 %3567  ;;  %v3385_v35 = vadd.f32 %v3362_v53, %v3316_v59  ;;  %v3386_v42 = vadd.f32 %v3364_v9, %v3317_v0 }
 0x439   : > { %v3589_v23 = vsel %vm407_vm5, %v3564_v48, %v3566_v45  ;;  %v3590_v41 = vsel %vm407_vm5, %v3566_v45, %v3568_v1  ;;  %v3387_v29 = vadd.f32 %v3366_v38, %v3318_v44  ;;  %v3296_v27 = vsel %vm407_vm5, %v8488_v63, %v8528_v24 }
 0x43a   : > { %v3635_v60 = vsel %vm583_vm4, %v3633_v26, %v3634_v62  ;;  %v3613_v54 = vadd.f32 %v3589_v23, %v3483_v12  ;;  %v3614_v2 = vadd.f32 %v3590_v41, %v3484_v10  ;;  %v3485_v4 = vadd.f32 %v3461_v21, %v3385_v35  ;;  %v3570_v38 = vpop.permute.xlu0 %3569  ;;  %v10320_v12 = vld [vmem:[#allocation169_spill] sm:$0xff] }
 0x43b   : > { %v10318_v56 = vrot.slane %v8745_v5, 1  ;;  %v3663_v59 = vmax.f32 %v8707_v31, %v3635_v60  ;;  %v3636_v53 = vrot.slane %v3610_v58, 3  ;;  %v3639_v9 = vrot.slane %v3611_v50, 3 }
 0x43c   : > { %v3637_v18 = vrot.slane %v3613_v54, 3  ;;  %v3640_v51 = vrot.slane %v3614_v2, 3  ;;  %v3572_v3 = vpop.permute.xlu1 %3571  ;;  %v3462_v30 = vsel %vm407_vm5, %v8665_v16, %v8696_v15  ;;  %v3463_v63 = vsel %vm407_vm5, %v8696_v15, %v8698_v11  ;;  %v10319_v15 = vld [vmem:[#allocation58_spill] sm:$0xff] }
 0x43d   : > { %v3388_v14 = vadd.f32 %v10318_v56, %v3319_v17  ;;  %v3689_v48 = vadd.f32 %v8811_v8, %v3663_v59  ;;  %v3591_v5 = vsel %vm407_vm5, %v3570_v38, %v3572_v3  ;;  %v3297_v31 = vsel %vm407_vm5, %v8528_v24, %v8530_v13  ;;  %v10325_v59 = vld [vmem:[#allocation177_spill] sm:$0xff]  ;;  %v10328_v38 = vld [vmem:[#allocation160_spill] sm:$0xff] }
 0x43e   : > { %v3638_v16 = vsel %vm583_vm4, %v3636_v53, %v3637_v18  ;;  %v3641_v36 = vsel %vm583_vm4, %v3639_v9, %v3640_v51  ;;  %v3615_v0 = vadd.f32 %v3591_v5, %v3485_v4  ;;  %v3320_v11 = vadd.f32 %v3296_v27, %v10319_v15  ;;  %v3574_v25 = vpop.permute.xlu0 %3573  ;;  %v10326_v9 = vld [vmem:[#allocation198_spill] sm:$0xff] }
 0x43f   : > { %v3698_v57 = vmax.f32 %v3689_v48, 0.0  ;;  %v3664_v46 = vmax.f32 %v8709_v22, %v3638_v16  ;;  %v3665_v49 = vmax.f32 %v8711_v55, %v3641_v36  ;;  %v3486_v20 = vadd.f32 %v3462_v30, %v3386_v42 }
 0x440   : > { %v3487_v24 = vadd.f32 %v3463_v63, %v3387_v29  ;;  %v3464_v13 = vsel %vm407_vm5, %v8732_v61, %v8734_v6  ;;  %v3642_v44 = vrot.slane %v3615_v0, 3  ;;  %v3576_v19 = vpop.permute.xlu1 %3575  ;;  %v3592_v17 = vsel %vm407_vm5, %v3572_v3, %v3574_v25 }
 0x441   : > { %3707 = vst [vmem:[%s8881_s11] sm:$0xff] %v3698_v57  ;;  %v3690_v47 = vadd.f32 %v8814_v32, %v3664_v46  ;;  %v3691_v33 = vadd.f32 %v8820_v34, %v3665_v49  ;;  %v3593_v22 = vsel %vm407_vm5, %v3574_v25, %v3576_v19  ;;  %v3321_v55 = vadd.f32 %v3297_v31, %v10320_v12 }
 0x442   : > { %v3643_v10 = vsel %vm583_vm4, %v3634_v62, %v3642_v44  ;;  %v3616_v21 = vadd.f32 %v3592_v17, %v3486_v20  ;;  %v3617_v61 = vadd.f32 %v3593_v22, %v3487_v24  ;;  %v10321_v26 = vrot.slane %v8761_v28, 2  ;;  %v3578_v62 = vpop.permute.xlu0 %3577  ;;  %v10331_v17 = vld [vmem:[#allocation206_spill] sm:$0xff] }
 0x443   : > { %v10322_v58 = vrot.slane %v8667_v7, 2  ;;  %v3699_v45 = vmax.f32 %v3690_v47, 0.0  ;;  %v3700_v1 = vmax.f32 %v3691_v33, 0.0  ;;  %v3666_v35 = vmax.f32 %v8767_v37, %v3643_v10 }
 0x444   : > { %v3488_v42 = vadd.f32 %v3464_v13, %v3388_v14  ;;  %v10323_v23 = vrot.slane %v8755_v52, 1  ;;  %v3644_v29 = vrot.slane %v3616_v21, 3  ;;  %v3646_v60 = vrot.slane %v3617_v61, 3  ;;  %v3580_v54 = vpop.permute.xlu1 %3579 }
 0x445   : > { %v2733_v50 = vsel %vm489_vm1, %v10322_v58, %v10321_v26  ;;  %v3465_v28 = vsel %vm407_vm5, %v8734_v6, %v8763_v39  ;;  %v3466_v7 = vsel %vm407_vm5, %v8763_v39, %v8765_v43  ;;  %3708 = vst [vmem:[%s8881_s11 + $0x8] sm:$0xff] %v3699_v45  ;;  %3709 = vst [vmem:[%s8881_s11 + $0x10] sm:$0xff] %v3700_v1  ;;  %v10324_v2 = vrot.slane %v8759_v40, 1  ;;  %v10327_v43 = vld [vmem:[#allocation159_spill] sm:$0xff] }
 0x446   : > { %v3389_v41 = vadd.f32 %v10323_v23, %v3320_v11  ;;  %v3692_v37 = vadd.f32 %v8811_v8, %v3666_v35  ;;  %v3594_v52 = vsel %vm407_vm5, %v3578_v62, %v3580_v54  ;;  %v3645_v4 = vsel %vm583_vm4, %v3637_v18, %v3644_v29  ;;  %v3582_v40 = vpop.permute.xlu0 %3581 }
 0x447   : > { %v3390_v27 = vadd.f32 %v10324_v2, %v3321_v55  ;;  %v3647_v56 = vsel %vm583_vm4, %v3640_v51, %v3646_v60  ;;  %v3618_v14 = vadd.f32 %v3594_v52, %v3488_v42  ;;  %v3667_v53 = vmax.f32 %v10325_v59, %v3645_v4 }
 0x448   : > { %v3701_v6 = vmax.f32 %v3692_v37, 0.0  ;;  %v3668_v39 = vmax.f32 %v10326_v9, %v3647_v56  ;;  %v10329_v3 = vmax.f32 %v10327_v43, %v10328_v38  ;;  %v3489_v63 = vadd.f32 %v3465_v28, %v3389_v41  ;;  %v3584_v31 = vpop.permute.xlu1 %3583 }
 0x449   : > { %v3490_v48 = vadd.f32 %v3466_v7, %v3390_v27  ;;  %v3648_v5 = vrot.slane %v3618_v14, 3  ;;  %v3693_v18 = vadd.f32 %v8814_v32, %v3667_v53  ;;  %v3595_v16 = vsel %vm407_vm5, %v3580_v54, %v3582_v40 }
 0x44a   : > { %v2753_v30 = vmax.f32 %v10329_v3, %v2733_v50  ;;  %3710 = vst [vmem:[%s8881_s11 + $0x18] sm:$0xff] %v3701_v6  ;;  %v3694_v51 = vadd.f32 %v8820_v34, %v3668_v39  ;;  %v3596_v36 = vsel %vm407_vm5, %v3582_v40, %v3584_v31  ;;  %v3619_v15 = vadd.f32 %v3595_v16, %v3489_v63 }
 0x44b   : > { %v3649_v0 = vsel %vm583_vm4, %v3642_v44, %v3648_v5  ;;  %v3620_v11 = vadd.f32 %v3596_v36, %v3490_v48  ;;  %v3702_v57 = vmax.f32 %v3693_v18, 0.0  ;;  %v10330_v44 = vld [vmem:[#allocation193_spill] sm:$0xff] }
 0x44c   : > { %v3703_v46 = vmax.f32 %v3694_v51, 0.0  ;;  %v3669_v49 = vmax.f32 %v2753_v30, %v3649_v0  ;;  %v3650_v20 = vrot.slane %v3619_v15, 3 }
 0x44d   : > { %v3652_v24 = vrot.slane %v3620_v11, 3  ;;  %3711 = vst [vmem:[%s8881_s11 + $0x20] sm:$0xff] %v3702_v57 }
 0x44e   : > { %3712 = vst [vmem:[%s8881_s11 + $0x28] sm:$0xff] %v3703_v46  ;;  %v3695_v13 = vadd.f32 %v8811_v8, %v3669_v49  ;;  %v3651_v25 = vsel %vm583_vm4, %v3644_v29, %v3650_v20 }
 0x44f   : > { %v3653_v19 = vsel %vm583_vm4, %v3646_v60, %v3652_v24  ;;  %v3670_v33 = vmax.f32 %v10330_v44, %v3651_v25 }
 0x450   : > { %v3704_v47 = vmax.f32 %v3695_v13, 0.0  ;;  %v3671_v22 = vmax.f32 %v10331_v17, %v3653_v19 }
 0x451   : > { %v3696_v12 = vadd.f32 %v8814_v32, %v3670_v33 }
 0x452   : > { %3713 = vst [vmem:[%s8881_s11 + $0x30] sm:$0xff] %v3704_v47  ;;  %v3697_v55 = vadd.f32 %v8820_v34, %v3671_v22 }
 0x453   : > { %v3705_v10 = vmax.f32 %v3696_v12, 0.0 }
 0x454   : > { %v3706_v21 = vmax.f32 %v3697_v55, 0.0 }
 0x455   : > { %3714 = vst [vmem:[%s8881_s11 + $0x38] sm:$0xff] %v3705_v10 }
 0x456   : > { %3715 = vst [vmem:[%s8881_s11 + $0x40] sm:$0xff] %v3706_v21 }
 0x457 PF: > { %s15_s12 = sadd.s32 1, %s4056_s12  }
 0x458   : > { %p12_p3 = scmp.ge.s32.totalorder %s15_s12, 4  }
 0x45a   :  { %14 = sbr.rel (!%p12_p3) target bundleno = 2 (0x2), region = 79 }
 0x45f   :  { %3737 = vsyncpa [#allocation3], 1 }
 0x460   :  { %3739 = vsyncpa [#allocation3 + $0x1], 1 }
 0x461   :  { %3740 = vsyncpa [#allocation5], 1 }

// kernel: cnn_forward.4
= control target key start
LH: loop header
LB: loop body
LE: loop exit
PB: predicated region body
PF: predicated region fallthrough
CT: control target
= control target key end

     0   :  { %s1307_s12 = smov 0   ;;  %s1933_s0 = inlined_call_operand.vmem [shape: f32[2,144,576], index: 0, kind: input, shape index: {}]   ;;  %s1934_s1 = inlined_call_operand.vmem [shape: f32[576,128], index: 1, kind: input, shape index: {}]   ;;  %s1935_s2 = inlined_call_operand.vmem [shape: f32[1,32], index: 2, kind: input, shape index: {}]   ;;  %s1936_s3 = inlined_call_operand.vmem [shape: f32[2,144,32], index: 3, kind: output, shape index: {}]  }
   0x1 LB: > { %s1150_s13 = sadd.s32 4294967295, %s1282_s12   ;;  %p1154_p0 = scmp.ge.s32.totalorder %s1282_s12, 1  ;;  %s1282_s12 = sphi %s1307_s12, %s13_s12  }
   0x2   : > { %p137_p1 = scmp.lt.s32.totalorder %s1282_s12, 3 }
   0x4   : > { %p138_p2 = pnand %p1154_p0, %p137_p1 }
   0x5   : > { %p161_p3 = scmp.lt.s32.totalorder (!%p138_p2), %s1150_s13, 1  ;;  %s1286_s11 = smov (!%p138_p2), 64  }
   0x6   : > { %141 = sbr.rel (%p138_p2) target bundleno = 619 (0x26b), region = 32 }
   0xb   : > { %v276_v0 = vld [vmem:[%s1934_s1 + $0x78] sm:$0xff]  ;;  %v1284_v2 = vmov 0.0   ;;  %v275_v3 = vld [vmem:[%s1934_s1 + $0x70] sm:$0xff]  ;;  %v274_v5 = vld [vmem:[%s1934_s1 + $0x68] sm:$0xff]  ;;  %s1938_s13 = smov (!%p161_p3, %s1150_s13), 1  ;;  %vm333_vm0 = vcmask 523264  }
   0xc   : > { %v308_v1 = vld [vmem:[%s1934_s1 + $0x178] sm:$0xff]  ;;  %388 = vmatprep.subr.mxu0 %v1284_v2  ;;  %543 = vmatprep.subr.mxu1 %v1284_v2  ;;  %v307_v4 = vld [vmem:[%s1934_s1 + $0x170] sm:$0xff]  ;;  %v306_v6 = vld [vmem:[%s1934_s1 + $0x168] sm:$0xff]  ;;  %s1263_s26 = smul.u32 720, %s1938_s13  ;;  %vm1076_vm1 = vcmask 261120  }
   0xd   : > { %389 = vmatpush1.msra.mxu0 %v276_v0  ;;  %544 = vmatpush1.msra.mxu1 %v308_v1  ;;  %v273_v7 = vld [vmem:[%s1934_s1 + $0x60] sm:$0xff]  ;;  %v272_v9 = vld [vmem:[%s1934_s1 + $0x58] sm:$0xff]  ;;  %v271_v11 = vld [vmem:[%s1934_s1 + $0x50] sm:$0xff]  ;;  %s1264_s14 = smul.u32 144, %s1938_s13 }
   0xe   : > { %390 = vmatprep.subr.mxu0 %v1284_v2  ;;  %545 = vmatprep.subr.mxu1 %v1284_v2  ;;  %v305_v8 = vld [vmem:[%s1934_s1 + $0x160] sm:$0xff]  ;;  %v304_v10 = vld [vmem:[%s1934_s1 + $0x158] sm:$0xff]  ;;  %v303_v12 = vld [vmem:[%s1934_s1 + $0x150] sm:$0xff]  ;;  %s1563_s10 = scalar_lea.vmem %s1933_s0, %s1263_s26 }
   0xf   : > { %391 = vmatpush1.msra.mxu0 %v275_v3  ;;  %546 = vmatpush1.msra.mxu1 %v307_v4  ;;  %v270_v13 = vld [vmem:[%s1934_s1 + $0x48] sm:$0xff]  ;;  %v269_v15 = vld [vmem:[%s1934_s1 + $0x40] sm:$0xff]  ;;  %v268_v17 = vld [vmem:[%s1934_s1 + $0x38] sm:$0xff]  ;;  %s1860_s19 = scalar_lea.vmem %s1936_s3, %s1264_s14 }
  0x10   : > { %392 = vmatprep.subr.mxu0 %v1284_v2  ;;  %547 = vmatprep.subr.mxu1 %v1284_v2  ;;  %v302_v14 = vld [vmem:[%s1934_s1 + $0x148] sm:$0xff]  ;;  %v301_v16 = vld [vmem:[%s1934_s1 + $0x140] sm:$0xff]  ;;  %v300_v18 = vld [vmem:[%s1934_s1 + $0x138] sm:$0xff] }
  0x11   : > { %393 = vmatpush1.msra.mxu0 %v274_v5  ;;  %548 = vmatpush1.msra.mxu1 %v306_v6  ;;  %v267_v19 = vld [vmem:[%s1934_s1 + $0x30] sm:$0xff]  ;;  %v266_v21 = vld [vmem:[%s1934_s1 + $0x28] sm:$0xff]  ;;  %v265_v23 = vld [vmem:[%s1934_s1 + $0x20] sm:$0xff] }
  0x12   : > { %394 = vmatprep.subr.mxu0 %v1284_v2  ;;  %549 = vmatprep.subr.mxu1 %v1284_v2  ;;  %v299_v20 = vld [vmem:[%s1934_s1 + $0x130] sm:$0xff]  ;;  %v298_v22 = vld [vmem:[%s1934_s1 + $0x128] sm:$0xff]  ;;  %v297_v24 = vld [vmem:[%s1934_s1 + $0x120] sm:$0xff] }
  0x13   : > { %395 = vmatpush1.msra.mxu0 %v273_v7  ;;  %550 = vmatpush1.msra.mxu1 %v305_v8  ;;  %v264_v25 = vld [vmem:[%s1934_s1 + $0x18] sm:$0xff]  ;;  %v263_v27 = vld [vmem:[%s1934_s1 + $0x10] sm:$0xff]  ;;  %v262_v29 = vld [vmem:[%s1934_s1 + $0x8] sm:$0xff] }
  0x14   : > { %396 = vmatprep.subr.mxu0 %v1284_v2  ;;  %551 = vmatprep.subr.mxu1 %v1284_v2  ;;  %v296_v26 = vld [vmem:[%s1934_s1 + $0x118] sm:$0xff]  ;;  %v295_v28 = vld [vmem:[%s1934_s1 + $0x110] sm:$0xff]  ;;  %v294_v30 = vld [vmem:[%s1934_s1 + $0x108] sm:$0xff] }
  0x15   : > { %397 = vmatpush1.msra.mxu0 %v272_v9  ;;  %552 = vmatpush1.msra.mxu1 %v304_v10  ;;  %v261_v31 = vld [vmem:[%s1934_s1] sm:$0xff]  ;;  %v292_v33 = vld [vmem:[%s1934_s1 + $0xf8] sm:$0xff]  ;;  %v291_v35 = vld [vmem:[%s1934_s1 + $0xf0] sm:$0xff] }
  0x16   : > { %398 = vmatprep.subr.mxu0 %v1284_v2  ;;  %553 = vmatprep.subr.mxu1 %v1284_v2  ;;  %v293_v32 = vld [vmem:[%s1934_s1 + $0x100] sm:$0xff]  ;;  %v324_v34 = vld [vmem:[%s1934_s1 + $0x1f8] sm:$0xff]  ;;  %v323_v36 = vld [vmem:[%s1934_s1 + $0x1f0] sm:$0xff] }
  0x17   : > { %399 = vmatpush1.msra.mxu0 %v271_v11  ;;  %554 = vmatpush1.msra.mxu1 %v303_v12  ;;  %v290_v37 = vld [vmem:[%s1934_s1 + $0xe8] sm:$0xff]  ;;  %v289_v39 = vld [vmem:[%s1934_s1 + $0xe0] sm:$0xff]  ;;  %v288_v41 = vld [vmem:[%s1934_s1 + $0xd8] sm:$0xff] }
  0x18   : > { %400 = vmatprep.subr.mxu0 %v1284_v2  ;;  %555 = vmatprep.subr.mxu1 %v1284_v2  ;;  %v322_v38 = vld [vmem:[%s1934_s1 + $0x1e8] sm:$0xff]  ;;  %v321_v40 = vld [vmem:[%s1934_s1 + $0x1e0] sm:$0xff]  ;;  %v320_v42 = vld [vmem:[%s1934_s1 + $0x1d8] sm:$0xff] }
  0x19   : > { %401 = vmatpush1.msra.mxu0 %v270_v13  ;;  %556 = vmatpush1.msra.mxu1 %v302_v14  ;;  %v287_v43 = vld [vmem:[%s1934_s1 + $0xd0] sm:$0xff]  ;;  %v286_v45 = vld [vmem:[%s1934_s1 + $0xc8] sm:$0xff]  ;;  %v285_v47 = vld [vmem:[%s1934_s1 + $0xc0] sm:$0xff] }
  0x1a   : > { %402 = vmatprep.subr.mxu0 %v1284_v2  ;;  %557 = vmatprep.subr.mxu1 %v1284_v2  ;;  %v319_v44 = vld [vmem:[%s1934_s1 + $0x1d0] sm:$0xff]  ;;  %v318_v46 = vld [vmem:[%s1934_s1 + $0x1c8] sm:$0xff]  ;;  %v317_v48 = vld [vmem:[%s1934_s1 + $0x1c0] sm:$0xff] }
  0x1b   : > { %403 = vmatpush1.msra.mxu0 %v269_v15  ;;  %558 = vmatpush1.msra.mxu1 %v301_v16  ;;  %v284_v49 = vld [vmem:[%s1934_s1 + $0xb8] sm:$0xff]  ;;  %v283_v51 = vld [vmem:[%s1934_s1 + $0xb0] sm:$0xff]  ;;  %v282_v53 = vld [vmem:[%s1934_s1 + $0xa8] sm:$0xff] }
  0x1c   : > { %404 = vmatprep.subr.mxu0 %v1284_v2  ;;  %559 = vmatprep.subr.mxu1 %v1284_v2  ;;  %v316_v50 = vld [vmem:[%s1934_s1 + $0x1b8] sm:$0xff]  ;;  %v315_v52 = vld [vmem:[%s1934_s1 + $0x1b0] sm:$0xff]  ;;  %v314_v54 = vld [vmem:[%s1934_s1 + $0x1a8] sm:$0xff] }
  0x1d   : > { %405 = vmatpush1.msra.mxu0 %v268_v17  ;;  %560 = vmatpush1.msra.mxu1 %v300_v18  ;;  %v281_v55 = vld [vmem:[%s1934_s1 + $0xa0] sm:$0xff]  ;;  %v280_v57 = vld [vmem:[%s1934_s1 + $0x98] sm:$0xff]  ;;  %v279_v59 = vld [vmem:[%s1934_s1 + $0x90] sm:$0xff] }
  0x1e   : > { %406 = vmatprep.subr.mxu0 %v1284_v2  ;;  %561 = vmatprep.subr.mxu1 %v1284_v2  ;;  %v313_v56 = vld [vmem:[%s1934_s1 + $0x1a0] sm:$0xff]  ;;  %v312_v58 = vld [vmem:[%s1934_s1 + $0x198] sm:$0xff]  ;;  %v311_v60 = vld [vmem:[%s1934_s1 + $0x190] sm:$0xff] }
  0x1f   : > { %407 = vmatpush1.msra.mxu0 %v267_v19  ;;  %562 = vmatpush1.msra.mxu1 %v299_v20  ;;  %v278_v61 = vld [vmem:[%s1934_s1 + $0x88] sm:$0xff]  ;;  %v277_v63 = vld [vmem:[%s1934_s1 + $0x80] sm:$0xff]  ;;  %v174_v3 = vld [vmem:[%s1563_s10 + $0x18] sm:$0xff] }
  0x20   : > { %408 = vmatprep.subr.mxu0 %v1284_v2  ;;  %563 = vmatprep.subr.mxu1 %v1284_v2  ;;  %v310_v62 = vld [vmem:[%s1934_s1 + $0x188] sm:$0xff]  ;;  %v309_v1 = vld [vmem:[%s1934_s1 + $0x180] sm:$0xff]  ;;  %v173_v5 = vld [vmem:[%s1563_s10 + $0x10] sm:$0xff] }
  0x21   : > { %409 = vmatpush1.msra.mxu0 %v266_v21  ;;  %564 = vmatpush1.msra.mxu1 %v298_v22  ;;  %v172_v0 = vld [vmem:[%s1563_s10 + $0x8] sm:$0xff]  ;;  %v171_v4 = vld [vmem:[%s1563_s10] sm:$0xff]  ;;  %v332_v6 = vld [vmem:[%s1934_s1 + $0x238] sm:$0xff] }
  0x22   : > { %410 = vmatprep.subr.mxu0 %v1284_v2  ;;  %565 = vmatprep.subr.mxu1 %v1284_v2  ;;  %v177_v7 = vld [vmem:[%s1563_s10 + $0x30] sm:$0xff]  ;;  %v179_v8 = vld [vmem:[%s1563_s10 + $0x40] sm:$0xff]  ;;  %v178_v9 = vld [vmem:[%s1563_s10 + $0x38] sm:$0xff] }
  0x23   : > { %411 = vmatpush1.msra.mxu0 %v265_v23  ;;  %566 = vmatpush1.msra.mxu1 %v297_v24  ;;  %v182_v10 = vld [vmem:[%s1563_s10 + $0x58] sm:$0xff]  ;;  %v184_v11 = vld [vmem:[%s1563_s10 + $0x68] sm:$0xff]  ;;  %v331_v12 = vld [vmem:[%s1934_s1 + $0x230] sm:$0xff] }
  0x24   : > { %412 = vmatprep.subr.mxu0 %v1284_v2  ;;  %567 = vmatprep.subr.mxu1 %v1284_v2  ;;  %v181_v13 = vld [vmem:[%s1563_s10 + $0x50] sm:$0xff]  ;;  %v183_v14 = vld [vmem:[%s1563_s10 + $0x60] sm:$0xff]  ;;  %v330_v17 = vld [vmem:[%s1934_s1 + $0x228] sm:$0xff] }
  0x25   : > { %413 = vmatpush1.msra.mxu0 %v264_v25  ;;  %568 = vmatpush1.msra.mxu1 %v296_v26  ;;  %v187_v15 = vld [vmem:[%s1563_s10 + $0x80] sm:$0xff]  ;;  %v189_v16 = vld [vmem:[%s1563_s10 + $0x90] sm:$0xff]  ;;  %v186_v18 = vld [vmem:[%s1563_s10 + $0x78] sm:$0xff] }
  0x26   : > { %414 = vmatprep.subr.mxu0 %v1284_v2  ;;  %569 = vmatprep.subr.mxu1 %v1284_v2  ;;  %v188_v19 = vld [vmem:[%s1563_s10 + $0x88] sm:$0xff]  ;;  %v194_v21 = vld [vmem:[%s1563_s10 + $0xb8] sm:$0xff]  ;;  %v329_v22 = vld [vmem:[%s1934_s1 + $0x220] sm:$0xff] }
  0x27   : > { %415 = vmatpush1.msra.mxu0 %v263_v27  ;;  %570 = vmatpush1.msra.mxu1 %v295_v28  ;;  %v192_v20 = vld [vmem:[%s1563_s10 + $0xa8] sm:$0xff]  ;;  %v191_v23 = vld [vmem:[%s1563_s10 + $0xa0] sm:$0xff]  ;;  %v193_v24 = vld [vmem:[%s1563_s10 + $0xb0] sm:$0xff] }
  0x28   : > { %416 = vmatprep.subr.mxu0 %v1284_v2  ;;  %571 = vmatprep.subr.mxu1 %v1284_v2  ;;  %v197_v25 = vld [vmem:[%s1563_s10 + $0xd0] sm:$0xff]  ;;  %v199_v26 = vld [vmem:[%s1563_s10 + $0xe0] sm:$0xff]  ;;  %v328_v27 = vld [vmem:[%s1934_s1 + $0x218] sm:$0xff] }
  0x29   : > { %417 = vmatpush1.msra.mxu0 %v262_v29  ;;  %572 = vmatpush1.msra.mxu1 %v294_v30  ;;  %v196_v28 = vld [vmem:[%s1563_s10 + $0xc8] sm:$0xff]  ;;  %v198_v29 = vld [vmem:[%s1563_s10 + $0xd8] sm:$0xff] }
  0x2a   : > { %418 = vmatprep.subr.mxu0 %v1284_v2  ;;  %573 = vmatprep.subr.mxu1 %v1284_v2  ;;  %v202_v30 = vld [vmem:[%s1563_s10 + $0xf8] sm:$0xff] }
  0x2b   : > { %419 = vmatpush1.msra.mxu0 %v261_v31  ;;  %574 = vmatpush1.msra.mxu1 %v293_v32  ;;  %v204_v31 = vld [vmem:[%s1563_s10 + $0x108] sm:$0xff]  ;;  %v327_v32 = vld [vmem:[%s1934_s1 + $0x210] sm:$0xff] }
  0x2c   : > { %420 = vmatprep.subr.mxu0 %v1284_v2  ;;  %575 = vmatprep.subr.mxu1 %v1284_v2 }
  0x2d   : > { %421 = vmatpush2.msra.mxu0 %v292_v33  ;;  %576 = vmatpush2.msra.mxu1 %v324_v34  ;;  %v201_v33 = vld [vmem:[%s1563_s10 + $0xf0] sm:$0xff]  ;;  %v203_v34 = vld [vmem:[%s1563_s10 + $0x100] sm:$0xff] }
  0x2e   : > { %422 = vmatprep.subr.mxu0 %v1284_v2  ;;  %577 = vmatprep.subr.mxu1 %v1284_v2 }
  0x2f   : > { %423 = vmatpush2.msra.mxu0 %v291_v35  ;;  %578 = vmatpush2.msra.mxu1 %v323_v36  ;;  %v207_v35 = vld [vmem:[%s1563_s10 + $0x120] sm:$0xff]  ;;  %v209_v36 = vld [vmem:[%s1563_s10 + $0x130] sm:$0xff] }
  0x30   : > { %424 = vmatprep.subr.mxu0 %v1284_v2  ;;  %579 = vmatprep.subr.mxu1 %v1284_v2 }
  0x31   : > { %425 = vmatpush2.msra.mxu0 %v290_v37  ;;  %580 = vmatpush2.msra.mxu1 %v322_v38  ;;  %v326_v37 = vld [vmem:[%s1934_s1 + $0x208] sm:$0xff]  ;;  %v206_v38 = vld [vmem:[%s1563_s10 + $0x118] sm:$0xff] }
  0x32   : > { %426 = vmatprep.subr.mxu0 %v1284_v2  ;;  %581 = vmatprep.subr.mxu1 %v1284_v2 }
  0x33   : > { %427 = vmatpush2.msra.mxu0 %v289_v39  ;;  %582 = vmatpush2.msra.mxu1 %v321_v40  ;;  %v208_v39 = vld [vmem:[%s1563_s10 + $0x128] sm:$0xff] }
  0x34   : > { %428 = vmatprep.subr.mxu0 %v1284_v2  ;;  %583 = vmatprep.subr.mxu1 %v1284_v2  ;;  %v212_v40 = vld [vmem:[%s1563_s10 + $0x148] sm:$0xff] }
  0x35   : > { %429 = vmatpush2.msra.mxu0 %v288_v41  ;;  %584 = vmatpush2.msra.mxu1 %v320_v42  ;;  %v214_v41 = vld [vmem:[%s1563_s10 + $0x158] sm:$0xff]  ;;  %v325_v42 = vld [vmem:[%s1934_s1 + $0x200] sm:$0xff] }
  0x36   : > { %430 = vmatprep.subr.mxu0 %v1284_v2  ;;  %585 = vmatprep.subr.mxu1 %v1284_v2 }
  0x37   : > { %431 = vmatpush2.msra.mxu0 %v287_v43  ;;  %586 = vmatpush2.msra.mxu1 %v319_v44  ;;  %v211_v43 = vld [vmem:[%s1563_s10 + $0x140] sm:$0xff]  ;;  %v213_v44 = vld [vmem:[%s1563_s10 + $0x150] sm:$0xff] }
  0x38   : > { %432 = vmatprep.subr.mxu0 %v1284_v2  ;;  %587 = vmatprep.subr.mxu1 %v1284_v2 }
  0x39   : > { %433 = vmatpush2.msra.mxu0 %v286_v45  ;;  %588 = vmatpush2.msra.mxu1 %v318_v46  ;;  %v217_v45 = vld [vmem:[%s1563_s10 + $0x170] sm:$0xff]  ;;  %v219_v46 = vld [vmem:[%s1563_s10 + $0x180] sm:$0xff] }
  0x3a   : > { %434 = vmatprep.subr.mxu0 %v1284_v2  ;;  %589 = vmatprep.subr.mxu1 %v1284_v2 }
  0x3b   : > { %435 = vmatpush2.msra.mxu0 %v285_v47  ;;  %590 = vmatpush2.msra.mxu1 %v317_v48  ;;  %v216_v47 = vld [vmem:[%s1563_s10 + $0x168] sm:$0xff]  ;;  %v218_v48 = vld [vmem:[%s1563_s10 + $0x178] sm:$0xff] }
  0x3c   : > { %436 = vmatprep.subr.mxu0 %v1284_v2  ;;  %591 = vmatprep.subr.mxu1 %v1284_v2 }
  0x3d   : > { %437 = vmatpush2.msra.mxu0 %v284_v49  ;;  %592 = vmatpush2.msra.mxu1 %v316_v50  ;;  %v222_v49 = vld [vmem:[%s1563_s10 + $0x198] sm:$0xff]  ;;  %v224_v50 = vld [vmem:[%s1563_s10 + $0x1a8] sm:$0xff] }
  0x3e   : > { %438 = vmatprep.subr.mxu0 %v1284_v2  ;;  %593 = vmatprep.subr.mxu1 %v1284_v2 }
  0x3f   : > { %439 = vmatpush2.msra.mxu0 %v283_v51  ;;  %594 = vmatpush2.msra.mxu1 %v315_v52  ;;  %v221_v51 = vld [vmem:[%s1563_s10 + $0x190] sm:$0xff]  ;;  %v223_v52 = vld [vmem:[%s1563_s10 + $0x1a0] sm:$0xff] }
  0x40   : > { %440 = vmatprep.subr.mxu0 %v1284_v2  ;;  %595 = vmatprep.subr.mxu1 %v1284_v2 }
  0x41   : > { %441 = vmatpush2.msra.mxu0 %v282_v53  ;;  %596 = vmatpush2.msra.mxu1 %v314_v54  ;;  %v227_v53 = vld [vmem:[%s1563_s10 + $0x1c0] sm:$0xff]  ;;  %v229_v54 = vld [vmem:[%s1563_s10 + $0x1d0] sm:$0xff] }
  0x42   : > { %442 = vmatprep.subr.mxu0 %v1284_v2  ;;  %597 = vmatprep.subr.mxu1 %v1284_v2 }
  0x43   : > { %443 = vmatpush2.msra.mxu0 %v281_v55  ;;  %598 = vmatpush2.msra.mxu1 %v313_v56  ;;  %v226_v55 = vld [vmem:[%s1563_s10 + $0x1b8] sm:$0xff]  ;;  %v228_v56 = vld [vmem:[%s1563_s10 + $0x1c8] sm:$0xff] }
  0x44   : > { %444 = vmatprep.subr.mxu0 %v1284_v2  ;;  %599 = vmatprep.subr.mxu1 %v1284_v2 }
  0x45   : > { %445 = vmatpush2.msra.mxu0 %v280_v57  ;;  %600 = vmatpush2.msra.mxu1 %v312_v58  ;;  %v232_v57 = vld [vmem:[%s1563_s10 + $0x1e8] sm:$0xff]  ;;  %v234_v58 = vld [vmem:[%s1563_s10 + $0x1f8] sm:$0xff] }
  0x46   : > { %446 = vmatprep.subr.mxu0 %v1284_v2  ;;  %601 = vmatprep.subr.mxu1 %v1284_v2 }
  0x47   : > { %447 = vmatpush2.msra.mxu0 %v279_v59  ;;  %602 = vmatpush2.msra.mxu1 %v311_v60  ;;  %v231_v59 = vld [vmem:[%s1563_s10 + $0x1e0] sm:$0xff]  ;;  %v233_v60 = vld [vmem:[%s1563_s10 + $0x1f0] sm:$0xff] }
  0x48   : > { %448 = vmatprep.subr.mxu0 %v1284_v2  ;;  %603 = vmatprep.subr.mxu1 %v1284_v2 }
  0x49   : > { %449 = vmatpush2.msra.mxu0 %v278_v61  ;;  %604 = vmatpush2.msra.mxu1 %v310_v62  ;;  %v237_v61 = vld [vmem:[%s1563_s10 + $0x210] sm:$0xff]  ;;  %v239_v62 = vld [vmem:[%s1563_s10 + $0x220] sm:$0xff] }
  0x4a   : > { %450 = vmatprep.subr.mxu0 %v1284_v2  ;;  %605 = vmatprep.subr.mxu1 %v1284_v2  ;;  %v176_v2 = vld [vmem:[%s1563_s10 + $0x28] sm:$0xff] }
  0x4b   : > { %451 = vmatpush2.msra.mxu0 %v277_v63  ;;  %452 = vmatprep.mubr.f32.mxu0 %v172_v0  ;;  %v236_v63 = vld [vmem:[%s1563_s10 + $0x208] sm:$0xff]  ;;  %v238_v0 = vld [vmem:[%s1563_s10 + $0x218] sm:$0xff] }
  0x4c   : > { %606 = vmatpush2.msra.mxu1 %v309_v1  ;;  %607 = vmatprep.mubr.f32.mxu1 %v174_v3  ;;  %v242_v1 = vld [vmem:[%s1563_s10 + $0x238] sm:$0xff]  ;;  %v244_v3 = vld [vmem:[%s1563_s10 + $0x248] sm:$0xff] }
  0x4d   : > { %453 = vmatmul.mubr.f32.vlgmr.msra.gmra.mxu0 %v171_v4  ;;  %608 = vmatmul.mubr.f32.vlgmr.msra.gmra.mxu1 %v173_v5  ;;  %v241_v4 = vld [vmem:[%s1563_s10 + $0x230] sm:$0xff]  ;;  %v243_v5 = vld [vmem:[%s1563_s10 + $0x240] sm:$0xff] }
  0x4e   : > { %1204 = vmatprep.subr.mxu0 %v332_v6  ;;  %1247 = vmatprep.subr.mxu1 %v332_v6 }
  0x4f   : > { %1205 = vmatpush3.msra.mxu0 %v332_v6  ;;  %1255 = vmatpush3.msra.mxu1 %v332_v6  ;;  %v247_v6 = vld [vmem:[%s1563_s10 + $0x260] sm:$0xff] }
  0x50   : > { %457 = vmatprep.mubr.f32.mxu0 %v177_v7  ;;  %612 = vmatprep.mubr.f32.mxu1 %v179_v8  ;;  %v249_v7 = vld [vmem:[%s1563_s10 + $0x270] sm:$0xff]  ;;  %v246_v8 = vld [vmem:[%s1563_s10 + $0x258] sm:$0xff] }
  0x51   : > { %458 = vmatmul.mubr.f32.gmra.mxu0 %v176_v2  ;;  %613 = vmatmul.mubr.f32.gmra.mxu1 %v178_v9  ;;  %v248_v2 = vld [vmem:[%s1563_s10 + $0x268] sm:$0xff] }
  0x52   : > { %462 = vmatprep.mubr.f32.mxu0 %v182_v10  ;;  %617 = vmatprep.mubr.f32.mxu1 %v184_v11  ;;  %v252_v9 = vld [vmem:[%s1563_s10 + $0x288] sm:$0xff]  ;;  %v254_v10 = vld [vmem:[%s1563_s10 + $0x298] sm:$0xff]  ;;  %v251_v11 = vld [vmem:[%s1563_s10 + $0x280] sm:$0xff] }
  0x53   : > { %1206 = vmatprep.subr.mxu0 %v331_v12  ;;  %1248 = vmatprep.subr.mxu1 %v331_v12 }
  0x54   : > { %1207 = vmatpush3.msra.mxu0 %v331_v12  ;;  %1256 = vmatpush3.msra.mxu1 %v331_v12  ;;  %v253_v12 = vld [vmem:[%s1563_s10 + $0x290] sm:$0xff] }
  0x55   : > { %463 = vmatmul.mubr.f32.gmra.mxu0 %v181_v13  ;;  %618 = vmatmul.mubr.f32.gmra.mxu1 %v183_v14  ;;  %v257_v13 = vld [vmem:[%s1563_s10 + $0x2b0] sm:$0xff]  ;;  %v259_v14 = vld [vmem:[%s1563_s10 + $0x2c0] sm:$0xff] }
  0x56   : > { %467 = vmatprep.mubr.f32.mxu0 %v187_v15  ;;  %622 = vmatprep.mubr.f32.mxu1 %v189_v16  ;;  %v256_v15 = vld [vmem:[%s1563_s10 + $0x2a8] sm:$0xff]  ;;  %v258_v16 = vld [vmem:[%s1563_s10 + $0x2b8] sm:$0xff] }
  0x57   : > { %1208 = vmatprep.subr.mxu0 %v330_v17  ;;  %1249 = vmatprep.subr.mxu1 %v330_v17 }
  0x58   : > { %1209 = vmatpush3.msra.mxu0 %v330_v17  ;;  %1257 = vmatpush3.msra.mxu1 %v330_v17  ;;  %v175_v17 = vld [vmem:[%s1563_s10 + $0x20] sm:$0xff] }
  0x59   : > { %468 = vmatmul.mubr.f32.gmra.mxu0 %v186_v18  ;;  %623 = vmatmul.mubr.f32.gmra.mxu1 %v188_v19  ;;  %v225_v18 = vld [vmem:[%s1563_s10 + $0x1b0] sm:$0xff]  ;;  %v180_v19 = vld [vmem:[%s1563_s10 + $0x48] sm:$0xff] }
  0x5a   : > { %472 = vmatprep.mubr.f32.mxu0 %v192_v20  ;;  %627 = vmatprep.mubr.f32.mxu1 %v194_v21  ;;  %v230_v20 = vld [vmem:[%s1563_s10 + $0x1d8] sm:$0xff]  ;;  %v185_v21 = vld [vmem:[%s1563_s10 + $0x70] sm:$0xff] }
  0x5b   : > { %1210 = vmatprep.subr.mxu0 %v329_v22  ;;  %1250 = vmatprep.subr.mxu1 %v329_v22 }
  0x5c   : > { %1211 = vmatpush3.msra.mxu0 %v329_v22  ;;  %1258 = vmatpush3.msra.mxu1 %v329_v22  ;;  %v235_v22 = vld [vmem:[%s1563_s10 + $0x200] sm:$0xff] }
  0x5d   : > { %473 = vmatmul.mubr.f32.gmra.mxu0 %v191_v23  ;;  %628 = vmatmul.mubr.f32.gmra.mxu1 %v193_v24  ;;  %v190_v23 = vld [vmem:[%s1563_s10 + $0x98] sm:$0xff]  ;;  %v240_v24 = vld [vmem:[%s1563_s10 + $0x228] sm:$0xff] }
  0x5e   : > { %477 = vmatprep.mubr.f32.mxu0 %v197_v25  ;;  %632 = vmatprep.mubr.f32.mxu1 %v199_v26  ;;  %v195_v25 = vld [vmem:[%s1563_s10 + $0xc0] sm:$0xff]  ;;  %v245_v26 = vld [vmem:[%s1563_s10 + $0x250] sm:$0xff] }
  0x5f   : > { %1212 = vmatprep.subr.mxu0 %v328_v27  ;;  %1251 = vmatprep.subr.mxu1 %v328_v27 }
  0x60   : > { %1213 = vmatpush3.msra.mxu0 %v328_v27  ;;  %1259 = vmatpush3.msra.mxu1 %v328_v27  ;;  %v200_v27 = vld [vmem:[%s1563_s10 + $0xe8] sm:$0xff] }
  0x61   : > { %478 = vmatmul.mubr.f32.gmra.mxu0 %v196_v28  ;;  %633 = vmatmul.mubr.f32.gmra.mxu1 %v198_v29  ;;  %v250_v28 = vld [vmem:[%s1563_s10 + $0x278] sm:$0xff]  ;;  %v205_v29 = vld [vmem:[%s1563_s10 + $0x110] sm:$0xff] }
  0x62   : > { %482 = vmatprep.mubr.f32.mxu0 %v202_v30  ;;  %637 = vmatprep.mubr.f32.mxu1 %v204_v31  ;;  %v255_v30 = vld [vmem:[%s1563_s10 + $0x2a0] sm:$0xff]  ;;  %v210_v31 = vld [vmem:[%s1563_s10 + $0x138] sm:$0xff] }
  0x63   : > { %1214 = vmatprep.subr.mxu0 %v327_v32  ;;  %1252 = vmatprep.subr.mxu1 %v327_v32 }
  0x64   : > { %1215 = vmatpush3.msra.mxu0 %v327_v32  ;;  %1260 = vmatpush3.msra.mxu1 %v327_v32  ;;  %v260_v32 = vld [vmem:[%s1563_s10 + $0x2c8] sm:$0xff] }
  0x65   : > { %483 = vmatmul.mubr.f32.gmra.mxu0 %v201_v33  ;;  %638 = vmatmul.mubr.f32.gmra.mxu1 %v203_v34  ;;  %v215_v33 = vld [vmem:[%s1563_s10 + $0x160] sm:$0xff]  ;;  %v220_v34 = vld [vmem:[%s1563_s10 + $0x188] sm:$0xff]  ;;  %s1285_s10 = smov 96  }
  0x66   : > { %487 = vmatprep.mubr.f32.mxu0 %v207_v35  ;;  %642 = vmatprep.mubr.f32.mxu1 %v209_v36 }
  0x67   : > { %1216 = vmatprep.subr.mxu0 %v326_v37  ;;  %1253 = vmatprep.subr.mxu1 %v326_v37 }
  0x68   : > { %1217 = vmatpush3.msra.mxu0 %v326_v37  ;;  %1261 = vmatpush3.msra.mxu1 %v326_v37 }
  0x69   : > { %488 = vmatmul.mubr.f32.gmra.mxu0 %v206_v38  ;;  %643 = vmatmul.mubr.f32.gmra.mxu1 %v208_v39 }
  0x6a   : > { %492 = vmatprep.mubr.f32.mxu0 %v212_v40  ;;  %647 = vmatprep.mubr.f32.mxu1 %v214_v41 }
  0x6b   : > { %1218 = vmatprep.subr.mxu0 %v325_v42  ;;  %1254 = vmatprep.subr.mxu1 %v325_v42 }
  0x6c   : > { %1219 = vmatpush3.msra.mxu0 %v325_v42  ;;  %1262 = vmatpush3.msra.mxu1 %v325_v42 }
  0x6d   : > { %493 = vmatmul.mubr.f32.gmra.mxu0 %v211_v43  ;;  %648 = vmatmul.mubr.f32.gmra.mxu1 %v213_v44 }
  0x6e   : > { %497 = vmatprep.mubr.f32.mxu0 %v217_v45  ;;  %652 = vmatprep.mubr.f32.mxu1 %v219_v46 }
  0x71   : > { %498 = vmatmul.mubr.f32.gmra.mxu0 %v216_v47  ;;  %653 = vmatmul.mubr.f32.gmra.mxu1 %v218_v48 }
  0x72   : > { %502 = vmatprep.mubr.f32.mxu0 %v222_v49  ;;  %657 = vmatprep.mubr.f32.mxu1 %v224_v50 }
  0x75   : > { %503 = vmatmul.mubr.f32.gmra.mxu0 %v221_v51  ;;  %658 = vmatmul.mubr.f32.gmra.mxu1 %v223_v52 }
  0x76   : > { %507 = vmatprep.mubr.f32.mxu0 %v227_v53  ;;  %662 = vmatprep.mubr.f32.mxu1 %v229_v54 }
  0x79   : > { %508 = vmatmul.mubr.f32.gmra.mxu0 %v226_v55  ;;  %663 = vmatmul.mubr.f32.gmra.mxu1 %v228_v56 }
  0x7a   : > { %512 = vmatprep.mubr.f32.mxu0 %v232_v57  ;;  %667 = vmatprep.mubr.f32.mxu1 %v234_v58 }
  0x7d   : > { %513 = vmatmul.mubr.f32.gmra.mxu0 %v231_v59  ;;  %668 = vmatmul.mubr.f32.gmra.mxu1 %v233_v60 }
  0x7e   : > { %517 = vmatprep.mubr.f32.mxu0 %v237_v61  ;;  %672 = vmatprep.mubr.f32.mxu1 %v239_v62 }
  0x81   : > { %518 = vmatmul.mubr.f32.gmra.mxu0 %v236_v63  ;;  %673 = vmatmul.mubr.f32.gmra.mxu1 %v238_v0 }
  0x82   : > { %522 = vmatprep.mubr.f32.mxu0 %v242_v1  ;;  %677 = vmatprep.mubr.f32.mxu1 %v244_v3 }
  0x85   : > { %523 = vmatmul.mubr.f32.gmra.mxu0 %v241_v4  ;;  %678 = vmatmul.mubr.f32.gmra.mxu1 %v243_v5 }
  0x86   : > { %527 = vmatprep.mubr.f32.mxu0 %v247_v6  ;;  %682 = vmatprep.mubr.f32.mxu1 %v249_v7 }
  0x89   : > { %528 = vmatmul.mubr.f32.gmra.mxu0 %v246_v8  ;;  %683 = vmatmul.mubr.f32.gmra.mxu1 %v248_v2 }
  0x8a   : > { %532 = vmatprep.mubr.f32.mxu0 %v252_v9  ;;  %687 = vmatprep.mubr.f32.mxu1 %v254_v10 }
  0x8d   : > { %533 = vmatmul.mubr.f32.gmra.mxu0 %v251_v11  ;;  %688 = vmatmul.mubr.f32.gmra.mxu1 %v253_v12 }
  0x8e   : > { %537 = vmatprep.mubr.f32.mxu0 %v257_v13  ;;  %692 = vmatprep.mubr.f32.mxu1 %v259_v14 }
  0x91   : > { %538 = vmatmul.mubr.f32.gmra.mxu0 %v256_v15  ;;  %693 = vmatmul.mubr.f32.gmra.mxu1 %v258_v16 }
  0x92   : > { %1220 = vmatprep.mubr.msk.f32.mxu0 %vm333_vm0, %v175_v17  ;;  %1235 = vmatprep.mubr.msk.f32.mxu1 %vm333_vm0, %v225_v18 }
  0x95   : > { %1221 = vmatmul.mubr.msk.f32.vlgmr.msra.gmra.mxu0 %vm333_vm0, %v180_v19  ;;  %1236 = vmatmul.mubr.msk.f32.vlgmr.msra.gmra.mxu1 %vm333_vm0, %v230_v20 }
  0x96   : > { %1223 = vmatprep.mubr.msk.f32.mxu0 %vm333_vm0, %v185_v21  ;;  %1238 = vmatprep.mubr.msk.f32.mxu1 %vm333_vm0, %v235_v22 }
  0x99   : > { %1224 = vmatmul.mubr.msk.f32.gmra.mxu0 %vm333_vm0, %v190_v23  ;;  %1239 = vmatmul.mubr.msk.f32.gmra.mxu1 %vm333_vm0, %v240_v24 }
  0x9a   : > { %1226 = vmatprep.mubr.msk.f32.mxu0 %vm333_vm0, %v195_v25  ;;  %1241 = vmatprep.mubr.msk.f32.mxu1 %vm333_vm0, %v245_v26 }
  0x9d   : > { %1227 = vmatmul.mubr.msk.f32.gmra.mxu0 %vm333_vm0, %v200_v27  ;;  %1242 = vmatmul.mubr.msk.f32.gmra.mxu1 %vm333_vm0, %v250_v28 }
  0x9e   : > { %1229 = vmatprep.mubr.msk.f32.mxu0 %vm333_vm0, %v205_v29  ;;  %1244 = vmatprep.mubr.msk.f32.mxu1 %vm333_vm0, %v255_v30 }
  0xa1   : > { %1230 = vmatmul.mubr.msk.f32.gmra.mxu0 %vm333_vm0, %v210_v31  ;;  %1245 = vmatmul.mubr.msk.f32.gmra.mxu1 %vm333_vm0, %v260_v32 }
  0xa2   : > { %1232 = vmatprep.mubr.msk.f32.mxu0 %vm333_vm0, %v215_v33 }
  0xa5   : > { %1233 = vmatmul.mubr.msk.f32.gmra.mxu0 %vm333_vm0, %v220_v34 }
 0x10d   : > { %v454_v35 = vpop.f32.mrf.mxu0  ;;  %v609_v36 = vpop.f32.mrf.mxu1 }
 0x10e   : > { %v1715_v37 = vadd.f32 %v609_v36, %v454_v35 }
 0x10f   : > { %v456_v38 = vpop.f32.mrf.mxu0  ;;  %v611_v39 = vpop.f32.mrf.mxu1 }
 0x111   : > { %v459_v40 = vpop.f32.mrf.mxu0  ;;  %v614_v41 = vpop.f32.mrf.mxu1 }
 0x112   : > { %v1717_v42 = vadd.f32 %v614_v41, %v459_v40 }
 0x113   : > { %v461_v43 = vpop.f32.mrf.mxu0  ;;  %v616_v44 = vpop.f32.mrf.mxu1 }
 0x115   : > { %v464_v45 = vpop.f32.mrf.mxu0  ;;  %v619_v46 = vpop.f32.mrf.mxu1 }
 0x116   : > { %v1719_v47 = vadd.f32 %v619_v46, %v464_v45 }
 0x117   : > { %v466_v48 = vpop.f32.mrf.mxu0  ;;  %v621_v49 = vpop.f32.mrf.mxu1 }
 0x119   : > { %v1721_v50 = vpop.f32.mrf.mxu0  ;;  %v1723_v51 = vpop.f32.mrf.mxu1 }
 0x11b   : > { %v471_v52 = vpop.f32.mrf.mxu0  ;;  %v626_v53 = vpop.f32.mrf.mxu1 }
 0x11d   : > { %v474_v54 = vpop.f32.mrf.mxu0  ;;  %v629_v55 = vpop.f32.mrf.mxu1 }
 0x11e   : > { %v1725_v56 = vadd.f32 %v629_v55, %v474_v54 }
 0x11f   : > { %v476_v57 = vpop.f32.mrf.mxu0  ;;  %v631_v58 = vpop.f32.mrf.mxu1 }
 0x121   : > { %v479_v59 = vpop.f32.mrf.mxu0  ;;  %v634_v60 = vpop.f32.mrf.mxu1 }
 0x122   : > { %v1727_v61 = vadd.f32 %v634_v60, %v479_v59 }
 0x123   : > { %v481_v62 = vpop.f32.mrf.mxu0  ;;  %v636_v63 = vpop.f32.mrf.mxu1 }
 0x125   : > { %v484_v0 = vpop.f32.mrf.mxu0  ;;  %v639_v1 = vpop.f32.mrf.mxu1 }
 0x126   : > { %v1729_v3 = vadd.f32 %v639_v1, %v484_v0  ;;  %v625_v1 = vadd.f32 %v1723_v51, %v1721_v50 }
 0x127   : > { %v486_v4 = vpop.f32.mrf.mxu0  ;;  %v641_v5 = vpop.f32.mrf.mxu1 }
 0x129   : > { %v489_v6 = vpop.f32.mrf.mxu0  ;;  %v644_v7 = vpop.f32.mrf.mxu1 }
 0x12a   : > { %v1731_v8 = vadd.f32 %v644_v7, %v489_v6 }
 0x12b   : > { %v491_v2 = vpop.f32.mrf.mxu0  ;;  %v646_v9 = vpop.f32.mrf.mxu1 }
 0x12d   : > { %v494_v10 = vpop.f32.mrf.mxu0  ;;  %v649_v11 = vpop.f32.mrf.mxu1 }
 0x12e   : > { %v1733_v12 = vadd.f32 %v649_v11, %v494_v10 }
 0x12f   : > { %v496_v13 = vpop.f32.mrf.mxu0  ;;  %v651_v14 = vpop.f32.mrf.mxu1 }
 0x131   : > { %v1735_v15 = vpop.f32.mrf.mxu0  ;;  %v1737_v16 = vpop.f32.mrf.mxu1 }
 0x133   : > { %v501_v17 = vpop.f32.mrf.mxu0  ;;  %v656_v18 = vpop.f32.mrf.mxu1 }
 0x135   : > { %v504_v19 = vpop.f32.mrf.mxu0  ;;  %v659_v20 = vpop.f32.mrf.mxu1 }
 0x136   : > { %v660_v2 = vadd.f32 %v659_v20, %v504_v19 }
 0x137   : > { %v506_v21 = vpop.f32.mrf.mxu0  ;;  %v661_v22 = vpop.f32.mrf.mxu1 }
 0x139   : > { %v509_v23 = vpop.f32.mrf.mxu0  ;;  %v664_v24 = vpop.f32.mrf.mxu1 }
 0x13a   : > { %v665_v57 = vadd.f32 %v664_v24, %v509_v23 }
 0x13b   : > { %v511_v25 = vpop.f32.mrf.mxu0  ;;  %v666_v26 = vpop.f32.mrf.mxu1 }
 0x13d   : > { %v514_v27 = vpop.f32.mrf.mxu0  ;;  %v669_v28 = vpop.f32.mrf.mxu1 }
 0x13e   : > { %v670_v14 = vadd.f32 %v669_v28, %v514_v27 }
 0x13f   : > { %v516_v29 = vpop.f32.mrf.mxu0  ;;  %v671_v30 = vpop.f32.mrf.mxu1 }
 0x140   : > { %v655_v30 = vadd.f32 %v1737_v16, %v1735_v15 }
 0x141   : > { %v519_v31 = vpop.f32.mrf.mxu0  ;;  %v674_v32 = vpop.f32.mrf.mxu1 }
 0x142   : > { %v675_v9 = vadd.f32 %v674_v32, %v519_v31 }
 0x143   : > { %v521_v33 = vpop.f32.mrf.mxu0  ;;  %v676_v34 = vpop.f32.mrf.mxu1 }
 0x145   : > { %v524_v35 = vpop.f32.mrf.mxu0  ;;  %v679_v36 = vpop.f32.mrf.mxu1 }
 0x146   : > { %v680_v24 = vadd.f32 %v679_v36, %v524_v35 }
 0x147   : > { %v526_v38 = vpop.f32.mrf.mxu0  ;;  %v681_v39 = vpop.f32.mrf.mxu1 }
 0x149   : > { %v529_v40 = vpop.f32.mrf.mxu0  ;;  %v684_v41 = vpop.f32.mrf.mxu1 }
 0x14a   : > { %v685_v25 = vadd.f32 %v684_v41, %v529_v40 }
 0x14b   : > { %v531_v43 = vpop.f32.mrf.mxu0  ;;  %v686_v44 = vpop.f32.mrf.mxu1 }
 0x14d   : > { %v1739_v45 = vpop.f32.mrf.mxu0  ;;  %v1741_v46 = vpop.f32.mrf.mxu1 }
 0x14e   : > { %v690_v34 = vadd.f32 %v1741_v46, %v1739_v45 }
 0x14f   : > { %v536_v48 = vpop.f32.mrf.mxu0  ;;  %v691_v49 = vpop.f32.mrf.mxu1 }
 0x151   : > { %v539_v52 = vpop.f32.mrf.mxu0  ;;  %v694_v53 = vpop.f32.mrf.mxu1 }
 0x152   : > { %v695_v35 = vadd.f32 %v694_v53, %v539_v52 }
 0x153   : > { %v541_v54 = vpop.f32.mrf.mxu0  ;;  %v696_v55 = vpop.f32.mrf.mxu1 }
 0x155   : > { %v1222_v58 = vpop.f32.mrf.mxu0  ;;  %v1237_v59 = vpop.f32.mrf.mxu1 }
 0x156   : > { %v1744_v60 = vadd.f32 %v1222_v58, %v1717_v42  ;;  %v1746_v62 = vadd.f32 %v1237_v59, %v665_v57 }
 0x157   : > { %v764_v63 = vpop.f32.mrf.mxu0  ;;  %v814_v0 = vpop.f32.mrf.mxu1 }
 0x158   : > { %893 = vrot.lane.b32.xlu1 %v1746_v62, %s1285_s10  ;;  %873 = vrot.lane.b32.xlu0 %v1744_v60, %s1285_s10  ;;  %v765_v5 = vadd.f32 %v764_v63, %v1715_v37  ;;  %v815_v51 = vadd.f32 %v814_v0, %v660_v2 }
 0x159   : > { %v1225_v4 = vpop.f32.mrf.mxu0  ;;  %v1240_v42 = vpop.f32.mrf.mxu1 }
 0x15a   : > { %v1755_v6 = vadd.f32 %v1225_v4, %v625_v1  ;;  %v830_v10 = vadd.f32 %v1240_v42, %v675_v9 }
 0x15b   : > { %v774_v7 = vpop.f32.mrf.mxu0  ;;  %v824_v11 = vpop.f32.mrf.mxu1 }
 0x15c   : > { %877 = vrot.lane.b32.xlu1 %v1755_v6, %s1285_s10  ;;  %871 = vrot.lane.b32.xlu0 %v765_v5, %s1285_s10  ;;  %v775_v37 = vadd.f32 %v774_v7, %v1719_v47  ;;  %v825_v17 = vadd.f32 %v824_v11, %v670_v14  ;;  %v1854_v11 = vld [vmem:[%s1935_s2] ss:$0 sm:$0xff] }
 0x15d   : > { %v1228_v50 = vpop.f32.mrf.mxu0  ;;  %v1243_v18 = vpop.f32.mrf.mxu1 }
 0x15e   : > { %v790_v20 = vadd.f32 %v1228_v50, %v1727_v61  ;;  %v840_v47 = vadd.f32 %v1243_v18, %v685_v25 }
 0x15f   : > { %v784_v13 = vpop.f32.mrf.mxu0  ;;  %v834_v22 = vpop.f32.mrf.mxu1 }
 0x160   : > { %897 = vrot.lane.b32.xlu1 %v830_v10, %s1285_s10  ;;  %891 = vrot.lane.b32.xlu0 %v815_v51, %s1285_s10  ;;  %v785_v21 = vadd.f32 %v784_v13, %v1725_v56  ;;  %v835_v26 = vadd.f32 %v834_v22, %v680_v24 }
 0x161   : > { %v1231_v19 = vpop.f32.mrf.mxu0  ;;  %v1246_v56 = vpop.f32.mrf.mxu1 }
 0x162   : > { %v800_v28 = vadd.f32 %v1231_v19, %v1731_v8 }
 0x163   : > { %v794_v23 = vpop.f32.mrf.mxu0  ;;  %v844_v33 = vpop.f32.mrf.mxu1 }
 0x164   : > { %875 = vrot.lane.b32.xlu1 %v775_v37, %s1285_s10  ;;  %895 = vrot.lane.b32.xlu0 %v825_v17, %s1285_s10  ;;  %v795_v61 = vadd.f32 %v794_v23, %v1729_v3  ;;  %v850_v3 = vadd.f32 %v1246_v56, %v695_v35  ;;  %v845_v8 = vadd.f32 %v844_v33, %v690_v34 }
 0x165   : > { %v1234_v27 = vpop.f32.mrf.mxu0 }
 0x166   : > { %v810_v31 = vadd.f32 %v1234_v27, %v655_v30 }
 0x167   : > { %v804_v29 = vpop.f32.mrf.mxu0 }
 0x168   : > { %881 = vrot.lane.b32.xlu1 %v790_v20, %s1285_s10  ;;  %879 = vrot.lane.b32.xlu0 %v785_v21, %s1285_s10  ;;  %v805_v32 = vadd.f32 %v804_v29, %v1733_v12 }
 0x16c   : > { %901 = vrot.lane.b32.xlu1 %v840_v47, %s1285_s10  ;;  %899 = vrot.lane.b32.xlu0 %v835_v26, %s1285_s10 }
 0x170   : > { %885 = vrot.lane.b32.xlu1 %v800_v28, %s1285_s10  ;;  %883 = vrot.lane.b32.xlu0 %v795_v61, %s1285_s10 }
 0x174   : > { %889 = vrot.lane.b32.xlu1 %v810_v31, %s1285_s10  ;;  %887 = vrot.lane.b32.xlu0 %v805_v32, %s1285_s10 }
 0x178   : > { %905 = vrot.lane.b32.xlu1 %v850_v3, %s1285_s10  ;;  %903 = vrot.lane.b32.xlu0 %v845_v8, %s1285_s10 }
 0x1ca   : > { %v894_v15 = vpop.permute.xlu1 %893  ;;  %v874_v16 = vpop.permute.xlu0 %873 }
 0x1cb   : > { %v926_v36 = vmax.f32 %v1744_v60, %v874_v16  ;;  %v936_v39 = vmax.f32 %v1746_v62, %v894_v15 }
 0x1cd   : > { %963 = vrot.lane.b32.xlu1 %v926_v36, %s1286_s11 }
 0x1ce   : > { %v878_v12 = vpop.permute.xlu1 %877  ;;  %v872_v38 = vpop.permute.xlu0 %871 }
 0x1cf   : > { %v925_v40 = vmax.f32 %v765_v5, %v872_v38  ;;  %v1790_v44 = vmax.f32 %v1755_v6, %v878_v12 }
 0x1d1   : > { %983 = vrot.lane.b32.xlu1 %v936_v39, %s1286_s11  ;;  %961 = vrot.lane.b32.xlu0 %v925_v40, %s1286_s11 }
 0x1d2   : > { %v898_v41 = vpop.permute.xlu1 %897  ;;  %v892_v43 = vpop.permute.xlu0 %891 }
 0x1d3   : > { %v1792_v45 = vmax.f32 %v815_v51, %v892_v43  ;;  %v1798_v49 = vmax.f32 %v830_v10, %v898_v41 }
 0x1d5   : > { %967 = vrot.lane.b32.xlu1 %v1790_v44, %s1286_s11  ;;  %981 = vrot.lane.b32.xlu0 %v1792_v45, %s1286_s11 }
 0x1d6   : > { %v876_v46 = vpop.permute.xlu1 %875  ;;  %v896_v48 = vpop.permute.xlu0 %895 }
 0x1d7   : > { %v1800_v52 = vmax.f32 %v775_v37, %v876_v46  ;;  %v1806_v55 = vmax.f32 %v825_v17, %v896_v48 }
 0x1d9   : > { %987 = vrot.lane.b32.xlu1 %v1798_v49, %s1286_s11  ;;  %965 = vrot.lane.b32.xlu0 %v1800_v52, %s1286_s11 }
 0x1da   : > { %v882_v53 = vpop.permute.xlu1 %881  ;;  %v880_v54 = vpop.permute.xlu0 %879 }
 0x1db   : > { %v1808_v57 = vmax.f32 %v790_v20, %v882_v53  ;;  %v1814_v60 = vmax.f32 %v785_v21, %v880_v54 }
 0x1dd   : > { %971 = vrot.lane.b32.xlu1 %v1808_v57, %s1286_s11  ;;  %985 = vrot.lane.b32.xlu0 %v1806_v55, %s1286_s11 }
 0x1de   : > { %v902_v58 = vpop.permute.xlu1 %901  ;;  %v900_v59 = vpop.permute.xlu0 %899 }
 0x1df   : > { %v1816_v62 = vmax.f32 %v840_v47, %v902_v58  ;;  %v1822_v1 = vmax.f32 %v835_v26, %v900_v59 }
 0x1e1   : > { %991 = vrot.lane.b32.xlu1 %v1816_v62, %s1286_s11  ;;  %969 = vrot.lane.b32.xlu0 %v1814_v60, %s1286_s11 }
 0x1e2   : > { %v886_v63 = vpop.permute.xlu1 %885  ;;  %v884_v0 = vpop.permute.xlu0 %883 }
 0x1e3   : > { %v1824_v4 = vmax.f32 %v800_v28, %v886_v63  ;;  %v1830_v42 = vmax.f32 %v795_v61, %v884_v0 }
 0x1e5   : > { %975 = vrot.lane.b32.xlu1 %v1824_v4, %s1286_s11  ;;  %989 = vrot.lane.b32.xlu0 %v1822_v1, %s1286_s11 }
 0x1e6   : > { %v890_v5 = vpop.permute.xlu1 %889  ;;  %v888_v6 = vpop.permute.xlu0 %887 }
 0x1e7   : > { %v1832_v7 = vmax.f32 %v810_v31, %v890_v5  ;;  %v1838_v9 = vmax.f32 %v805_v32, %v888_v6 }
 0x1e9   : > { %979 = vrot.lane.b32.xlu1 %v1832_v7, %s1286_s11  ;;  %973 = vrot.lane.b32.xlu0 %v1830_v42, %s1286_s11 }
 0x1ea   : > { %v906_v2 = vpop.permute.xlu1 %905  ;;  %v904_v51 = vpop.permute.xlu0 %903 }
 0x1eb   : > { %v1840_v50 = vmax.f32 %v850_v3, %v906_v2  ;;  %v1846_v10 = vmax.f32 %v845_v8, %v904_v51 }
 0x1ed   : > { %995 = vrot.lane.b32.xlu1 %v1840_v50, %s1286_s11  ;;  %977 = vrot.lane.b32.xlu0 %v1838_v9, %s1286_s11 }
 0x1f1   : > { %993 = vrot.lane.b32.xlu0 %v1846_v10, %s1286_s11 }
 0x23f   : > { %v964_v13 = vpop.permute.xlu1 %963 }
 0x240   : > { %v1016_v14 = vmax.f32 %v926_v36, %v964_v13 }
 0x242   : > { %v1041_v37 = vadd.f32 %v1854_v11, %v1016_v14 }
 0x243   : > { %v984_v17 = vpop.permute.xlu1 %983  ;;  %v962_v18 = vpop.permute.xlu0 %961 }
 0x244   : > { %v1059_v19 = vmax.f32 %v1041_v37, 0.0  ;;  %v1026_v20 = vmax.f32 %v936_v39, %v984_v17  ;;  %v1015_v21 = vmax.f32 %v925_v40, %v962_v18 }
 0x246   : > { %1078 = vst.msk [vmem:[%s1860_s19 + $0x8] sm:$0xff] %vm1076_vm1, %v1059_v19  ;;  %v1051_v22 = vadd.f32 %v1854_v11, %v1026_v20  ;;  %v1040_v23 = vadd.f32 %v1854_v11, %v1015_v21 }
 0x247   : > { %v968_v24 = vpop.permute.xlu1 %967  ;;  %v982_v25 = vpop.permute.xlu0 %981 }
 0x248   : > { %v1069_v47 = vmax.f32 %v1051_v22, 0.0  ;;  %v1058_v26 = vmax.f32 %v1040_v23, 0.0  ;;  %v1018_v27 = vmax.f32 %v1790_v44, %v968_v24  ;;  %v1025_v28 = vmax.f32 %v1792_v45, %v982_v25 }
 0x24a   : > { %1088 = vst.msk [vmem:[%s1860_s19 + $0x58] sm:$0xff] %vm1076_vm1, %v1069_v47  ;;  %1077 = vst.msk [vmem:[%s1860_s19] sm:$0xff] %vm1076_vm1, %v1058_v26  ;;  %v1043_v61 = vadd.f32 %v1854_v11, %v1018_v27  ;;  %v1050_v56 = vadd.f32 %v1854_v11, %v1025_v28 }
 0x24b   : > { %v988_v29 = vpop.permute.xlu1 %987  ;;  %v966_v30 = vpop.permute.xlu0 %965 }
 0x24c   : > { %v1061_v31 = vmax.f32 %v1043_v61, 0.0  ;;  %v1068_v32 = vmax.f32 %v1050_v56, 0.0  ;;  %v1028_v33 = vmax.f32 %v1798_v49, %v988_v29  ;;  %v1017_v34 = vmax.f32 %v1800_v52, %v966_v30 }
 0x24e   : > { %1080 = vst.msk [vmem:[%s1860_s19 + $0x18] sm:$0xff] %vm1076_vm1, %v1061_v31  ;;  %1087 = vst.msk [vmem:[%s1860_s19 + $0x50] sm:$0xff] %vm1076_vm1, %v1068_v32  ;;  %v1053_v35 = vadd.f32 %v1854_v11, %v1028_v33  ;;  %v1042_v3 = vadd.f32 %v1854_v11, %v1017_v34 }
 0x24f   : > { %v972_v8 = vpop.permute.xlu1 %971  ;;  %v986_v15 = vpop.permute.xlu0 %985 }
 0x250   : > { %v1071_v16 = vmax.f32 %v1053_v35, 0.0  ;;  %v1060_v36 = vmax.f32 %v1042_v3, 0.0  ;;  %v1020_v12 = vmax.f32 %v1808_v57, %v972_v8  ;;  %v1027_v38 = vmax.f32 %v1806_v55, %v986_v15 }
 0x252   : > { %1090 = vst.msk [vmem:[%s1860_s19 + $0x68] sm:$0xff] %vm1076_vm1, %v1071_v16  ;;  %1079 = vst.msk [vmem:[%s1860_s19 + $0x10] sm:$0xff] %vm1076_vm1, %v1060_v36  ;;  %v1045_v39 = vadd.f32 %v1854_v11, %v1020_v12  ;;  %v1052_v40 = vadd.f32 %v1854_v11, %v1027_v38 }
 0x253   : > { %v992_v41 = vpop.permute.xlu1 %991  ;;  %v970_v43 = vpop.permute.xlu0 %969 }
 0x254   : > { %v1063_v44 = vmax.f32 %v1045_v39, 0.0  ;;  %v1070_v45 = vmax.f32 %v1052_v40, 0.0  ;;  %v1030_v46 = vmax.f32 %v1816_v62, %v992_v41  ;;  %v1019_v48 = vmax.f32 %v1814_v60, %v970_v43 }
 0x256   : > { %1082 = vst.msk [vmem:[%s1860_s19 + $0x28] sm:$0xff] %vm1076_vm1, %v1063_v44  ;;  %1089 = vst.msk [vmem:[%s1860_s19 + $0x60] sm:$0xff] %vm1076_vm1, %v1070_v45  ;;  %v1055_v49 = vadd.f32 %v1854_v11, %v1030_v46  ;;  %v1044_v52 = vadd.f32 %v1854_v11, %v1019_v48 }
 0x257   : > { %v976_v53 = vpop.permute.xlu1 %975  ;;  %v990_v54 = vpop.permute.xlu0 %989 }
 0x258   : > { %v1073_v55 = vmax.f32 %v1055_v49, 0.0  ;;  %v1062_v57 = vmax.f32 %v1044_v52, 0.0  ;;  %v1022_v58 = vmax.f32 %v1824_v4, %v976_v53  ;;  %v1029_v59 = vmax.f32 %v1822_v1, %v990_v54 }
 0x25a   : > { %1092 = vst.msk [vmem:[%s1860_s19 + $0x78] sm:$0xff] %vm1076_vm1, %v1073_v55  ;;  %1081 = vst.msk [vmem:[%s1860_s19 + $0x20] sm:$0xff] %vm1076_vm1, %v1062_v57  ;;  %v1047_v60 = vadd.f32 %v1854_v11, %v1022_v58  ;;  %v1054_v62 = vadd.f32 %v1854_v11, %v1029_v59 }
 0x25b   : > { %v980_v63 = vpop.permute.xlu1 %979  ;;  %v974_v0 = vpop.permute.xlu0 %973 }
 0x25c   : > { %v1065_v5 = vmax.f32 %v1047_v60, 0.0  ;;  %v1072_v6 = vmax.f32 %v1054_v62, 0.0  ;;  %v1024_v2 = vmax.f32 %v1832_v7, %v980_v63  ;;  %v1021_v4 = vmax.f32 %v1830_v42, %v974_v0 }
 0x25e   : > { %1084 = vst.msk [vmem:[%s1860_s19 + $0x38] sm:$0xff] %vm1076_vm1, %v1065_v5  ;;  %1091 = vst.msk [vmem:[%s1860_s19 + $0x70] sm:$0xff] %vm1076_vm1, %v1072_v6  ;;  %v1049_v1 = vadd.f32 %v1854_v11, %v1024_v2  ;;  %v1046_v51 = vadd.f32 %v1854_v11, %v1021_v4 }
 0x25f   : > { %v996_v13 = vpop.permute.xlu1 %995  ;;  %v978_v14 = vpop.permute.xlu0 %977 }
 0x260   : > { %v1067_v37 = vmax.f32 %v1049_v1, 0.0  ;;  %v1064_v17 = vmax.f32 %v1046_v51, 0.0  ;;  %v1032_v18 = vmax.f32 %v1840_v50, %v996_v13  ;;  %v1023_v7 = vmax.f32 %v1838_v9, %v978_v14 }
 0x262   : > { %1086 = vst.msk [vmem:[%s1860_s19 + $0x48] sm:$0xff] %vm1076_vm1, %v1067_v37  ;;  %1083 = vst.msk [vmem:[%s1860_s19 + $0x30] sm:$0xff] %vm1076_vm1, %v1064_v17  ;;  %v1057_v42 = vadd.f32 %v1854_v11, %v1032_v18  ;;  %v1048_v19 = vadd.f32 %v1854_v11, %v1023_v7 }
 0x263   : > { %v994_v20 = vpop.permute.xlu0 %993 }
 0x264   : > { %v1075_v21 = vmax.f32 %v1057_v42, 0.0  ;;  %v1066_v22 = vmax.f32 %v1048_v19, 0.0  ;;  %v1031_v23 = vmax.f32 %v1846_v10, %v994_v20 }
 0x266   : > { %1094 = vst.msk [vmem:[%s1860_s19 + $0x88] sm:$0xff] %vm1076_vm1, %v1075_v21  ;;  %1085 = vst.msk [vmem:[%s1860_s19 + $0x40] sm:$0xff] %vm1076_vm1, %v1066_v22  ;;  %v1056_v50 = vadd.f32 %v1854_v11, %v1031_v23 }
 0x268   : > { %v1074_v9 = vmax.f32 %v1056_v50, 0.0 }
 0x26a   : > { %1093 = vst.msk [vmem:[%s1860_s19 + $0x80] sm:$0xff] %vm1076_vm1, %v1074_v9 }
 0x26b PF: > { %s13_s12 = sadd.s32 1, %s1282_s12  }
 0x26c   : > { %p10_p4 = scmp.ge.s32.totalorder %s13_s12, 4  }
 0x26e   :  { %12 = sbr.rel (!%p10_p4) target bundleno = 1 (0x1), region = 62 }

// kernel: cnn_forward.5
= control target key start
LH: loop header
LB: loop body
LE: loop exit
PB: predicated region body
PF: predicated region fallthrough
CT: control target
= control target key end

     0   :  { %v2761_v30 = vmov 1983009808   ;;  %v620_v32 = vlaneseq  ;;  %s4567_s0 = inlined_call_operand.vmem [shape: f32[2,4608], index: 0, kind: input, shape index: {}]   ;;  %s4568_s1 = inlined_call_operand.vmem [shape: f32[4608,13], index: 1, kind: input, shape index: {}]   ;;  %s4569_s2 = inlined_call_operand.vmem [shape: f32[1,13], index: 2, kind: input, shape index: {}]   ;;  %s4570_s3 = inlined_call_operand.hbm [shape: f32[2,13], index: 3, kind: output, shape index: {}]  }
   0x1   :  { %v55_v0 = vld [vmem:[%s4568_s1 + $0xf8] sm:$0xff]  ;;  %v54_v4 = vld [vmem:[%s4568_s1 + $0xf0] sm:$0xff]  ;;  %v53_v8 = vld [vmem:[%s4568_s1 + $0xe8] sm:$0xff]  ;;  %v618_v31 = vunpack.c.l.s4 %v2761_v30 }
   0x2   :  { %v87_v1 = vld [vmem:[%s4568_s1 + $0x1f8] sm:$0xff]  ;;  %2094 = vmatprep.subr.mxu0 %v55_v0  ;;  %v86_v5 = vld [vmem:[%s4568_s1 + $0x1f0] sm:$0xff]  ;;  %v85_v9 = vld [vmem:[%s4568_s1 + $0x1e8] sm:$0xff]  ;;  %v621_v42 = vshrl.u32 %v620_v32, 7 }
   0x3   :  { %v39_v2 = vld [vmem:[%s4568_s1 + $0x78] sm:$0xff]  ;;  %2129 = vmatprep.subr.mxu1 %v87_v1  ;;  %v38_v6 = vld [vmem:[%s4568_s1 + $0x70] sm:$0xff]  ;;  %v37_v10 = vld [vmem:[%s4568_s1 + $0x68] sm:$0xff]  ;;  %v619_v41 = vunpack.c.0.s8 %v618_v31 }
   0x4   :  { %v71_v3 = vld [vmem:[%s4568_s1 + $0x178] sm:$0xff]  ;;  %2095 = vmatpush3.msra.mxu0 %v39_v2  ;;  %v70_v7 = vld [vmem:[%s4568_s1 + $0x170] sm:$0xff]  ;;  %v69_v11 = vld [vmem:[%s4568_s1 + $0x168] sm:$0xff] }
   0x5   :  { %2130 = vmatpush3.msra.mxu1 %v71_v3  ;;  %2096 = vmatprep.subr.mxu0 %v54_v4  ;;  %v52_v12 = vld [vmem:[%s4568_s1 + $0xe0] sm:$0xff]  ;;  %v51_v16 = vld [vmem:[%s4568_s1 + $0xd8] sm:$0xff]  ;;  %v50_v20 = vld [vmem:[%s4568_s1 + $0xd0] sm:$0xff]  ;;  %v2921_v51 = vsub.s32 %v619_v41, %v621_v42 }
   0x6   :  { %2131 = vmatprep.subr.mxu1 %v86_v5  ;;  %2097 = vmatpush3.msra.mxu0 %v38_v6  ;;  %v84_v13 = vld [vmem:[%s4568_s1 + $0x1e0] sm:$0xff]  ;;  %v83_v17 = vld [vmem:[%s4568_s1 + $0x1d8] sm:$0xff]  ;;  %v82_v21 = vld [vmem:[%s4568_s1 + $0x1d0] sm:$0xff] }
   0x7   :  { %2132 = vmatpush3.msra.mxu1 %v70_v7  ;;  %2098 = vmatprep.subr.mxu0 %v53_v8  ;;  %v36_v14 = vld [vmem:[%s4568_s1 + $0x60] sm:$0xff]  ;;  %v35_v18 = vld [vmem:[%s4568_s1 + $0x58] sm:$0xff]  ;;  %v34_v22 = vld [vmem:[%s4568_s1 + $0x50] sm:$0xff] }
   0x8   :  { %2133 = vmatprep.subr.mxu1 %v85_v9  ;;  %v68_v15 = vld [vmem:[%s4568_s1 + $0x160] sm:$0xff]  ;;  %2099 = vmatpush3.msra.mxu0 %v37_v10  ;;  %v67_v19 = vld [vmem:[%s4568_s1 + $0x158] sm:$0xff]  ;;  %v66_v23 = vld [vmem:[%s4568_s1 + $0x150] sm:$0xff] }
   0x9   :  { %2134 = vmatpush3.msra.mxu1 %v69_v11  ;;  %2100 = vmatprep.subr.mxu0 %v52_v12  ;;  %v49_v24 = vld [vmem:[%s4568_s1 + $0xc8] sm:$0xff]  ;;  %v48_v28 = vld [vmem:[%s4568_s1 + $0xc0] sm:$0xff]  ;;  %v47_v35 = vld [vmem:[%s4568_s1 + $0xb8] sm:$0xff] }
   0xa   :  { %2135 = vmatprep.subr.mxu1 %v84_v13  ;;  %2101 = vmatpush3.msra.mxu0 %v36_v14  ;;  %v81_v25 = vld [vmem:[%s4568_s1 + $0x1c8] sm:$0xff]  ;;  %v80_v29 = vld [vmem:[%s4568_s1 + $0x1c0] sm:$0xff]  ;;  %v79_v36 = vld [vmem:[%s4568_s1 + $0x1b8] sm:$0xff] }
   0xb   :  { %2136 = vmatpush3.msra.mxu1 %v68_v15  ;;  %2102 = vmatprep.subr.mxu0 %v51_v16  ;;  %v33_v26 = vld [vmem:[%s4568_s1 + $0x48] sm:$0xff]  ;;  %v32_v33 = vld [vmem:[%s4568_s1 + $0x40] sm:$0xff]  ;;  %v31_v37 = vld [vmem:[%s4568_s1 + $0x38] sm:$0xff] }
   0xc   :  { %2137 = vmatprep.subr.mxu1 %v83_v17  ;;  %2103 = vmatpush3.msra.mxu0 %v35_v18  ;;  %v65_v27 = vld [vmem:[%s4568_s1 + $0x148] sm:$0xff]  ;;  %v64_v34 = vld [vmem:[%s4568_s1 + $0x140] sm:$0xff]  ;;  %v63_v38 = vld [vmem:[%s4568_s1 + $0x138] sm:$0xff] }
   0xd   :  { %2138 = vmatpush3.msra.mxu1 %v67_v19  ;;  %2104 = vmatprep.subr.mxu0 %v50_v20  ;;  %v46_v39 = vld [vmem:[%s4568_s1 + $0xb0] sm:$0xff]  ;;  %v45_v45 = vld [vmem:[%s4568_s1 + $0xa8] sm:$0xff]  ;;  %v44_v49 = vld [vmem:[%s4568_s1 + $0xa0] sm:$0xff] }
   0xe   :  { %2139 = vmatprep.subr.mxu1 %v82_v21  ;;  %2105 = vmatpush3.msra.mxu0 %v34_v22  ;;  %v78_v40 = vld [vmem:[%s4568_s1 + $0x1b0] sm:$0xff]  ;;  %v77_v46 = vld [vmem:[%s4568_s1 + $0x1a8] sm:$0xff]  ;;  %v76_v50 = vld [vmem:[%s4568_s1 + $0x1a0] sm:$0xff] }
   0xf   :  { %2140 = vmatpush3.msra.mxu1 %v66_v23  ;;  %2106 = vmatprep.subr.mxu0 %v49_v24  ;;  %v30_v43 = vld [vmem:[%s4568_s1 + $0x30] sm:$0xff]  ;;  %v29_v47 = vld [vmem:[%s4568_s1 + $0x28] sm:$0xff]  ;;  %v28_v52 = vld [vmem:[%s4568_s1 + $0x20] sm:$0xff] }
  0x10   :  { %2141 = vmatprep.subr.mxu1 %v81_v25  ;;  %2107 = vmatpush3.msra.mxu0 %v33_v26  ;;  %v62_v44 = vld [vmem:[%s4568_s1 + $0x130] sm:$0xff]  ;;  %v61_v48 = vld [vmem:[%s4568_s1 + $0x128] sm:$0xff]  ;;  %v60_v53 = vld [vmem:[%s4568_s1 + $0x120] sm:$0xff] }
  0x11   :  { %2142 = vmatpush3.msra.mxu1 %v65_v27  ;;  %2108 = vmatprep.subr.mxu0 %v48_v28  ;;  %v15_v54 = vld [vmem:[%s4567_s0] sm:$0xff]  ;;  %v43_v55 = vld [vmem:[%s4568_s1 + $0x98] sm:$0xff]  ;;  %v42_v60 = vld [vmem:[%s4568_s1 + $0x90] sm:$0xff] }
  0x12   :  { %2143 = vmatprep.subr.mxu1 %v80_v29  ;;  %2109 = vmatpush3.msra.mxu0 %v32_v33  ;;  %v75_v56 = vld [vmem:[%s4568_s1 + $0x198] sm:$0xff]  ;;  %v616_v57 = vcombine.high %v15_v54, %v15_v54  ;;  %v74_v61 = vld [vmem:[%s4568_s1 + $0x190] sm:$0xff]  ;;  %v623_v62 = vrot.slane %v15_v54, %v2921_v51  ;;  %v41_v1 = vld [vmem:[%s4568_s1 + $0x88] sm:$0xff] }
  0x13   :  { %2144 = vmatpush3.msra.mxu1 %v64_v34  ;;  %2110 = vmatprep.subr.mxu0 %v47_v35  ;;  %v27_v58 = vld [vmem:[%s4568_s1 + $0x18] sm:$0xff]  ;;  %v26_v63 = vld [vmem:[%s4568_s1 + $0x10] sm:$0xff]  ;;  %v73_v2 = vld [vmem:[%s4568_s1 + $0x188] sm:$0xff] }
  0x14   :  { %2145 = vmatprep.subr.mxu1 %v79_v36  ;;  %2111 = vmatpush3.msra.mxu0 %v31_v37  ;;  %v59_v59 = vld [vmem:[%s4568_s1 + $0x118] sm:$0xff]  ;;  %v58_v0 = vld [vmem:[%s4568_s1 + $0x110] sm:$0xff]  ;;  %v630_v3 = vrot.slane %v616_v57, %v2921_v51  ;;  %v25_v4 = vld [vmem:[%s4568_s1 + $0x8] sm:$0xff]  ;;  %v631_v8 = vcombine.high %v623_v62, %v623_v62 }
  0x15   :  { %2146 = vmatpush3.msra.mxu1 %v63_v38  ;;  %2112 = vmatprep.subr.mxu0 %v46_v39  ;;  %v57_v5 = vld [vmem:[%s4568_s1 + $0x108] sm:$0xff]  ;;  %v40_v6 = vld [vmem:[%s4568_s1 + $0x80] sm:$0xff]  ;;  %v119_v12 = vld [vmem:[%s4568_s1 + $0x2f8] sm:$0xff] }
  0x16   :  { %2147 = vmatprep.subr.mxu1 %v78_v40  ;;  %2113 = vmatpush3.msra.mxu0 %v30_v43  ;;  %v72_v7 = vld [vmem:[%s4568_s1 + $0x180] sm:$0xff]  ;;  %v632_v11 = vcombine.high %v630_v3, %v630_v3  ;;  %v151_v13 = vld [vmem:[%s4568_s1 + $0x3f8] sm:$0xff]  ;;  %v118_v16 = vld [vmem:[%s4568_s1 + $0x2f0] sm:$0xff] }
  0x17   :  { %2148 = vmatpush3.msra.mxu1 %v62_v44  ;;  %2114 = vmatprep.subr.mxu0 %v45_v45  ;;  %v24_v9 = vld [vmem:[%s4568_s1] sm:$0xff]  ;;  %v103_v14 = vld [vmem:[%s4568_s1 + $0x278] sm:$0xff]  ;;  %v150_v17 = vld [vmem:[%s4568_s1 + $0x3f0] sm:$0xff] }
  0x18   :  { %2149 = vmatprep.subr.mxu1 %v77_v46  ;;  %2115 = vmatpush3.msra.mxu0 %v29_v47  ;;  %v56_v10 = vld [vmem:[%s4568_s1 + $0x100] sm:$0xff]  ;;  %v135_v15 = vld [vmem:[%s4568_s1 + $0x378] sm:$0xff]  ;;  %v102_v18 = vld [vmem:[%s4568_s1 + $0x270] sm:$0xff] }
  0x19   :  { %2150 = vmatpush3.msra.mxu1 %v61_v48  ;;  %2116 = vmatprep.subr.mxu0 %v44_v49  ;;  %v134_v19 = vld [vmem:[%s4568_s1 + $0x370] sm:$0xff]  ;;  %v117_v20 = vld [vmem:[%s4568_s1 + $0x2e8] sm:$0xff]  ;;  %v116_v24 = vld [vmem:[%s4568_s1 + $0x2e0] sm:$0xff] }
  0x1a   :  { %2151 = vmatprep.subr.mxu1 %v76_v50  ;;  %2117 = vmatpush3.msra.mxu0 %v28_v52  ;;  %v149_v21 = vld [vmem:[%s4568_s1 + $0x3e8] sm:$0xff]  ;;  %v148_v25 = vld [vmem:[%s4568_s1 + $0x3e0] sm:$0xff]  ;;  %v115_v28 = vld [vmem:[%s4568_s1 + $0x2d8] sm:$0xff] }
  0x1b   :  { %2152 = vmatpush3.msra.mxu1 %v60_v53  ;;  %2118 = vmatprep.subr.mxu0 %v43_v55  ;;  %v101_v22 = vld [vmem:[%s4568_s1 + $0x268] sm:$0xff]  ;;  %v100_v26 = vld [vmem:[%s4568_s1 + $0x260] sm:$0xff]  ;;  %v147_v29 = vld [vmem:[%s4568_s1 + $0x3d8] sm:$0xff] }
  0x1c   :  { %2153 = vmatprep.subr.mxu1 %v75_v56  ;;  %2119 = vmatpush3.msra.mxu0 %v27_v58  ;;  %v133_v23 = vld [vmem:[%s4568_s1 + $0x368] sm:$0xff]  ;;  %v132_v27 = vld [vmem:[%s4568_s1 + $0x360] sm:$0xff]  ;;  %v99_v30 = vld [vmem:[%s4568_s1 + $0x258] sm:$0xff] }
  0x1d   :  { %2154 = vmatpush3.msra.mxu1 %v59_v59  ;;  %2120 = vmatprep.subr.mxu0 %v42_v60  ;;  %v131_v31 = vld [vmem:[%s4568_s1 + $0x358] sm:$0xff]  ;;  %v114_v32 = vld [vmem:[%s4568_s1 + $0x2d0] sm:$0xff]  ;;  %v113_v36 = vld [vmem:[%s4568_s1 + $0x2c8] sm:$0xff] }
  0x1e   :  { %2155 = vmatprep.subr.mxu1 %v74_v61  ;;  %2121 = vmatpush3.msra.mxu0 %v26_v63  ;;  %v146_v33 = vld [vmem:[%s4568_s1 + $0x3d0] sm:$0xff]  ;;  %v145_v37 = vld [vmem:[%s4568_s1 + $0x3c8] sm:$0xff]  ;;  %v112_v40 = vld [vmem:[%s4568_s1 + $0x2c0] sm:$0xff] }
  0x1f   :  { %2156 = vmatpush3.msra.mxu1 %v58_v0  ;;  %2122 = vmatprep.subr.mxu0 %v41_v1  ;;  %v98_v34 = vld [vmem:[%s4568_s1 + $0x250] sm:$0xff]  ;;  %v97_v38 = vld [vmem:[%s4568_s1 + $0x248] sm:$0xff]  ;;  %v144_v41 = vld [vmem:[%s4568_s1 + $0x3c0] sm:$0xff] }
  0x20   :  { %2157 = vmatprep.subr.mxu1 %v73_v2  ;;  %2123 = vmatpush3.msra.mxu0 %v25_v4  ;;  %v130_v35 = vld [vmem:[%s4568_s1 + $0x350] sm:$0xff]  ;;  %v129_v39 = vld [vmem:[%s4568_s1 + $0x348] sm:$0xff]  ;;  %v96_v42 = vld [vmem:[%s4568_s1 + $0x240] sm:$0xff] }
  0x21   :  { %2158 = vmatpush3.msra.mxu1 %v57_v5  ;;  %2124 = vmatprep.subr.mxu0 %v40_v6  ;;  %v128_v43 = vld [vmem:[%s4568_s1 + $0x340] sm:$0xff]  ;;  %v111_v44 = vld [vmem:[%s4568_s1 + $0x2b8] sm:$0xff]  ;;  %v110_v48 = vld [vmem:[%s4568_s1 + $0x2b0] sm:$0xff] }
  0x22   :  { %2159 = vmatprep.subr.mxu1 %v72_v7  ;;  %2125 = vmatpush3.msra.mxu0 %v24_v9  ;;  %v143_v45 = vld [vmem:[%s4568_s1 + $0x3b8] sm:$0xff]  ;;  %v142_v49 = vld [vmem:[%s4568_s1 + $0x3b0] sm:$0xff]  ;;  %v109_v53 = vld [vmem:[%s4568_s1 + $0x2a8] sm:$0xff] }
  0x23   :  { %869 = vmatprep.mubr.f32.mxu0 %v631_v8  ;;  %2160 = vmatpush3.msra.mxu1 %v56_v10  ;;  %v95_v46 = vld [vmem:[%s4568_s1 + $0x238] sm:$0xff]  ;;  %v94_v50 = vld [vmem:[%s4568_s1 + $0x230] sm:$0xff]  ;;  %v141_v54 = vld [vmem:[%s4568_s1 + $0x3a8] sm:$0xff] }
  0x24   :  { %870 = vmatmul.mubr.f32.vlgmr.msra.gmra.mxu0 %v623_v62  ;;  %939 = vmatprep.mubr.f32.mxu1 %v632_v11  ;;  %v127_v47 = vld [vmem:[%s4568_s1 + $0x338] sm:$0xff]  ;;  %v126_v52 = vld [vmem:[%s4568_s1 + $0x330] sm:$0xff]  ;;  %v93_v55 = vld [vmem:[%s4568_s1 + $0x228] sm:$0xff] }
  0x25   :  { %2164 = vmatprep.subr.mxu0 %v119_v12  ;;  %2199 = vmatprep.subr.mxu1 %v151_v13  ;;  %v125_v56 = vld [vmem:[%s4568_s1 + $0x328] sm:$0xff]  ;;  %v108_v58 = vld [vmem:[%s4568_s1 + $0x2a0] sm:$0xff]  ;;  %v107_v62 = vld [vmem:[%s4568_s1 + $0x298] sm:$0xff] }
  0x26   :  { %940 = vmatmul.mubr.f32.vlgmr.msra.gmra.mxu1 %v630_v3  ;;  %2165 = vmatpush3.msra.mxu0 %v103_v14  ;;  %v16_v57 = vld [vmem:[%s4567_s0 + $0x8] sm:$0xff]  ;;  %v140_v59 = vld [vmem:[%s4568_s1 + $0x3a0] sm:$0xff]  ;;  %v139_v63 = vld [vmem:[%s4568_s1 + $0x398] sm:$0xff] }
  0x27   :  { %2200 = vmatpush3.msra.mxu1 %v135_v15  ;;  %2166 = vmatprep.subr.mxu0 %v118_v16  ;;  %v92_v60 = vld [vmem:[%s4568_s1 + $0x220] sm:$0xff]  ;;  %v633_v0 = vcombine.high %v16_v57, %v16_v57  ;;  %v91_v1 = vld [vmem:[%s4568_s1 + $0x218] sm:$0xff]  ;;  %v106_v3 = vld [vmem:[%s4568_s1 + $0x290] sm:$0xff]  ;;  %v640_v5 = vrot.slane %v16_v57, %v2921_v51 }
  0x28   :  { %2201 = vmatprep.subr.mxu1 %v150_v17  ;;  %2167 = vmatpush3.msra.mxu0 %v102_v18  ;;  %v124_v61 = vld [vmem:[%s4568_s1 + $0x320] sm:$0xff]  ;;  %v123_v2 = vld [vmem:[%s4568_s1 + $0x318] sm:$0xff]  ;;  %v138_v4 = vld [vmem:[%s4568_s1 + $0x390] sm:$0xff] }
  0x29   :  { %2202 = vmatpush3.msra.mxu1 %v134_v19  ;;  %2168 = vmatprep.subr.mxu0 %v117_v20  ;;  %v90_v6 = vld [vmem:[%s4568_s1 + $0x210] sm:$0xff]  ;;  %v105_v8 = vld [vmem:[%s4568_s1 + $0x288] sm:$0xff]  ;;  %v647_v10 = vrot.slane %v633_v0, %v2921_v51  ;;  %v104_v13 = vld [vmem:[%s4568_s1 + $0x280] sm:$0xff]  ;;  %v648_v15 = vcombine.high %v640_v5, %v640_v5 }
  0x2a   :  { %2203 = vmatprep.subr.mxu1 %v149_v21  ;;  %2169 = vmatpush3.msra.mxu0 %v101_v22  ;;  %v122_v7 = vld [vmem:[%s4568_s1 + $0x310] sm:$0xff]  ;;  %v137_v9 = vld [vmem:[%s4568_s1 + $0x388] sm:$0xff]  ;;  %v136_v14 = vld [vmem:[%s4568_s1 + $0x380] sm:$0xff] }
  0x2b   :  { %2204 = vmatpush3.msra.mxu1 %v133_v23  ;;  %2170 = vmatprep.subr.mxu0 %v116_v24  ;;  %v89_v11 = vld [vmem:[%s4568_s1 + $0x208] sm:$0xff]  ;;  %v88_v16 = vld [vmem:[%s4568_s1 + $0x200] sm:$0xff]  ;;  %v649_v18 = vcombine.high %v647_v10, %v647_v10  ;;  %v183_v19 = vld [vmem:[%s4568_s1 + $0x4f8] sm:$0xff] }
  0x2c   :  { %2205 = vmatprep.subr.mxu1 %v148_v25  ;;  %2171 = vmatpush3.msra.mxu0 %v100_v26  ;;  %v121_v12 = vld [vmem:[%s4568_s1 + $0x308] sm:$0xff]  ;;  %v120_v17 = vld [vmem:[%s4568_s1 + $0x300] sm:$0xff]  ;;  %v215_v20 = vld [vmem:[%s4568_s1 + $0x5f8] sm:$0xff] }
  0x2d   :  { %2206 = vmatpush3.msra.mxu1 %v132_v27  ;;  %2172 = vmatprep.subr.mxu0 %v115_v28  ;;  %v167_v21 = vld [vmem:[%s4568_s1 + $0x478] sm:$0xff]  ;;  %v182_v23 = vld [vmem:[%s4568_s1 + $0x4f0] sm:$0xff]  ;;  %v181_v27 = vld [vmem:[%s4568_s1 + $0x4e8] sm:$0xff] }
  0x2e   :  { %2207 = vmatprep.subr.mxu1 %v147_v29  ;;  %2173 = vmatpush3.msra.mxu0 %v99_v30  ;;  %v199_v22 = vld [vmem:[%s4568_s1 + $0x578] sm:$0xff]  ;;  %v214_v24 = vld [vmem:[%s4568_s1 + $0x5f0] sm:$0xff]  ;;  %v213_v28 = vld [vmem:[%s4568_s1 + $0x5e8] sm:$0xff] }
  0x2f   :  { %2208 = vmatpush3.msra.mxu1 %v131_v31  ;;  %2174 = vmatprep.subr.mxu0 %v114_v32  ;;  %v166_v25 = vld [vmem:[%s4568_s1 + $0x470] sm:$0xff]  ;;  %v165_v29 = vld [vmem:[%s4568_s1 + $0x468] sm:$0xff]  ;;  %v180_v31 = vld [vmem:[%s4568_s1 + $0x4e0] sm:$0xff] }
  0x30   :  { %2209 = vmatprep.subr.mxu1 %v146_v33  ;;  %2175 = vmatpush3.msra.mxu0 %v98_v34  ;;  %v198_v26 = vld [vmem:[%s4568_s1 + $0x570] sm:$0xff]  ;;  %v197_v30 = vld [vmem:[%s4568_s1 + $0x568] sm:$0xff]  ;;  %v212_v32 = vld [vmem:[%s4568_s1 + $0x5e0] sm:$0xff] }
  0x31   :  { %2210 = vmatpush3.msra.mxu1 %v130_v35  ;;  %2176 = vmatprep.subr.mxu0 %v113_v36  ;;  %v164_v33 = vld [vmem:[%s4568_s1 + $0x460] sm:$0xff]  ;;  %v179_v35 = vld [vmem:[%s4568_s1 + $0x4d8] sm:$0xff]  ;;  %v206_v57 = vld [vmem:[%s4568_s1 + $0x5b0] sm:$0xff] }
  0x32   :  { %2211 = vmatprep.subr.mxu1 %v145_v37  ;;  %2177 = vmatpush3.msra.mxu0 %v97_v38  ;;  %v196_v34 = vld [vmem:[%s4568_s1 + $0x560] sm:$0xff]  ;;  %v211_v36 = vld [vmem:[%s4568_s1 + $0x5d8] sm:$0xff]  ;;  %v17_v0 = vld [vmem:[%s4567_s0 + $0x10] sm:$0xff] }
  0x33   :  { %2212 = vmatpush3.msra.mxu1 %v129_v39  ;;  %2178 = vmatprep.subr.mxu0 %v112_v40  ;;  %v163_v37 = vld [vmem:[%s4568_s1 + $0x458] sm:$0xff]  ;;  %v178_v39 = vld [vmem:[%s4568_s1 + $0x4d0] sm:$0xff] }
  0x34   :  { %2213 = vmatprep.subr.mxu1 %v144_v41  ;;  %2179 = vmatpush3.msra.mxu0 %v96_v42  ;;  %v195_v38 = vld [vmem:[%s4568_s1 + $0x558] sm:$0xff]  ;;  %v210_v40 = vld [vmem:[%s4568_s1 + $0x5d0] sm:$0xff] }
  0x35   :  { %2214 = vmatpush3.msra.mxu1 %v128_v43  ;;  %2180 = vmatprep.subr.mxu0 %v111_v44  ;;  %v162_v41 = vld [vmem:[%s4568_s1 + $0x450] sm:$0xff]  ;;  %v177_v43 = vld [vmem:[%s4568_s1 + $0x4c8] sm:$0xff] }
  0x36   :  { %2215 = vmatprep.subr.mxu1 %v143_v45  ;;  %2181 = vmatpush3.msra.mxu0 %v95_v46  ;;  %v194_v42 = vld [vmem:[%s4568_s1 + $0x550] sm:$0xff]  ;;  %v209_v44 = vld [vmem:[%s4568_s1 + $0x5c8] sm:$0xff] }
  0x37   :  { %2216 = vmatpush3.msra.mxu1 %v127_v47  ;;  %2182 = vmatprep.subr.mxu0 %v110_v48  ;;  %v161_v45 = vld [vmem:[%s4568_s1 + $0x448] sm:$0xff]  ;;  %v176_v47 = vld [vmem:[%s4568_s1 + $0x4c0] sm:$0xff] }
  0x38   :  { %2217 = vmatprep.subr.mxu1 %v142_v49  ;;  %2183 = vmatpush3.msra.mxu0 %v94_v50  ;;  %v193_v46 = vld [vmem:[%s4568_s1 + $0x548] sm:$0xff]  ;;  %v208_v48 = vld [vmem:[%s4568_s1 + $0x5c0] sm:$0xff] }
  0x39   :  { %2218 = vmatpush3.msra.mxu1 %v126_v52  ;;  %2184 = vmatprep.subr.mxu0 %v109_v53  ;;  %v160_v49 = vld [vmem:[%s4568_s1 + $0x440] sm:$0xff]  ;;  %v175_v52 = vld [vmem:[%s4568_s1 + $0x4b8] sm:$0xff] }
  0x3a   :  { %2219 = vmatprep.subr.mxu1 %v141_v54  ;;  %2185 = vmatpush3.msra.mxu0 %v93_v55  ;;  %v192_v50 = vld [vmem:[%s4568_s1 + $0x540] sm:$0xff]  ;;  %v207_v53 = vld [vmem:[%s4568_s1 + $0x5b8] sm:$0xff] }
  0x3b   :  { %2220 = vmatpush3.msra.mxu1 %v125_v56  ;;  %2186 = vmatprep.subr.mxu0 %v108_v58  ;;  %v159_v54 = vld [vmem:[%s4568_s1 + $0x438] sm:$0xff]  ;;  %v174_v56 = vld [vmem:[%s4568_s1 + $0x4b0] sm:$0xff] }
  0x3c   :  { %2221 = vmatprep.subr.mxu1 %v140_v59  ;;  %2187 = vmatpush3.msra.mxu0 %v92_v60  ;;  %v191_v55 = vld [vmem:[%s4568_s1 + $0x538] sm:$0xff]  ;;  %v158_v58 = vld [vmem:[%s4568_s1 + $0x430] sm:$0xff]  ;;  %v173_v60 = vld [vmem:[%s4568_s1 + $0x4a8] sm:$0xff] }
  0x3d   :  { %2222 = vmatpush3.msra.mxu1 %v124_v61  ;;  %2188 = vmatprep.subr.mxu0 %v107_v62  ;;  %v190_v59 = vld [vmem:[%s4568_s1 + $0x530] sm:$0xff]  ;;  %v205_v61 = vld [vmem:[%s4568_s1 + $0x5a8] sm:$0xff] }
  0x3e   :  { %2223 = vmatprep.subr.mxu1 %v139_v63  ;;  %2189 = vmatpush3.msra.mxu0 %v91_v1  ;;  %v157_v62 = vld [vmem:[%s4568_s1 + $0x428] sm:$0xff]  ;;  %v172_v1 = vld [vmem:[%s4568_s1 + $0x4a0] sm:$0xff] }
  0x3f   :  { %2224 = vmatpush3.msra.mxu1 %v123_v2  ;;  %2190 = vmatprep.subr.mxu0 %v106_v3  ;;  %v189_v63 = vld [vmem:[%s4568_s1 + $0x528] sm:$0xff]  ;;  %v204_v2 = vld [vmem:[%s4568_s1 + $0x5a0] sm:$0xff] }
  0x40   :  { %2225 = vmatprep.subr.mxu1 %v138_v4  ;;  %2191 = vmatpush3.msra.mxu0 %v90_v6  ;;  %v156_v3 = vld [vmem:[%s4568_s1 + $0x420] sm:$0xff]  ;;  %v203_v6 = vld [vmem:[%s4568_s1 + $0x598] sm:$0xff] }
  0x41   :  { %2226 = vmatpush3.msra.mxu1 %v122_v7  ;;  %2192 = vmatprep.subr.mxu0 %v105_v8  ;;  %v188_v4 = vld [vmem:[%s4568_s1 + $0x520] sm:$0xff]  ;;  %v650_v7 = vcombine.high %v17_v0, %v17_v0  ;;  %v155_v8 = vld [vmem:[%s4568_s1 + $0x418] sm:$0xff] }
  0x42   :  { %2227 = vmatprep.subr.mxu1 %v137_v9  ;;  %2193 = vmatpush3.msra.mxu0 %v89_v11  ;;  %v187_v9 = vld [vmem:[%s4568_s1 + $0x518] sm:$0xff]  ;;  %v202_v11 = vld [vmem:[%s4568_s1 + $0x590] sm:$0xff] }
  0x43   :  { %2228 = vmatpush3.msra.mxu1 %v121_v12  ;;  %2194 = vmatprep.subr.mxu0 %v104_v13  ;;  %v657_v12 = vrot.slane %v17_v0, %v2921_v51  ;;  %v154_v13 = vld [vmem:[%s4568_s1 + $0x410] sm:$0xff] }
  0x44   :  { %2229 = vmatprep.subr.mxu1 %v136_v14  ;;  %2195 = vmatpush3.msra.mxu0 %v88_v16  ;;  %v186_v14 = vld [vmem:[%s4568_s1 + $0x510] sm:$0xff]  ;;  %v201_v16 = vld [vmem:[%s4568_s1 + $0x588] sm:$0xff] }
  0x45   :  { %1009 = vmatprep.mubr.f32.mxu0 %v648_v15  ;;  %2230 = vmatpush3.msra.mxu1 %v120_v17  ;;  %v169_v15 = vld [vmem:[%s4568_s1 + $0x488] sm:$0xff]  ;;  %v664_v17 = vrot.slane %v650_v7, %v2921_v51  ;;  %v270_v0 = vld [vmem:[%s4568_s1 + $0x7b0] sm:$0xff]  ;;  %v18_v7 = vld [vmem:[%s4567_s0 + $0x18] sm:$0xff] }
  0x46   :  { %1010 = vmatmul.mubr.f32.vlgmr.msra.gmra.mxu0 %v640_v5  ;;  %1079 = vmatprep.mubr.f32.mxu1 %v649_v18  ;;  %v171_v5 = vld [vmem:[%s4568_s1 + $0x498] sm:$0xff]  ;;  %v153_v18 = vld [vmem:[%s4568_s1 + $0x408] sm:$0xff] }
  0x47   :  { %2234 = vmatprep.subr.mxu0 %v183_v19  ;;  %2269 = vmatprep.subr.mxu1 %v215_v20  ;;  %v185_v19 = vld [vmem:[%s4568_s1 + $0x508] sm:$0xff]  ;;  %v168_v20 = vld [vmem:[%s4568_s1 + $0x480] sm:$0xff] }
  0x48   :  { %1080 = vmatmul.mubr.f32.vlgmr.msra.gmra.mxu1 %v647_v10  ;;  %2235 = vmatpush3.msra.mxu0 %v167_v21  ;;  %v170_v10 = vld [vmem:[%s4568_s1 + $0x490] sm:$0xff]  ;;  %v200_v21 = vld [vmem:[%s4568_s1 + $0x580] sm:$0xff] }
  0x49   :  { %2270 = vmatpush3.msra.mxu1 %v199_v22  ;;  %2236 = vmatprep.subr.mxu0 %v182_v23  ;;  %v665_v22 = vcombine.high %v657_v12, %v657_v12  ;;  %v152_v23 = vld [vmem:[%s4568_s1 + $0x400] sm:$0xff] }
  0x4a   :  { %2271 = vmatprep.subr.mxu1 %v214_v24  ;;  %2237 = vmatpush3.msra.mxu0 %v166_v25  ;;  %v184_v24 = vld [vmem:[%s4568_s1 + $0x500] sm:$0xff]  ;;  %v666_v25 = vcombine.high %v664_v17, %v664_v17 }
  0x4b   :  { %2272 = vmatpush3.msra.mxu1 %v198_v26  ;;  %2238 = vmatprep.subr.mxu0 %v181_v27  ;;  %v247_v26 = vld [vmem:[%s4568_s1 + $0x6f8] sm:$0xff] }
  0x4c   :  { %2273 = vmatprep.subr.mxu1 %v213_v28  ;;  %2239 = vmatpush3.msra.mxu0 %v165_v29  ;;  %v279_v27 = vld [vmem:[%s4568_s1 + $0x7f8] sm:$0xff] }
  0x4d   :  { %2274 = vmatpush3.msra.mxu1 %v197_v30  ;;  %2240 = vmatprep.subr.mxu0 %v180_v31  ;;  %v231_v28 = vld [vmem:[%s4568_s1 + $0x678] sm:$0xff]  ;;  %v246_v30 = vld [vmem:[%s4568_s1 + $0x6f0] sm:$0xff] }
  0x4e   :  { %2275 = vmatprep.subr.mxu1 %v212_v32  ;;  %2241 = vmatpush3.msra.mxu0 %v164_v33  ;;  %v263_v29 = vld [vmem:[%s4568_s1 + $0x778] sm:$0xff]  ;;  %v278_v31 = vld [vmem:[%s4568_s1 + $0x7f0] sm:$0xff] }
  0x4f   :  { %2276 = vmatpush3.msra.mxu1 %v196_v34  ;;  %2242 = vmatprep.subr.mxu0 %v179_v35  ;;  %v230_v32 = vld [vmem:[%s4568_s1 + $0x670] sm:$0xff]  ;;  %v245_v34 = vld [vmem:[%s4568_s1 + $0x6e8] sm:$0xff] }
  0x50   :  { %2277 = vmatprep.subr.mxu1 %v211_v36  ;;  %2243 = vmatpush3.msra.mxu0 %v163_v37  ;;  %v262_v33 = vld [vmem:[%s4568_s1 + $0x770] sm:$0xff]  ;;  %v277_v35 = vld [vmem:[%s4568_s1 + $0x7e8] sm:$0xff] }
  0x51   :  { %2278 = vmatpush3.msra.mxu1 %v195_v38  ;;  %2244 = vmatprep.subr.mxu0 %v178_v39  ;;  %v229_v36 = vld [vmem:[%s4568_s1 + $0x668] sm:$0xff]  ;;  %v244_v38 = vld [vmem:[%s4568_s1 + $0x6e0] sm:$0xff] }
  0x52   :  { %2279 = vmatprep.subr.mxu1 %v210_v40  ;;  %2245 = vmatpush3.msra.mxu0 %v162_v41  ;;  %v261_v37 = vld [vmem:[%s4568_s1 + $0x768] sm:$0xff]  ;;  %v276_v39 = vld [vmem:[%s4568_s1 + $0x7e0] sm:$0xff] }
  0x53   :  { %2280 = vmatpush3.msra.mxu1 %v194_v42  ;;  %2246 = vmatprep.subr.mxu0 %v177_v43  ;;  %v228_v40 = vld [vmem:[%s4568_s1 + $0x660] sm:$0xff]  ;;  %v243_v42 = vld [vmem:[%s4568_s1 + $0x6d8] sm:$0xff] }
  0x54   :  { %2281 = vmatprep.subr.mxu1 %v209_v44  ;;  %2247 = vmatpush3.msra.mxu0 %v161_v45  ;;  %v260_v41 = vld [vmem:[%s4568_s1 + $0x760] sm:$0xff]  ;;  %v275_v43 = vld [vmem:[%s4568_s1 + $0x7d8] sm:$0xff] }
  0x55   :  { %2282 = vmatpush3.msra.mxu1 %v193_v46  ;;  %2248 = vmatprep.subr.mxu0 %v176_v47  ;;  %v227_v44 = vld [vmem:[%s4568_s1 + $0x658] sm:$0xff]  ;;  %v242_v46 = vld [vmem:[%s4568_s1 + $0x6d0] sm:$0xff] }
  0x56   :  { %2283 = vmatprep.subr.mxu1 %v208_v48  ;;  %2249 = vmatpush3.msra.mxu0 %v160_v49  ;;  %v259_v45 = vld [vmem:[%s4568_s1 + $0x758] sm:$0xff]  ;;  %v274_v47 = vld [vmem:[%s4568_s1 + $0x7d0] sm:$0xff] }
  0x57   :  { %2284 = vmatpush3.msra.mxu1 %v192_v50  ;;  %2250 = vmatprep.subr.mxu0 %v175_v52  ;;  %v226_v48 = vld [vmem:[%s4568_s1 + $0x650] sm:$0xff]  ;;  %v241_v50 = vld [vmem:[%s4568_s1 + $0x6c8] sm:$0xff] }
  0x58   :  { %2285 = vmatprep.subr.mxu1 %v207_v53  ;;  %2251 = vmatpush3.msra.mxu0 %v159_v54  ;;  %v258_v49 = vld [vmem:[%s4568_s1 + $0x750] sm:$0xff]  ;;  %v273_v52 = vld [vmem:[%s4568_s1 + $0x7c8] sm:$0xff] }
  0x59   :  { %2286 = vmatpush3.msra.mxu1 %v191_v55  ;;  %2252 = vmatprep.subr.mxu0 %v174_v56  ;;  %v225_v53 = vld [vmem:[%s4568_s1 + $0x648] sm:$0xff]  ;;  %v240_v55 = vld [vmem:[%s4568_s1 + $0x6c0] sm:$0xff] }
  0x5a   :  { %2287 = vmatprep.subr.mxu1 %v206_v57  ;;  %2253 = vmatpush3.msra.mxu0 %v158_v58  ;;  %v257_v54 = vld [vmem:[%s4568_s1 + $0x748] sm:$0xff]  ;;  %v272_v56 = vld [vmem:[%s4568_s1 + $0x7c0] sm:$0xff] }
  0x5b   :  { %2288 = vmatpush3.msra.mxu1 %v190_v59  ;;  %2254 = vmatprep.subr.mxu0 %v173_v60  ;;  %v224_v57 = vld [vmem:[%s4568_s1 + $0x640] sm:$0xff]  ;;  %v239_v59 = vld [vmem:[%s4568_s1 + $0x6b8] sm:$0xff] }
  0x5c   :  { %2289 = vmatprep.subr.mxu1 %v205_v61  ;;  %2255 = vmatpush3.msra.mxu0 %v157_v62  ;;  %v256_v58 = vld [vmem:[%s4568_s1 + $0x740] sm:$0xff]  ;;  %v271_v60 = vld [vmem:[%s4568_s1 + $0x7b8] sm:$0xff] }
  0x5d   :  { %2290 = vmatpush3.msra.mxu1 %v189_v63  ;;  %2256 = vmatprep.subr.mxu0 %v172_v1  ;;  %v223_v61 = vld [vmem:[%s4568_s1 + $0x638] sm:$0xff]  ;;  %v238_v63 = vld [vmem:[%s4568_s1 + $0x6b0] sm:$0xff] }
  0x5e   :  { %2291 = vmatprep.subr.mxu1 %v204_v2  ;;  %2257 = vmatpush3.msra.mxu0 %v156_v3  ;;  %v255_v62 = vld [vmem:[%s4568_s1 + $0x738] sm:$0xff]  ;;  %v222_v1 = vld [vmem:[%s4568_s1 + $0x630] sm:$0xff]  ;;  %v237_v3 = vld [vmem:[%s4568_s1 + $0x6a8] sm:$0xff] }
  0x5f   :  { %2292 = vmatpush3.msra.mxu1 %v188_v4  ;;  %2258 = vmatprep.subr.mxu0 %v171_v5  ;;  %v254_v2 = vld [vmem:[%s4568_s1 + $0x730] sm:$0xff]  ;;  %v269_v4 = vld [vmem:[%s4568_s1 + $0x7a8] sm:$0xff] }
  0x60   :  { %2293 = vmatprep.subr.mxu1 %v203_v6  ;;  %2259 = vmatpush3.msra.mxu0 %v155_v8  ;;  %v221_v5 = vld [vmem:[%s4568_s1 + $0x628] sm:$0xff]  ;;  %v236_v8 = vld [vmem:[%s4568_s1 + $0x6a0] sm:$0xff] }
  0x61   :  { %2294 = vmatpush3.msra.mxu1 %v187_v9  ;;  %2260 = vmatprep.subr.mxu0 %v170_v10  ;;  %v253_v6 = vld [vmem:[%s4568_s1 + $0x728] sm:$0xff]  ;;  %v268_v9 = vld [vmem:[%s4568_s1 + $0x7a0] sm:$0xff] }
  0x62   :  { %2295 = vmatprep.subr.mxu1 %v202_v11  ;;  %2261 = vmatpush3.msra.mxu0 %v154_v13  ;;  %v220_v10 = vld [vmem:[%s4568_s1 + $0x620] sm:$0xff]  ;;  %v267_v13 = vld [vmem:[%s4568_s1 + $0x798] sm:$0xff] }
  0x63   :  { %2296 = vmatpush3.msra.mxu1 %v186_v14  ;;  %2262 = vmatprep.subr.mxu0 %v169_v15  ;;  %v252_v11 = vld [vmem:[%s4568_s1 + $0x720] sm:$0xff]  ;;  %v667_v14 = vcombine.high %v18_v7, %v18_v7  ;;  %v219_v15 = vld [vmem:[%s4568_s1 + $0x618] sm:$0xff] }
  0x64   :  { %2297 = vmatprep.subr.mxu1 %v201_v16  ;;  %2263 = vmatpush3.msra.mxu0 %v153_v18  ;;  %v251_v16 = vld [vmem:[%s4568_s1 + $0x718] sm:$0xff]  ;;  %v266_v18 = vld [vmem:[%s4568_s1 + $0x790] sm:$0xff] }
  0x65   :  { %2298 = vmatpush3.msra.mxu1 %v185_v19  ;;  %2264 = vmatprep.subr.mxu0 %v168_v20  ;;  %v674_v19 = vrot.slane %v18_v7, %v2921_v51  ;;  %v218_v20 = vld [vmem:[%s4568_s1 + $0x610] sm:$0xff] }
  0x66   :  { %2299 = vmatprep.subr.mxu1 %v200_v21  ;;  %2265 = vmatpush3.msra.mxu0 %v152_v23  ;;  %v250_v21 = vld [vmem:[%s4568_s1 + $0x710] sm:$0xff]  ;;  %v265_v23 = vld [vmem:[%s4568_s1 + $0x788] sm:$0xff] }
  0x67   :  { %1149 = vmatprep.mubr.f32.mxu0 %v665_v22  ;;  %2300 = vmatpush3.msra.mxu1 %v184_v24  ;;  %v233_v22 = vld [vmem:[%s4568_s1 + $0x688] sm:$0xff]  ;;  %v681_v24 = vrot.slane %v667_v14, %v2921_v51  ;;  %v334_v7 = vld [vmem:[%s4568_s1 + $0x9b0] sm:$0xff]  ;;  %v19_v14 = vld [vmem:[%s4567_s0 + $0x20] sm:$0xff] }
  0x68   :  { %1150 = vmatmul.mubr.f32.vlgmr.msra.gmra.mxu0 %v657_v12  ;;  %1219 = vmatprep.mubr.f32.mxu1 %v666_v25  ;;  %v235_v12 = vld [vmem:[%s4568_s1 + $0x698] sm:$0xff]  ;;  %v217_v25 = vld [vmem:[%s4568_s1 + $0x608] sm:$0xff] }
  0x69   :  { %2304 = vmatprep.subr.mxu0 %v247_v26  ;;  %2339 = vmatprep.subr.mxu1 %v279_v27  ;;  %v249_v26 = vld [vmem:[%s4568_s1 + $0x708] sm:$0xff]  ;;  %v232_v27 = vld [vmem:[%s4568_s1 + $0x680] sm:$0xff] }
  0x6a   :  { %1220 = vmatmul.mubr.f32.vlgmr.msra.gmra.mxu1 %v664_v17  ;;  %2305 = vmatpush3.msra.mxu0 %v231_v28  ;;  %v234_v17 = vld [vmem:[%s4568_s1 + $0x690] sm:$0xff]  ;;  %v264_v28 = vld [vmem:[%s4568_s1 + $0x780] sm:$0xff] }
  0x6b   :  { %2340 = vmatpush3.msra.mxu1 %v263_v29  ;;  %2306 = vmatprep.subr.mxu0 %v246_v30  ;;  %v682_v29 = vcombine.high %v674_v19, %v674_v19  ;;  %v216_v30 = vld [vmem:[%s4568_s1 + $0x600] sm:$0xff] }
  0x6c   :  { %2341 = vmatprep.subr.mxu1 %v278_v31  ;;  %2307 = vmatpush3.msra.mxu0 %v230_v32  ;;  %v248_v31 = vld [vmem:[%s4568_s1 + $0x700] sm:$0xff]  ;;  %v683_v32 = vcombine.high %v681_v24, %v681_v24 }
  0x6d   :  { %2342 = vmatpush3.msra.mxu1 %v262_v33  ;;  %2308 = vmatprep.subr.mxu0 %v245_v34  ;;  %v311_v33 = vld [vmem:[%s4568_s1 + $0x8f8] sm:$0xff] }
  0x6e   :  { %2343 = vmatprep.subr.mxu1 %v277_v35  ;;  %2309 = vmatpush3.msra.mxu0 %v229_v36  ;;  %v343_v34 = vld [vmem:[%s4568_s1 + $0x9f8] sm:$0xff] }
  0x6f   :  { %2344 = vmatpush3.msra.mxu1 %v261_v37  ;;  %2310 = vmatprep.subr.mxu0 %v244_v38  ;;  %v295_v35 = vld [vmem:[%s4568_s1 + $0x878] sm:$0xff]  ;;  %v310_v37 = vld [vmem:[%s4568_s1 + $0x8f0] sm:$0xff] }
  0x70   :  { %2345 = vmatprep.subr.mxu1 %v276_v39  ;;  %2311 = vmatpush3.msra.mxu0 %v228_v40  ;;  %v327_v36 = vld [vmem:[%s4568_s1 + $0x978] sm:$0xff]  ;;  %v342_v38 = vld [vmem:[%s4568_s1 + $0x9f0] sm:$0xff] }
  0x71   :  { %2346 = vmatpush3.msra.mxu1 %v260_v41  ;;  %2312 = vmatprep.subr.mxu0 %v243_v42  ;;  %v294_v39 = vld [vmem:[%s4568_s1 + $0x870] sm:$0xff]  ;;  %v309_v41 = vld [vmem:[%s4568_s1 + $0x8e8] sm:$0xff] }
  0x72   :  { %2347 = vmatprep.subr.mxu1 %v275_v43  ;;  %2313 = vmatpush3.msra.mxu0 %v227_v44  ;;  %v326_v40 = vld [vmem:[%s4568_s1 + $0x970] sm:$0xff]  ;;  %v341_v42 = vld [vmem:[%s4568_s1 + $0x9e8] sm:$0xff] }
  0x73   :  { %2348 = vmatpush3.msra.mxu1 %v259_v45  ;;  %2314 = vmatprep.subr.mxu0 %v242_v46  ;;  %v293_v43 = vld [vmem:[%s4568_s1 + $0x868] sm:$0xff]  ;;  %v308_v45 = vld [vmem:[%s4568_s1 + $0x8e0] sm:$0xff] }
  0x74   :  { %2349 = vmatprep.subr.mxu1 %v274_v47  ;;  %2315 = vmatpush3.msra.mxu0 %v226_v48  ;;  %v325_v44 = vld [vmem:[%s4568_s1 + $0x968] sm:$0xff]  ;;  %v340_v46 = vld [vmem:[%s4568_s1 + $0x9e0] sm:$0xff] }
  0x75   :  { %2350 = vmatpush3.msra.mxu1 %v258_v49  ;;  %2316 = vmatprep.subr.mxu0 %v241_v50  ;;  %v292_v47 = vld [vmem:[%s4568_s1 + $0x860] sm:$0xff]  ;;  %v307_v49 = vld [vmem:[%s4568_s1 + $0x8d8] sm:$0xff] }
  0x76   :  { %2351 = vmatprep.subr.mxu1 %v273_v52  ;;  %2317 = vmatpush3.msra.mxu0 %v225_v53  ;;  %v324_v48 = vld [vmem:[%s4568_s1 + $0x960] sm:$0xff]  ;;  %v339_v50 = vld [vmem:[%s4568_s1 + $0x9d8] sm:$0xff] }
  0x77   :  { %2352 = vmatpush3.msra.mxu1 %v257_v54  ;;  %2318 = vmatprep.subr.mxu0 %v240_v55  ;;  %v291_v52 = vld [vmem:[%s4568_s1 + $0x858] sm:$0xff]  ;;  %v306_v54 = vld [vmem:[%s4568_s1 + $0x8d0] sm:$0xff] }
  0x78   :  { %2353 = vmatprep.subr.mxu1 %v272_v56  ;;  %2319 = vmatpush3.msra.mxu0 %v224_v57  ;;  %v323_v53 = vld [vmem:[%s4568_s1 + $0x958] sm:$0xff]  ;;  %v338_v55 = vld [vmem:[%s4568_s1 + $0x9d0] sm:$0xff] }
  0x79   :  { %2354 = vmatpush3.msra.mxu1 %v256_v58  ;;  %2320 = vmatprep.subr.mxu0 %v239_v59  ;;  %v290_v56 = vld [vmem:[%s4568_s1 + $0x850] sm:$0xff]  ;;  %v305_v58 = vld [vmem:[%s4568_s1 + $0x8c8] sm:$0xff] }
  0x7a   :  { %2355 = vmatprep.subr.mxu1 %v271_v60  ;;  %2321 = vmatpush3.msra.mxu0 %v223_v61  ;;  %v322_v57 = vld [vmem:[%s4568_s1 + $0x950] sm:$0xff]  ;;  %v337_v59 = vld [vmem:[%s4568_s1 + $0x9c8] sm:$0xff] }
  0x7b   :  { %2356 = vmatpush3.msra.mxu1 %v255_v62  ;;  %2322 = vmatprep.subr.mxu0 %v238_v63  ;;  %v289_v60 = vld [vmem:[%s4568_s1 + $0x848] sm:$0xff]  ;;  %v304_v62 = vld [vmem:[%s4568_s1 + $0x8c0] sm:$0xff] }
  0x7c   :  { %2357 = vmatprep.subr.mxu1 %v270_v0  ;;  %2323 = vmatpush3.msra.mxu0 %v222_v1  ;;  %v321_v61 = vld [vmem:[%s4568_s1 + $0x948] sm:$0xff]  ;;  %v336_v63 = vld [vmem:[%s4568_s1 + $0x9c0] sm:$0xff] }
  0x7d   :  { %2358 = vmatpush3.msra.mxu1 %v254_v2  ;;  %2324 = vmatprep.subr.mxu0 %v237_v3  ;;  %v288_v0 = vld [vmem:[%s4568_s1 + $0x840] sm:$0xff]  ;;  %v303_v2 = vld [vmem:[%s4568_s1 + $0x8b8] sm:$0xff] }
  0x7e   :  { %2359 = vmatprep.subr.mxu1 %v269_v4  ;;  %2325 = vmatpush3.msra.mxu0 %v221_v5  ;;  %v320_v1 = vld [vmem:[%s4568_s1 + $0x940] sm:$0xff]  ;;  %v335_v3 = vld [vmem:[%s4568_s1 + $0x9b8] sm:$0xff] }
  0x7f   :  { %2360 = vmatpush3.msra.mxu1 %v253_v6  ;;  %2326 = vmatprep.subr.mxu0 %v236_v8  ;;  %v287_v4 = vld [vmem:[%s4568_s1 + $0x838] sm:$0xff]  ;;  %v302_v6 = vld [vmem:[%s4568_s1 + $0x8b0] sm:$0xff] }
  0x80   :  { %2361 = vmatprep.subr.mxu1 %v268_v9  ;;  %2327 = vmatpush3.msra.mxu0 %v220_v10  ;;  %v319_v5 = vld [vmem:[%s4568_s1 + $0x938] sm:$0xff]  ;;  %v286_v8 = vld [vmem:[%s4568_s1 + $0x830] sm:$0xff]  ;;  %v301_v10 = vld [vmem:[%s4568_s1 + $0x8a8] sm:$0xff] }
  0x81   :  { %2362 = vmatpush3.msra.mxu1 %v252_v11  ;;  %2328 = vmatprep.subr.mxu0 %v235_v12  ;;  %v318_v9 = vld [vmem:[%s4568_s1 + $0x930] sm:$0xff]  ;;  %v333_v11 = vld [vmem:[%s4568_s1 + $0x9a8] sm:$0xff] }
  0x82   :  { %2363 = vmatprep.subr.mxu1 %v267_v13  ;;  %2329 = vmatpush3.msra.mxu0 %v219_v15  ;;  %v285_v12 = vld [vmem:[%s4568_s1 + $0x828] sm:$0xff]  ;;  %v300_v15 = vld [vmem:[%s4568_s1 + $0x8a0] sm:$0xff] }
  0x83   :  { %2364 = vmatpush3.msra.mxu1 %v251_v16  ;;  %2330 = vmatprep.subr.mxu0 %v234_v17  ;;  %v317_v13 = vld [vmem:[%s4568_s1 + $0x928] sm:$0xff]  ;;  %v332_v16 = vld [vmem:[%s4568_s1 + $0x9a0] sm:$0xff] }
  0x84   :  { %2365 = vmatprep.subr.mxu1 %v266_v18  ;;  %2331 = vmatpush3.msra.mxu0 %v218_v20  ;;  %v284_v17 = vld [vmem:[%s4568_s1 + $0x820] sm:$0xff]  ;;  %v331_v20 = vld [vmem:[%s4568_s1 + $0x998] sm:$0xff] }
  0x85   :  { %2366 = vmatpush3.msra.mxu1 %v250_v21  ;;  %2332 = vmatprep.subr.mxu0 %v233_v22  ;;  %v316_v18 = vld [vmem:[%s4568_s1 + $0x920] sm:$0xff]  ;;  %v684_v21 = vcombine.high %v19_v14, %v19_v14  ;;  %v283_v22 = vld [vmem:[%s4568_s1 + $0x818] sm:$0xff] }
  0x86   :  { %2367 = vmatprep.subr.mxu1 %v265_v23  ;;  %2333 = vmatpush3.msra.mxu0 %v217_v25  ;;  %v315_v23 = vld [vmem:[%s4568_s1 + $0x918] sm:$0xff]  ;;  %v330_v25 = vld [vmem:[%s4568_s1 + $0x990] sm:$0xff] }
  0x87   :  { %2368 = vmatpush3.msra.mxu1 %v249_v26  ;;  %2334 = vmatprep.subr.mxu0 %v232_v27  ;;  %v691_v26 = vrot.slane %v19_v14, %v2921_v51  ;;  %v282_v27 = vld [vmem:[%s4568_s1 + $0x810] sm:$0xff] }
  0x88   :  { %2369 = vmatprep.subr.mxu1 %v264_v28  ;;  %2335 = vmatpush3.msra.mxu0 %v216_v30  ;;  %v314_v28 = vld [vmem:[%s4568_s1 + $0x910] sm:$0xff]  ;;  %v329_v30 = vld [vmem:[%s4568_s1 + $0x988] sm:$0xff] }
  0x89   :  { %1289 = vmatprep.mubr.f32.mxu0 %v682_v29  ;;  %2370 = vmatpush3.msra.mxu1 %v248_v31  ;;  %v297_v29 = vld [vmem:[%s4568_s1 + $0x888] sm:$0xff]  ;;  %v698_v31 = vrot.slane %v684_v21, %v2921_v51  ;;  %v398_v14 = vld [vmem:[%s4568_s1 + $0xbb0] sm:$0xff] }
  0x8a   :  { %1290 = vmatmul.mubr.f32.vlgmr.msra.gmra.mxu0 %v674_v19  ;;  %1359 = vmatprep.mubr.f32.mxu1 %v683_v32  ;;  %v299_v19 = vld [vmem:[%s4568_s1 + $0x898] sm:$0xff]  ;;  %v281_v32 = vld [vmem:[%s4568_s1 + $0x808] sm:$0xff] }
  0x8b   :  { %2374 = vmatprep.subr.mxu0 %v311_v33  ;;  %2409 = vmatprep.subr.mxu1 %v343_v34  ;;  %v313_v33 = vld [vmem:[%s4568_s1 + $0x908] sm:$0xff]  ;;  %v296_v34 = vld [vmem:[%s4568_s1 + $0x880] sm:$0xff] }
  0x8c   :  { %1360 = vmatmul.mubr.f32.vlgmr.msra.gmra.mxu1 %v681_v24  ;;  %2375 = vmatpush3.msra.mxu0 %v295_v35  ;;  %v298_v24 = vld [vmem:[%s4568_s1 + $0x890] sm:$0xff]  ;;  %v328_v35 = vld [vmem:[%s4568_s1 + $0x980] sm:$0xff]  ;;  %v20_v21 = vld [vmem:[%s4567_s0 + $0x28] sm:$0xff] }
  0x8d   :  { %2410 = vmatpush3.msra.mxu1 %v327_v36  ;;  %2376 = vmatprep.subr.mxu0 %v310_v37  ;;  %v699_v36 = vcombine.high %v691_v26, %v691_v26  ;;  %v280_v37 = vld [vmem:[%s4568_s1 + $0x800] sm:$0xff] }
  0x8e   :  { %2411 = vmatprep.subr.mxu1 %v342_v38  ;;  %2377 = vmatpush3.msra.mxu0 %v294_v39  ;;  %v312_v38 = vld [vmem:[%s4568_s1 + $0x900] sm:$0xff]  ;;  %v700_v39 = vcombine.high %v698_v31, %v698_v31 }
  0x8f   :  { %2412 = vmatpush3.msra.mxu1 %v326_v40  ;;  %2378 = vmatprep.subr.mxu0 %v309_v41  ;;  %v375_v40 = vld [vmem:[%s4568_s1 + $0xaf8] sm:$0xff] }
  0x90   :  { %2413 = vmatprep.subr.mxu1 %v341_v42  ;;  %2379 = vmatpush3.msra.mxu0 %v293_v43  ;;  %v407_v41 = vld [vmem:[%s4568_s1 + $0xbf8] sm:$0xff] }
  0x91   :  { %2414 = vmatpush3.msra.mxu1 %v325_v44  ;;  %2380 = vmatprep.subr.mxu0 %v308_v45  ;;  %v359_v42 = vld [vmem:[%s4568_s1 + $0xa78] sm:$0xff]  ;;  %v374_v44 = vld [vmem:[%s4568_s1 + $0xaf0] sm:$0xff] }
  0x92   :  { %2415 = vmatprep.subr.mxu1 %v340_v46  ;;  %2381 = vmatpush3.msra.mxu0 %v292_v47  ;;  %v391_v43 = vld [vmem:[%s4568_s1 + $0xb78] sm:$0xff]  ;;  %v406_v45 = vld [vmem:[%s4568_s1 + $0xbf0] sm:$0xff] }
  0x93   :  { %2416 = vmatpush3.msra.mxu1 %v324_v48  ;;  %2382 = vmatprep.subr.mxu0 %v307_v49  ;;  %v358_v46 = vld [vmem:[%s4568_s1 + $0xa70] sm:$0xff]  ;;  %v373_v48 = vld [vmem:[%s4568_s1 + $0xae8] sm:$0xff] }
  0x94   :  { %2417 = vmatprep.subr.mxu1 %v339_v50  ;;  %2383 = vmatpush3.msra.mxu0 %v291_v52  ;;  %v390_v47 = vld [vmem:[%s4568_s1 + $0xb70] sm:$0xff]  ;;  %v405_v49 = vld [vmem:[%s4568_s1 + $0xbe8] sm:$0xff] }
  0x95   :  { %2418 = vmatpush3.msra.mxu1 %v323_v53  ;;  %2384 = vmatprep.subr.mxu0 %v306_v54  ;;  %v357_v50 = vld [vmem:[%s4568_s1 + $0xa68] sm:$0xff]  ;;  %v372_v53 = vld [vmem:[%s4568_s1 + $0xae0] sm:$0xff] }
  0x96   :  { %2419 = vmatprep.subr.mxu1 %v338_v55  ;;  %2385 = vmatpush3.msra.mxu0 %v290_v56  ;;  %v389_v52 = vld [vmem:[%s4568_s1 + $0xb68] sm:$0xff]  ;;  %v404_v54 = vld [vmem:[%s4568_s1 + $0xbe0] sm:$0xff] }
  0x97   :  { %2420 = vmatpush3.msra.mxu1 %v322_v57  ;;  %2386 = vmatprep.subr.mxu0 %v305_v58  ;;  %v356_v55 = vld [vmem:[%s4568_s1 + $0xa60] sm:$0xff]  ;;  %v371_v57 = vld [vmem:[%s4568_s1 + $0xad8] sm:$0xff] }
  0x98   :  { %2421 = vmatprep.subr.mxu1 %v337_v59  ;;  %2387 = vmatpush3.msra.mxu0 %v289_v60  ;;  %v388_v56 = vld [vmem:[%s4568_s1 + $0xb60] sm:$0xff]  ;;  %v403_v58 = vld [vmem:[%s4568_s1 + $0xbd8] sm:$0xff] }
  0x99   :  { %2422 = vmatpush3.msra.mxu1 %v321_v61  ;;  %2388 = vmatprep.subr.mxu0 %v304_v62  ;;  %v355_v59 = vld [vmem:[%s4568_s1 + $0xa58] sm:$0xff]  ;;  %v370_v61 = vld [vmem:[%s4568_s1 + $0xad0] sm:$0xff] }
  0x9a   :  { %2423 = vmatprep.subr.mxu1 %v336_v63  ;;  %2389 = vmatpush3.msra.mxu0 %v288_v0  ;;  %v387_v60 = vld [vmem:[%s4568_s1 + $0xb58] sm:$0xff]  ;;  %v402_v62 = vld [vmem:[%s4568_s1 + $0xbd0] sm:$0xff] }
  0x9b   :  { %2424 = vmatpush3.msra.mxu1 %v320_v1  ;;  %2390 = vmatprep.subr.mxu0 %v303_v2  ;;  %v354_v63 = vld [vmem:[%s4568_s1 + $0xa50] sm:$0xff]  ;;  %v369_v1 = vld [vmem:[%s4568_s1 + $0xac8] sm:$0xff] }
  0x9c   :  { %2425 = vmatprep.subr.mxu1 %v335_v3  ;;  %2391 = vmatpush3.msra.mxu0 %v287_v4  ;;  %v386_v0 = vld [vmem:[%s4568_s1 + $0xb50] sm:$0xff]  ;;  %v401_v2 = vld [vmem:[%s4568_s1 + $0xbc8] sm:$0xff] }
  0x9d   :  { %2426 = vmatpush3.msra.mxu1 %v319_v5  ;;  %2392 = vmatprep.subr.mxu0 %v302_v6  ;;  %v353_v3 = vld [vmem:[%s4568_s1 + $0xa48] sm:$0xff]  ;;  %v368_v5 = vld [vmem:[%s4568_s1 + $0xac0] sm:$0xff] }
  0x9e   :  { %2427 = vmatprep.subr.mxu1 %v334_v7  ;;  %2393 = vmatpush3.msra.mxu0 %v286_v8  ;;  %v385_v4 = vld [vmem:[%s4568_s1 + $0xb48] sm:$0xff]  ;;  %v400_v6 = vld [vmem:[%s4568_s1 + $0xbc0] sm:$0xff] }
  0x9f   :  { %2428 = vmatpush3.msra.mxu1 %v318_v9  ;;  %2394 = vmatprep.subr.mxu0 %v301_v10  ;;  %v352_v7 = vld [vmem:[%s4568_s1 + $0xa40] sm:$0xff]  ;;  %v367_v9 = vld [vmem:[%s4568_s1 + $0xab8] sm:$0xff] }
  0xa0   :  { %2429 = vmatprep.subr.mxu1 %v333_v11  ;;  %2395 = vmatpush3.msra.mxu0 %v285_v12  ;;  %v384_v8 = vld [vmem:[%s4568_s1 + $0xb40] sm:$0xff]  ;;  %v399_v10 = vld [vmem:[%s4568_s1 + $0xbb8] sm:$0xff] }
  0xa1   :  { %2430 = vmatpush3.msra.mxu1 %v317_v13  ;;  %2396 = vmatprep.subr.mxu0 %v300_v15  ;;  %v351_v11 = vld [vmem:[%s4568_s1 + $0xa38] sm:$0xff]  ;;  %v366_v13 = vld [vmem:[%s4568_s1 + $0xab0] sm:$0xff] }
  0xa2   :  { %2431 = vmatprep.subr.mxu1 %v332_v16  ;;  %2397 = vmatpush3.msra.mxu0 %v284_v17  ;;  %v383_v12 = vld [vmem:[%s4568_s1 + $0xb38] sm:$0xff]  ;;  %v350_v15 = vld [vmem:[%s4568_s1 + $0xa30] sm:$0xff]  ;;  %v365_v17 = vld [vmem:[%s4568_s1 + $0xaa8] sm:$0xff] }
  0xa3   :  { %2432 = vmatpush3.msra.mxu1 %v316_v18  ;;  %2398 = vmatprep.subr.mxu0 %v299_v19  ;;  %v382_v16 = vld [vmem:[%s4568_s1 + $0xb30] sm:$0xff]  ;;  %v397_v18 = vld [vmem:[%s4568_s1 + $0xba8] sm:$0xff] }
  0xa4   :  { %2433 = vmatprep.subr.mxu1 %v331_v20  ;;  %2399 = vmatpush3.msra.mxu0 %v283_v22  ;;  %v349_v19 = vld [vmem:[%s4568_s1 + $0xa28] sm:$0xff]  ;;  %v364_v22 = vld [vmem:[%s4568_s1 + $0xaa0] sm:$0xff] }
  0xa5   :  { %2434 = vmatpush3.msra.mxu1 %v315_v23  ;;  %2400 = vmatprep.subr.mxu0 %v298_v24  ;;  %v381_v20 = vld [vmem:[%s4568_s1 + $0xb28] sm:$0xff]  ;;  %v396_v23 = vld [vmem:[%s4568_s1 + $0xba0] sm:$0xff] }
  0xa6   :  { %2435 = vmatprep.subr.mxu1 %v330_v25  ;;  %2401 = vmatpush3.msra.mxu0 %v282_v27  ;;  %v348_v24 = vld [vmem:[%s4568_s1 + $0xa20] sm:$0xff]  ;;  %v395_v27 = vld [vmem:[%s4568_s1 + $0xb98] sm:$0xff] }
  0xa7   :  { %2436 = vmatpush3.msra.mxu1 %v314_v28  ;;  %2402 = vmatprep.subr.mxu0 %v297_v29  ;;  %v380_v25 = vld [vmem:[%s4568_s1 + $0xb20] sm:$0xff]  ;;  %v701_v28 = vcombine.high %v20_v21, %v20_v21  ;;  %v347_v29 = vld [vmem:[%s4568_s1 + $0xa18] sm:$0xff] }
  0xa8   :  { %2437 = vmatprep.subr.mxu1 %v329_v30  ;;  %2403 = vmatpush3.msra.mxu0 %v281_v32  ;;  %v379_v30 = vld [vmem:[%s4568_s1 + $0xb18] sm:$0xff]  ;;  %v394_v32 = vld [vmem:[%s4568_s1 + $0xb90] sm:$0xff] }
  0xa9   :  { %2438 = vmatpush3.msra.mxu1 %v313_v33  ;;  %2404 = vmatprep.subr.mxu0 %v296_v34  ;;  %v708_v33 = vrot.slane %v20_v21, %v2921_v51  ;;  %v346_v34 = vld [vmem:[%s4568_s1 + $0xa10] sm:$0xff] }
  0xaa   :  { %2439 = vmatprep.subr.mxu1 %v328_v35  ;;  %2405 = vmatpush3.msra.mxu0 %v280_v37  ;;  %v378_v35 = vld [vmem:[%s4568_s1 + $0xb10] sm:$0xff] }
  0xab   :  { %1429 = vmatprep.mubr.f32.mxu0 %v699_v36  ;;  %2440 = vmatpush3.msra.mxu1 %v312_v38 }
  0xac   :  { %1430 = vmatmul.mubr.f32.vlgmr.msra.gmra.mxu0 %v691_v26  ;;  %1499 = vmatprep.mubr.f32.mxu1 %v700_v39  ;;  %v363_v26 = vld [vmem:[%s4568_s1 + $0xa98] sm:$0xff] }
  0xad   :  { %2444 = vmatprep.subr.mxu0 %v375_v40  ;;  %2479 = vmatprep.subr.mxu1 %v407_v41 }
  0xae   :  { %1500 = vmatmul.mubr.f32.vlgmr.msra.gmra.mxu1 %v698_v31  ;;  %2445 = vmatpush3.msra.mxu0 %v359_v42  ;;  %v362_v31 = vld [vmem:[%s4568_s1 + $0xa90] sm:$0xff] }
  0xaf   :  { %2480 = vmatpush3.msra.mxu1 %v391_v43  ;;  %2446 = vmatprep.subr.mxu0 %v374_v44 }
  0xb0   :  { %2481 = vmatprep.subr.mxu1 %v406_v45  ;;  %2447 = vmatpush3.msra.mxu0 %v358_v46 }
  0xb1   :  { %2482 = vmatpush3.msra.mxu1 %v390_v47  ;;  %2448 = vmatprep.subr.mxu0 %v373_v48 }
  0xb2   :  { %2483 = vmatprep.subr.mxu1 %v405_v49  ;;  %2449 = vmatpush3.msra.mxu0 %v357_v50 }
  0xb3   :  { %2484 = vmatpush3.msra.mxu1 %v389_v52  ;;  %2450 = vmatprep.subr.mxu0 %v372_v53 }
  0xb4   :  { %2485 = vmatprep.subr.mxu1 %v404_v54  ;;  %2451 = vmatpush3.msra.mxu0 %v356_v55 }
  0xb5   :  { %2486 = vmatpush3.msra.mxu1 %v388_v56  ;;  %2452 = vmatprep.subr.mxu0 %v371_v57 }
  0xb6   :  { %2487 = vmatprep.subr.mxu1 %v403_v58  ;;  %2453 = vmatpush3.msra.mxu0 %v355_v59 }
  0xb7   :  { %2488 = vmatpush3.msra.mxu1 %v387_v60  ;;  %2454 = vmatprep.subr.mxu0 %v370_v61 }
  0xb8   :  { %2489 = vmatprep.subr.mxu1 %v402_v62  ;;  %2455 = vmatpush3.msra.mxu0 %v354_v63 }
  0xb9   :  { %2490 = vmatpush3.msra.mxu1 %v386_v0  ;;  %2456 = vmatprep.subr.mxu0 %v369_v1 }
  0xba   :  { %2491 = vmatprep.subr.mxu1 %v401_v2  ;;  %2457 = vmatpush3.msra.mxu0 %v353_v3 }
  0xbb   :  { %2492 = vmatpush3.msra.mxu1 %v385_v4  ;;  %2458 = vmatprep.subr.mxu0 %v368_v5 }
  0xbc   :  { %2493 = vmatprep.subr.mxu1 %v400_v6  ;;  %2459 = vmatpush3.msra.mxu0 %v352_v7 }
  0xbd   :  { %2494 = vmatpush3.msra.mxu1 %v384_v8  ;;  %2460 = vmatprep.subr.mxu0 %v367_v9 }
  0xbe   :  { %2495 = vmatprep.subr.mxu1 %v399_v10  ;;  %2461 = vmatpush3.msra.mxu0 %v351_v11 }
  0xbf   :  { %2496 = vmatpush3.msra.mxu1 %v383_v12  ;;  %2462 = vmatprep.subr.mxu0 %v366_v13 }
  0xc0   :  { %2497 = vmatprep.subr.mxu1 %v398_v14  ;;  %2463 = vmatpush3.msra.mxu0 %v350_v15 }
  0xc1   :  { %2498 = vmatpush3.msra.mxu1 %v382_v16  ;;  %2464 = vmatprep.subr.mxu0 %v365_v17 }
  0xc2   :  { %2499 = vmatprep.subr.mxu1 %v397_v18  ;;  %2465 = vmatpush3.msra.mxu0 %v349_v19 }
  0xc3   :  { %2500 = vmatpush3.msra.mxu1 %v381_v20  ;;  %2466 = vmatprep.subr.mxu0 %v364_v22 }
  0xc4   :  { %2501 = vmatprep.subr.mxu1 %v396_v23  ;;  %2467 = vmatpush3.msra.mxu0 %v348_v24 }
  0xc5   :  { %2502 = vmatpush3.msra.mxu1 %v380_v25  ;;  %2468 = vmatprep.subr.mxu0 %v363_v26 }
  0xc6   :  { %2503 = vmatprep.subr.mxu1 %v395_v27 }
  0xc7   :  { %8 = vsyncpa [#allocation3], 0  ;;  %2469 = vmatpush3.msra.mxu0 %v347_v29  ;;  %2504 = vmatpush3.msra.mxu1 %v379_v30  ;;  %v361_v36 = vld [vmem:[%s4568_s1 + $0xa88] sm:$0xff]  ;;  %v715_v38 = vrot.slane %v701_v28, %v2921_v51  ;;  %v360_v41 = vld [vmem:[%s4568_s1 + $0xa80] sm:$0xff]  ;;  %v716_v43 = vcombine.high %v708_v33, %v708_v33  ;;  %vm2065_vm0 = vcmask 99328  }
  0xc8   :  { %v393_v37 = vld [vmem:[%s4568_s1 + $0xb88] sm:$0xff]  ;;  %2470 = vmatprep.subr.mxu0 %v362_v31  ;;  %2505 = vmatprep.subr.mxu1 %v394_v32  ;;  %v392_v42 = vld [vmem:[%s4568_s1 + $0xb80] sm:$0xff]  ;;  %v439_v47 = vld [vmem:[%s4568_s1 + $0xcf8] sm:$0xff] }
  0xc9   :  { %v345_v39 = vld [vmem:[%s4568_s1 + $0xa08] sm:$0xff]  ;;  %2471 = vmatpush3.msra.mxu0 %v346_v34  ;;  %2506 = vmatpush3.msra.mxu1 %v378_v35  ;;  %v344_v44 = vld [vmem:[%s4568_s1 + $0xa00] sm:$0xff]  ;;  %v717_v46 = vcombine.high %v715_v38, %v715_v38  ;;  %v471_v48 = vld [vmem:[%s4568_s1 + $0xdf8] sm:$0xff] }
  0xca   :  { %v377_v40 = vld [vmem:[%s4568_s1 + $0xb08] sm:$0xff]  ;;  %2472 = vmatprep.subr.mxu0 %v361_v36  ;;  %2507 = vmatprep.subr.mxu1 %v393_v37  ;;  %v376_v45 = vld [vmem:[%s4568_s1 + $0xb00] sm:$0xff]  ;;  %v423_v49 = vld [vmem:[%s4568_s1 + $0xc78] sm:$0xff] }
  0xcb   :  { %2473 = vmatpush3.msra.mxu0 %v345_v39  ;;  %2508 = vmatpush3.msra.mxu1 %v377_v40  ;;  %v455_v50 = vld [vmem:[%s4568_s1 + $0xd78] sm:$0xff]  ;;  %v438_v52 = vld [vmem:[%s4568_s1 + $0xcf0] sm:$0xff]  ;;  %v437_v56 = vld [vmem:[%s4568_s1 + $0xce8] sm:$0xff] }
  0xcc   :  { %2474 = vmatprep.subr.mxu0 %v360_v41  ;;  %2509 = vmatprep.subr.mxu1 %v392_v42  ;;  %v470_v53 = vld [vmem:[%s4568_s1 + $0xdf0] sm:$0xff]  ;;  %v469_v57 = vld [vmem:[%s4568_s1 + $0xde8] sm:$0xff]  ;;  %v436_v60 = vld [vmem:[%s4568_s1 + $0xce0] sm:$0xff] }
  0xcd   :  { %2475 = vmatpush3.msra.mxu0 %v344_v44  ;;  %1569 = vmatprep.mubr.f32.mxu0 %v716_v43  ;;  %v422_v54 = vld [vmem:[%s4568_s1 + $0xc70] sm:$0xff]  ;;  %v421_v58 = vld [vmem:[%s4568_s1 + $0xc68] sm:$0xff]  ;;  %v468_v61 = vld [vmem:[%s4568_s1 + $0xde0] sm:$0xff] }
  0xce   :  { %2510 = vmatpush3.msra.mxu1 %v376_v45  ;;  %1570 = vmatmul.mubr.f32.vlgmr.msra.gmra.mxu0 %v708_v33  ;;  %v454_v55 = vld [vmem:[%s4568_s1 + $0xd70] sm:$0xff]  ;;  %v453_v59 = vld [vmem:[%s4568_s1 + $0xd68] sm:$0xff]  ;;  %v420_v62 = vld [vmem:[%s4568_s1 + $0xc60] sm:$0xff] }
  0xcf   :  { %1639 = vmatprep.mubr.f32.mxu1 %v717_v46  ;;  %2514 = vmatprep.subr.mxu0 %v439_v47  ;;  %v452_v63 = vld [vmem:[%s4568_s1 + $0xd60] sm:$0xff]  ;;  %v435_v0 = vld [vmem:[%s4568_s1 + $0xcd8] sm:$0xff]  ;;  %v434_v4 = vld [vmem:[%s4568_s1 + $0xcd0] sm:$0xff] }
  0xd0   :  { %2549 = vmatprep.subr.mxu1 %v471_v48  ;;  %1640 = vmatmul.mubr.f32.vlgmr.msra.gmra.mxu1 %v715_v38  ;;  %v467_v1 = vld [vmem:[%s4568_s1 + $0xdd8] sm:$0xff]  ;;  %v466_v5 = vld [vmem:[%s4568_s1 + $0xdd0] sm:$0xff]  ;;  %v433_v8 = vld [vmem:[%s4568_s1 + $0xcc8] sm:$0xff] }
  0xd1   :  { %2515 = vmatpush3.msra.mxu0 %v423_v49  ;;  %2550 = vmatpush3.msra.mxu1 %v455_v50  ;;  %v419_v2 = vld [vmem:[%s4568_s1 + $0xc58] sm:$0xff]  ;;  %v418_v6 = vld [vmem:[%s4568_s1 + $0xc50] sm:$0xff]  ;;  %v465_v9 = vld [vmem:[%s4568_s1 + $0xdc8] sm:$0xff] }
  0xd2   :  { %2516 = vmatprep.subr.mxu0 %v438_v52  ;;  %2551 = vmatprep.subr.mxu1 %v470_v53  ;;  %v451_v3 = vld [vmem:[%s4568_s1 + $0xd58] sm:$0xff]  ;;  %v450_v7 = vld [vmem:[%s4568_s1 + $0xd50] sm:$0xff]  ;;  %v417_v10 = vld [vmem:[%s4568_s1 + $0xc48] sm:$0xff] }
  0xd3   :  { %2517 = vmatpush3.msra.mxu0 %v422_v54  ;;  %2552 = vmatpush3.msra.mxu1 %v454_v55  ;;  %v449_v11 = vld [vmem:[%s4568_s1 + $0xd48] sm:$0xff]  ;;  %v432_v12 = vld [vmem:[%s4568_s1 + $0xcc0] sm:$0xff]  ;;  %v431_v16 = vld [vmem:[%s4568_s1 + $0xcb8] sm:$0xff] }
  0xd4   :  { %2518 = vmatprep.subr.mxu0 %v437_v56  ;;  %2553 = vmatprep.subr.mxu1 %v469_v57  ;;  %v464_v13 = vld [vmem:[%s4568_s1 + $0xdc0] sm:$0xff]  ;;  %v463_v17 = vld [vmem:[%s4568_s1 + $0xdb8] sm:$0xff]  ;;  %v430_v20 = vld [vmem:[%s4568_s1 + $0xcb0] sm:$0xff] }
  0xd5   :  { %2519 = vmatpush3.msra.mxu0 %v421_v58  ;;  %2554 = vmatpush3.msra.mxu1 %v453_v59  ;;  %v416_v14 = vld [vmem:[%s4568_s1 + $0xc40] sm:$0xff]  ;;  %v415_v18 = vld [vmem:[%s4568_s1 + $0xc38] sm:$0xff]  ;;  %v462_v21 = vld [vmem:[%s4568_s1 + $0xdb0] sm:$0xff] }
  0xd6   :  { %2520 = vmatprep.subr.mxu0 %v436_v60  ;;  %2555 = vmatprep.subr.mxu1 %v468_v61  ;;  %v448_v15 = vld [vmem:[%s4568_s1 + $0xd40] sm:$0xff]  ;;  %v447_v19 = vld [vmem:[%s4568_s1 + $0xd38] sm:$0xff]  ;;  %v414_v22 = vld [vmem:[%s4568_s1 + $0xc30] sm:$0xff] }
  0xd7   :  { %2521 = vmatpush3.msra.mxu0 %v420_v62  ;;  %2556 = vmatpush3.msra.mxu1 %v452_v63  ;;  %v446_v23 = vld [vmem:[%s4568_s1 + $0xd30] sm:$0xff]  ;;  %v429_v24 = vld [vmem:[%s4568_s1 + $0xca8] sm:$0xff]  ;;  %v428_v29 = vld [vmem:[%s4568_s1 + $0xca0] sm:$0xff] }
  0xd8   :  { %2522 = vmatprep.subr.mxu0 %v435_v0  ;;  %2557 = vmatprep.subr.mxu1 %v467_v1  ;;  %v461_v25 = vld [vmem:[%s4568_s1 + $0xda8] sm:$0xff]  ;;  %v21_v28 = vld [vmem:[%s4567_s0 + $0x30] sm:$0xff]  ;;  %v460_v30 = vld [vmem:[%s4568_s1 + $0xda0] sm:$0xff] }
  0xd9   :  { %2523 = vmatpush3.msra.mxu0 %v419_v2  ;;  %2558 = vmatpush3.msra.mxu1 %v451_v3  ;;  %v413_v26 = vld [vmem:[%s4568_s1 + $0xc28] sm:$0xff]  ;;  %v412_v31 = vld [vmem:[%s4568_s1 + $0xc20] sm:$0xff]  ;;  %v427_v33 = vld [vmem:[%s4568_s1 + $0xc98] sm:$0xff]  ;;  %v718_v35 = vcombine.high %v21_v28, %v21_v28  ;;  %v725_v40 = vrot.slane %v21_v28, %v2921_v51 }
  0xda   :  { %2524 = vmatprep.subr.mxu0 %v434_v4  ;;  %2559 = vmatprep.subr.mxu1 %v466_v5  ;;  %v445_v27 = vld [vmem:[%s4568_s1 + $0xd28] sm:$0xff]  ;;  %v444_v32 = vld [vmem:[%s4568_s1 + $0xd20] sm:$0xff]  ;;  %v459_v34 = vld [vmem:[%s4568_s1 + $0xd98] sm:$0xff] }
  0xdb   :  { %2525 = vmatpush3.msra.mxu0 %v418_v6  ;;  %2560 = vmatpush3.msra.mxu1 %v450_v7  ;;  %v411_v36 = vld [vmem:[%s4568_s1 + $0xc18] sm:$0xff]  ;;  %v426_v38 = vld [vmem:[%s4568_s1 + $0xc90] sm:$0xff]  ;;  %v425_v43 = vld [vmem:[%s4568_s1 + $0xc88] sm:$0xff]  ;;  %v732_v45 = vrot.slane %v718_v35, %v2921_v51  ;;  %v733_v50 = vcombine.high %v725_v40, %v725_v40 }
  0xdc   :  { %2526 = vmatprep.subr.mxu0 %v433_v8  ;;  %2561 = vmatprep.subr.mxu1 %v465_v9  ;;  %v443_v37 = vld [vmem:[%s4568_s1 + $0xd18] sm:$0xff]  ;;  %v458_v39 = vld [vmem:[%s4568_s1 + $0xd90] sm:$0xff]  ;;  %v457_v44 = vld [vmem:[%s4568_s1 + $0xd88] sm:$0xff] }
  0xdd   :  { %2527 = vmatpush3.msra.mxu0 %v417_v10  ;;  %2562 = vmatpush3.msra.mxu1 %v449_v11  ;;  %v410_v41 = vld [vmem:[%s4568_s1 + $0xc10] sm:$0xff]  ;;  %v409_v46 = vld [vmem:[%s4568_s1 + $0xc08] sm:$0xff]  ;;  %v424_v48 = vld [vmem:[%s4568_s1 + $0xc80] sm:$0xff]  ;;  %v734_v54 = vcombine.high %v732_v45, %v732_v45 }
  0xde   :  { %2528 = vmatprep.subr.mxu0 %v432_v12  ;;  %2563 = vmatprep.subr.mxu1 %v464_v13  ;;  %v442_v42 = vld [vmem:[%s4568_s1 + $0xd10] sm:$0xff]  ;;  %v441_v47 = vld [vmem:[%s4568_s1 + $0xd08] sm:$0xff]  ;;  %v456_v49 = vld [vmem:[%s4568_s1 + $0xd80] sm:$0xff] }
  0xdf   :  { %2529 = vmatpush3.msra.mxu0 %v416_v14  ;;  %2564 = vmatpush3.msra.mxu1 %v448_v15  ;;  %v408_v52 = vld [vmem:[%s4568_s1 + $0xc00] sm:$0xff]  ;;  %v503_v55 = vld [vmem:[%s4568_s1 + $0xef8] sm:$0xff]  ;;  %v502_v59 = vld [vmem:[%s4568_s1 + $0xef0] sm:$0xff] }
  0xe0   :  { %2530 = vmatprep.subr.mxu0 %v431_v16  ;;  %2565 = vmatprep.subr.mxu1 %v463_v17  ;;  %v440_v53 = vld [vmem:[%s4568_s1 + $0xd00] sm:$0xff]  ;;  %v535_v56 = vld [vmem:[%s4568_s1 + $0xff8] sm:$0xff]  ;;  %v534_v60 = vld [vmem:[%s4568_s1 + $0xff0] sm:$0xff] }
  0xe1   :  { %2531 = vmatpush3.msra.mxu0 %v415_v18  ;;  %2566 = vmatpush3.msra.mxu1 %v447_v19  ;;  %v487_v57 = vld [vmem:[%s4568_s1 + $0xe78] sm:$0xff]  ;;  %v486_v61 = vld [vmem:[%s4568_s1 + $0xe70] sm:$0xff]  ;;  %v501_v63 = vld [vmem:[%s4568_s1 + $0xee8] sm:$0xff] }
  0xe2   :  { %2532 = vmatprep.subr.mxu0 %v430_v20  ;;  %2567 = vmatprep.subr.mxu1 %v462_v21  ;;  %v519_v58 = vld [vmem:[%s4568_s1 + $0xf78] sm:$0xff]  ;;  %v518_v62 = vld [vmem:[%s4568_s1 + $0xf70] sm:$0xff]  ;;  %v533_v0 = vld [vmem:[%s4568_s1 + $0xfe8] sm:$0xff] }
  0xe3   :  { %2533 = vmatpush3.msra.mxu0 %v414_v22  ;;  %2568 = vmatpush3.msra.mxu1 %v446_v23  ;;  %v485_v1 = vld [vmem:[%s4568_s1 + $0xe68] sm:$0xff]  ;;  %v500_v3 = vld [vmem:[%s4568_s1 + $0xee0] sm:$0xff]  ;;  %v499_v7 = vld [vmem:[%s4568_s1 + $0xed8] sm:$0xff] }
  0xe4   :  { %2534 = vmatprep.subr.mxu0 %v429_v24  ;;  %2569 = vmatprep.subr.mxu1 %v461_v25  ;;  %v517_v2 = vld [vmem:[%s4568_s1 + $0xf68] sm:$0xff]  ;;  %v532_v4 = vld [vmem:[%s4568_s1 + $0xfe0] sm:$0xff]  ;;  %v531_v8 = vld [vmem:[%s4568_s1 + $0xfd8] sm:$0xff] }
  0xe5   :  { %2535 = vmatpush3.msra.mxu0 %v413_v26  ;;  %2570 = vmatpush3.msra.mxu1 %v445_v27  ;;  %v484_v5 = vld [vmem:[%s4568_s1 + $0xe60] sm:$0xff]  ;;  %v483_v9 = vld [vmem:[%s4568_s1 + $0xe58] sm:$0xff]  ;;  %v498_v11 = vld [vmem:[%s4568_s1 + $0xed0] sm:$0xff] }
  0xe6   :  { %2536 = vmatprep.subr.mxu0 %v428_v29  ;;  %2571 = vmatprep.subr.mxu1 %v460_v30  ;;  %v516_v6 = vld [vmem:[%s4568_s1 + $0xf60] sm:$0xff]  ;;  %v515_v10 = vld [vmem:[%s4568_s1 + $0xf58] sm:$0xff]  ;;  %v530_v12 = vld [vmem:[%s4568_s1 + $0xfd0] sm:$0xff] }
  0xe7   :  { %2537 = vmatpush3.msra.mxu0 %v412_v31  ;;  %2572 = vmatpush3.msra.mxu1 %v444_v32  ;;  %v482_v13 = vld [vmem:[%s4568_s1 + $0xe50] sm:$0xff]  ;;  %v497_v15 = vld [vmem:[%s4568_s1 + $0xec8] sm:$0xff]  ;;  %v496_v19 = vld [vmem:[%s4568_s1 + $0xec0] sm:$0xff] }
  0xe8   :  { %2538 = vmatprep.subr.mxu0 %v427_v33  ;;  %2573 = vmatprep.subr.mxu1 %v459_v34  ;;  %v514_v14 = vld [vmem:[%s4568_s1 + $0xf50] sm:$0xff]  ;;  %v529_v16 = vld [vmem:[%s4568_s1 + $0xfc8] sm:$0xff]  ;;  %v528_v20 = vld [vmem:[%s4568_s1 + $0xfc0] sm:$0xff] }
  0xe9   :  { %2539 = vmatpush3.msra.mxu0 %v411_v36  ;;  %2574 = vmatpush3.msra.mxu1 %v443_v37  ;;  %v481_v17 = vld [vmem:[%s4568_s1 + $0xe48] sm:$0xff]  ;;  %v480_v21 = vld [vmem:[%s4568_s1 + $0xe40] sm:$0xff]  ;;  %v495_v23 = vld [vmem:[%s4568_s1 + $0xeb8] sm:$0xff] }
  0xea   :  { %2540 = vmatprep.subr.mxu0 %v426_v38  ;;  %2575 = vmatprep.subr.mxu1 %v458_v39  ;;  %v513_v18 = vld [vmem:[%s4568_s1 + $0xf48] sm:$0xff]  ;;  %v512_v22 = vld [vmem:[%s4568_s1 + $0xf40] sm:$0xff]  ;;  %v527_v24 = vld [vmem:[%s4568_s1 + $0xfb8] sm:$0xff] }
  0xeb   :  { %2541 = vmatpush3.msra.mxu0 %v410_v41  ;;  %2576 = vmatpush3.msra.mxu1 %v442_v42  ;;  %v479_v25 = vld [vmem:[%s4568_s1 + $0xe38] sm:$0xff]  ;;  %v494_v27 = vld [vmem:[%s4568_s1 + $0xeb0] sm:$0xff]  ;;  %v493_v31 = vld [vmem:[%s4568_s1 + $0xea8] sm:$0xff] }
  0xec   :  { %2542 = vmatprep.subr.mxu0 %v425_v43  ;;  %2577 = vmatprep.subr.mxu1 %v457_v44  ;;  %v511_v26 = vld [vmem:[%s4568_s1 + $0xf38] sm:$0xff]  ;;  %v526_v28 = vld [vmem:[%s4568_s1 + $0xfb0] sm:$0xff]  ;;  %v525_v32 = vld [vmem:[%s4568_s1 + $0xfa8] sm:$0xff] }
  0xed   :  { %2543 = vmatpush3.msra.mxu0 %v409_v46  ;;  %2578 = vmatpush3.msra.mxu1 %v441_v47  ;;  %v478_v29 = vld [vmem:[%s4568_s1 + $0xe30] sm:$0xff]  ;;  %v477_v33 = vld [vmem:[%s4568_s1 + $0xe28] sm:$0xff]  ;;  %v22_v35 = vld [vmem:[%s4567_s0 + $0x38] sm:$0xff] }
  0xee   :  { %2544 = vmatprep.subr.mxu0 %v424_v48  ;;  %2579 = vmatprep.subr.mxu1 %v456_v49  ;;  %v510_v30 = vld [vmem:[%s4568_s1 + $0xf30] sm:$0xff]  ;;  %v509_v34 = vld [vmem:[%s4568_s1 + $0xf28] sm:$0xff]  ;;  %v492_v36 = vld [vmem:[%s4568_s1 + $0xea0] sm:$0xff]  ;;  %v735_v42 = vcombine.high %v22_v35, %v22_v35  ;;  %v742_v47 = vrot.slane %v22_v35, %v2921_v51 }
  0xef   :  { %2545 = vmatpush3.msra.mxu0 %v408_v52  ;;  %1709 = vmatprep.mubr.f32.mxu0 %v733_v50  ;;  %v524_v37 = vld [vmem:[%s4568_s1 + $0xfa0] sm:$0xff]  ;;  %v523_v41 = vld [vmem:[%s4568_s1 + $0xf98] sm:$0xff]  ;;  %v522_v46 = vld [vmem:[%s4568_s1 + $0xf90] sm:$0xff] }
  0xf0   :  { %2580 = vmatpush3.msra.mxu1 %v440_v53  ;;  %1710 = vmatmul.mubr.f32.vlgmr.msra.gmra.mxu0 %v725_v40  ;;  %v476_v38 = vld [vmem:[%s4568_s1 + $0xe20] sm:$0xff]  ;;  %v491_v40 = vld [vmem:[%s4568_s1 + $0xe98] sm:$0xff]  ;;  %v474_v48 = vld [vmem:[%s4568_s1 + $0xe10] sm:$0xff]  ;;  %v749_v53 = vrot.slane %v735_v42, %v2921_v51 }
  0xf1   :  { %1779 = vmatprep.mubr.f32.mxu1 %v734_v54  ;;  %2584 = vmatprep.subr.mxu0 %v503_v55  ;;  %v508_v39 = vld [vmem:[%s4568_s1 + $0xf20] sm:$0xff]  ;;  %v475_v43 = vld [vmem:[%s4568_s1 + $0xe18] sm:$0xff]  ;;  %v506_v49 = vld [vmem:[%s4568_s1 + $0xf10] sm:$0xff] }
  0xf2   :  { %2619 = vmatprep.subr.mxu1 %v535_v56  ;;  %1780 = vmatmul.mubr.f32.vlgmr.msra.gmra.mxu1 %v732_v45  ;;  %v507_v44 = vld [vmem:[%s4568_s1 + $0xf18] sm:$0xff]  ;;  %v490_v45 = vld [vmem:[%s4568_s1 + $0xe90] sm:$0xff]  ;;  %v489_v50 = vld [vmem:[%s4568_s1 + $0xe88] sm:$0xff] }
  0xf3   :  { %2585 = vmatpush3.msra.mxu0 %v487_v57  ;;  %2620 = vmatpush3.msra.mxu1 %v519_v58  ;;  %v521_v52 = vld [vmem:[%s4568_s1 + $0xf88] sm:$0xff]  ;;  %v488_v56 = vld [vmem:[%s4568_s1 + $0xe80] sm:$0xff]  ;;  %v750_v58 = vcombine.high %v742_v47, %v742_v47  ;;  %v590_v35 = vld [vmem:[%s4568_s1 + $0x11b0] sm:$0xff] }
  0xf4   :  { %2586 = vmatprep.subr.mxu0 %v502_v59  ;;  %2621 = vmatprep.subr.mxu1 %v534_v60  ;;  %v473_v54 = vld [vmem:[%s4568_s1 + $0xe08] sm:$0xff]  ;;  %v520_v57 = vld [vmem:[%s4568_s1 + $0xf80] sm:$0xff] }
  0xf5   :  { %2587 = vmatpush3.msra.mxu0 %v486_v61  ;;  %2622 = vmatpush3.msra.mxu1 %v518_v62  ;;  %v505_v55 = vld [vmem:[%s4568_s1 + $0xf08] sm:$0xff]  ;;  %v472_v59 = vld [vmem:[%s4568_s1 + $0xe00] sm:$0xff]  ;;  %v751_v61 = vcombine.high %v749_v53, %v749_v53  ;;  %v567_v62 = vld [vmem:[%s4568_s1 + $0x10f8] sm:$0xff] }
  0xf6   :  { %2588 = vmatprep.subr.mxu0 %v501_v63  ;;  %2623 = vmatprep.subr.mxu1 %v533_v0  ;;  %v504_v60 = vld [vmem:[%s4568_s1 + $0xf00] sm:$0xff]  ;;  %v599_v63 = vld [vmem:[%s4568_s1 + $0x11f8] sm:$0xff]  ;;  %v573_v42 = vld [vmem:[%s4568_s1 + $0x1128] sm:$0xff] }
  0xf7   :  { %2589 = vmatpush3.msra.mxu0 %v485_v1  ;;  %2624 = vmatpush3.msra.mxu1 %v517_v2  ;;  %v551_v0 = vld [vmem:[%s4568_s1 + $0x1078] sm:$0xff]  ;;  %v566_v2 = vld [vmem:[%s4568_s1 + $0x10f0] sm:$0xff] }
  0xf8   :  { %2590 = vmatprep.subr.mxu0 %v500_v3  ;;  %2625 = vmatprep.subr.mxu1 %v532_v4  ;;  %v583_v1 = vld [vmem:[%s4568_s1 + $0x1178] sm:$0xff]  ;;  %v598_v3 = vld [vmem:[%s4568_s1 + $0x11f0] sm:$0xff] }
  0xf9   :  { %2591 = vmatpush3.msra.mxu0 %v484_v5  ;;  %2626 = vmatpush3.msra.mxu1 %v516_v6  ;;  %v550_v4 = vld [vmem:[%s4568_s1 + $0x1070] sm:$0xff]  ;;  %v565_v6 = vld [vmem:[%s4568_s1 + $0x10e8] sm:$0xff] }
  0xfa   :  { %2592 = vmatprep.subr.mxu0 %v499_v7  ;;  %2627 = vmatprep.subr.mxu1 %v531_v8  ;;  %v582_v5 = vld [vmem:[%s4568_s1 + $0x1170] sm:$0xff]  ;;  %v597_v7 = vld [vmem:[%s4568_s1 + $0x11e8] sm:$0xff] }
  0xfb   :  { %2593 = vmatpush3.msra.mxu0 %v483_v9  ;;  %2628 = vmatpush3.msra.mxu1 %v515_v10  ;;  %v549_v8 = vld [vmem:[%s4568_s1 + $0x1068] sm:$0xff]  ;;  %v564_v10 = vld [vmem:[%s4568_s1 + $0x10e0] sm:$0xff] }
  0xfc   :  { %2594 = vmatprep.subr.mxu0 %v498_v11  ;;  %2629 = vmatprep.subr.mxu1 %v530_v12  ;;  %v581_v9 = vld [vmem:[%s4568_s1 + $0x1168] sm:$0xff]  ;;  %v596_v11 = vld [vmem:[%s4568_s1 + $0x11e0] sm:$0xff] }
  0xfd   :  { %2595 = vmatpush3.msra.mxu0 %v482_v13  ;;  %2630 = vmatpush3.msra.mxu1 %v514_v14  ;;  %v548_v12 = vld [vmem:[%s4568_s1 + $0x1060] sm:$0xff]  ;;  %v563_v14 = vld [vmem:[%s4568_s1 + $0x10d8] sm:$0xff] }
  0xfe   :  { %2596 = vmatprep.subr.mxu0 %v497_v15  ;;  %2631 = vmatprep.subr.mxu1 %v529_v16  ;;  %v580_v13 = vld [vmem:[%s4568_s1 + $0x1160] sm:$0xff]  ;;  %v595_v15 = vld [vmem:[%s4568_s1 + $0x11d8] sm:$0xff] }
  0xff   :  { %2597 = vmatpush3.msra.mxu0 %v481_v17  ;;  %2632 = vmatpush3.msra.mxu1 %v513_v18  ;;  %v547_v16 = vld [vmem:[%s4568_s1 + $0x1058] sm:$0xff]  ;;  %v562_v18 = vld [vmem:[%s4568_s1 + $0x10d0] sm:$0xff] }
 0x100   :  { %2598 = vmatprep.subr.mxu0 %v496_v19  ;;  %2633 = vmatprep.subr.mxu1 %v528_v20  ;;  %v579_v17 = vld [vmem:[%s4568_s1 + $0x1158] sm:$0xff]  ;;  %v594_v19 = vld [vmem:[%s4568_s1 + $0x11d0] sm:$0xff] }
 0x101   :  { %2599 = vmatpush3.msra.mxu0 %v480_v21  ;;  %2634 = vmatpush3.msra.mxu1 %v512_v22  ;;  %v546_v20 = vld [vmem:[%s4568_s1 + $0x1050] sm:$0xff]  ;;  %v561_v22 = vld [vmem:[%s4568_s1 + $0x10c8] sm:$0xff] }
 0x102   :  { %2600 = vmatprep.subr.mxu0 %v495_v23  ;;  %2635 = vmatprep.subr.mxu1 %v527_v24  ;;  %v578_v21 = vld [vmem:[%s4568_s1 + $0x1150] sm:$0xff]  ;;  %v593_v23 = vld [vmem:[%s4568_s1 + $0x11c8] sm:$0xff] }
 0x103   :  { %2601 = vmatpush3.msra.mxu0 %v479_v25  ;;  %2636 = vmatpush3.msra.mxu1 %v511_v26  ;;  %v545_v24 = vld [vmem:[%s4568_s1 + $0x1048] sm:$0xff]  ;;  %v560_v26 = vld [vmem:[%s4568_s1 + $0x10c0] sm:$0xff] }
 0x104   :  { %2602 = vmatprep.subr.mxu0 %v494_v27  ;;  %2637 = vmatprep.subr.mxu1 %v526_v28  ;;  %v577_v25 = vld [vmem:[%s4568_s1 + $0x1148] sm:$0xff]  ;;  %v592_v27 = vld [vmem:[%s4568_s1 + $0x11c0] sm:$0xff] }
 0x105   :  { %2603 = vmatpush3.msra.mxu0 %v478_v29  ;;  %2638 = vmatpush3.msra.mxu1 %v510_v30  ;;  %v544_v28 = vld [vmem:[%s4568_s1 + $0x1040] sm:$0xff]  ;;  %v559_v30 = vld [vmem:[%s4568_s1 + $0x10b8] sm:$0xff] }
 0x106   :  { %2604 = vmatprep.subr.mxu0 %v493_v31  ;;  %2639 = vmatprep.subr.mxu1 %v525_v32  ;;  %v576_v29 = vld [vmem:[%s4568_s1 + $0x1140] sm:$0xff]  ;;  %v591_v31 = vld [vmem:[%s4568_s1 + $0x11b8] sm:$0xff] }
 0x107   :  { %2605 = vmatpush3.msra.mxu0 %v477_v33  ;;  %2640 = vmatpush3.msra.mxu1 %v509_v34  ;;  %v543_v32 = vld [vmem:[%s4568_s1 + $0x1038] sm:$0xff]  ;;  %v558_v34 = vld [vmem:[%s4568_s1 + $0x10b0] sm:$0xff] }
 0x108   :  { %2606 = vmatprep.subr.mxu0 %v492_v36  ;;  %2641 = vmatprep.subr.mxu1 %v524_v37  ;;  %v575_v33 = vld [vmem:[%s4568_s1 + $0x1138] sm:$0xff]  ;;  %v542_v36 = vld [vmem:[%s4568_s1 + $0x1030] sm:$0xff] }
 0x109   :  { %2607 = vmatpush3.msra.mxu0 %v476_v38  ;;  %2642 = vmatpush3.msra.mxu1 %v508_v39  ;;  %v574_v37 = vld [vmem:[%s4568_s1 + $0x1130] sm:$0xff]  ;;  %v557_v38 = vld [vmem:[%s4568_s1 + $0x10a8] sm:$0xff] }
 0x10a   :  { %2608 = vmatprep.subr.mxu0 %v491_v40  ;;  %2643 = vmatprep.subr.mxu1 %v523_v41  ;;  %v589_v39 = vld [vmem:[%s4568_s1 + $0x11a8] sm:$0xff]  ;;  %v23_v40 = vld [vmem:[%s4567_s0 + $0x40] sm:$0xff] }
 0x10b   :  { %2609 = vmatpush3.msra.mxu0 %v475_v43  ;;  %2644 = vmatpush3.msra.mxu1 %v507_v44  ;;  %v541_v41 = vld [vmem:[%s4568_s1 + $0x1028] sm:$0xff]  ;;  %v556_v43 = vld [vmem:[%s4568_s1 + $0x10a0] sm:$0xff] }
 0x10c   :  { %2610 = vmatprep.subr.mxu0 %v490_v45  ;;  %2645 = vmatprep.subr.mxu1 %v522_v46  ;;  %v588_v44 = vld [vmem:[%s4568_s1 + $0x11a0] sm:$0xff] }
 0x10d   :  { %2611 = vmatpush3.msra.mxu0 %v474_v48  ;;  %2646 = vmatpush3.msra.mxu1 %v506_v49  ;;  %v540_v45 = vld [vmem:[%s4568_s1 + $0x1020] sm:$0xff]  ;;  %v555_v48 = vld [vmem:[%s4568_s1 + $0x1098] sm:$0xff] }
 0x10e   :  { %2612 = vmatprep.subr.mxu0 %v489_v50  ;;  %2647 = vmatprep.subr.mxu1 %v521_v52  ;;  %v572_v46 = vld [vmem:[%s4568_s1 + $0x1120] sm:$0xff]  ;;  %v587_v49 = vld [vmem:[%s4568_s1 + $0x1198] sm:$0xff] }
 0x10f   :  { %2613 = vmatpush3.msra.mxu0 %v473_v54  ;;  %2648 = vmatpush3.msra.mxu1 %v505_v55  ;;  %v539_v50 = vld [vmem:[%s4568_s1 + $0x1018] sm:$0xff]  ;;  %v586_v54 = vld [vmem:[%s4568_s1 + $0x1190] sm:$0xff]  ;;  %v759_v55 = vrot.slane %v23_v40, %v2921_v51 }
 0x110   :  { %2614 = vmatprep.subr.mxu0 %v488_v56  ;;  %2649 = vmatprep.subr.mxu1 %v520_v57  ;;  %v571_v52 = vld [vmem:[%s4568_s1 + $0x1118] sm:$0xff]  ;;  %v538_v56 = vld [vmem:[%s4568_s1 + $0x1010] sm:$0xff] }
 0x111   :  { %2615 = vmatpush3.msra.mxu0 %v472_v59  ;;  %1849 = vmatprep.mubr.f32.mxu0 %v750_v58  ;;  %v570_v57 = vld [vmem:[%s4568_s1 + $0x1110] sm:$0xff]  ;;  %v553_v59 = vld [vmem:[%s4568_s1 + $0x1088] sm:$0xff] }
 0x112   :  { %2650 = vmatpush3.msra.mxu1 %v504_v60  ;;  %1850 = vmatmul.mubr.f32.vlgmr.msra.gmra.mxu0 %v742_v47  ;;  %v752_v47 = vcombine.high %v23_v40, %v23_v40  ;;  %v585_v60 = vld [vmem:[%s4568_s1 + $0x1188] sm:$0xff] }
 0x113   :  { %1919 = vmatprep.mubr.f32.mxu1 %v751_v61  ;;  %2654 = vmatprep.subr.mxu0 %v567_v62  ;;  %v537_v61 = vld [vmem:[%s4568_s1 + $0x1008] sm:$0xff]  ;;  %v552_v62 = vld [vmem:[%s4568_s1 + $0x1080] sm:$0xff] }
 0x114   :  { %2689 = vmatprep.subr.mxu1 %v599_v63  ;;  %1920 = vmatmul.mubr.f32.vlgmr.msra.gmra.mxu1 %v749_v53  ;;  %v554_v53 = vld [vmem:[%s4568_s1 + $0x1090] sm:$0xff]  ;;  %v766_v58 = vrot.slane %v752_v47, %v2921_v51  ;;  %v569_v51 = vld [vmem:[%s4568_s1 + $0x1108] sm:$0xff]  ;;  %v584_v63 = vld [vmem:[%s4568_s1 + $0x1180] sm:$0xff] }
 0x115   :  { %2655 = vmatpush3.msra.mxu0 %v551_v0  ;;  %2690 = vmatpush3.msra.mxu1 %v583_v1  ;;  %v767_v0 = vcombine.high %v759_v55, %v759_v55  ;;  %v536_v1 = vld [vmem:[%s4568_s1 + $0x1000] sm:$0xff] }
 0x116   :  { %2656 = vmatprep.subr.mxu0 %v566_v2  ;;  %2691 = vmatprep.subr.mxu1 %v598_v3  ;;  %v768_v2 = vcombine.high %v766_v58, %v766_v58  ;;  %v568_v3 = vld [vmem:[%s4568_s1 + $0x1100] sm:$0xff]  ;;  %s2762_s1 = smov [#allocation2]  }
 0x117   :  { %2657 = vmatpush3.msra.mxu0 %v550_v4  ;;  %2692 = vmatpush3.msra.mxu1 %v582_v5  ;;  %v2126_v4 = vpop.f32.mrf.mxu0  ;;  %v2161_v5 = vpop.f32.mrf.mxu1 }
 0x118   :  { %2658 = vmatprep.subr.mxu0 %v565_v6  ;;  %2693 = vmatprep.subr.mxu1 %v597_v7 }
 0x119   :  { %2659 = vmatpush3.msra.mxu0 %v549_v8  ;;  %2694 = vmatpush3.msra.mxu1 %v581_v9  ;;  %v2127_v6 = vpop.f32.mrf.mxu0  ;;  %v2093_v9 = vld [vmem:[%s4569_s2] ss:$0 sm:$0xff]  ;;  %s2085_s2 = sshll.u32 %s2762_s1, 4  ;;  %s2086_s2 = int_to_ptr.vmem [resolvable:$true] %s2085_s2 }
 0x11a   :  { %2660 = vmatprep.subr.mxu0 %v564_v10  ;;  %2695 = vmatprep.subr.mxu1 %v596_v11  ;;  %v2128_v8 = vadd.f32 %v2127_v6, %v2126_v4  ;;  %v2162_v10 = vpop.f32.mrf.mxu1  ;;  %s2739_s21 = scalar_lea.vmem %s2086_s2, 32  ;;  %p2744_p1 = scmp.lt.s32.totalorder %s2086_s2, %s2086_s2 }
 0x11b   :  { %2661 = vmatpush3.msra.mxu0 %v548_v12  ;;  %2696 = vmatpush3.msra.mxu1 %v580_v13  ;;  %v2196_v7 = vpop.f32.mrf.mxu0  ;;  %p2740_p0 = scmp.ne.s32.totalorder %s2086_s2, %s2739_s21  ;;  %p2745_p2 = scmp.lt.s32.totalorder %s2739_s21, %s2739_s21 }
 0x11c   :  { %2662 = vmatprep.subr.mxu0 %v563_v14  ;;  %2697 = vmatprep.subr.mxu1 %v595_v15  ;;  %v2231_v11 = vpop.f32.mrf.mxu1  ;;  %v872_v13 = vadd.f32 %v2128_v8, %v2093_v9  ;;  %v2163_v14 = vadd.f32 %v2162_v10, %v2161_v5 }
 0x11d   :  { %2663 = vmatpush3.msra.mxu0 %v547_v16  ;;  %2698 = vmatpush3.msra.mxu1 %v579_v17  ;;  %v2197_v12 = vpop.f32.mrf.mxu0  ;;  %p2746_p3 = por %p2745_p2, %p2744_p1 }
 0x11e   :  { %2664 = vmatprep.subr.mxu0 %v562_v18  ;;  %2699 = vmatprep.subr.mxu1 %v594_v19  ;;  %v2198_v16 = vadd.f32 %v2197_v12, %v2196_v7  ;;  %v2232_v17 = vpop.f32.mrf.mxu1  ;;  %v942_v18 = vadd.f32 %v2163_v14, %v872_v13 }
 0x11f   :  { %2665 = vmatpush3.msra.mxu0 %v546_v20  ;;  %2700 = vmatpush3.msra.mxu1 %v578_v21  ;;  %p2747_p4 = pnand %p2746_p3, %p2740_p0 }
 0x120   :  { %2666 = vmatprep.subr.mxu0 %v561_v22  ;;  %2701 = vmatprep.subr.mxu1 %v593_v23  ;;  %v1012_v21 = vadd.f32 %v2198_v16, %v942_v18  ;;  %v2233_v22 = vadd.f32 %v2232_v17, %v2231_v11 }
 0x121   :  { %2667 = vmatpush3.msra.mxu0 %v545_v24  ;;  %2702 = vmatpush3.msra.mxu1 %v577_v25 }
 0x122   :  { %2668 = vmatprep.subr.mxu0 %v560_v26  ;;  %2703 = vmatprep.subr.mxu1 %v592_v27  ;;  %v1082_v26 = vadd.f32 %v2233_v22, %v1012_v21 }
 0x123   :  { %2669 = vmatpush3.msra.mxu0 %v544_v28  ;;  %2704 = vmatpush3.msra.mxu1 %v576_v29 }
 0x124   :  { %2670 = vmatprep.subr.mxu0 %v559_v30  ;;  %2705 = vmatprep.subr.mxu1 %v591_v31 }
 0x125   :  { %2671 = vmatpush3.msra.mxu0 %v543_v32  ;;  %2706 = vmatpush3.msra.mxu1 %v575_v33 }
 0x126   :  { %2672 = vmatprep.subr.mxu0 %v558_v34  ;;  %2707 = vmatprep.subr.mxu1 %v590_v35 }
 0x127   :  { %2673 = vmatpush3.msra.mxu0 %v542_v36  ;;  %2708 = vmatpush3.msra.mxu1 %v574_v37 }
 0x128   :  { %2674 = vmatprep.subr.mxu0 %v557_v38  ;;  %2709 = vmatprep.subr.mxu1 %v589_v39  ;;  %v2266_v15 = vpop.f32.mrf.mxu0 }
 0x129   :  { %2675 = vmatpush3.msra.mxu0 %v541_v41  ;;  %2710 = vmatpush3.msra.mxu1 %v573_v42 }
 0x12a   :  { %2676 = vmatprep.subr.mxu0 %v556_v43  ;;  %2711 = vmatprep.subr.mxu1 %v588_v44  ;;  %v2301_v19 = vpop.f32.mrf.mxu1  ;;  %v2267_v20 = vpop.f32.mrf.mxu0 }
 0x12b   :  { %2677 = vmatpush3.msra.mxu0 %v540_v45  ;;  %2712 = vmatpush3.msra.mxu1 %v572_v46  ;;  %v2268_v24 = vadd.f32 %v2267_v20, %v2266_v15 }
 0x12c   :  { %2678 = vmatprep.subr.mxu0 %v555_v48  ;;  %2713 = vmatprep.subr.mxu1 %v587_v49  ;;  %v2302_v25 = vpop.f32.mrf.mxu1 }
 0x12d   :  { %2679 = vmatpush3.msra.mxu0 %v539_v50  ;;  %2714 = vmatpush3.msra.mxu1 %v571_v52  ;;  %v1152_v29 = vadd.f32 %v2268_v24, %v1082_v26  ;;  %v2303_v30 = vadd.f32 %v2302_v25, %v2301_v19 }
 0x12e   :  { %2680 = vmatprep.subr.mxu0 %v554_v53  ;;  %2715 = vmatprep.subr.mxu1 %v586_v54 }
 0x12f   :  { %2681 = vmatpush3.msra.mxu0 %v538_v56  ;;  %2716 = vmatpush3.msra.mxu1 %v570_v57  ;;  %v1222_v34 = vadd.f32 %v2303_v30, %v1152_v29 }
 0x130   :  { %2682 = vmatprep.subr.mxu0 %v553_v59  ;;  %2717 = vmatprep.subr.mxu1 %v585_v60 }
 0x131   :  { %2683 = vmatpush3.msra.mxu0 %v537_v61  ;;  %2718 = vmatpush3.msra.mxu1 %v569_v51 }
 0x132   :  { %2684 = vmatprep.subr.mxu0 %v552_v62  ;;  %2719 = vmatprep.subr.mxu1 %v584_v63 }
 0x133   :  { %2685 = vmatpush3.msra.mxu0 %v536_v1  ;;  %1989 = vmatprep.mubr.f32.mxu0 %v767_v0 }
 0x134   :  { %2720 = vmatpush3.msra.mxu1 %v568_v3  ;;  %2059 = vmatprep.mubr.f32.mxu1 %v768_v2 }
 0x135   :  { %1990 = vmatmul.mubr.f32.vlgmr.msra.gmra.mxu0 %v759_v55  ;;  %2060 = vmatmul.mubr.f32.vlgmr.msra.gmra.mxu1 %v766_v58 }
 0x14a   :  { %v2336_v23 = vpop.f32.mrf.mxu0 }
 0x14c   :  { %v2371_v27 = vpop.f32.mrf.mxu1  ;;  %v2337_v28 = vpop.f32.mrf.mxu0 }
 0x14d   :  { %v2338_v32 = vadd.f32 %v2337_v28, %v2336_v23 }
 0x14e   :  { %v2372_v33 = vpop.f32.mrf.mxu1 }
 0x14f   :  { %v1292_v37 = vadd.f32 %v2338_v32, %v1222_v34  ;;  %v2373_v38 = vadd.f32 %v2372_v33, %v2371_v27 }
 0x151   :  { %v1362_v42 = vadd.f32 %v2373_v38, %v1292_v37 }
 0x16c   :  { %v2406_v31 = vpop.f32.mrf.mxu0 }
 0x16e   :  { %v2441_v35 = vpop.f32.mrf.mxu1  ;;  %v2407_v36 = vpop.f32.mrf.mxu0 }
 0x16f   :  { %v2408_v40 = vadd.f32 %v2407_v36, %v2406_v31 }
 0x170   :  { %v2442_v41 = vpop.f32.mrf.mxu1 }
 0x171   :  { %v1432_v45 = vadd.f32 %v2408_v40, %v1362_v42  ;;  %v2443_v46 = vadd.f32 %v2442_v41, %v2441_v35 }
 0x173   :  { %v1502_v50 = vadd.f32 %v2443_v46, %v1432_v45 }
 0x18e   :  { %v2476_v39 = vpop.f32.mrf.mxu0 }
 0x190   :  { %v2511_v43 = vpop.f32.mrf.mxu1  ;;  %v2477_v44 = vpop.f32.mrf.mxu0 }
 0x191   :  { %v2478_v48 = vadd.f32 %v2477_v44, %v2476_v39 }
 0x192   :  { %v2512_v49 = vpop.f32.mrf.mxu1 }
 0x193   :  { %v1572_v54 = vadd.f32 %v2478_v48, %v1502_v50  ;;  %v2513_v55 = vadd.f32 %v2512_v49, %v2511_v43 }
 0x195   :  { %v1642_v59 = vadd.f32 %v2513_v55, %v1572_v54 }
 0x1b0   :  { %v2546_v47 = vpop.f32.mrf.mxu0 }
 0x1b2   :  { %v2581_v52 = vpop.f32.mrf.mxu1  ;;  %v2547_v53 = vpop.f32.mrf.mxu0 }
 0x1b3   :  { %v2548_v57 = vadd.f32 %v2547_v53, %v2546_v47 }
 0x1b4   :  { %v2582_v58 = vpop.f32.mrf.mxu1 }
 0x1b5   :  { %v1712_v51 = vadd.f32 %v2548_v57, %v1642_v59  ;;  %v2583_v62 = vadd.f32 %v2582_v58, %v2581_v52 }
 0x1b7   :  { %v1782_v1 = vadd.f32 %v2583_v62, %v1712_v51 }
 0x1d2   :  { %v2616_v56 = vpop.f32.mrf.mxu0 }
 0x1d4   :  { %v2651_v60 = vpop.f32.mrf.mxu1  ;;  %v2617_v61 = vpop.f32.mrf.mxu0 }
 0x1d5   :  { %v2618_v63 = vadd.f32 %v2617_v61, %v2616_v56 }
 0x1d6   :  { %v2652_v0 = vpop.f32.mrf.mxu1 }
 0x1d7   :  { %v1852_v2 = vadd.f32 %v2618_v63, %v1782_v1  ;;  %v2653_v3 = vadd.f32 %v2652_v0, %v2651_v60 }
 0x1d9   :  { %v1922_v8 = vadd.f32 %v2653_v3, %v1852_v2 }
 0x1f5   :  { %v2686_v4 = vpop.f32.mrf.mxu0  ;;  %v2721_v5 = vpop.f32.mrf.mxu1 }
 0x1f7   :  { %v2687_v6 = vpop.f32.mrf.mxu0  ;;  %v2722_v7 = vpop.f32.mrf.mxu1 }
 0x1f8   :  { %v2688_v9 = vadd.f32 %v2687_v6, %v2686_v4  ;;  %v2723_v11 = vadd.f32 %v2722_v7, %v2721_v5 }
 0x1fa   :  { %v1992_v10 = vadd.f32 %v2688_v9, %v1922_v8 }
 0x1fc   :  { %v2062_v12 = vadd.f32 %v2723_v11, %v1992_v10 }
 0x1fe   :  { %v2066_v13 = vsel %vm2065_vm0, %v2062_v12, -inf }
 0x1ff   :  { %2067 = vmax.xlane.f32.xlu0 %v2066_v13 }
 0x288   :  { %v2068_v14 = vpop.xlane.xlu0 %2067 }
 0x289   :  { %v2069_v15 = vsub.f32 %v2062_v12, %v2068_v14 }
 0x28b   :  { %v2070_v16 = vmul.f32 1.442695, %v2069_v15 }
 0x28d   :  { %2735 = vpow2.f32 %v2070_v16 }
 0x29a   :  { %v2736_v17 = vpop.eup %2735 }
 0x29b   :  { %v2072_v18 = vsel %vm2065_vm0, %v2736_v17, 0.0 }
 0x29c   :  { %2073 = vadd.xlane.f32.xlu0 %v2072_v18 }
 0x325   :  { %v2074_v19 = vpop.xlane.xlu0 %2073 }
 0x326   :  { %2737 = vlog2.f32 %v2074_v19 }
 0x333   :  { %v2738_v20 = vpop.eup %2737 }
 0x334   :  { %v2076_v21 = vmul.f32 0.6931472, %v2738_v20 }
 0x336   :  { %v2077_v22 = vsub.f32 %v2069_v15, %v2076_v21 }
 0x338   :  { %2078 = vst.msk [vmem:[#allocation2] sm:$0x3] %vm2065_vm0, %v2077_v22 }
 0x339   :  { %2750 = shalt.err (!%p2747_p4)
}
 0x33a   :  { %2088 = dma.vmem_to_hbm [thread:$0]  %s2086_s2, 32, %s4570_s3, [#allocation3]  }
 0x33b   :  { %2759 = dma.done.wait [#allocation3], 32  }
 0x33c   :  { %2760 = vsyncadd [#allocation3], 4294967264 }
 0x33d   :  { %2092 = vsyncpa [#allocation3], 1 }

</bundles_post_ra>
